<compile_context>
chip_gen: v6e
topology: v6e:2x2x1
jax: 0.10.0
libtpu: 0.0.40
codegen_flags: <defaults>
</compile_context>

<pallas_src>
import jax
import jax.numpy as jnp
from jax.experimental import pallas as pl
from jax.experimental.pallas import tpu as pltpu

NEG_SLOPE = 0.01                      # nn.LeakyReLU() default
_VMEM_LIMIT = 48 * 1024 * 1024        # stays under v7x's 64 MiB/TC; plenty on v5e/v6e


def _leaky_relu(x):
    return jnp.where(x > 0, x, NEG_SLOPE * x)


def _round_up(x, m):
    return (x + m - 1) // m * m


def _pick_rows_tile(m, cap):
    """Row tile: multiple of 8 (or the full extent), <= cap, and giving >= 2 grid
    steps whenever m >= 16 so both v7x TensorCores get work ("parallel" axis)."""
    if m <= 8:
        return m
    return max(8, min(cap, _round_up(pl.cdiv(m, 2), 8)))


# ---------------------------------------------------------------------------
# Fused (M, K) @ (K, Cout) + bias + LeakyReLU kernel (used by every conv layer)
# ---------------------------------------------------------------------------
def _mm_bias_lrelu_kernel(x_ref, w_ref, b_ref, o_ref):
    acc = jnp.dot(x_ref[...], w_ref[...], preferred_element_type=jnp.float32)
    o_ref[...] = _leaky_relu(acc + b_ref[...]).astype(o_ref.dtype)


def _mm_bias_lrelu(x, w, b, *, rows_cap):
    """bf16 in, f32 MXU accumulation, bf16 out. Single folded-K matmul per block."""
    M, K = x.shape
    Cout = w.shape[-1]
    TM = _pick_rows_tile(M, rows_cap)
    grid = (pl.cdiv(M, TM),)

    return pl.pallas_call(
        _mm_bias_lrelu_kernel,
        out_shape=jax.ShapeDtypeStruct((M, Cout), jnp.bfloat16),
        grid=grid,
        in_specs=[pl.BlockSpec((TM, K), lambda i: (i, 0)),
                  pl.BlockSpec((K, Cout), lambda i: (0, 0)),    # VMEM-resident weight
                  pl.BlockSpec((1, Cout), lambda i: (0, 0))],   # VMEM-resident bias
        out_specs=pl.BlockSpec((TM, Cout), lambda i: (i, 0)),
        compiler_params=pltpu.CompilerParams(
            dimension_semantics=("parallel",),
            vmem_limit_bytes=_VMEM_LIMIT),
        cost_estimate=pl.CostEstimate(
            flops=2 * M * K * Cout,
            transcendentals=0,
            bytes_accessed=M * K * 2 + K * Cout * 2 + Cout * 4 + M * Cout * 2),
    )(x, w, b)


# ---------------------------------------------------------------------------
# Conv2d(k=3, stride=2, pad=1) + (identity norm) + LeakyReLU
# ---------------------------------------------------------------------------
def _im2col_3x3_s2(x_nhwc):
    """(N, H, W, C) -> (N*Ho*Wo, 9*C) stride-2/pad-1 patches, K ordered (dy, dx, cin).

    Pure layout work (pad + strided slices + concat) is left to XLA per the perf
    review (wrapper-side im2col / pre-shifted planes); all FLOPs stay in Pallas.
    """
    N, H, W, C = x_nhwc.shape
    Ho, Wo = H // 2, W // 2
    xp = jnp.pad(x_nhwc, ((0, 0), (1, 1), (1, 1), (0, 0)))
    taps = [xp[:, dy:dy + 2 * Ho:2, dx:dx + 2 * Wo:2, :]
            for dy in range(3) for dx in range(3)]
    patches = jnp.concatenate(taps, axis=-1).reshape(N * Ho * Wo, 9 * C)
    return patches, (N, Ho, Wo)


def conv_block(x_nhwc, w_folded, b, *, rows_cap):
    patches, (N, Ho, Wo) = _im2col_3x3_s2(x_nhwc)
    Cout = w_folded.shape[-1]
    out = _mm_bias_lrelu(patches, w_folded, b, rows_cap=rows_cap)
    return out.reshape(N, Ho, Wo, Cout)


# ---------------------------------------------------------------------------
# Fused FC tail: fc1 + label-linear + concat + fc2 + sigmoid in one kernel
# ---------------------------------------------------------------------------
def _fc_tail_kernel(x_ref, lab_ref, w1_ref, b1_ref, wl_ref, bl_ref,
                    w2x_ref, w2l_ref, b2_ref, o_ref):
    h1 = _leaky_relu(jnp.dot(x_ref[...], w1_ref[...],
                             preferred_element_type=jnp.float32) + b1_ref[...])
    hl = _leaky_relu(jnp.dot(lab_ref[...], wl_ref[...],
                             preferred_element_type=jnp.float32) + bl_ref[...])
    # concat([h1, hl]) @ W2 + b2 expressed as two row-vector reductions (fc2 has 1 unit)
    logits = (jnp.sum(h1 * w2x_ref[...], axis=-1, keepdims=True)
              + jnp.sum(hl * w2l_ref[...], axis=-1, keepdims=True)
              + b2_ref[...])
    o_ref[...] = jax.nn.sigmoid(logits)


def fc_tail(x_flat, label, params):
    N, Kx = x_flat.shape
    TM = _pick_rows_tile(N, 256)
    grid = (pl.cdiv(N, TM),)

    bytes_accessed = (N * Kx * 2 + N * 10 * 2 + Kx * 512 * 2 + 10 * 512 * 2
                      + 4 * (512 + 512 + 1 + 2 * 512) + N * 4)

    return pl.pallas_call(
        _fc_tail_kernel,
        out_shape=jax.ShapeDtypeStruct((N, 1), jnp.float32),
        grid=grid,
        in_specs=[
            pl.BlockSpec((TM, Kx), lambda i: (i, 0)),
            pl.BlockSpec((TM, 10), lambda i: (i, 0)),
            pl.BlockSpec((Kx, 512), lambda i: (0, 0)),
            pl.BlockSpec((1, 512), lambda i: (0, 0)),
            pl.BlockSpec((10, 512), lambda i: (0, 0)),
            pl.BlockSpec((1, 512), lambda i: (0, 0)),
            pl.BlockSpec((1, 512), lambda i: (0, 0)),
            pl.BlockSpec((1, 512), lambda i: (0, 0)),
            pl.BlockSpec((1, 1), lambda i: (0, 0)),
        ],
        out_specs=pl.BlockSpec((TM, 1), lambda i: (i, 0)),
        compiler_params=pltpu.CompilerParams(
            dimension_semantics=("parallel",),
            vmem_limit_bytes=_VMEM_LIMIT),
        cost_estimate=pl.CostEstimate(
            flops=2 * N * (Kx * 512 + 10 * 512 + 1024),
            transcendentals=N,
            bytes_accessed=bytes_accessed),
    )(x_flat, label,
      params["w_fc1"], params["b_fc1"],
      params["w_label"], params["b_label"],
      params["w_fc2_x"], params["w_fc2_l"], params["b_fc2"])


# ---------------------------------------------------------------------------
# Deterministic synthetic parameters (weights bf16, biases f32)
# ---------------------------------------------------------------------------
def init_params(key):
    keys = iter(jax.random.split(key, 16))
    params = {}

    # Conv weights stored K-folded as (9*Cin, Cout), K ordered (dy, dx, cin).
    # NOTE: a real PyTorch checkpoint (Cout, Cin, kh, kw) maps via
    #   w.permute(2, 3, 1, 0).reshape(9 * Cin, Cout)
    conv_dims = [(3, 64), (64, 128), (128, 256), (256, 512)]
    for i, (cin, cout) in enumerate(conv_dims, start=1):
        bound = 1.0 / (9 * cin) ** 0.5
        w = jax.random.uniform(next(keys), (3, 3, cin, cout), jnp.float32, -bound, bound)
        b = jax.random.uniform(next(keys), (1, cout), jnp.float32, -bound, bound)
        params[f"w_step{i}"] = w.reshape(9 * cin, cout).astype(jnp.bfloat16)
        params[f"b_step{i}"] = b

    def linear(fin, fout):
        bound = 1.0 / fin ** 0.5
        w = jax.random.uniform(next(keys), (fin, fout), jnp.float32, -bound, bound)
        b = jax.random.uniform(next(keys), (1, fout), jnp.float32, -bound, bound)
        return w, b

    w, b = linear(10, 512)
    params["w_label"], params["b_label"] = w.astype(jnp.bfloat16), b

    # fc1 rows stored in NHWC-flatten order (h, w, c) so the conv4 output can be fed
    # without any transpose.  A real PyTorch checkpoint (fc1.weight: (512, 2048), input
    # order (c, h, w)) maps via
    #   fc1.weight.T.reshape(512, 2, 2, 512).transpose(1, 2, 0, 3).reshape(2048, 512)
    w, b = linear(512 * 2 * 2, 512)
    params["w_fc1"], params["b_fc1"] = w.astype(jnp.bfloat16), b

    # fc2 (1024 -> 1) split so concat([fc1(x), label_branch]) happens inside the kernel
    # (matches torch.cat((x, label), dim=1): conv features first, label branch second).
    w, b = linear(1024, 1)
    params["w_fc2_x"] = w[:512, 0].reshape(1, 512)      # f32 row vectors
    params["w_fc2_l"] = w[512:, 0].reshape(1, 512)
    params["b_fc2"] = b.reshape(1, 1)
    return params


# ---------------------------------------------------------------------------
# Full forward pass
# ---------------------------------------------------------------------------
# Per-layer row-tile caps (rows = N*Ho*Wo): bigger effective batch tiles for the
# deeper layers where M per sample shrinks (feedback: TB>=32 / >=64-128 for layers 3/4).
_CONV_ROW_CAPS = (2048, 1024, 512, 512)


def discriminator_forward(params, x_nchw, label):
    N = x_nchw.shape[0]
    x = jnp.transpose(x_nchw, (0, 2, 3, 1)).astype(jnp.bfloat16)   # NCHW -> NHWC once

    x = conv_block(x, params["w_step1"], params["b_step1"], rows_cap=_CONV_ROW_CAPS[0])  # (N,16,16,64)
    x = conv_block(x, params["w_step2"], params["b_step2"], rows_cap=_CONV_ROW_CAPS[1])  # (N,8,8,128)
    x = conv_block(x, params["w_step3"], params["b_step3"], rows_cap=_CONV_ROW_CAPS[2])  # (N,4,4,256)
    x = conv_block(x, params["w_step4"], params["b_step4"], rows_cap=_CONV_ROW_CAPS[3])  # (N,2,2,512)

    # NHWC flatten; w_fc1 rows are stored in matching (h, w, c) order, so no
    # NHWC->NCHW transpose / HBM round trip is needed before the FC tail.
    x_flat = x.reshape(N, 512 * 2 * 2)

    return fc_tail(x_flat, label.astype(jnp.bfloat16), params)     # (N, 1) f32


if __name__ == "__main__":
    key = jax.random.PRNGKey(0)
    k_params, k_x, k_label = jax.random.split(key, 3)

    params = init_params(k_params)

    # Architecture implies 32x32 RGB input (four stride-2 convs -> 2x2x512 = fc_num_features)
    batch = 2
    x = jax.random.normal(k_x, (batch, 3, 32, 32), dtype=jnp.float32)          # NCHW
    label = jax.nn.one_hot(
        jax.random.randint(k_label, (batch,), 0, 10), 10, dtype=jnp.float32)   # (N, 10)

    fwd = jax.jit(discriminator_forward)
    out = jax.block_until_ready(fwd(params, x, label))

    assert out.shape == (batch, 1)
    assert bool(jnp.all(jnp.isfinite(out)))
    assert bool(jnp.all((out >= 0.0) & (out <= 1.0)))
    print("KERNEL_OK")
</pallas_src>

<mosaic_0001>
module attributes {stable_mosaic.version = 11 : i64} {
  func.func @_mm_bias_lrelu_kernel(%arg0: i32, %arg1: memref<256x27xbf16, #tpu.memory_space<vmem>>, %arg2: memref<27x64xbf16, #tpu.memory_space<vmem>>, %arg3: memref<1x64xf32, #tpu.memory_space<vmem>>, %arg4: memref<256x64xbf16, #tpu.memory_space<vmem>>) attributes {dimension_semantics = [#tpu.dimension_semantics<parallel>], iteration_bounds = array<i64: 2>, scalar_prefetch = 0 : i64, scratch_operands = 0 : i64, tpu.core_type = #tpu.core_type<tc>, window_params = [{transform_indices = @transform_0, window_bounds = array<i64: 256, 27>}, {pipeline_mode = #tpu.pipeline_mode<synchronous>, transform_indices = @transform_1, window_bounds = array<i64: 27, 64>}, {pipeline_mode = #tpu.pipeline_mode<synchronous>, transform_indices = @transform_2, window_bounds = array<i64: 1, 64>}, {transform_indices = @transform_3, window_bounds = array<i64: 256, 64>}]} {
    %c0 = arith.constant 0 : index
    %c0_0 = arith.constant 0 : index
    %0 = vector.load %arg1[%c0, %c0_0] : memref<256x27xbf16, #tpu.memory_space<vmem>>, vector<256x27xbf16>
    %c0_1 = arith.constant 0 : index
    %c0_2 = arith.constant 0 : index
    %1 = vector.load %arg2[%c0_1, %c0_2] : memref<27x64xbf16, #tpu.memory_space<vmem>>, vector<27x64xbf16>
    %cst = arith.constant dense<0.000000e+00> : vector<256x64xf32>
    %2 = tpu.matmul %0, %1, %cst {dimension_numbers = #tpu.dot_dimension_numbers<[1], [0], [0], [1], [0, 0, 1, 1], [], []>} : vector<256x27xbf16>, vector<27x64xbf16>, vector<256x64xf32> -> vector<256x64xf32>
    %c0_3 = arith.constant 0 : index
    %c0_4 = arith.constant 0 : index
    %3 = vector.load %arg3[%c0_3, %c0_4] : memref<1x64xf32, #tpu.memory_space<vmem>>, vector<1x64xf32>
    %4 = vector.broadcast %3 : vector<1x64xf32> to vector<256x64xf32>
    %5 = arith.addf %2, %4 : vector<256x64xf32>
    %cst_5 = arith.constant 0.000000e+00 : f32
    %6 = vector.broadcast %cst_5 : f32 to vector<256x64xf32>
    %7 = arith.cmpf ogt, %5, %6 : vector<256x64xf32>
    %cst_6 = arith.constant 0.00999999977 : f32
    %8 = vector.broadcast %cst_6 : f32 to vector<256x64xf32>
    %9 = arith.mulf %8, %5 : vector<256x64xf32>
    %10 = arith.select %7, %5, %9 : vector<256x64xi1>, vector<256x64xf32>
    %11 = arith.truncf %10 : vector<256x64xf32> to vector<256x64xbf16>
    %c0_7 = arith.constant 0 : index
    %c0_8 = arith.constant 0 : index
    %12 = vector.load %arg4[%c0_7, %c0_8] : memref<256x64xbf16, #tpu.memory_space<vmem>>, vector<256x64xbf16>
    tpu.vector_store %arg4[%c0_7, %c0_8], %11 {strides = array<i32>} : memref<256x64xbf16, #tpu.memory_space<vmem>>, vector<256x64xbf16>,
    return
  }
  func.func @transform_0(%arg0: i32) -> (i32, i32) {
    %c0_i32 = arith.constant 0 : i32
    %c0_i32_0 = arith.constant 0 : i32
    return %arg0, %c0_i32 : i32, i32
  }
  func.func @transform_1(%arg0: i32) -> (i32, i32) {
    %c0_i32 = arith.constant 0 : i32
    %c0_i32_0 = arith.constant 0 : i32
    %c0_i32_1 = arith.constant 0 : i32
    return %c0_i32, %c0_i32_0 : i32, i32
  }
  func.func @transform_2(%arg0: i32) -> (i32, i32) {
    %c0_i32 = arith.constant 0 : i32
    %c0_i32_0 = arith.constant 0 : i32
    %c0_i32_1 = arith.constant 0 : i32
    return %c0_i32, %c0_i32_0 : i32, i32
  }
  func.func @transform_3(%arg0: i32) -> (i32, i32) {
    %c0_i32 = arith.constant 0 : i32
    %c0_i32_0 = arith.constant 0 : i32
    return %arg0, %c0_i32 : i32, i32
  }
}

module attributes {stable_mosaic.version = 11 : i64} {
  func.func @_mm_bias_lrelu_kernel(%arg0: i32, %arg1: memref<64x576xbf16, #tpu.memory_space<vmem>>, %arg2: memref<576x128xbf16, #tpu.memory_space<vmem>>, %arg3: memref<1x128xf32, #tpu.memory_space<vmem>>, %arg4: memref<64x128xbf16, #tpu.memory_space<vmem>>) attributes {dimension_semantics = [#tpu.dimension_semantics<parallel>], iteration_bounds = array<i64: 2>, scalar_prefetch = 0 : i64, scratch_operands = 0 : i64, tpu.core_type = #tpu.core_type<tc>, window_params = [{transform_indices = @transform_0, window_bounds = array<i64: 64, 576>}, {pipeline_mode = #tpu.pipeline_mode<synchronous>, transform_indices = @transform_1, window_bounds = array<i64: 576, 128>}, {pipeline_mode = #tpu.pipeline_mode<synchronous>, transform_indices = @transform_2, window_bounds = array<i64: 1, 128>}, {transform_indices = @transform_3, window_bounds = array<i64: 64, 128>}]} {
    %c0 = arith.constant 0 : index
    %c0_0 = arith.constant 0 : index
    %0 = vector.load %arg1[%c0, %c0_0] : memref<64x576xbf16, #tpu.memory_space<vmem>>, vector<64x576xbf16>
    %c0_1 = arith.constant 0 : index
    %c0_2 = arith.constant 0 : index
    %1 = vector.load %arg2[%c0_1, %c0_2] : memref<576x128xbf16, #tpu.memory_space<vmem>>, vector<576x128xbf16>
    %cst = arith.constant dense<0.000000e+00> : vector<64x128xf32>
    %2 = tpu.matmul %0, %1, %cst {dimension_numbers = #tpu.dot_dimension_numbers<[1], [0], [0], [1], [0, 0, 1, 1], [], []>} : vector<64x576xbf16>, vector<576x128xbf16>, vector<64x128xf32> -> vector<64x128xf32>
    %c0_3 = arith.constant 0 : index
    %c0_4 = arith.constant 0 : index
    %3 = vector.load %arg3[%c0_3, %c0_4] : memref<1x128xf32, #tpu.memory_space<vmem>>, vector<1x128xf32>
    %4 = vector.broadcast %3 : vector<1x128xf32> to vector<64x128xf32>
    %5 = arith.addf %2, %4 : vector<64x128xf32>
    %cst_5 = arith.constant 0.000000e+00 : f32
    %6 = vector.broadcast %cst_5 : f32 to vector<64x128xf32>
    %7 = arith.cmpf ogt, %5, %6 : vector<64x128xf32>
    %cst_6 = arith.constant 0.00999999977 : f32
    %8 = vector.broadcast %cst_6 : f32 to vector<64x128xf32>
    %9 = arith.mulf %8, %5 : vector<64x128xf32>
    %10 = arith.select %7, %5, %9 : vector<64x128xi1>, vector<64x128xf32>
    %11 = arith.truncf %10 : vector<64x128xf32> to vector<64x128xbf16>
    %c0_7 = arith.constant 0 : index
    %c0_8 = arith.constant 0 : index
    %12 = vector.load %arg4[%c0_7, %c0_8] : memref<64x128xbf16, #tpu.memory_space<vmem>>, vector<64x128xbf16>
    tpu.vector_store %arg4[%c0_7, %c0_8], %11 {strides = array<i32>} : memref<64x128xbf16, #tpu.memory_space<vmem>>, vector<64x128xbf16>,
    return
  }
  func.func @transform_0(%arg0: i32) -> (i32, i32) {
    %c0_i32 = arith.constant 0 : i32
    %c0_i32_0 = arith.constant 0 : i32
    return %arg0, %c0_i32 : i32, i32
  }
  func.func @transform_1(%arg0: i32) -> (i32, i32) {
    %c0_i32 = arith.constant 0 : i32
    %c0_i32_0 = arith.constant 0 : i32
    %c0_i32_1 = arith.constant 0 : i32
    return %c0_i32, %c0_i32_0 : i32, i32
  }
  func.func @transform_2(%arg0: i32) -> (i32, i32) {
    %c0_i32 = arith.constant 0 : i32
    %c0_i32_0 = arith.constant 0 : i32
    %c0_i32_1 = arith.constant 0 : i32
    return %c0_i32, %c0_i32_0 : i32, i32
  }
  func.func @transform_3(%arg0: i32) -> (i32, i32) {
    %c0_i32 = arith.constant 0 : i32
    %c0_i32_0 = arith.constant 0 : i32
    return %arg0, %c0_i32 : i32, i32
  }
}

module attributes {stable_mosaic.version = 11 : i64} {
  func.func @_mm_bias_lrelu_kernel(%arg0: i32, %arg1: memref<16x1152xbf16, #tpu.memory_space<vmem>>, %arg2: memref<1152x256xbf16, #tpu.memory_space<vmem>>, %arg3: memref<1x256xf32, #tpu.memory_space<vmem>>, %arg4: memref<16x256xbf16, #tpu.memory_space<vmem>>) attributes {dimension_semantics = [#tpu.dimension_semantics<parallel>], iteration_bounds = array<i64: 2>, scalar_prefetch = 0 : i64, scratch_operands = 0 : i64, tpu.core_type = #tpu.core_type<tc>, window_params = [{transform_indices = @transform_0, window_bounds = array<i64: 16, 1152>}, {pipeline_mode = #tpu.pipeline_mode<synchronous>, transform_indices = @transform_1, window_bounds = array<i64: 1152, 256>}, {pipeline_mode = #tpu.pipeline_mode<synchronous>, transform_indices = @transform_2, window_bounds = array<i64: 1, 256>}, {transform_indices = @transform_3, window_bounds = array<i64: 16, 256>}]} {
    %c0 = arith.constant 0 : index
    %c0_0 = arith.constant 0 : index
    %0 = vector.load %arg1[%c0, %c0_0] : memref<16x1152xbf16, #tpu.memory_space<vmem>>, vector<16x1152xbf16>
    %c0_1 = arith.constant 0 : index
    %c0_2 = arith.constant 0 : index
    %1 = vector.load %arg2[%c0_1, %c0_2] : memref<1152x256xbf16, #tpu.memory_space<vmem>>, vector<1152x256xbf16>
    %cst = arith.constant dense<0.000000e+00> : vector<16x256xf32>
    %2 = tpu.matmul %0, %1, %cst {dimension_numbers = #tpu.dot_dimension_numbers<[1], [0], [0], [1], [0, 0, 1, 1], [], []>} : vector<16x1152xbf16>, vector<1152x256xbf16>, vector<16x256xf32> -> vector<16x256xf32>
    %c0_3 = arith.constant 0 : index
    %c0_4 = arith.constant 0 : index
    %3 = vector.load %arg3[%c0_3, %c0_4] : memref<1x256xf32, #tpu.memory_space<vmem>>, vector<1x256xf32>
    %4 = vector.broadcast %3 : vector<1x256xf32> to vector<16x256xf32>
    %5 = arith.addf %2, %4 : vector<16x256xf32>
    %cst_5 = arith.constant 0.000000e+00 : f32
    %6 = vector.broadcast %cst_5 : f32 to vector<16x256xf32>
    %7 = arith.cmpf ogt, %5, %6 : vector<16x256xf32>
    %cst_6 = arith.constant 0.00999999977 : f32
    %8 = vector.broadcast %cst_6 : f32 to vector<16x256xf32>
    %9 = arith.mulf %8, %5 : vector<16x256xf32>
    %10 = arith.select %7, %5, %9 : vector<16x256xi1>, vector<16x256xf32>
    %11 = arith.truncf %10 : vector<16x256xf32> to vector<16x256xbf16>
    %c0_7 = arith.constant 0 : index
    %c0_8 = arith.constant 0 : index
    %12 = vector.load %arg4[%c0_7, %c0_8] : memref<16x256xbf16, #tpu.memory_space<vmem>>, vector<16x256xbf16>
    tpu.vector_store %arg4[%c0_7, %c0_8], %11 {strides = array<i32>} : memref<16x256xbf16, #tpu.memory_space<vmem>>, vector<16x256xbf16>,
    return
  }
  func.func @transform_0(%arg0: i32) -> (i32, i32) {
    %c0_i32 = arith.constant 0 : i32
    %c0_i32_0 = arith.constant 0 : i32
    return %arg0, %c0_i32 : i32, i32
  }
  func.func @transform_1(%arg0: i32) -> (i32, i32) {
    %c0_i32 = arith.constant 0 : i32
    %c0_i32_0 = arith.constant 0 : i32
    %c0_i32_1 = arith.constant 0 : i32
    return %c0_i32, %c0_i32_0 : i32, i32
  }
  func.func @transform_2(%arg0: i32) -> (i32, i32) {
    %c0_i32 = arith.constant 0 : i32
    %c0_i32_0 = arith.constant 0 : i32
    %c0_i32_1 = arith.constant 0 : i32
    return %c0_i32, %c0_i32_0 : i32, i32
  }
  func.func @transform_3(%arg0: i32) -> (i32, i32) {
    %c0_i32 = arith.constant 0 : i32
    %c0_i32_0 = arith.constant 0 : i32
    return %arg0, %c0_i32 : i32, i32
  }
}

module attributes {stable_mosaic.version = 11 : i64} {
  func.func @_mm_bias_lrelu_kernel(%arg0: i32, %arg1: memref<8x2304xbf16, #tpu.memory_space<vmem>>, %arg2: memref<2304x512xbf16, #tpu.memory_space<vmem>>, %arg3: memref<1x512xf32, #tpu.memory_space<vmem>>, %arg4: memref<8x512xbf16, #tpu.memory_space<vmem>>) attributes {dimension_semantics = [#tpu.dimension_semantics<parallel>], iteration_bounds = array<i64: 1>, scalar_prefetch = 0 : i64, scratch_operands = 0 : i64, tpu.core_type = #tpu.core_type<tc>, window_params = [{transform_indices = @transform_0, window_bounds = array<i64: 8, 2304>}, {pipeline_mode = #tpu.pipeline_mode<synchronous>, transform_indices = @transform_1, window_bounds = array<i64: 2304, 512>}, {pipeline_mode = #tpu.pipeline_mode<synchronous>, transform_indices = @transform_2, window_bounds = array<i64: 1, 512>}, {transform_indices = @transform_3, window_bounds = array<i64: 8, 512>}]} {
    %c0 = arith.constant 0 : index
    %c0_0 = arith.constant 0 : index
    %0 = vector.load %arg1[%c0, %c0_0] : memref<8x2304xbf16, #tpu.memory_space<vmem>>, vector<8x2304xbf16>
    %c0_1 = arith.constant 0 : index
    %c0_2 = arith.constant 0 : index
    %1 = vector.load %arg2[%c0_1, %c0_2] : memref<2304x512xbf16, #tpu.memory_space<vmem>>, vector<2304x512xbf16>
    %cst = arith.constant dense<0.000000e+00> : vector<8x512xf32>
    %2 = tpu.matmul %0, %1, %cst {dimension_numbers = #tpu.dot_dimension_numbers<[1], [0], [0], [1], [0, 0, 1, 1], [], []>} : vector<8x2304xbf16>, vector<2304x512xbf16>, vector<8x512xf32> -> vector<8x512xf32>
    %c0_3 = arith.constant 0 : index
    %c0_4 = arith.constant 0 : index
    %3 = vector.load %arg3[%c0_3, %c0_4] : memref<1x512xf32, #tpu.memory_space<vmem>>, vector<1x512xf32>
    %4 = vector.broadcast %3 : vector<1x512xf32> to vector<8x512xf32>
    %5 = arith.addf %2, %4 : vector<8x512xf32>
    %cst_5 = arith.constant 0.000000e+00 : f32
    %6 = vector.broadcast %cst_5 : f32 to vector<8x512xf32>
    %7 = arith.cmpf ogt, %5, %6 : vector<8x512xf32>
    %cst_6 = arith.constant 0.00999999977 : f32
    %8 = vector.broadcast %cst_6 : f32 to vector<8x512xf32>
    %9 = arith.mulf %8, %5 : vector<8x512xf32>
    %10 = arith.select %7, %5, %9 : vector<8x512xi1>, vector<8x512xf32>
    %11 = arith.truncf %10 : vector<8x512xf32> to vector<8x512xbf16>
    %c0_7 = arith.constant 0 : index
    %c0_8 = arith.constant 0 : index
    %12 = vector.load %arg4[%c0_7, %c0_8] : memref<8x512xbf16, #tpu.memory_space<vmem>>, vector<8x512xbf16>
    tpu.vector_store %arg4[%c0_7, %c0_8], %11 {strides = array<i32>} : memref<8x512xbf16, #tpu.memory_space<vmem>>, vector<8x512xbf16>,
    return
  }
  func.func @transform_0(%arg0: i32) -> (i32, i32) {
    %c0_i32 = arith.constant 0 : i32
    %c0_i32_0 = arith.constant 0 : i32
    return %arg0, %c0_i32 : i32, i32
  }
  func.func @transform_1(%arg0: i32) -> (i32, i32) {
    %c0_i32 = arith.constant 0 : i32
    %c0_i32_0 = arith.constant 0 : i32
    %c0_i32_1 = arith.constant 0 : i32
    return %c0_i32, %c0_i32_0 : i32, i32
  }
  func.func @transform_2(%arg0: i32) -> (i32, i32) {
    %c0_i32 = arith.constant 0 : i32
    %c0_i32_0 = arith.constant 0 : i32
    %c0_i32_1 = arith.constant 0 : i32
    return %c0_i32, %c0_i32_0 : i32, i32
  }
  func.func @transform_3(%arg0: i32) -> (i32, i32) {
    %c0_i32 = arith.constant 0 : i32
    %c0_i32_0 = arith.constant 0 : i32
    return %arg0, %c0_i32 : i32, i32
  }
}

module attributes {stable_mosaic.version = 11 : i64} {
  func.func @_fc_tail_kernel(%arg0: i32, %arg1: memref<2x2048xbf16, #tpu.memory_space<vmem>>, %arg2: memref<2x10xbf16, #tpu.memory_space<vmem>>, %arg3: memref<2048x512xbf16, #tpu.memory_space<vmem>>, %arg4: memref<1x512xf32, #tpu.memory_space<vmem>>, %arg5: memref<10x512xbf16, #tpu.memory_space<vmem>>, %arg6: memref<1x512xf32, #tpu.memory_space<vmem>>, %arg7: memref<1x512xf32, #tpu.memory_space<vmem>>, %arg8: memref<1x512xf32, #tpu.memory_space<vmem>>, %arg9: memref<1x1xf32, #tpu.memory_space<vmem>>, %arg10: memref<2x1xf32, #tpu.memory_space<vmem>>) attributes {dimension_semantics = [#tpu.dimension_semantics<parallel>], iteration_bounds = array<i64: 1>, scalar_prefetch = 0 : i64, scratch_operands = 0 : i64, tpu.core_type = #tpu.core_type<tc>, window_params = [{transform_indices = @transform_0, window_bounds = array<i64: 2, 2048>}, {transform_indices = @transform_1, window_bounds = array<i64: 2, 10>}, {pipeline_mode = #tpu.pipeline_mode<synchronous>, transform_indices = @transform_2, window_bounds = array<i64: 2048, 512>}, {pipeline_mode = #tpu.pipeline_mode<synchronous>, transform_indices = @transform_3, window_bounds = array<i64: 1, 512>}, {pipeline_mode = #tpu.pipeline_mode<synchronous>, transform_indices = @transform_4, window_bounds = array<i64: 10, 512>}, {pipeline_mode = #tpu.pipeline_mode<synchronous>, transform_indices = @transform_5, window_bounds = array<i64: 1, 512>}, {pipeline_mode = #tpu.pipeline_mode<synchronous>, transform_indices = @transform_6, window_bounds = array<i64: 1, 512>}, {pipeline_mode = #tpu.pipeline_mode<synchronous>, transform_indices = @transform_7, window_bounds = array<i64: 1, 512>}, {pipeline_mode = #tpu.pipeline_mode<synchronous>, transform_indices = @transform_8, window_bounds = array<i64: 1, 1>}, {transform_indices = @transform_9, window_bounds = array<i64: 2, 1>}]} {
    %c0 = arith.constant 0 : index
    %c0_0 = arith.constant 0 : index
    %0 = vector.load %arg1[%c0, %c0_0] : memref<2x2048xbf16, #tpu.memory_space<vmem>>, vector<2x2048xbf16>
    %c0_1 = arith.constant 0 : index
    %c0_2 = arith.constant 0 : index
    %1 = vector.load %arg3[%c0_1, %c0_2] : memref<2048x512xbf16, #tpu.memory_space<vmem>>, vector<2048x512xbf16>
    %cst = arith.constant dense<0.000000e+00> : vector<2x512xf32>
    %2 = tpu.matmul %0, %1, %cst {dimension_numbers = #tpu.dot_dimension_numbers<[1], [0], [0], [1], [0, 0, 1, 1], [], []>} : vector<2x2048xbf16>, vector<2048x512xbf16>, vector<2x512xf32> -> vector<2x512xf32>
    %c0_3 = arith.constant 0 : index
    %c0_4 = arith.constant 0 : index
    %3 = vector.load %arg4[%c0_3, %c0_4] : memref<1x512xf32, #tpu.memory_space<vmem>>, vector<1x512xf32>
    %4 = vector.broadcast %3 : vector<1x512xf32> to vector<2x512xf32>
    %5 = arith.addf %2, %4 : vector<2x512xf32>
    %cst_5 = arith.constant 0.000000e+00 : f32
    %6 = vector.broadcast %cst_5 : f32 to vector<2x512xf32>
    %7 = arith.cmpf ogt, %5, %6 : vector<2x512xf32>
    %cst_6 = arith.constant 0.00999999977 : f32
    %8 = vector.broadcast %cst_6 : f32 to vector<2x512xf32>
    %9 = arith.mulf %8, %5 : vector<2x512xf32>
    %10 = arith.select %7, %5, %9 : vector<2x512xi1>, vector<2x512xf32>
    %c0_7 = arith.constant 0 : index
    %c0_8 = arith.constant 0 : index
    %11 = vector.load %arg2[%c0_7, %c0_8] : memref<2x10xbf16, #tpu.memory_space<vmem>>, vector<2x10xbf16>
    %c0_9 = arith.constant 0 : index
    %c0_10 = arith.constant 0 : index
    %12 = vector.load %arg5[%c0_9, %c0_10] : memref<10x512xbf16, #tpu.memory_space<vmem>>, vector<10x512xbf16>
    %cst_11 = arith.constant dense<0.000000e+00> : vector<2x512xf32>
    %13 = tpu.matmul %11, %12, %cst_11 {dimension_numbers = #tpu.dot_dimension_numbers<[1], [0], [0], [1], [0, 0, 1, 1], [], []>} : vector<2x10xbf16>, vector<10x512xbf16>, vector<2x512xf32> -> vector<2x512xf32>
    %c0_12 = arith.constant 0 : index
    %c0_13 = arith.constant 0 : index
    %14 = vector.load %arg6[%c0_12, %c0_13] : memref<1x512xf32, #tpu.memory_space<vmem>>, vector<1x512xf32>
    %15 = vector.broadcast %14 : vector<1x512xf32> to vector<2x512xf32>
    %16 = arith.addf %13, %15 : vector<2x512xf32>
    %cst_14 = arith.constant 0.000000e+00 : f32
    %17 = vector.broadcast %cst_14 : f32 to vector<2x512xf32>
    %18 = arith.cmpf ogt, %16, %17 : vector<2x512xf32>
    %cst_15 = arith.constant 0.00999999977 : f32
    %19 = vector.broadcast %cst_15 : f32 to vector<2x512xf32>
    %20 = arith.mulf %19, %16 : vector<2x512xf32>
    %21 = arith.select %18, %16, %20 : vector<2x512xi1>, vector<2x512xf32>
    %c0_16 = arith.constant 0 : index
    %c0_17 = arith.constant 0 : index
    %22 = vector.load %arg7[%c0_16, %c0_17] : memref<1x512xf32, #tpu.memory_space<vmem>>, vector<1x512xf32>
    %23 = vector.broadcast %22 : vector<1x512xf32> to vector<2x512xf32>
    %24 = arith.mulf %10, %23 : vector<2x512xf32>
    %cst_18 = arith.constant dense<0.000000e+00> : vector<2xf32>
    %25 = vector.multi_reduction <add>, %24, %cst_18 [1] : vector<2x512xf32> to vector<2xf32>
    %26 = vector.shape_cast %25 : vector<2xf32> to vector<2x1xf32>
    %c0_19 = arith.constant 0 : index
    %c0_20 = arith.constant 0 : index
    %27 = vector.load %arg8[%c0_19, %c0_20] : memref<1x512xf32, #tpu.memory_space<vmem>>, vector<1x512xf32>
    %28 = vector.broadcast %27 : vector<1x512xf32> to vector<2x512xf32>
    %29 = arith.mulf %21, %28 : vector<2x512xf32>
    %cst_21 = arith.constant dense<0.000000e+00> : vector<2xf32>
    %30 = vector.multi_reduction <add>, %29, %cst_21 [1] : vector<2x512xf32> to vector<2xf32>
    %31 = vector.shape_cast %30 : vector<2xf32> to vector<2x1xf32>
    %32 = arith.addf %26, %31 : vector<2x1xf32>
    %c0_22 = arith.constant 0 : index
    %c0_23 = arith.constant 0 : index
    %33 = vector.load %arg9[%c0_22, %c0_23] : memref<1x1xf32, #tpu.memory_space<vmem>>, vector<1x1xf32>
    %34 = vector.broadcast %33 : vector<1x1xf32> to vector<2x1xf32>
    %35 = arith.addf %32, %34 : vector<2x1xf32>
    %36 = arith.negf %35 : vector<2x1xf32>
    %37 = math.exp %36 : vector<2x1xf32>
    %cst_24 = arith.constant 1.000000e+00 : f32
    %38 = vector.broadcast %cst_24 : f32 to vector<2x1xf32>
    %39 = arith.addf %38, %37 : vector<2x1xf32>
    %40 = arith.divf %38, %39 : vector<2x1xf32>
    %c0_25 = arith.constant 0 : index
    %c0_26 = arith.constant 0 : index
    %41 = vector.load %arg10[%c0_25, %c0_26] : memref<2x1xf32, #tpu.memory_space<vmem>>, vector<2x1xf32>
    tpu.vector_store %arg10[%c0_25, %c0_26], %40 {strides = array<i32>} : memref<2x1xf32, #tpu.memory_space<vmem>>, vector<2x1xf32>,
    return
  }
  func.func @transform_0(%arg0: i32) -> (i32, i32) {
    %c0_i32 = arith.constant 0 : i32
    %c0_i32_0 = arith.constant 0 : i32
    return %arg0, %c0_i32 : i32, i32
  }
  func.func @transform_1(%arg0: i32) -> (i32, i32) {
    %c0_i32 = arith.constant 0 : i32
    %c0_i32_0 = arith.constant 0 : i32
    return %arg0, %c0_i32 : i32, i32
  }
  func.func @transform_2(%arg0: i32) -> (i32, i32) {
    %c0_i32 = arith.constant 0 : i32
    %c0_i32_0 = arith.constant 0 : i32
    %c0_i32_1 = arith.constant 0 : i32
    return %c0_i32, %c0_i32_0 : i32, i32
  }
  func.func @transform_3(%arg0: i32) -> (i32, i32) {
    %c0_i32 = arith.constant 0 : i32
    %c0_i32_0 = arith.constant 0 : i32
    %c0_i32_1 = arith.constant 0 : i32
    return %c0_i32, %c0_i32_0 : i32, i32
  }
  func.func @transform_4(%arg0: i32) -> (i32, i32) {
    %c0_i32 = arith.constant 0 : i32
    %c0_i32_0 = arith.constant 0 : i32
    %c0_i32_1 = arith.constant 0 : i32
    return %c0_i32, %c0_i32_0 : i32, i32
  }
  func.func @transform_5(%arg0: i32) -> (i32, i32) {
    %c0_i32 = arith.constant 0 : i32
    %c0_i32_0 = arith.constant 0 : i32
    %c0_i32_1 = arith.constant 0 : i32
    return %c0_i32, %c0_i32_0 : i32, i32
  }
  func.func @transform_6(%arg0: i32) -> (i32, i32) {
    %c0_i32 = arith.constant 0 : i32
    %c0_i32_0 = arith.constant 0 : i32
    %c0_i32_1 = arith.constant 0 : i32
    return %c0_i32, %c0_i32_0 : i32, i32
  }
  func.func @transform_7(%arg0: i32) -> (i32, i32) {
    %c0_i32 = arith.constant 0 : i32
    %c0_i32_0 = arith.constant 0 : i32
    %c0_i32_1 = arith.constant 0 : i32
    return %c0_i32, %c0_i32_0 : i32, i32
  }
  func.func @transform_8(%arg0: i32) -> (i32, i32) {
    %c0_i32 = arith.constant 0 : i32
    %c0_i32_0 = arith.constant 0 : i32
    %c0_i32_1 = arith.constant 0 : i32
    return %c0_i32, %c0_i32_0 : i32, i32
  }
  func.func @transform_9(%arg0: i32) -> (i32, i32) {
    %c0_i32 = arith.constant 0 : i32
    %c0_i32_0 = arith.constant 0 : i32
    return %arg0, %c0_i32 : i32, i32
  }
}

</mosaic_0001>

<bundles_post_ra>
// kernel: discriminator_forward.5
= control target key start
LH: loop header
LB: loop body
LE: loop exit
PB: predicated region body
PF: predicated region fallthrough
CT: control target
= control target key end

     0   :  { %8 = vsyncpa [#allocation3], 0  ;;  %s1412_s0 = inlined_call_operand.vmem [shape: bf16[512,27], index: 0, kind: input, shape index: {}]   ;;  %s1413_s1 = inlined_call_operand.hbm [shape: bf16[27,64], index: 1, kind: input, shape index: {}]   ;;  %s1414_s2 = inlined_call_operand.hbm [shape: f32[1,64], index: 2, kind: input, shape index: {}]   ;;  %s1415_s3 = inlined_call_operand.vmem [shape: bf16[512,64], index: 3, kind: output, shape index: {}]  }
   0x1   :  { %9 = vsyncpa [#allocation5], 0  ;;  %s1204_s12 = smov 0  }
   0x2 LB: > { %s889_s13 = sadd.s32 4294967295, %s1177_s12   ;;  %p891_p0 = scmp.ge.s32.totalorder %s1177_s12, 1  ;;  %s1177_s12 = sphi %s1204_s12, %s15_s12  }
   0x3   : > { %p114_p1 = scmp.lt.s32.totalorder %s1177_s12, 3  ;;  %s1179_s14 = smov [#allocation2]  }
   0x4   : > { %s126_s15 = sshll.u32 %s1179_s14, 4  ;;  %p1218_p3 = scmp.eq.s32.totalorder %s889_s13, 0  ;;  %s127_s15 = int_to_ptr.vmem [resolvable:$true] %s126_s15 }
   0x5   : > { %p1212_p2 = pnand %p891_p0, %p114_p1  ;;  %s1180_s18 = smov [#allocation4]  }
   0x6   : > { %s140_s19 = sshll.u32 %s1180_s18, 4  ;;  %s1122_s21 = scalar_lea.vmem %s127_s15, 256  ;;  %s141_s19 = int_to_ptr.vmem [resolvable:$true] %s140_s19 }
   0x7   : > { %p1069_p4 = pneg %p1212_p2  ;;  %p1123_p7 = scmp.ne.s32.totalorder %s127_s15, %s1122_s21 }
   0x8   : > { %p1130_p10 = scmp.lt.s32.totalorder %s127_s15, %s127_s15  ;;  %p1131_p11 = scmp.lt.s32.totalorder %s1122_s21, %s1122_s21 }
   0x9   : > { %p1226_p5 = pnand %p1218_p3, %p1069_p4 }
   0xa   : > { %p1132_p12 = por %p1131_p11, %p1130_p10 }
   0xb   : > { %p1113_p6 = pneg %p1226_p5 }
   0xd   : > { %p1125_p8 = pnand %p1123_p7, %p1113_p6 }
   0xf   : > { %p1126_p9 = pneg %p1125_p8 }
  0x11   : > { %p1133_p13 = pnand %p1132_p12, %p1126_p9 }
  0x13   : > { %1136 = shalt.err (!%p1133_p13)
}
  0x14   : > { %s1181_s22 = smov 64   ;;  %s1182_s23 = smov 4  }
  0x15   : > { %1072 = dma.hbm_to_vmem [thread:$0]  (!%p1226_p5), %s1413_s1, 256, %s127_s15, [#allocation3], %s1181_s22, %s1181_s22, %s1182_s23  }
  0x16   : > { %s1148_s26 = scalar_lea.vmem %s141_s19, 16  ;;  %s1155_s27 = scalar_lea.vmem %s141_s19, 32 }
  0x17   : > { %p1149_p0 = scmp.ne.s32.totalorder %s141_s19, %s1148_s26  ;;  %p1156_p7 = scmp.lt.s32.totalorder %s141_s19, %s141_s19 }
  0x18   : > { %p1157_p8 = scmp.lt.s32.totalorder %s1155_s27, %s1148_s26 }
  0x19   : > { %p1151_p1 = pnand %p1149_p0, %p1113_p6 }
  0x1a   : > { %p1158_p9 = por %p1157_p8, %p1156_p7 }
  0x1b   : > { %p1152_p4 = pneg %p1151_p1 }
  0x1d   : > { %p1159_p10 = pnand %p1158_p9, %p1152_p4 }
  0x1f   : > { %1162 = shalt.err (!%p1159_p10)
}
  0x20   : > { %1075 = dma.hbm_to_vmem [thread:$0]  (!%p1226_p5), %s1414_s2, 16, %s141_s19, [#allocation5]  }
  0x21   : > { %162 = sbr.rel (%p1212_p2) target bundleno = 294 (0x126), region = 32 }
  0x26   : > { %1168 = dma.done.wait (%p1218_p3), [#allocation3], 256  }
  0x27   : > { %1170 = vsyncadd (%p1218_p3), [#allocation3], 4294967040 }
  0x28   : > { %1172 = dma.done.wait (%p1218_p3), [#allocation5], 16  }
  0x29   : > { %1174 = vsyncadd (%p1218_p3), [#allocation5], 4294967280  ;;  %vm386_vm0 = vcmask 1044480   ;;  %s898_s30 = sshll.u32 %s889_s13, 5  ;;  %vm387_vm1 = vcmask 1045504   ;;  %v1183_v0 = vmov 65535  }
  0x2a   : > { %p191_p5 = scmp.lt.s32.totalorder %s898_s30, 63  ;;  %v388_v1 = vsel %vm386_vm0, 4294967295, %v1183_v0  ;;  %v1093_v3 = vld [vmem:[#allocation2 + $0x8] sm:$0x3f]   ;;  %v1094_v4 = vld [vmem:[#allocation2] sm:$0xff]   ;;  %vm337_vm2 = vcmask 220160  }
  0x2b   : > { %v389_v2 = vsel %vm387_vm1, %v388_v1, 0  ;;  %v1302_v22 = vld [vmem:[#allocation4] ss:$0 sm:$0xff]  ;;  %vm778_vm5 = vcmask 519168  }
  0x2c   : > { %s1420_s30 = smov (!%p191_p5, %s898_s30), 63  ;;  %v391_v5 = vand.u32 %v1093_v3, %v389_v2 }
  0x2d   : > { %s899_s4 = sshll.u32 %s1420_s30, 2 }
  0x2e   : > { %s1268_s7 = scalar_lea.vmem %s1412_s0, %s899_s4  ;;  %1021 = vmatprep.subr.bf16.mxu0 %v391_v5  ;;  %1057 = vmatprep.subr.bf16.mxu1 %v391_v5  ;;  %s1313_s10 = scalar_lea.vmem %s1415_s3, %s899_s4 }
  0x2f   : > { %v1095_v6 = vld [vmem:[%s1268_s7] sm:$0xff]   ;;  %1022 = vmatpush3.bf16.msra.mxu0 %v391_v5  ;;  %1059 = vmatpush3.bf16.msra.mxu1 %v391_v5  ;;  %v1097_v8 = vld [vmem:[%s1268_s7 + $0x8] sm:$0xff]   ;;  %v1099_v10 = vld [vmem:[%s1268_s7 + $0x10] sm:$0xff]  }
  0x30   : > { %v1096_v7 = vld [vmem:[%s1268_s7 + $0x40] sm:$0xff]   ;;  %1023 = vmatprep.subr.bf16.mxu0 %v1094_v4  ;;  %1058 = vmatprep.subr.bf16.mxu1 %v1094_v4  ;;  %v1098_v9 = vld [vmem:[%s1268_s7 + $0x48] sm:$0xff]   ;;  %v1100_v11 = vld [vmem:[%s1268_s7 + $0x50] sm:$0xff]  }
  0x31   : > { %1025 = vmatprep.mubr.msk.bf16.mxu0 %vm337_vm2, %v1095_v6  ;;  %1041 = vmatprep.mubr.msk.bf16.mxu1 %vm337_vm2, %v1096_v7  ;;  %v1101_v12 = vld [vmem:[%s1268_s7 + $0x18] sm:$0xff]   ;;  %v1103_v14 = vld [vmem:[%s1268_s7 + $0x20] sm:$0xff]   ;;  %v1105_v16 = vld [vmem:[%s1268_s7 + $0x28] sm:$0xff]  }
  0x32   : > { %v1102_v13 = vld [vmem:[%s1268_s7 + $0x58] sm:$0xff]   ;;  %v1104_v15 = vld [vmem:[%s1268_s7 + $0x60] sm:$0xff]   ;;  %v1106_v17 = vld [vmem:[%s1268_s7 + $0x68] sm:$0xff]  }
  0x33   : > { %1024 = vmatpush3.bf16.msra.mxu0 %v1094_v4  ;;  %1060 = vmatpush3.bf16.msra.mxu1 %v1094_v4  ;;  %v1107_v18 = vld [vmem:[%s1268_s7 + $0x30] sm:$0xff]   ;;  %v1109_v20 = vld [vmem:[%s1268_s7 + $0x38] sm:$0xff]  }
  0x34   : > { %v1108_v19 = vld [vmem:[%s1268_s7 + $0x70] sm:$0xff]   ;;  %v1110_v21 = vld [vmem:[%s1268_s7 + $0x78] sm:$0xff]  }
  0x36   : > { %1026 = vmatmul.mubr.msk.bf16.vlgmr.msra.gmra.mxu0 %vm337_vm2, %v1097_v8  ;;  %1042 = vmatmul.mubr.msk.bf16.vlgmr.msra.gmra.mxu1 %vm337_vm2, %v1098_v9 }
  0x37   : > { %1029 = vmatprep.mubr.msk.bf16.mxu0 %vm337_vm2, %v1099_v10  ;;  %1045 = vmatprep.mubr.msk.bf16.mxu1 %vm337_vm2, %v1100_v11 }
  0x3e   : > { %1030 = vmatmul.mubr.msk.bf16.gmra.mxu0 %vm337_vm2, %v1101_v12  ;;  %1046 = vmatmul.mubr.msk.bf16.gmra.mxu1 %vm337_vm2, %v1102_v13 }
  0x3f   : > { %1033 = vmatprep.mubr.msk.bf16.mxu0 %vm337_vm2, %v1103_v14  ;;  %1049 = vmatprep.mubr.msk.bf16.mxu1 %vm337_vm2, %v1104_v15 }
  0x46   : > { %1034 = vmatmul.mubr.msk.bf16.gmra.mxu0 %vm337_vm2, %v1105_v16  ;;  %1050 = vmatmul.mubr.msk.bf16.gmra.mxu1 %vm337_vm2, %v1106_v17 }
  0x47   : > { %1037 = vmatprep.mubr.msk.bf16.mxu0 %vm337_vm2, %v1107_v18  ;;  %1053 = vmatprep.mubr.msk.bf16.mxu1 %vm337_vm2, %v1108_v19 }
  0x4e   : > { %1038 = vmatmul.mubr.msk.bf16.gmra.mxu0 %vm337_vm2, %v1109_v20  ;;  %1054 = vmatmul.mubr.msk.bf16.gmra.mxu1 %vm337_vm2, %v1110_v21 }
  0xf6   : > { %v1027_v23 = vpop.f32.mrf.mxu0  ;;  %v1043_v24 = vpop.f32.mrf.mxu1 }
  0xf7   : > { %v436_v25 = vadd.f32 %v1027_v23, %v1302_v22  ;;  %v500_v26 = vadd.f32 %v1043_v24, %v1302_v22 }
  0xf8   : > { %v427_v27 = vpop.f32.mrf.mxu0  ;;  %v491_v28 = vpop.f32.mrf.mxu1 }
  0xf9   : > { %vm556_vm3 = vcmp.gt.f32.partialorder %v436_v25, 0.0  ;;  %v588_v29 = vmul.f32 0.01, %v436_v25  ;;  %vm572_vm4 = vcmp.gt.f32.partialorder %v500_v26, 0.0  ;;  %v604_v30 = vmul.f32 0.01, %v500_v26 }
  0xfa   : > { %v428_v31 = vadd.f32 %v1302_v22, %v427_v27  ;;  %v492_v32 = vadd.f32 %v1302_v22, %v491_v28  ;;  %v1028_v33 = vpop.f32.mrf.mxu0  ;;  %v1044_v34 = vpop.f32.mrf.mxu1 }
  0xfb   : > { %v620_v35 = vsel %vm556_vm3, %v436_v25, %v588_v29  ;;  %v636_v36 = vsel %vm572_vm4, %v500_v26, %v604_v30  ;;  %v439_v37 = vadd.f32 %v1028_v33, %v1302_v22  ;;  %v503_v38 = vadd.f32 %v1044_v34, %v1302_v22 }
  0xfc   : > { %v973_v39 = vpack.c.bf16 %v620_v35, %v620_v35  ;;  %v989_v40 = vpack.c.bf16 %v636_v36, %v636_v36  ;;  %vm554_vm6 = vcmp.gt.f32.partialorder %v428_v31, 0.0  ;;  %v586_v41 = vmul.f32 0.01, %v428_v31  ;;  %v430_v42 = vpop.f32.mrf.mxu0  ;;  %v494_v43 = vpop.f32.mrf.mxu1 }
  0xfd   : > { %vm570_vm7 = vcmp.gt.f32.partialorder %v492_v32, 0.0  ;;  %v602_v44 = vmul.f32 0.01, %v492_v32  ;;  %vm557_vm8 = vcmp.gt.f32.partialorder %v439_v37, 0.0  ;;  %v589_v45 = vmul.f32 0.01, %v439_v37 }
  0xfe   : > { %781 = vst.msk [vmem:[%s1313_s10 + $0x8] sm:$0xf] %vm778_vm5, %v973_v39  ;;  %797 = vst.msk [vmem:[%s1313_s10 + $0x48] sm:$0xf] %vm778_vm5, %v989_v40  ;;  %v618_v46 = vsel %vm554_vm6, %v428_v31, %v586_v41  ;;  %vm573_vm9 = vcmp.gt.f32.partialorder %v503_v38, 0.0  ;;  %v431_v48 = vadd.f32 %v1302_v22, %v430_v42  ;;  %v1031_v49 = vpop.f32.mrf.mxu0  ;;  %v1047_v50 = vpop.f32.mrf.mxu1  ;;  %v495_v54 = vadd.f32 %v1302_v22, %v494_v43 }
  0xff   : > { %v605_v47 = vmul.f32 0.01, %v503_v38  ;;  %v971_v51 = vpack.c.bf16 %v618_v46, %v618_v46  ;;  %v634_v52 = vsel %vm570_vm7, %v492_v32, %v602_v44  ;;  %v621_v53 = vsel %vm557_vm8, %v439_v37, %v589_v45 }
 0x100   : > { %v987_v55 = vpack.c.bf16 %v634_v52, %v634_v52  ;;  %v974_v56 = vpack.c.bf16 %v621_v53, %v621_v53  ;;  %vm555_vm10 = vcmp.gt.f32.partialorder %v431_v48, 0.0  ;;  %v443_v58 = vpop.f32.mrf.mxu0  ;;  %v507_v59 = vpop.f32.mrf.mxu1  ;;  %v587_v61 = vmul.f32 0.01, %v431_v48 }
 0x101   : > { %v637_v57 = vsel %vm573_vm9, %v503_v38, %v605_v47  ;;  %779 = vst.msk [vmem:[%s1313_s10] sm:$0xf] %vm778_vm5, %v971_v51  ;;  %vm571_vm11 = vcmp.gt.f32.partialorder %v495_v54, 0.0  ;;  %v603_v62 = vmul.f32 0.01, %v495_v54  ;;  %v452_v63 = vadd.f32 %v1031_v49, %v1302_v22 }
 0x102   : > { %v990_v60 = vpack.c.bf16 %v637_v57, %v637_v57  ;;  %795 = vst.msk [vmem:[%s1313_s10 + $0x40] sm:$0xf] %vm778_vm5, %v987_v55  ;;  %782 = vst.msk [vmem:[%s1313_s10 + $0xc] sm:$0xf] %vm778_vm5, %v974_v56  ;;  %v516_v0 = vadd.f32 %v1047_v50, %v1302_v22  ;;  %v444_v1 = vadd.f32 %v1302_v22, %v443_v58  ;;  %v1032_v3 = vpop.f32.mrf.mxu0  ;;  %v1048_v4 = vpop.f32.mrf.mxu1 }
 0x103   : > { %v508_v2 = vadd.f32 %v1302_v22, %v507_v59  ;;  %v619_v5 = vsel %vm555_vm10, %v431_v48, %v587_v61  ;;  %v635_v6 = vsel %vm571_vm11, %v495_v54, %v603_v62  ;;  %v455_v7 = vadd.f32 %v1032_v3, %v1302_v22 }
 0x104   : > { %798 = vst.msk [vmem:[%s1313_s10 + $0x4c] sm:$0xf] %vm778_vm5, %v990_v60  ;;  %v519_v8 = vadd.f32 %v1048_v4, %v1302_v22  ;;  %v972_v9 = vpack.c.bf16 %v619_v5, %v619_v5  ;;  %v988_v10 = vpack.c.bf16 %v635_v6, %v635_v6  ;;  %vm560_vm12 = vcmp.gt.f32.partialorder %v452_v63, 0.0  ;;  %v446_v12 = vpop.f32.mrf.mxu0  ;;  %v510_v13 = vpop.f32.mrf.mxu1 }
 0x105   : > { %v592_v11 = vmul.f32 0.01, %v452_v63  ;;  %vm576_vm13 = vcmp.gt.f32.partialorder %v516_v0, 0.0  ;;  %v608_v14 = vmul.f32 0.01, %v516_v0  ;;  %vm558_vm14 = vcmp.gt.f32.partialorder %v444_v1, 0.0 }
 0x106   : > { %v590_v15 = vmul.f32 0.01, %v444_v1  ;;  %780 = vst.msk [vmem:[%s1313_s10 + $0x4] sm:$0xf] %vm778_vm5, %v972_v9  ;;  %796 = vst.msk [vmem:[%s1313_s10 + $0x44] sm:$0xf] %vm778_vm5, %v988_v10  ;;  %v1035_v18 = vpop.f32.mrf.mxu0  ;;  %v1051_v19 = vpop.f32.mrf.mxu1  ;;  %v447_v33 = vadd.f32 %v1302_v22, %v446_v12  ;;  %v511_v35 = vadd.f32 %v1302_v22, %v510_v13 }
 0x107   : > { %v624_v16 = vsel %vm560_vm12, %v452_v63, %v592_v11  ;;  %vm574_vm15 = vcmp.gt.f32.partialorder %v508_v2, 0.0  ;;  %v606_v17 = vmul.f32 0.01, %v508_v2  ;;  %vm561_vm0 = vcmp.gt.f32.partialorder %v455_v7, 0.0 }
 0x108   : > { %v977_v20 = vpack.c.bf16 %v624_v16, %v624_v16  ;;  %v640_v21 = vsel %vm576_vm13, %v516_v0, %v608_v14  ;;  %v622_v23 = vsel %vm558_vm14, %v444_v1, %v590_v15  ;;  %v593_v24 = vmul.f32 0.01, %v455_v7  ;;  %v459_v28 = vpop.f32.mrf.mxu0  ;;  %v523_v29 = vpop.f32.mrf.mxu1 }
 0x109   : > { %v993_v25 = vpack.c.bf16 %v640_v21, %v640_v21  ;;  %v975_v26 = vpack.c.bf16 %v622_v23, %v622_v23  ;;  %v638_v27 = vsel %vm574_vm15, %v508_v2, %v606_v17  ;;  %vm577_vm1 = vcmp.gt.f32.partialorder %v519_v8, 0.0 }
 0x10a   : > { %785 = vst.msk [vmem:[%s1313_s10 + $0x18] sm:$0xf] %vm778_vm5, %v977_v20  ;;  %v991_v30 = vpack.c.bf16 %v638_v27, %v638_v27  ;;  %v625_v31 = vsel %vm561_vm0, %v455_v7, %v593_v24  ;;  %v609_v32 = vmul.f32 0.01, %v519_v8  ;;  %v468_v36 = vadd.f32 %v1035_v18, %v1302_v22  ;;  %v1036_v38 = vpop.f32.mrf.mxu0  ;;  %v1052_v39 = vpop.f32.mrf.mxu1 }
 0x10b   : > { %801 = vst.msk [vmem:[%s1313_s10 + $0x58] sm:$0xf] %vm778_vm5, %v993_v25  ;;  %783 = vst.msk [vmem:[%s1313_s10 + $0x10] sm:$0xf] %vm778_vm5, %v975_v26  ;;  %v978_v34 = vpack.c.bf16 %v625_v31, %v625_v31  ;;  %v532_v37 = vadd.f32 %v1051_v19, %v1302_v22  ;;  %vm559_vm2 = vcmp.gt.f32.partialorder %v447_v33, 0.0  ;;  %v460_v42 = vadd.f32 %v1302_v22, %v459_v28 }
 0x10c   : > { %799 = vst.msk [vmem:[%s1313_s10 + $0x50] sm:$0xf] %vm778_vm5, %v991_v30  ;;  %v641_v40 = vsel %vm577_vm1, %v519_v8, %v609_v32  ;;  %v591_v41 = vmul.f32 0.01, %v447_v33  ;;  %vm575_vm3 = vcmp.gt.f32.partialorder %v511_v35, 0.0  ;;  %vm564_vm4 = vcmp.gt.f32.partialorder %v468_v36, 0.0  ;;  %v462_v45 = vpop.f32.mrf.mxu0  ;;  %v526_v46 = vpop.f32.mrf.mxu1 }
 0x10d   : > { %786 = vst.msk [vmem:[%s1313_s10 + $0x1c] sm:$0xf] %vm778_vm5, %v978_v34  ;;  %v994_v43 = vpack.c.bf16 %v641_v40, %v641_v40  ;;  %v607_v44 = vmul.f32 0.01, %v511_v35  ;;  %v596_v48 = vmul.f32 0.01, %v468_v36  ;;  %v524_v58 = vadd.f32 %v1302_v22, %v523_v29 }
 0x10e   : > { %v623_v47 = vsel %vm559_vm2, %v447_v33, %v591_v41  ;;  %vm580_vm6 = vcmp.gt.f32.partialorder %v532_v37, 0.0  ;;  %v612_v49 = vmul.f32 0.01, %v532_v37  ;;  %vm562_vm7 = vcmp.gt.f32.partialorder %v460_v42, 0.0  ;;  %v1039_v53 = vpop.f32.mrf.mxu0  ;;  %v1055_v54 = vpop.f32.mrf.mxu1 }
 0x10f   : > { %802 = vst.msk [vmem:[%s1313_s10 + $0x5c] sm:$0xf] %vm778_vm5, %v994_v43  ;;  %v976_v50 = vpack.c.bf16 %v623_v47, %v623_v47  ;;  %v639_v51 = vsel %vm575_vm3, %v511_v35, %v607_v44  ;;  %v594_v52 = vmul.f32 0.01, %v460_v42  ;;  %v628_v56 = vsel %vm564_vm4, %v468_v36, %v596_v48 }
 0x110   : > { %v992_v55 = vpack.c.bf16 %v639_v51, %v639_v51  ;;  %v644_v57 = vsel %vm580_vm6, %v532_v37, %v612_v49  ;;  %v981_v59 = vpack.c.bf16 %v628_v56, %v628_v56  ;;  %v471_v62 = vadd.f32 %v1036_v38, %v1302_v22  ;;  %v475_v63 = vpop.f32.mrf.mxu0  ;;  %v539_v3 = vpop.f32.mrf.mxu1 }
 0x111   : > { %784 = vst.msk [vmem:[%s1313_s10 + $0x14] sm:$0xf] %vm778_vm5, %v976_v50  ;;  %v997_v60 = vpack.c.bf16 %v644_v57, %v644_v57  ;;  %v626_v61 = vsel %vm562_vm7, %v460_v42, %v594_v52  ;;  %vm578_vm8 = vcmp.gt.f32.partialorder %v524_v58, 0.0  ;;  %v610_v1 = vmul.f32 0.01, %v524_v58 }
 0x112   : > { %800 = vst.msk [vmem:[%s1313_s10 + $0x54] sm:$0xf] %vm778_vm5, %v992_v55  ;;  %v979_v0 = vpack.c.bf16 %v626_v61, %v626_v61  ;;  %v535_v2 = vadd.f32 %v1052_v39, %v1302_v22  ;;  %789 = vst.msk [vmem:[%s1313_s10 + $0x28] sm:$0xf] %vm778_vm5, %v981_v59  ;;  %vm565_vm9 = vcmp.gt.f32.partialorder %v471_v62, 0.0  ;;  %v463_v5 = vadd.f32 %v1302_v22, %v462_v45  ;;  %v1040_v13 = vpop.f32.mrf.mxu0  ;;  %v1056_v17 = vpop.f32.mrf.mxu1 }
 0x113   : > { %805 = vst.msk [vmem:[%s1313_s10 + $0x68] sm:$0xf] %vm778_vm5, %v997_v60  ;;  %v597_v4 = vmul.f32 0.01, %v471_v62  ;;  %v527_v6 = vadd.f32 %v1302_v22, %v526_v46  ;;  %v642_v7 = vsel %vm578_vm8, %v524_v58, %v610_v1  ;;  %v484_v9 = vadd.f32 %v1039_v53, %v1302_v22 }
 0x114   : > { %787 = vst.msk [vmem:[%s1313_s10 + $0x20] sm:$0xf] %vm778_vm5, %v979_v0  ;;  %vm581_vm10 = vcmp.gt.f32.partialorder %v535_v2, 0.0  ;;  %v613_v8 = vmul.f32 0.01, %v535_v2  ;;  %v995_v10 = vpack.c.bf16 %v642_v7, %v642_v7  ;;  %vm563_vm11 = vcmp.gt.f32.partialorder %v463_v5, 0.0  ;;  %v478_v30 = vpop.f32.mrf.mxu0  ;;  %v542_v33 = vpop.f32.mrf.mxu1 }
 0x115   : > { %v629_v11 = vsel %vm565_vm9, %v471_v62, %v597_v4  ;;  %v595_v12 = vmul.f32 0.01, %v463_v5  ;;  %vm579_vm12 = vcmp.gt.f32.partialorder %v527_v6, 0.0  ;;  %v611_v16 = vmul.f32 0.01, %v527_v6 }
 0x116   : > { %v982_v14 = vpack.c.bf16 %v629_v11, %v629_v11  ;;  %v645_v15 = vsel %vm581_vm10, %v535_v2, %v613_v8  ;;  %803 = vst.msk [vmem:[%s1313_s10 + $0x60] sm:$0xf] %vm778_vm5, %v995_v10  ;;  %vm568_vm13 = vcmp.gt.f32.partialorder %v484_v9, 0.0  ;;  %v600_v20 = vmul.f32 0.01, %v484_v9 }
 0x117   : > { %v998_v18 = vpack.c.bf16 %v645_v15, %v645_v15  ;;  %v627_v19 = vsel %vm563_vm11, %v463_v5, %v595_v12  ;;  %v643_v23 = vsel %vm579_vm12, %v527_v6, %v611_v16  ;;  %v548_v24 = vadd.f32 %v1055_v54, %v1302_v22 }
 0x118   : > { %790 = vst.msk [vmem:[%s1313_s10 + $0x2c] sm:$0xf] %vm778_vm5, %v982_v14  ;;  %v980_v21 = vpack.c.bf16 %v627_v19, %v627_v19  ;;  %v476_v25 = vadd.f32 %v1302_v22, %v475_v63  ;;  %v996_v26 = vpack.c.bf16 %v643_v23, %v643_v23  ;;  %v632_v27 = vsel %vm568_vm13, %v484_v9, %v600_v20 }
 0x119   : > { %806 = vst.msk [vmem:[%s1313_s10 + $0x6c] sm:$0xf] %vm778_vm5, %v998_v18  ;;  %v540_v28 = vadd.f32 %v1302_v22, %v539_v3  ;;  %v487_v29 = vadd.f32 %v1040_v13, %v1302_v22  ;;  %v985_v31 = vpack.c.bf16 %v632_v27, %v632_v27  ;;  %vm584_vm14 = vcmp.gt.f32.partialorder %v548_v24, 0.0 }
 0x11a   : > { %788 = vst.msk [vmem:[%s1313_s10 + $0x24] sm:$0xf] %vm778_vm5, %v980_v21  ;;  %v616_v32 = vmul.f32 0.01, %v548_v24  ;;  %vm566_vm15 = vcmp.gt.f32.partialorder %v476_v25, 0.0  ;;  %v551_v38 = vadd.f32 %v1056_v17, %v1302_v22  ;;  %v479_v39 = vadd.f32 %v1302_v22, %v478_v30 }
 0x11b   : > { %804 = vst.msk [vmem:[%s1313_s10 + $0x64] sm:$0xf] %vm778_vm5, %v996_v26  ;;  %v598_v34 = vmul.f32 0.01, %v476_v25  ;;  %vm582_vm0 = vcmp.gt.f32.partialorder %v540_v28, 0.0  ;;  %vm569_vm1 = vcmp.gt.f32.partialorder %v487_v29, 0.0  ;;  %v543_v43 = vadd.f32 %v1302_v22, %v542_v33 }
 0x11c   : > { %v614_v35 = vmul.f32 0.01, %v540_v28  ;;  %793 = vst.msk [vmem:[%s1313_s10 + $0x38] sm:$0xf] %vm778_vm5, %v985_v31  ;;  %v648_v36 = vsel %vm584_vm14, %v548_v24, %v616_v32  ;;  %v601_v37 = vmul.f32 0.01, %v487_v29 }
 0x11d   : > { %v1001_v40 = vpack.c.bf16 %v648_v36, %v648_v36  ;;  %v630_v41 = vsel %vm566_vm15, %v476_v25, %v598_v34  ;;  %vm585_vm2 = vcmp.gt.f32.partialorder %v551_v38, 0.0  ;;  %v617_v48 = vmul.f32 0.01, %v551_v38 }
 0x11e   : > { %v646_v42 = vsel %vm582_vm0, %v540_v28, %v614_v35  ;;  %v983_v44 = vpack.c.bf16 %v630_v41, %v630_v41  ;;  %v633_v46 = vsel %vm569_vm1, %v487_v29, %v601_v37  ;;  %vm567_vm3 = vcmp.gt.f32.partialorder %v479_v39, 0.0 }
 0x11f   : > { %v999_v45 = vpack.c.bf16 %v646_v42, %v646_v42  ;;  %809 = vst.msk [vmem:[%s1313_s10 + $0x78] sm:$0xf] %vm778_vm5, %v1001_v40  ;;  %v986_v47 = vpack.c.bf16 %v633_v46, %v633_v46  ;;  %v599_v49 = vmul.f32 0.01, %v479_v39  ;;  %vm583_vm4 = vcmp.gt.f32.partialorder %v543_v43, 0.0 }
 0x120   : > { %791 = vst.msk [vmem:[%s1313_s10 + $0x30] sm:$0xf] %vm778_vm5, %v983_v44  ;;  %v615_v50 = vmul.f32 0.01, %v543_v43  ;;  %v649_v22 = vsel %vm585_vm2, %v551_v38, %v617_v48 }
 0x121   : > { %807 = vst.msk [vmem:[%s1313_s10 + $0x70] sm:$0xf] %vm778_vm5, %v999_v45  ;;  %794 = vst.msk [vmem:[%s1313_s10 + $0x3c] sm:$0xf] %vm778_vm5, %v986_v47  ;;  %v631_v51 = vsel %vm567_vm3, %v479_v39, %v599_v49  ;;  %v1002_v52 = vpack.c.bf16 %v649_v22, %v649_v22 }
 0x122   : > { %v984_v53 = vpack.c.bf16 %v631_v51, %v631_v51  ;;  %v647_v54 = vsel %vm583_vm4, %v543_v43, %v615_v50 }
 0x123   : > { %v1000_v55 = vpack.c.bf16 %v647_v54, %v647_v54  ;;  %810 = vst.msk [vmem:[%s1313_s10 + $0x7c] sm:$0xf] %vm778_vm5, %v1002_v52 }
 0x124   : > { %792 = vst.msk [vmem:[%s1313_s10 + $0x34] sm:$0xf] %vm778_vm5, %v984_v53 }
 0x125   : > { %808 = vst.msk [vmem:[%s1313_s10 + $0x74] sm:$0xf] %vm778_vm5, %v1000_v55 }
 0x126 PF: > { %s15_s12 = sadd.s32 1, %s1177_s12  }
 0x127   : > { %p12_p2 = scmp.ge.s32.totalorder %s15_s12, 4  }
 0x129   :  { %14 = sbr.rel (!%p12_p2) target bundleno = 2 (0x2), region = 71 }
 0x12e   :  { %833 = vsyncpa [#allocation3], 1 }
 0x12f   :  { %835 = vsyncpa [#allocation3 + $0x1], 1 }
 0x130   :  { %836 = vsyncpa [#allocation5], 1 }

// kernel: discriminator_forward.6
= control target key start
LH: loop header
LB: loop body
LE: loop exit
PB: predicated region body
PF: predicated region fallthrough
CT: control target
= control target key end

     0   :  { %s1249_s12 = smov 0   ;;  %s1406_s0 = inlined_call_operand.vmem [shape: bf16[128,576], index: 0, kind: input, shape index: {}]   ;;  %s1407_s1 = inlined_call_operand.vmem [shape: bf16[576,128], index: 1, kind: input, shape index: {}]   ;;  %s1408_s2 = inlined_call_operand.vmem [shape: f32[1,128], index: 2, kind: input, shape index: {}]   ;;  %s1409_s3 = inlined_call_operand.vmem [shape: bf16[128,128], index: 3, kind: output, shape index: {}]  }
   0x1 LB: > { %s925_s13 = sadd.s32 4294967295, %s1227_s12   ;;  %p929_p0 = scmp.ge.s32.totalorder %s1227_s12, 1  ;;  %s1227_s12 = sphi %s1249_s12, %s13_s12  }
   0x2   : > { %p139_p1 = scmp.lt.s32.totalorder %s1227_s12, 3 }
   0x4   : > { %p140_p2 = pnand %p929_p0, %p139_p1 }
   0x5   : > { %s930_s19 = sshll.u32 (!%p140_p2), %s925_s13, 3 }
   0x6   : > { %143 = sbr.rel (%p140_p2) target bundleno = 285 (0x11d), region = 32  ;;  %p165_p3 = scmp.lt.s32.totalorder (!%p140_p2), %s930_s19, 15 }
   0xb   : > { %v1157_v0 = vld [vmem:[%s1407_s1 + $0x78] sm:$0xff]   ;;  %v1161_v4 = vld [vmem:[%s1407_s1 + $0x70] sm:$0xff]   ;;  %v1165_v8 = vld [vmem:[%s1407_s1 + $0x68] sm:$0xff]   ;;  %s1411_s19 = smov (!%p165_p3, %s930_s19), 15  ;;  %vm597_vm0 = vcmask 523264  }
   0xc   : > { %v1158_v1 = vld [vmem:[%s1407_s1 + $0xf8] sm:$0xff]   ;;  %1036 = vmatprep.subr.bf16.mxu0 %v1157_v0  ;;  %v1162_v5 = vld [vmem:[%s1407_s1 + $0xf0] sm:$0xff]   ;;  %v1166_v9 = vld [vmem:[%s1407_s1 + $0xe8] sm:$0xff]   ;;  %s1148_s16 = smul.u32 20, %s1411_s19  ;;  %s933_s17 = sshll.u32 %s1411_s19, 2 }
   0xd   : > { %v1159_v2 = vld [vmem:[%s1407_s1 + $0x38] sm:$0xff]   ;;  %1076 = vmatprep.subr.bf16.mxu1 %v1158_v1  ;;  %v1163_v6 = vld [vmem:[%s1407_s1 + $0x30] sm:$0xff]   ;;  %v1167_v10 = vld [vmem:[%s1407_s1 + $0x28] sm:$0xff]   ;;  %s175_s21 = scalar_lea.vmem %s1409_s3, %s933_s17 }
   0xe   : > { %v1160_v3 = vld [vmem:[%s1407_s1 + $0xb8] sm:$0xff]   ;;  %1037 = vmatpush3.bf16.msra.mxu0 %v1159_v2  ;;  %v1164_v7 = vld [vmem:[%s1407_s1 + $0xb0] sm:$0xff]   ;;  %v1168_v11 = vld [vmem:[%s1407_s1 + $0xa8] sm:$0xff]   ;;  %s1355_s13 = scalar_lea.vmem %s1406_s0, %s1148_s16 }
   0xf   : > { %1077 = vmatpush3.bf16.msra.mxu1 %v1160_v3  ;;  %1038 = vmatprep.subr.bf16.mxu0 %v1161_v4  ;;  %v1169_v12 = vld [vmem:[%s1407_s1 + $0x60] sm:$0xff]   ;;  %v1173_v16 = vld [vmem:[%s1407_s1 + $0x58] sm:$0xff]   ;;  %v1177_v20 = vld [vmem:[%s1407_s1 + $0x50] sm:$0xff]  }
  0x10   : > { %1078 = vmatprep.subr.bf16.mxu1 %v1162_v5  ;;  %v1170_v13 = vld [vmem:[%s1407_s1 + $0xe0] sm:$0xff]   ;;  %v1174_v17 = vld [vmem:[%s1407_s1 + $0xd8] sm:$0xff]   ;;  %v1178_v21 = vld [vmem:[%s1407_s1 + $0xd0] sm:$0xff]  }
  0x11   : > { %v1171_v14 = vld [vmem:[%s1407_s1 + $0x20] sm:$0xff]   ;;  %v1175_v18 = vld [vmem:[%s1407_s1 + $0x18] sm:$0xff]   ;;  %v1179_v22 = vld [vmem:[%s1407_s1 + $0x10] sm:$0xff]  }
  0x12   : > { %1039 = vmatpush3.bf16.msra.mxu0 %v1163_v6  ;;  %v1172_v15 = vld [vmem:[%s1407_s1 + $0xa0] sm:$0xff]   ;;  %v1176_v19 = vld [vmem:[%s1407_s1 + $0x98] sm:$0xff]   ;;  %v1180_v23 = vld [vmem:[%s1407_s1 + $0x90] sm:$0xff]  }
  0x13   : > { %1079 = vmatpush3.bf16.msra.mxu1 %v1164_v7  ;;  %1040 = vmatprep.subr.bf16.mxu0 %v1165_v8  ;;  %v1181_v24 = vld [vmem:[%s1407_s1 + $0x48] sm:$0xff]   ;;  %v1185_v28 = vld [vmem:[%s1407_s1 + $0x40] sm:$0xff]   ;;  %v1195_v36 = vld [vmem:[%s1407_s1 + $0x118] sm:$0xff]  }
  0x14   : > { %1080 = vmatprep.subr.bf16.mxu1 %v1166_v9  ;;  %v1182_v25 = vld [vmem:[%s1407_s1 + $0xc8] sm:$0xff]   ;;  %v1186_v29 = vld [vmem:[%s1407_s1 + $0xc0] sm:$0xff]   ;;  %v1202_v39 = vld [vmem:[%s1407_s1 + $0x110] sm:$0xff]  }
  0x15   : > { %v1183_v26 = vld [vmem:[%s1407_s1 + $0x8] sm:$0xff]   ;;  %v1187_v30 = vld [vmem:[%s1407_s1] sm:$0xff]   ;;  %v1205_v43 = vld [vmem:[%s1355_s13 + $0x5c] ss:$20 sps:$4 sm:$0xff]  }
  0x16   : > { %1041 = vmatpush3.bf16.msra.mxu0 %v1167_v10  ;;  %v1184_v27 = vld [vmem:[%s1407_s1 + $0x88] sm:$0xff]   ;;  %v1188_v31 = vld [vmem:[%s1407_s1 + $0x80] sm:$0xff]   ;;  %v1210_v48 = vld [vmem:[%s1355_s13 + $0x7c] ss:$20 sps:$4 sm:$0xff]  }
  0x17   : > { %1081 = vmatpush3.bf16.msra.mxu1 %v1168_v11  ;;  %1042 = vmatprep.subr.bf16.mxu0 %v1169_v12  ;;  %v1189_v32 = vld [vmem:[%s1355_s13] ss:$20 sps:$4 sm:$0xff]   ;;  %v1191_v33 = vld [vmem:[%s1355_s13 + $0x4] ss:$20 sps:$4 sm:$0xff]   ;;  %v1192_v34 = vld [vmem:[%s1355_s13 + $0x8] ss:$20 sps:$4 sm:$0xff]  }
  0x18   : > { %1082 = vmatprep.subr.bf16.mxu1 %v1170_v13  ;;  %v1194_v35 = vld [vmem:[%s1355_s13 + $0xc] ss:$20 sps:$4 sm:$0xff]   ;;  %642 = vmatprep.mubr.bf16.mxu0 %v1191_v33  ;;  %v1198_v38 = vld [vmem:[%s1355_s13 + $0x34] ss:$20 sps:$4 sm:$0xff]   ;;  %v1201_v41 = vld [vmem:[%s1355_s13 + $0x30] ss:$20 sps:$4 sm:$0xff]  }
  0x19   : > { %707 = vmatprep.mubr.bf16.mxu1 %v1194_v35  ;;  %v1196_v37 = vld [vmem:[%s1355_s13 + $0x2c] ss:$20 sps:$4 sm:$0xff]   ;;  %v1200_v40 = vld [vmem:[%s1355_s13 + $0x28] ss:$20 sps:$4 sm:$0xff]   ;;  %v1207_v46 = vld [vmem:[%s1355_s13 + $0x50] ss:$20 sps:$4 sm:$0xff]  }
  0x1a   : > { %1043 = vmatpush3.bf16.msra.mxu0 %v1171_v14  ;;  %v1203_v42 = vld [vmem:[%s1355_s13 + $0x54] ss:$20 sps:$4 sm:$0xff]   ;;  %v1216_v45 = vld [vmem:[%s1407_s1 + $0x100] sm:$0xff]   ;;  %v1208_v47 = vld [vmem:[%s1355_s13 + $0x58] ss:$20 sps:$4 sm:$0xff]  }
  0x1b   : > { %1083 = vmatpush3.bf16.msra.mxu1 %v1172_v15  ;;  %1044 = vmatprep.subr.bf16.mxu0 %v1173_v16  ;;  %v1209_v44 = vld [vmem:[%s1407_s1 + $0x108] sm:$0xff]   ;;  %v1212_v49 = vld [vmem:[%s1355_s13 + $0x84] ss:$20 sps:$4 sm:$0xff]   ;;  %v1215_v51 = vld [vmem:[%s1355_s13 + $0x80] ss:$20 sps:$4 sm:$0xff]  }
  0x1c   : > { %1084 = vmatprep.subr.bf16.mxu1 %v1174_v17  ;;  %v1214_v50 = vld [vmem:[%s1355_s13 + $0x78] ss:$20 sps:$4 sm:$0xff]   ;;  %v1217_v52 = vld [vmem:[%s1355_s13 + $0x10] ss:$20 sps:$4 sm:$0xff]   ;;  %v1218_v53 = vld [vmem:[%s1355_s13 + $0x60] ss:$20 sps:$4 sm:$0xff]  }
  0x1d   : > { %v1219_v54 = vld [vmem:[%s1355_s13 + $0x38] ss:$20 sps:$4 sm:$0xff]   ;;  %v1220_v55 = vld [vmem:[%s1355_s13 + $0x88] ss:$20 sps:$4 sm:$0xff]  }
  0x1e   : > { %1045 = vmatpush3.bf16.msra.mxu0 %v1175_v18  ;;  %v934_v18 = vld [vmem:[%s1408_s2] ss:$0 sm:$0xff] }
  0x1f   : > { %1085 = vmatpush3.bf16.msra.mxu1 %v1176_v19  ;;  %1046 = vmatprep.subr.bf16.mxu0 %v1177_v20 }
  0x20   : > { %1086 = vmatprep.subr.bf16.mxu1 %v1178_v21 }
  0x22   : > { %1047 = vmatpush3.bf16.msra.mxu0 %v1179_v22 }
  0x23   : > { %1087 = vmatpush3.bf16.msra.mxu1 %v1180_v23  ;;  %1048 = vmatprep.subr.bf16.mxu0 %v1181_v24 }
  0x24   : > { %1088 = vmatprep.subr.bf16.mxu1 %v1182_v25 }
  0x26   : > { %1049 = vmatpush3.bf16.msra.mxu0 %v1183_v26 }
  0x27   : > { %1089 = vmatpush3.bf16.msra.mxu1 %v1184_v27  ;;  %1050 = vmatprep.subr.bf16.mxu0 %v1185_v28 }
  0x28   : > { %1090 = vmatprep.subr.bf16.mxu1 %v1186_v29 }
  0x2a   : > { %1051 = vmatpush3.bf16.msra.mxu0 %v1187_v30 }
  0x2b   : > { %1091 = vmatpush3.bf16.msra.mxu1 %v1188_v31  ;;  %1124 = vmatprep.subr.bf16.mxu0 %v1195_v36 }
  0x2c   : > { %1140 = vmatprep.subr.bf16.mxu1 %v1195_v36 }
  0x2d   : > { %643 = vmatmul.mubr.bf16.vlgmr.msra.gmra.mxu0 %v1189_v32 }
  0x2e   : > { %708 = vmatmul.mubr.bf16.vlgmr.msra.gmra.mxu1 %v1192_v34  ;;  %1125 = vmatpush3.bf16.msra.mxu0 %v1195_v36 }
  0x2f   : > { %1144 = vmatpush3.bf16.msra.mxu1 %v1195_v36  ;;  %650 = vmatprep.mubr.bf16.mxu0 %v1196_v37 }
  0x30   : > { %715 = vmatprep.mubr.bf16.mxu1 %v1198_v38  ;;  %1126 = vmatprep.subr.bf16.mxu0 %v1202_v39 }
  0x31   : > { %1141 = vmatprep.subr.bf16.mxu1 %v1202_v39 }
  0x32   : > { %1127 = vmatpush3.bf16.msra.mxu0 %v1202_v39 }
  0x33   : > { %1145 = vmatpush3.bf16.msra.mxu1 %v1202_v39  ;;  %1128 = vmatprep.subr.bf16.mxu0 %v1209_v44 }
  0x34   : > { %1142 = vmatprep.subr.bf16.mxu1 %v1209_v44 }
  0x35   : > { %651 = vmatmul.mubr.bf16.gmra.mxu0 %v1200_v40 }
  0x36   : > { %716 = vmatmul.mubr.bf16.gmra.mxu1 %v1201_v41  ;;  %658 = vmatprep.mubr.bf16.mxu0 %v1203_v42 }
  0x37   : > { %723 = vmatprep.mubr.bf16.mxu1 %v1205_v43  ;;  %1129 = vmatpush3.bf16.msra.mxu0 %v1209_v44 }
  0x38   : > { %1146 = vmatpush3.bf16.msra.mxu1 %v1209_v44  ;;  %1130 = vmatprep.subr.bf16.mxu0 %v1216_v45 }
  0x39   : > { %1143 = vmatprep.subr.bf16.mxu1 %v1216_v45 }
  0x3b   : > { %1131 = vmatpush3.bf16.msra.mxu0 %v1216_v45 }
  0x3c   : > { %1147 = vmatpush3.bf16.msra.mxu1 %v1216_v45 }
  0x3d   : > { %659 = vmatmul.mubr.bf16.gmra.mxu0 %v1207_v46 }
  0x3e   : > { %724 = vmatmul.mubr.bf16.gmra.mxu1 %v1208_v47  ;;  %666 = vmatprep.mubr.bf16.mxu0 %v1210_v48 }
  0x3f   : > { %731 = vmatprep.mubr.bf16.mxu1 %v1212_v49 }
  0x45   : > { %667 = vmatmul.mubr.bf16.gmra.mxu0 %v1214_v50 }
  0x46   : > { %732 = vmatmul.mubr.bf16.gmra.mxu1 %v1215_v51  ;;  %1132 = vmatprep.mubr.msk.bf16.mxu0 %vm597_vm0, %v1217_v52 }
  0x47   : > { %1136 = vmatprep.mubr.msk.bf16.mxu1 %vm597_vm0, %v1218_v53 }
  0x4d   : > { %1133 = vmatmul.mubr.msk.bf16.vlgmr.msra.gmra.mxu0 %vm597_vm0, %v1219_v54 }
  0x4e   : > { %1137 = vmatmul.mubr.msk.bf16.vlgmr.msra.gmra.mxu1 %vm597_vm0, %v1220_v55 }
  0xed   : > { %v1052_v56 = vpop.f32.mrf.mxu0 }
  0xee   : > { %v1092_v57 = vpop.f32.mrf.mxu1 }
  0xef   : > { %v1053_v58 = vpop.f32.mrf.mxu0 }
  0xf0   : > { %v1093_v59 = vpop.f32.mrf.mxu1  ;;  %v1054_v15 = vadd.f32 %v1053_v58, %v1052_v56 }
  0xf1   : > { %v1055_v60 = vpop.f32.mrf.mxu0  ;;  %v1094_v28 = vadd.f32 %v1093_v59, %v1092_v57 }
  0xf2   : > { %v1095_v61 = vpop.f32.mrf.mxu1  ;;  %v645_v24 = vadd.f32 %v1054_v15, %v934_v18 }
  0xf3   : > { %v1056_v62 = vpop.f32.mrf.mxu0 }
  0xf4   : > { %v1096_v63 = vpop.f32.mrf.mxu1  ;;  %v1057_v29 = vadd.f32 %v1056_v62, %v1055_v60  ;;  %v710_v43 = vadd.f32 %v1094_v28, %v645_v24 }
  0xf5   : > { %v1058_v0 = vpop.f32.mrf.mxu0  ;;  %v1097_v45 = vadd.f32 %v1096_v63, %v1095_v61 }
  0xf6   : > { %v1098_v1 = vpop.f32.mrf.mxu1  ;;  %v648_v44 = vadd.f32 %v1057_v29, %v934_v18 }
  0xf7   : > { %v1059_v2 = vpop.f32.mrf.mxu0 }
  0xf8   : > { %v1099_v3 = vpop.f32.mrf.mxu1  ;;  %v1060_v16 = vadd.f32 %v1059_v2, %v1058_v0 }
  0xf9   : > { %v1061_v4 = vpop.f32.mrf.mxu0  ;;  %v1100_v31 = vadd.f32 %v1099_v3, %v1098_v1 }
  0xfa   : > { %v1101_v5 = vpop.f32.mrf.mxu1  ;;  %v653_v25 = vadd.f32 %v1060_v16, %v934_v18 }
  0xfb   : > { %v1062_v6 = vpop.f32.mrf.mxu0 }
  0xfc   : > { %v1102_v7 = vpop.f32.mrf.mxu1  ;;  %v1063_v21 = vadd.f32 %v1062_v6, %v1061_v4  ;;  %v718_v41 = vadd.f32 %v1100_v31, %v653_v25  ;;  %v713_v4 = vadd.f32 %v1097_v45, %v648_v44 }
  0xfd   : > { %v1064_v8 = vpop.f32.mrf.mxu0  ;;  %v1103_v46 = vadd.f32 %v1102_v7, %v1101_v5 }
  0xfe   : > { %v1104_v9 = vpop.f32.mrf.mxu1  ;;  %v656_v36 = vadd.f32 %v1063_v21, %v934_v18 }
  0xff   : > { %v1065_v10 = vpop.f32.mrf.mxu0 }
 0x100   : > { %v1105_v11 = vpop.f32.mrf.mxu1  ;;  %v1066_v22 = vadd.f32 %v1065_v10, %v1064_v8  ;;  %v721_v58 = vadd.f32 %v1103_v46, %v656_v36 }
 0x101   : > { %v1067_v12 = vpop.f32.mrf.mxu0  ;;  %v1106_v47 = vadd.f32 %v1105_v11, %v1104_v9 }
 0x102   : > { %v1107_v13 = vpop.f32.mrf.mxu1  ;;  %v661_v37 = vadd.f32 %v1066_v22, %v934_v18 }
 0x103   : > { %v1068_v14 = vpop.f32.mrf.mxu0 }
 0x104   : > { %v1108_v17 = vpop.f32.mrf.mxu1  ;;  %v1069_v32 = vadd.f32 %v1068_v14, %v1067_v12  ;;  %v726_v57 = vadd.f32 %v1106_v47, %v661_v37 }
 0x105   : > { %v1070_v19 = vpop.f32.mrf.mxu0  ;;  %v1109_v54 = vadd.f32 %v1108_v17, %v1107_v13 }
 0x106   : > { %v1110_v20 = vpop.f32.mrf.mxu1  ;;  %v664_v49 = vadd.f32 %v1069_v32, %v934_v18 }
 0x107   : > { %v1071_v23 = vpop.f32.mrf.mxu0 }
 0x108   : > { %v1072_v26 = vadd.f32 %v1071_v23, %v1070_v19  ;;  %v1111_v27 = vpop.f32.mrf.mxu1  ;;  %v729_v5 = vadd.f32 %v1109_v54, %v664_v49 }
 0x109   : > { %v1073_v30 = vpop.f32.mrf.mxu0  ;;  %v1112_v34 = vadd.f32 %v1111_v27, %v1110_v20 }
 0x10a   : > { %v669_v33 = vadd.f32 %v1072_v26, %v934_v18  ;;  %v1113_v35 = vpop.f32.mrf.mxu1 }
 0x10b   : > { %v1074_v38 = vpop.f32.mrf.mxu0 }
 0x10c   : > { %v1075_v39 = vadd.f32 %v1074_v38, %v1073_v30  ;;  %v1114_v40 = vpop.f32.mrf.mxu1  ;;  %v734_v42 = vadd.f32 %v1112_v34, %v669_v33 }
 0x10d   : > { %v1134_v48 = vpop.f32.mrf.mxu0  ;;  %v1115_v51 = vadd.f32 %v1114_v40, %v1113_v35 }
 0x10e   : > { %v672_v50 = vadd.f32 %v1075_v39, %v934_v18  ;;  %v783_v52 = vadd.f32 %v1134_v48, %v718_v41  ;;  %v1138_v53 = vpop.f32.mrf.mxu1 }
 0x10f   : > { %v799_v55 = vadd.f32 %v1138_v53, %v734_v42  ;;  %v774_v56 = vpop.f32.mrf.mxu0 }
 0x110   : > { %vm807_vm1 = vcmp.gt.f32.partialorder %v783_v52, 0.0  ;;  %v815_v59 = vmul.f32 0.01, %v783_v52  ;;  %v775_v60 = vadd.f32 %v774_v56, %v710_v43  ;;  %v790_v62 = vpop.f32.mrf.mxu1  ;;  %v737_v0 = vadd.f32 %v1115_v51, %v672_v50 }
 0x111   : > { %vm811_vm2 = vcmp.gt.f32.partialorder %v799_v55, 0.0  ;;  %v819_v61 = vmul.f32 0.01, %v799_v55  ;;  %v791_v63 = vadd.f32 %v790_v62, %v726_v57  ;;  %v1135_v1 = vpop.f32.mrf.mxu0 }
 0x112   : > { %v786_v2 = vadd.f32 %v1135_v1, %v721_v58  ;;  %v1139_v3 = vpop.f32.mrf.mxu1  ;;  %v823_v6 = vsel %vm807_vm1, %v783_v52, %v815_v59  ;;  %vm805_vm3 = vcmp.gt.f32.partialorder %v775_v60, 0.0  ;;  %v813_v7 = vmul.f32 0.01, %v775_v60 }
 0x113   : > { %v802_v8 = vadd.f32 %v1139_v3, %v737_v0  ;;  %v777_v9 = vpop.f32.mrf.mxu0  ;;  %v827_v10 = vsel %vm811_vm2, %v799_v55, %v819_v61  ;;  %v817_v14 = vmul.f32 0.01, %v791_v63  ;;  %vm809_vm6 = vcmp.gt.f32.partialorder %v791_v63, 0.0 }
 0x114   : > { %vm808_vm4 = vcmp.gt.f32.partialorder %v786_v2, 0.0  ;;  %v816_v11 = vmul.f32 0.01, %v786_v2  ;;  %v778_v12 = vadd.f32 %v777_v9, %v713_v4  ;;  %v793_v13 = vpop.f32.mrf.mxu1  ;;  %v821_v22 = vsel %vm805_vm3, %v775_v60, %v813_v7 }
 0x115   : > { %vm812_vm5 = vcmp.gt.f32.partialorder %v802_v8, 0.0  ;;  %v820_v15 = vmul.f32 0.01, %v802_v8  ;;  %v794_v16 = vadd.f32 %v793_v13, %v729_v5  ;;  %v825_v25 = vsel %vm809_vm6, %v791_v63, %v817_v14 }
 0x116   : > { %v824_v17 = vsel %vm808_vm4, %v786_v2, %v816_v11  ;;  %vm806_vm7 = vcmp.gt.f32.partialorder %v778_v12, 0.0  ;;  %v814_v18 = vmul.f32 0.01, %v778_v12 }
 0x117   : > { %v1021_v19 = vpack.c.bf16 %v824_v17, %v823_v6  ;;  %v828_v20 = vsel %vm812_vm5, %v802_v8, %v820_v15  ;;  %vm810_vm8 = vcmp.gt.f32.partialorder %v794_v16, 0.0  ;;  %v818_v21 = vmul.f32 0.01, %v794_v16 }
 0x118   : > { %v1031_v23 = vpack.c.bf16 %v828_v20, %v827_v10  ;;  %v822_v24 = vsel %vm806_vm7, %v778_v12, %v814_v18 }
 0x119   : > { %1033 = vst [vmem:[%s175_s21 + $0x8] sm:$0xff] %v1021_v19   ;;  %v1016_v26 = vpack.c.bf16 %v822_v24, %v821_v22  ;;  %v826_v27 = vsel %vm810_vm8, %v794_v16, %v818_v21 }
 0x11a   : > { %1035 = vst [vmem:[%s175_s21 + $0x18] sm:$0xff] %v1031_v23   ;;  %v1026_v28 = vpack.c.bf16 %v826_v27, %v825_v25 }
 0x11b   : > { %1017 = vst [vmem:[%s175_s21] sm:$0xff] %v1016_v26  }
 0x11c   : > { %1034 = vst [vmem:[%s175_s21 + $0x10] sm:$0xff] %v1026_v28  }
 0x11d PF: > { %s13_s12 = sadd.s32 1, %s1227_s12  }
 0x11e   : > { %p10_p4 = scmp.ge.s32.totalorder %s13_s12, 4  }
 0x120   :  { %12 = sbr.rel (!%p10_p4) target bundleno = 1 (0x1), region = 62 }

// kernel: discriminator_forward.7
= control target key start
LH: loop header
LB: loop body
LE: loop exit
PB: predicated region body
PF: predicated region fallthrough
CT: control target
= control target key end

     0   :  { %s1849_s12 = smov 0   ;;  %s2318_s0 = inlined_call_operand.vmem [shape: bf16[32,1152], index: 0, kind: input, shape index: {}]   ;;  %s2319_s1 = inlined_call_operand.vmem [shape: bf16[1152,256], index: 1, kind: input, shape index: {}]   ;;  %s2320_s2 = inlined_call_operand.vmem [shape: f32[1,256], index: 2, kind: input, shape index: {}]   ;;  %s2321_s3 = inlined_call_operand.vmem [shape: bf16[32,256], index: 3, kind: output, shape index: {}]  }
   0x1 LB: > { %s1411_s13 = sadd.s32 4294967295, %s1826_s12   ;;  %p1415_p0 = scmp.ge.s32.totalorder %s1826_s12, 1  ;;  %s1826_s12 = sphi %s1849_s12, %s13_s12  }
   0x2   : > { %p139_p1 = scmp.lt.s32.totalorder %s1826_s12, 3 }
   0x4   : > { %p140_p2 = pnand %p1415_p0, %p139_p1 }
   0x5   : > { %s1416_s22 = sshll.u32 (!%p140_p2), %s1411_s13, 1 }
   0x6   : > { %143 = sbr.rel (%p140_p2) target bundleno = 379 (0x17b), region = 32  ;;  %p166_p3 = scmp.lt.s32.totalorder (!%p140_p2), %s1416_s22, 3 }
   0xb   : > { %v1591_v0 = vld [vmem:[%s2319_s1 + $0x74] ss:$8 sps:$4 sm:$0xff]   ;;  %v1593_v1 = vld [vmem:[%s2319_s1 + $0x70] ss:$8 sps:$4 sm:$0xff]   ;;  %v1597_v4 = vld [vmem:[%s2319_s1 + $0x64] ss:$8 sps:$4 sm:$0xff]  }
   0xc   : > { %1112 = vmatprep.subr.bf16.mxu0 %v1591_v0  ;;  %v1594_v2 = vld [vmem:[%s2319_s1 + $0x174] ss:$8 sps:$4 sm:$0xff]   ;;  %v1596_v3 = vld [vmem:[%s2319_s1 + $0x170] ss:$8 sps:$4 sm:$0xff]   ;;  %v1599_v5 = vld [vmem:[%s2319_s1 + $0x60] ss:$8 sps:$4 sm:$0xff]  }
   0xd   : > { %1113 = vmatpush1.bf16.msra.mxu0 %v1593_v1  ;;  %1155 = vmatprep.subr.bf16.mxu1 %v1594_v2  ;;  %v1600_v6 = vld [vmem:[%s2319_s1 + $0x164] ss:$8 sps:$4 sm:$0xff]   ;;  %v1602_v7 = vld [vmem:[%s2319_s1 + $0x160] ss:$8 sps:$4 sm:$0xff]   ;;  %v1603_v8 = vld [vmem:[%s2319_s1 + $0x54] ss:$8 sps:$4 sm:$0xff]  }
   0xe   : > { %1156 = vmatpush1.bf16.msra.mxu1 %v1596_v3  ;;  %1114 = vmatprep.subr.bf16.mxu0 %v1597_v4  ;;  %v1605_v9 = vld [vmem:[%s2319_s1 + $0x50] ss:$8 sps:$4 sm:$0xff]   ;;  %v1606_v10 = vld [vmem:[%s2319_s1 + $0x154] ss:$8 sps:$4 sm:$0xff]   ;;  %v1609_v11 = vld [vmem:[%s2319_s1 + $0x44] ss:$8 sps:$4 sm:$0xff]  }
   0xf   : > { %1157 = vmatprep.subr.bf16.mxu1 %v1600_v6  ;;  %v1608_v12 = vld [vmem:[%s2319_s1 + $0x150] ss:$8 sps:$4 sm:$0xff]   ;;  %v1612_v13 = vld [vmem:[%s2319_s1 + $0x144] ss:$8 sps:$4 sm:$0xff]   ;;  %v1611_v14 = vld [vmem:[%s2319_s1 + $0x40] ss:$8 sps:$4 sm:$0xff]  }
  0x10   : > { %v1615_v15 = vld [vmem:[%s2319_s1 + $0x34] ss:$8 sps:$4 sm:$0xff]   ;;  %v1614_v16 = vld [vmem:[%s2319_s1 + $0x140] ss:$8 sps:$4 sm:$0xff]   ;;  %v1617_v18 = vld [vmem:[%s2319_s1 + $0x30] ss:$8 sps:$4 sm:$0xff]  }
  0x11   : > { %1115 = vmatpush1.bf16.msra.mxu0 %v1599_v5  ;;  %v1618_v17 = vld [vmem:[%s2319_s1 + $0x134] ss:$8 sps:$4 sm:$0xff]   ;;  %v1621_v19 = vld [vmem:[%s2319_s1 + $0x24] ss:$8 sps:$4 sm:$0xff]   ;;  %v1620_v20 = vld [vmem:[%s2319_s1 + $0x130] ss:$8 sps:$4 sm:$0xff]  }
  0x12   : > { %1116 = vmatprep.subr.bf16.mxu0 %v1603_v8  ;;  %1158 = vmatpush1.bf16.msra.mxu1 %v1602_v7  ;;  %v1624_v21 = vld [vmem:[%s2319_s1 + $0x124] ss:$8 sps:$4 sm:$0xff]   ;;  %v1623_v22 = vld [vmem:[%s2319_s1 + $0x20] ss:$8 sps:$4 sm:$0xff]   ;;  %v1627_v23 = vld [vmem:[%s2319_s1 + $0x14] ss:$8 sps:$4 sm:$0xff]  }
  0x13   : > { %1159 = vmatprep.subr.bf16.mxu1 %v1606_v10  ;;  %v1626_v24 = vld [vmem:[%s2319_s1 + $0x120] ss:$8 sps:$4 sm:$0xff]   ;;  %v1630_v25 = vld [vmem:[%s2319_s1 + $0x114] ss:$8 sps:$4 sm:$0xff]   ;;  %v1629_v26 = vld [vmem:[%s2319_s1 + $0x10] ss:$8 sps:$4 sm:$0xff]  }
  0x14   : > { %v1633_v27 = vld [vmem:[%s2319_s1 + $0x4] ss:$8 sps:$4 sm:$0xff]   ;;  %v1632_v28 = vld [vmem:[%s2319_s1 + $0x110] ss:$8 sps:$4 sm:$0xff]   ;;  %v1635_v30 = vld [vmem:[%s2319_s1] ss:$8 sps:$4 sm:$0xff]  }
  0x15   : > { %1117 = vmatpush1.bf16.msra.mxu0 %v1605_v9  ;;  %v1636_v29 = vld [vmem:[%s2319_s1 + $0x104] ss:$8 sps:$4 sm:$0xff]   ;;  %v1639_v31 = vld [vmem:[%s2319_s1 + $0xf4] ss:$8 sps:$4 sm:$0xff]   ;;  %v1638_v32 = vld [vmem:[%s2319_s1 + $0x100] ss:$8 sps:$4 sm:$0xff]  }
  0x16   : > { %1118 = vmatprep.subr.bf16.mxu0 %v1609_v11  ;;  %1160 = vmatpush1.bf16.msra.mxu1 %v1608_v12  ;;  %v1642_v33 = vld [vmem:[%s2319_s1 + $0x1f4] ss:$8 sps:$4 sm:$0xff]   ;;  %v1641_v34 = vld [vmem:[%s2319_s1 + $0xf0] ss:$8 sps:$4 sm:$0xff]   ;;  %v1645_v35 = vld [vmem:[%s2319_s1 + $0xe4] ss:$8 sps:$4 sm:$0xff]  }
  0x17   : > { %1161 = vmatprep.subr.bf16.mxu1 %v1612_v13  ;;  %s2323_s22 = smov (!%p166_p3, %s1416_s22), 3  ;;  %v1644_v36 = vld [vmem:[%s2319_s1 + $0x1f0] ss:$8 sps:$4 sm:$0xff]   ;;  %v1648_v37 = vld [vmem:[%s2319_s1 + $0x1e4] ss:$8 sps:$4 sm:$0xff]  }
  0x18   : > { %v1647_v38 = vld [vmem:[%s2319_s1 + $0xe0] ss:$8 sps:$4 sm:$0xff]   ;;  %v1651_v39 = vld [vmem:[%s2319_s1 + $0xd4] ss:$8 sps:$4 sm:$0xff]   ;;  %s1581_s19 = smul.u32 36, %s2323_s22 }
  0x19   : > { %1119 = vmatpush1.bf16.msra.mxu0 %v1611_v14  ;;  %v1650_v40 = vld [vmem:[%s2319_s1 + $0x1e0] ss:$8 sps:$4 sm:$0xff]   ;;  %v1654_v41 = vld [vmem:[%s2319_s1 + $0x1d4] ss:$8 sps:$4 sm:$0xff]   ;;  %v1653_v42 = vld [vmem:[%s2319_s1 + $0xd0] ss:$8 sps:$4 sm:$0xff]  }
  0x1a   : > { %1120 = vmatprep.subr.bf16.mxu0 %v1615_v15  ;;  %1162 = vmatpush1.bf16.msra.mxu1 %v1614_v16  ;;  %v1657_v43 = vld [vmem:[%s2319_s1 + $0xc4] ss:$8 sps:$4 sm:$0xff]   ;;  %s1997_s13 = scalar_lea.vmem %s2318_s0, %s1581_s19  ;;  %v1656_v44 = vld [vmem:[%s2319_s1 + $0x1d0] ss:$8 sps:$4 sm:$0xff]   ;;  %v1659_v46 = vld [vmem:[%s2319_s1 + $0xc0] ss:$8 sps:$4 sm:$0xff]  }
  0x1b   : > { %1163 = vmatprep.subr.bf16.mxu1 %v1618_v17  ;;  %v1660_v45 = vld [vmem:[%s2319_s1 + $0x1c4] ss:$8 sps:$4 sm:$0xff]   ;;  %v1663_v48 = vld [vmem:[%s2319_s1 + $0xb4] ss:$8 sps:$4 sm:$0xff]   ;;  %v1662_v49 = vld [vmem:[%s2319_s1 + $0x1c0] ss:$8 sps:$4 sm:$0xff]  }
  0x1c   : > { %v1688_v47 = vld [vmem:[%s1997_s13 + $0x4] ss:$36 sps:$4 sm:$0xff]   ;;  %v1666_v50 = vld [vmem:[%s2319_s1 + $0x1b4] ss:$8 sps:$4 sm:$0xff]   ;;  %v1695_v51 = vld [vmem:[%s1997_s13 + $0xc] ss:$36 sps:$4 sm:$0xff]  }
  0x1d   : > { %1121 = vmatpush1.bf16.msra.mxu0 %v1617_v18  ;;  %1144 = vmatprep.mubr.bf16.mxu0 %v1688_v47  ;;  %v1665_v52 = vld [vmem:[%s2319_s1 + $0xb0] ss:$8 sps:$4 sm:$0xff]   ;;  %v1669_v53 = vld [vmem:[%s2319_s1 + $0xa4] ss:$8 sps:$4 sm:$0xff]   ;;  %v1671_v56 = vld [vmem:[%s2319_s1 + $0xa0] ss:$8 sps:$4 sm:$0xff]  }
  0x1e   : > { %1122 = vmatprep.subr.bf16.mxu0 %v1621_v19  ;;  %1164 = vmatpush1.bf16.msra.mxu1 %v1620_v20  ;;  %v1668_v54 = vld [vmem:[%s2319_s1 + $0x1b0] ss:$8 sps:$4 sm:$0xff]   ;;  %v1672_v55 = vld [vmem:[%s2319_s1 + $0x1a4] ss:$8 sps:$4 sm:$0xff]   ;;  %v1675_v57 = vld [vmem:[%s2319_s1 + $0x94] ss:$8 sps:$4 sm:$0xff]  }
  0x1f   : > { %1165 = vmatprep.subr.bf16.mxu1 %v1624_v21  ;;  %1187 = vmatprep.mubr.bf16.mxu1 %v1695_v51  ;;  %v1674_v58 = vld [vmem:[%s2319_s1 + $0x1a0] ss:$8 sps:$4 sm:$0xff]   ;;  %v1678_v59 = vld [vmem:[%s2319_s1 + $0x194] ss:$8 sps:$4 sm:$0xff]   ;;  %v1677_v60 = vld [vmem:[%s2319_s1 + $0x90] ss:$8 sps:$4 sm:$0xff]  }
  0x20   : > { %v1681_v61 = vld [vmem:[%s2319_s1 + $0x84] ss:$8 sps:$4 sm:$0xff]   ;;  %v1680_v62 = vld [vmem:[%s2319_s1 + $0x190] ss:$8 sps:$4 sm:$0xff]   ;;  %v1683_v0 = vld [vmem:[%s2319_s1 + $0x80] ss:$8 sps:$4 sm:$0xff]  }
  0x21   : > { %1123 = vmatpush1.bf16.msra.mxu0 %v1623_v22  ;;  %v1684_v63 = vld [vmem:[%s2319_s1 + $0x184] ss:$8 sps:$4 sm:$0xff]   ;;  %v1692_v1 = vld [vmem:[%s2319_s1 + $0x274] ss:$8 sps:$4 sm:$0xff]   ;;  %v1689_v2 = vld [vmem:[%s2319_s1 + $0x180] ss:$8 sps:$4 sm:$0xff]  }
  0x22   : > { %1124 = vmatprep.subr.bf16.mxu0 %v1627_v23  ;;  %1166 = vmatpush1.bf16.msra.mxu1 %v1626_v24  ;;  %v1686_v3 = vld [vmem:[%s1997_s13] ss:$36 sps:$4 sm:$0xff]   ;;  %v1698_v4 = vld [vmem:[%s2319_s1 + $0x374] ss:$8 sps:$4 sm:$0xff]   ;;  %v1690_v5 = vld [vmem:[%s2319_s1 + $0x270] ss:$8 sps:$4 sm:$0xff]  }
  0x23   : > { %1167 = vmatprep.subr.bf16.mxu1 %v1630_v25  ;;  %v1693_v6 = vld [vmem:[%s1997_s13 + $0x8] ss:$36 sps:$4 sm:$0xff]   ;;  %v1696_v8 = vld [vmem:[%s2319_s1 + $0x370] ss:$8 sps:$4 sm:$0xff]   ;;  %v1707_v11 = vld [vmem:[%s2319_s1 + $0x254] ss:$8 sps:$4 sm:$0xff]  }
  0x24   : > { %v1701_v7 = vld [vmem:[%s2319_s1 + $0x264] ss:$8 sps:$4 sm:$0xff]   ;;  %v1699_v10 = vld [vmem:[%s2319_s1 + $0x260] ss:$8 sps:$4 sm:$0xff]   ;;  %v1710_v13 = vld [vmem:[%s2319_s1 + $0x354] ss:$8 sps:$4 sm:$0xff]  }
  0x25   : > { %1125 = vmatpush1.bf16.msra.mxu0 %v1629_v26  ;;  %v1704_v9 = vld [vmem:[%s2319_s1 + $0x364] ss:$8 sps:$4 sm:$0xff]   ;;  %v1702_v12 = vld [vmem:[%s2319_s1 + $0x360] ss:$8 sps:$4 sm:$0xff]   ;;  %v1705_v14 = vld [vmem:[%s2319_s1 + $0x250] ss:$8 sps:$4 sm:$0xff]  }
  0x26   : > { %1126 = vmatprep.subr.bf16.mxu0 %v1633_v27  ;;  %1168 = vmatpush1.bf16.msra.mxu1 %v1632_v28  ;;  %v1713_v15 = vld [vmem:[%s2319_s1 + $0x244] ss:$8 sps:$4 sm:$0xff]   ;;  %v1708_v16 = vld [vmem:[%s2319_s1 + $0x350] ss:$8 sps:$4 sm:$0xff]   ;;  %v1711_v18 = vld [vmem:[%s2319_s1 + $0x240] ss:$8 sps:$4 sm:$0xff]  }
  0x27   : > { %1169 = vmatprep.subr.bf16.mxu1 %v1636_v29  ;;  %v1716_v17 = vld [vmem:[%s2319_s1 + $0x344] ss:$8 sps:$4 sm:$0xff]   ;;  %v1719_v19 = vld [vmem:[%s2319_s1 + $0x234] ss:$8 sps:$4 sm:$0xff]   ;;  %v1714_v20 = vld [vmem:[%s2319_s1 + $0x340] ss:$8 sps:$4 sm:$0xff]  }
  0x28   : > { %v1722_v21 = vld [vmem:[%s2319_s1 + $0x334] ss:$8 sps:$4 sm:$0xff]   ;;  %v1717_v22 = vld [vmem:[%s2319_s1 + $0x230] ss:$8 sps:$4 sm:$0xff]   ;;  %v1725_v23 = vld [vmem:[%s2319_s1 + $0x224] ss:$8 sps:$4 sm:$0xff]  }
  0x29   : > { %1127 = vmatpush1.bf16.msra.mxu0 %v1635_v30  ;;  %v1720_v24 = vld [vmem:[%s2319_s1 + $0x330] ss:$8 sps:$4 sm:$0xff]   ;;  %v1728_v25 = vld [vmem:[%s2319_s1 + $0x324] ss:$8 sps:$4 sm:$0xff]   ;;  %v1723_v26 = vld [vmem:[%s2319_s1 + $0x220] ss:$8 sps:$4 sm:$0xff]  }
  0x2a   : > { %1128 = vmatprep.subr.bf16.mxu0 %v1639_v31  ;;  %1170 = vmatpush1.bf16.msra.mxu1 %v1638_v32  ;;  %v1731_v27 = vld [vmem:[%s2319_s1 + $0x214] ss:$8 sps:$4 sm:$0xff]   ;;  %v1726_v28 = vld [vmem:[%s2319_s1 + $0x320] ss:$8 sps:$4 sm:$0xff]   ;;  %v1729_v30 = vld [vmem:[%s2319_s1 + $0x210] ss:$8 sps:$4 sm:$0xff]  }
  0x2b   : > { %1171 = vmatprep.subr.bf16.mxu1 %v1642_v33  ;;  %v1734_v29 = vld [vmem:[%s2319_s1 + $0x314] ss:$8 sps:$4 sm:$0xff]   ;;  %v1732_v31 = vld [vmem:[%s2319_s1 + $0x310] ss:$8 sps:$4 sm:$0xff]   ;;  %v1737_v32 = vld [vmem:[%s2319_s1 + $0x204] ss:$8 sps:$4 sm:$0xff]  }
  0x2c   : > { %v1791_v33 = vld [vmem:[%s1997_s13 + $0x14] ss:$36 sps:$4 sm:$0xff]   ;;  %v1764_v51 = vld [vmem:[%s2319_s1 + $0x3c4] ss:$8 sps:$4 sm:$0xff]  }
  0x2d   : > { %1129 = vmatpush2.bf16.msra.mxu0 %v1641_v34  ;;  %v1740_v34 = vld [vmem:[%s2319_s1 + $0x304] ss:$8 sps:$4 sm:$0xff]   ;;  %v1758_v47 = vld [vmem:[%s2319_s1 + $0x3d4] ss:$8 sps:$4 sm:$0xff]  }
  0x2e   : > { %1130 = vmatprep.subr.bf16.mxu0 %v1645_v35  ;;  %1172 = vmatpush2.bf16.msra.mxu1 %v1644_v36  ;;  %v1735_v35 = vld [vmem:[%s2319_s1 + $0x200] ss:$8 sps:$4 sm:$0xff]  }
  0x2f   : > { %1173 = vmatprep.subr.bf16.mxu1 %v1648_v37  ;;  %v1797_v36 = vld [vmem:[%s1997_s13 + $0x1c] ss:$36 sps:$4 sm:$0xff]  }
  0x30   : > { %v1743_v37 = vld [vmem:[%s2319_s1 + $0x2f4] ss:$8 sps:$4 sm:$0xff]  }
  0x31   : > { %1131 = vmatpush2.bf16.msra.mxu0 %v1647_v38  ;;  %v1738_v38 = vld [vmem:[%s2319_s1 + $0x300] ss:$8 sps:$4 sm:$0xff]  }
  0x32   : > { %1132 = vmatprep.subr.bf16.mxu0 %v1651_v39  ;;  %1174 = vmatpush2.bf16.msra.mxu1 %v1650_v40  ;;  %v1746_v39 = vld [vmem:[%s2319_s1 + $0x3f4] ss:$8 sps:$4 sm:$0xff]   ;;  %v1741_v40 = vld [vmem:[%s2319_s1 + $0x2f0] ss:$8 sps:$4 sm:$0xff]  }
  0x33   : > { %1175 = vmatprep.subr.bf16.mxu1 %v1654_v41  ;;  %v1749_v41 = vld [vmem:[%s2319_s1 + $0x2e4] ss:$8 sps:$4 sm:$0xff]  }
  0x35   : > { %1133 = vmatpush2.bf16.msra.mxu0 %v1653_v42  ;;  %v1744_v42 = vld [vmem:[%s2319_s1 + $0x3f0] ss:$8 sps:$4 sm:$0xff]  }
  0x36   : > { %1134 = vmatprep.subr.bf16.mxu0 %v1657_v43  ;;  %1176 = vmatpush2.bf16.msra.mxu1 %v1656_v44  ;;  %v1752_v43 = vld [vmem:[%s2319_s1 + $0x3e4] ss:$8 sps:$4 sm:$0xff]   ;;  %v1747_v44 = vld [vmem:[%s2319_s1 + $0x2e0] ss:$8 sps:$4 sm:$0xff]  }
  0x37   : > { %1177 = vmatprep.subr.bf16.mxu1 %v1660_v45  ;;  %v1755_v45 = vld [vmem:[%s2319_s1 + $0x2d4] ss:$8 sps:$4 sm:$0xff]  }
  0x39   : > { %1135 = vmatpush2.bf16.msra.mxu0 %v1659_v46  ;;  %v1750_v46 = vld [vmem:[%s2319_s1 + $0x3e0] ss:$8 sps:$4 sm:$0xff]  }
  0x3a   : > { %1136 = vmatprep.subr.bf16.mxu0 %v1663_v48  ;;  %1178 = vmatpush2.bf16.msra.mxu1 %v1662_v49  ;;  %v1753_v48 = vld [vmem:[%s2319_s1 + $0x2d0] ss:$8 sps:$4 sm:$0xff]   ;;  %v1761_v49 = vld [vmem:[%s2319_s1 + $0x2c4] ss:$8 sps:$4 sm:$0xff]  }
  0x3b   : > { %1179 = vmatprep.subr.bf16.mxu1 %v1666_v50  ;;  %v1756_v50 = vld [vmem:[%s2319_s1 + $0x3d0] ss:$8 sps:$4 sm:$0xff]  }
  0x3d   : > { %1137 = vmatpush2.bf16.msra.mxu0 %v1665_v52  ;;  %v1759_v52 = vld [vmem:[%s2319_s1 + $0x2c0] ss:$8 sps:$4 sm:$0xff]  }
  0x3e   : > { %1138 = vmatprep.subr.bf16.mxu0 %v1669_v53  ;;  %1180 = vmatpush2.bf16.msra.mxu1 %v1668_v54  ;;  %v1767_v53 = vld [vmem:[%s2319_s1 + $0x2b4] ss:$8 sps:$4 sm:$0xff]   ;;  %v1762_v54 = vld [vmem:[%s2319_s1 + $0x3c0] ss:$8 sps:$4 sm:$0xff]  }
  0x3f   : > { %1181 = vmatprep.subr.bf16.mxu1 %v1672_v55  ;;  %v1770_v55 = vld [vmem:[%s2319_s1 + $0x3b4] ss:$8 sps:$4 sm:$0xff]  }
  0x41   : > { %1139 = vmatpush2.bf16.msra.mxu0 %v1671_v56  ;;  %v1765_v56 = vld [vmem:[%s2319_s1 + $0x2b0] ss:$8 sps:$4 sm:$0xff]  }
  0x42   : > { %1140 = vmatprep.subr.bf16.mxu0 %v1675_v57  ;;  %1182 = vmatpush2.bf16.msra.mxu1 %v1674_v58  ;;  %v1773_v57 = vld [vmem:[%s2319_s1 + $0x2a4] ss:$8 sps:$4 sm:$0xff]   ;;  %v1768_v58 = vld [vmem:[%s2319_s1 + $0x3b0] ss:$8 sps:$4 sm:$0xff]  }
  0x43   : > { %1183 = vmatprep.subr.bf16.mxu1 %v1678_v59  ;;  %v1776_v59 = vld [vmem:[%s2319_s1 + $0x3a4] ss:$8 sps:$4 sm:$0xff]  }
  0x45   : > { %1141 = vmatpush2.bf16.msra.mxu0 %v1677_v60  ;;  %v1771_v60 = vld [vmem:[%s2319_s1 + $0x2a0] ss:$8 sps:$4 sm:$0xff]  }
  0x46   : > { %1142 = vmatprep.subr.bf16.mxu0 %v1681_v61  ;;  %1184 = vmatpush2.bf16.msra.mxu1 %v1680_v62  ;;  %v1779_v61 = vld [vmem:[%s2319_s1 + $0x294] ss:$8 sps:$4 sm:$0xff]   ;;  %v1774_v62 = vld [vmem:[%s2319_s1 + $0x3a0] ss:$8 sps:$4 sm:$0xff]  }
  0x47   : > { %1185 = vmatprep.subr.bf16.mxu1 %v1684_v63  ;;  %v1782_v63 = vld [vmem:[%s2319_s1 + $0x394] ss:$8 sps:$4 sm:$0xff]  }
  0x49   : > { %1143 = vmatpush2.bf16.msra.mxu0 %v1683_v0  ;;  %v1777_v0 = vld [vmem:[%s2319_s1 + $0x290] ss:$8 sps:$4 sm:$0xff]  }
  0x4a   : > { %1198 = vmatprep.subr.bf16.mxu0 %v1692_v1  ;;  %1186 = vmatpush2.bf16.msra.mxu1 %v1689_v2  ;;  %v1785_v1 = vld [vmem:[%s2319_s1 + $0x284] ss:$8 sps:$4 sm:$0xff]   ;;  %v1780_v2 = vld [vmem:[%s2319_s1 + $0x390] ss:$8 sps:$4 sm:$0xff]  }
  0x4b   : > { %1241 = vmatprep.subr.bf16.mxu1 %v1698_v4  ;;  %v1783_v4 = vld [vmem:[%s2319_s1 + $0x280] ss:$8 sps:$4 sm:$0xff]  }
  0x4c   : > { %1145 = vmatmul.mubr.bf16.vlgmr.msra.gmra.mxu0 %v1686_v3  ;;  %v1788_v3 = vld [vmem:[%s2319_s1 + $0x384] ss:$8 sps:$4 sm:$0xff]  }
  0x4d   : > { %1199 = vmatpush1.bf16.msra.mxu0 %v1690_v5  ;;  %1188 = vmatmul.mubr.bf16.vlgmr.msra.gmra.mxu1 %v1693_v6  ;;  %v1794_v5 = vld [vmem:[%s2319_s1 + $0x474] ss:$8 sps:$4 sm:$0xff]   ;;  %v1786_v6 = vld [vmem:[%s2319_s1 + $0x380] ss:$8 sps:$4 sm:$0xff]  }
  0x4e   : > { %1200 = vmatprep.subr.bf16.mxu0 %v1701_v7  ;;  %1242 = vmatpush1.bf16.msra.mxu1 %v1696_v8  ;;  %v1789_v7 = vld [vmem:[%s1997_s13 + $0x10] ss:$36 sps:$4 sm:$0xff]  }
  0x4f   : > { %1243 = vmatprep.subr.bf16.mxu1 %v1704_v9  ;;  %1230 = vmatprep.mubr.bf16.mxu0 %v1791_v33  ;;  %v1792_v8 = vld [vmem:[%s2319_s1 + $0x470] ss:$8 sps:$4 sm:$0xff]  }
  0x50   : > { %1273 = vmatprep.mubr.bf16.mxu1 %v1797_v36  ;;  %v1795_v9 = vld [vmem:[%s1997_s13 + $0x18] ss:$36 sps:$4 sm:$0xff]  }
  0x51   : > { %1201 = vmatpush1.bf16.msra.mxu0 %v1699_v10  ;;  %v1800_v10 = vld [vmem:[%s2319_s1 + $0x464] ss:$8 sps:$4 sm:$0xff]  }
  0x52   : > { %1202 = vmatprep.subr.bf16.mxu0 %v1707_v11  ;;  %1244 = vmatpush1.bf16.msra.mxu1 %v1702_v12  ;;  %v1798_v11 = vld [vmem:[%s2319_s1 + $0x460] ss:$8 sps:$4 sm:$0xff]   ;;  %v1828_v12 = vmov 0  }
  0x53   : > { %1245 = vmatprep.subr.bf16.mxu1 %v1710_v13  ;;  %v1803_v13 = vld [vmem:[%s2319_s1 + $0x454] ss:$8 sps:$4 sm:$0xff]  }
  0x55   : > { %1203 = vmatpush1.bf16.msra.mxu0 %v1705_v14  ;;  %v1801_v14 = vld [vmem:[%s2319_s1 + $0x450] ss:$8 sps:$4 sm:$0xff]  }
  0x56   : > { %1204 = vmatprep.subr.bf16.mxu0 %v1713_v15  ;;  %1246 = vmatpush1.bf16.msra.mxu1 %v1708_v16  ;;  %v1806_v15 = vld [vmem:[%s2319_s1 + $0x444] ss:$8 sps:$4 sm:$0xff]   ;;  %v1804_v16 = vld [vmem:[%s2319_s1 + $0x440] ss:$8 sps:$4 sm:$0xff]  }
  0x57   : > { %1247 = vmatprep.subr.bf16.mxu1 %v1716_v17  ;;  %v1809_v17 = vld [vmem:[%s2319_s1 + $0x434] ss:$8 sps:$4 sm:$0xff]  }
  0x59   : > { %1205 = vmatpush1.bf16.msra.mxu0 %v1711_v18  ;;  %v1807_v18 = vld [vmem:[%s2319_s1 + $0x430] ss:$8 sps:$4 sm:$0xff]  }
  0x5a   : > { %1206 = vmatprep.subr.bf16.mxu0 %v1719_v19  ;;  %1248 = vmatpush1.bf16.msra.mxu1 %v1714_v20  ;;  %v1812_v19 = vld [vmem:[%s2319_s1 + $0x424] ss:$8 sps:$4 sm:$0xff]   ;;  %v1810_v20 = vld [vmem:[%s2319_s1 + $0x420] ss:$8 sps:$4 sm:$0xff]  }
  0x5b   : > { %1249 = vmatprep.subr.bf16.mxu1 %v1722_v21  ;;  %v1815_v21 = vld [vmem:[%s2319_s1 + $0x414] ss:$8 sps:$4 sm:$0xff]  }
  0x5d   : > { %1207 = vmatpush1.bf16.msra.mxu0 %v1717_v22  ;;  %v1813_v22 = vld [vmem:[%s2319_s1 + $0x410] ss:$8 sps:$4 sm:$0xff]  }
  0x5e   : > { %1208 = vmatprep.subr.bf16.mxu0 %v1725_v23  ;;  %1250 = vmatpush1.bf16.msra.mxu1 %v1720_v24  ;;  %v1818_v23 = vld [vmem:[%s2319_s1 + $0x404] ss:$8 sps:$4 sm:$0xff]   ;;  %v1816_v24 = vld [vmem:[%s2319_s1 + $0x400] ss:$8 sps:$4 sm:$0xff]  }
  0x5f   : > { %1251 = vmatprep.subr.bf16.mxu1 %v1728_v25  ;;  %v1819_v25 = vld [vmem:[%s1997_s13 + $0x20] ss:$36 sps:$4 sm:$0xff]   ;;  %s1578_s13 = sshll.u32 %s2323_s22, 3 }
  0x60   : > { %s177_s18 = scalar_lea.vmem %s2321_s3, %s1578_s13 }
  0x61   : > { %1209 = vmatpush1.bf16.msra.mxu0 %v1723_v26 }
  0x62   : > { %1210 = vmatprep.subr.bf16.mxu0 %v1731_v27  ;;  %1252 = vmatpush1.bf16.msra.mxu1 %v1726_v28  ;;  %v336_v27 = vlaneseq }
  0x63   : > { %1253 = vmatprep.subr.bf16.mxu1 %v1734_v29 }
  0x65   : > { %1211 = vmatpush1.bf16.msra.mxu0 %v1729_v30  ;;  %v337_v30 = vshrl.u32 %v336_v27, 7 }
  0x66   : > { %1212 = vmatprep.subr.bf16.mxu0 %v1737_v32  ;;  %1254 = vmatpush1.bf16.msra.mxu1 %v1732_v31 }
  0x67   : > { %1255 = vmatprep.subr.bf16.mxu1 %v1740_v34  ;;  %v338_v33 = vsub.s32 0, %v337_v30  ;;  %v334_v34 = vld [vmem:[%s2320_s2] sm:$0x3] }
  0x69   : > { %1213 = vmatpush1.bf16.msra.mxu0 %v1735_v35  ;;  %v342_v35 = vsub.s32 1, %v337_v30 }
  0x6a   : > { %1214 = vmatprep.subr.bf16.mxu0 %v1743_v37  ;;  %1256 = vmatpush1.bf16.msra.mxu1 %v1738_v38  ;;  %v339_v38 = vrot.slane %v334_v34, %v338_v33 }
  0x6b   : > { %1257 = vmatprep.subr.bf16.mxu1 %v1746_v39 }
  0x6d   : > { %1215 = vmatpush2.bf16.msra.mxu0 %v1741_v40  ;;  %v343_v40 = vrot.slane %v334_v34, %v342_v35 }
  0x6e   : > { %1216 = vmatprep.subr.bf16.mxu0 %v1749_v41  ;;  %1258 = vmatpush2.bf16.msra.mxu1 %v1744_v42 }
  0x6f   : > { %1259 = vmatprep.subr.bf16.mxu1 %v1752_v43 }
  0x71   : > { %1217 = vmatpush2.bf16.msra.mxu0 %v1747_v44 }
  0x72   : > { %1218 = vmatprep.subr.bf16.mxu0 %v1755_v45  ;;  %1260 = vmatpush2.bf16.msra.mxu1 %v1750_v46 }
  0x73   : > { %1261 = vmatprep.subr.bf16.mxu1 %v1758_v47 }
  0x75   : > { %1219 = vmatpush2.bf16.msra.mxu0 %v1753_v48 }
  0x76   : > { %1220 = vmatprep.subr.bf16.mxu0 %v1761_v49  ;;  %1262 = vmatpush2.bf16.msra.mxu1 %v1756_v50 }
  0x77   : > { %1263 = vmatprep.subr.bf16.mxu1 %v1764_v51 }
  0x79   : > { %1221 = vmatpush2.bf16.msra.mxu0 %v1759_v52 }
  0x7a   : > { %1222 = vmatprep.subr.bf16.mxu0 %v1767_v53  ;;  %1264 = vmatpush2.bf16.msra.mxu1 %v1762_v54 }
  0x7b   : > { %1265 = vmatprep.subr.bf16.mxu1 %v1770_v55 }
  0x7d   : > { %1223 = vmatpush2.bf16.msra.mxu0 %v1765_v56 }
  0x7e   : > { %1224 = vmatprep.subr.bf16.mxu0 %v1773_v57  ;;  %1266 = vmatpush2.bf16.msra.mxu1 %v1768_v58 }
  0x7f   : > { %1267 = vmatprep.subr.bf16.mxu1 %v1776_v59 }
  0x81   : > { %1225 = vmatpush2.bf16.msra.mxu0 %v1771_v60 }
  0x82   : > { %1226 = vmatprep.subr.bf16.mxu0 %v1779_v61  ;;  %1268 = vmatpush2.bf16.msra.mxu1 %v1774_v62 }
  0x83   : > { %1269 = vmatprep.subr.bf16.mxu1 %v1782_v63 }
  0x85   : > { %1227 = vmatpush2.bf16.msra.mxu0 %v1777_v0 }
  0x86   : > { %1228 = vmatprep.subr.bf16.mxu0 %v1785_v1  ;;  %1270 = vmatpush2.bf16.msra.mxu1 %v1780_v2 }
  0x87   : > { %1271 = vmatprep.subr.bf16.mxu1 %v1788_v3 }
  0x89   : > { %1229 = vmatpush2.bf16.msra.mxu0 %v1783_v4 }
  0x8a   : > { %1284 = vmatprep.subr.bf16.mxu0 %v1794_v5  ;;  %1272 = vmatpush2.bf16.msra.mxu1 %v1786_v6 }
  0x8c   : > { %1231 = vmatmul.mubr.bf16.vlgmr.msra.gmra.mxu0 %v1789_v7 }
  0x8d   : > { %1285 = vmatpush1.bf16.msra.mxu0 %v1792_v8  ;;  %1316 = vmatprep.mubr.bf16.mxu0 %v1828_v12 }
  0x8e   : > { %1274 = vmatmul.mubr.bf16.vlgmr.msra.gmra.mxu1 %v1795_v9  ;;  %1286 = vmatprep.subr.bf16.mxu0 %v1800_v10 }
  0x91   : > { %1287 = vmatpush1.bf16.msra.mxu0 %v1798_v11 }
  0x92   : > { %1288 = vmatprep.subr.bf16.mxu0 %v1803_v13 }
  0x95   : > { %1289 = vmatpush1.bf16.msra.mxu0 %v1801_v14 }
  0x96   : > { %1290 = vmatprep.subr.bf16.mxu0 %v1806_v15 }
  0x99   : > { %1291 = vmatpush1.bf16.msra.mxu0 %v1804_v16 }
  0x9a   : > { %1292 = vmatprep.subr.bf16.mxu0 %v1809_v17 }
  0x9d   : > { %1293 = vmatpush1.bf16.msra.mxu0 %v1807_v18 }
  0x9e   : > { %1294 = vmatprep.subr.bf16.mxu0 %v1812_v19 }
  0xa1   : > { %1295 = vmatpush1.bf16.msra.mxu0 %v1810_v20 }
  0xa2   : > { %1296 = vmatprep.subr.bf16.mxu0 %v1815_v21 }
  0xa5   : > { %1297 = vmatpush1.bf16.msra.mxu0 %v1813_v22 }
  0xa6   : > { %1298 = vmatprep.subr.bf16.mxu0 %v1818_v23 }
  0xa9   : > { %1299 = vmatpush1.bf16.msra.mxu0 %v1816_v24 }
  0xac   : > { %1317 = vmatmul.mubr.bf16.vlgmr.msra.gmra.mxu0 %v1819_v25 }
 0x10c   : > { %v1146_v26 = vpop.f32.mrf.mxu0 }
 0x10d   : > { %v1189_v29 = vpop.f32.mrf.mxu1  ;;  %v1147_v42 = vadd.f32 %v1146_v26, %v339_v38 }
 0x10e   : > { %v1148_v28 = vpop.f32.mrf.mxu0 }
 0x10f   : > { %v1191_v32 = vpop.f32.mrf.mxu1  ;;  %v1149_v45 = vadd.f32 %v1148_v28, %v343_v40  ;;  %v1190_v46 = vadd.f32 %v1189_v29, %v1147_v42 }
 0x110   : > { %v1150_v31 = vpop.f32.mrf.mxu0 }
 0x111   : > { %v1193_v37 = vpop.f32.mrf.mxu1  ;;  %v1151_v47 = vadd.f32 %v1150_v31, %v339_v38  ;;  %v1192_v50 = vadd.f32 %v1191_v32, %v1149_v45 }
 0x112   : > { %v1152_v36 = vpop.f32.mrf.mxu0 }
 0x113   : > { %v1195_v41 = vpop.f32.mrf.mxu1  ;;  %v1153_v51 = vadd.f32 %v1152_v36, %v343_v40  ;;  %v1194_v53 = vadd.f32 %v1193_v37, %v1151_v47 }
 0x115   : > { %v1196_v57 = vadd.f32 %v1195_v41, %v1153_v51 }
 0x14c   : > { %v1232_v39 = vpop.f32.mrf.mxu0 }
 0x14d   : > { %v1233_v52 = vadd.f32 %v1232_v39, %v1190_v46 }
 0x14e   : > { %v1234_v43 = vpop.f32.mrf.mxu0  ;;  %v1275_v44 = vpop.f32.mrf.mxu1 }
 0x14f   : > { %v1235_v54 = vadd.f32 %v1234_v43, %v1192_v50  ;;  %v1276_v58 = vadd.f32 %v1275_v44, %v1233_v52 }
 0x150   : > { %v1236_v48 = vpop.f32.mrf.mxu0  ;;  %v1277_v49 = vpop.f32.mrf.mxu1 }
 0x151   : > { %v1237_v59 = vadd.f32 %v1236_v48, %v1194_v53  ;;  %v1278_v61 = vadd.f32 %v1277_v49, %v1235_v54 }
 0x152   : > { %v1238_v55 = vpop.f32.mrf.mxu0  ;;  %v1279_v56 = vpop.f32.mrf.mxu1 }
 0x153   : > { %v1239_v62 = vadd.f32 %v1238_v55, %v1196_v57  ;;  %v1280_v2 = vadd.f32 %v1279_v56, %v1237_v59 }
 0x154   : > { %v1281_v0 = vpop.f32.mrf.mxu1 }
 0x155   : > { %v1282_v6 = vadd.f32 %v1281_v0, %v1239_v62 }
 0x16c   : > { %v1318_v60 = vpop.f32.mrf.mxu0 }
 0x16d   : > { %v1319_v63 = vadd.f32 %v1318_v60, %v1276_v58 }
 0x16e   : > { %v1320_v1 = vpop.f32.mrf.mxu0 }
 0x16f   : > { %v1331_v3 = vmul.f32 0.01, %v1319_v63  ;;  %v1321_v4 = vadd.f32 %v1320_v1, %v1278_v61  ;;  %vm1327_vm0 = vcmp.gt.f32.partialorder %v1319_v63, 0.0 }
 0x170   : > { %v1322_v5 = vpop.f32.mrf.mxu0 }
 0x171   : > { %vm1328_vm1 = vcmp.gt.f32.partialorder %v1321_v4, 0.0  ;;  %v1332_v7 = vmul.f32 0.01, %v1321_v4  ;;  %v1323_v8 = vadd.f32 %v1322_v5, %v1280_v2  ;;  %v1335_v10 = vsel %vm1327_vm0, %v1319_v63, %v1331_v3 }
 0x172   : > { %v1324_v9 = vpop.f32.mrf.mxu0 }
 0x173   : > { %v1336_v11 = vsel %vm1328_vm1, %v1321_v4, %v1332_v7  ;;  %v1333_v12 = vmul.f32 0.01, %v1323_v8  ;;  %v1325_v13 = vadd.f32 %v1324_v9, %v1282_v6  ;;  %vm1329_vm2 = vcmp.gt.f32.partialorder %v1323_v8, 0.0 }
 0x174   : > { %v1579_v14 = vpack.c.bf16 %v1336_v11, %v1335_v10 }
 0x175   : > { %vm1330_vm3 = vcmp.gt.f32.partialorder %v1325_v13, 0.0  ;;  %v1334_v15 = vmul.f32 0.01, %v1325_v13  ;;  %v1337_v16 = vsel %vm1329_vm2, %v1323_v8, %v1333_v12 }
 0x176   : > { %1351 = vst [vmem:[%s177_s18] sm:$0xff] %v1579_v14 }
 0x177   : > { %v1338_v17 = vsel %vm1330_vm3, %v1325_v13, %v1334_v15 }
 0x178   : > { %v1580_v18 = vpack.c.bf16 %v1338_v17, %v1337_v16 }
 0x17a   : > { %1352 = vst [vmem:[%s177_s18 + $0x8] sm:$0xff] %v1580_v18 }
 0x17b PF: > { %s13_s12 = sadd.s32 1, %s1826_s12  }
 0x17c   : > { %p10_p4 = scmp.ge.s32.totalorder %s13_s12, 4  }
 0x17e   :  { %12 = sbr.rel (!%p10_p4) target bundleno = 1 (0x1), region = 62 }

// kernel: discriminator_forward.9
= control target key start
LH: loop header
LB: loop body
LE: loop exit
PB: predicated region body
PF: predicated region fallthrough
CT: control target
= control target key end

     0   :  { %v551_v36 = vlaneseq  ;;  %v5466_v37 = vmov 1966171168   ;;  %vm4095_vm2 = vcmask 1041408   ;;  %vm3962_vm3 = vcmask 1044480   ;;  %s7276_s2 = inlined_call_operand.vmem [shape: bf16[2048,512], index: 2, kind: input, shape index: {}]   ;;  %s7277_s0 = inlined_call_operand.vmem [shape: bf16[2,2048], index: 0, kind: input, shape index: {}]   ;;  %s7278_s3 = inlined_call_operand.vmem [shape: f32[1,512], index: 3, kind: input, shape index: {}]   ;;  %s7279_s4 = inlined_call_operand.vmem [shape: bf16[10,512], index: 4, kind: input, shape index: {}]   ;;  %s7280_s6 = inlined_call_operand.vmem [shape: f32[1,512], index: 6, kind: input, shape index: {}]   ;;  %s7281_s1 = inlined_call_operand.vmem [shape: bf16[2,10], index: 1, kind: input, shape index: {}]   ;;  %s7282_s5 = inlined_call_operand.vmem [shape: f32[1,512], index: 5, kind: input, shape index: {}]   ;;  %s7283_s7 = inlined_call_operand.vmem [shape: f32[1,512], index: 7, kind: input, shape index: {}]   ;;  %s7284_s8 = inlined_call_operand.<no memory space> [shape: f32[1,1], index: 8, kind: input, shape index: {}]   ;;  %s7285_s9 = inlined_call_operand.vmem [shape: f32[2,1], index: 9, kind: output, shape index: {}]  }
   0x1   :  { %v4685_v0 = vld [vmem:[%s7276_s2 + $0xe4] ss:$16 sps:$4 sm:$0xff]   ;;  %v4689_v2 = vld [vmem:[%s7276_s2 + $0xe0] ss:$16 sps:$4 sm:$0xff]   ;;  %v575_v38 = vunpack.c.l.s4 %v5466_v37  ;;  %vm3958_vm4 = vcmask 80896   ;;  %vm4155_vm11 = vcmask 1024  }
   0x2   :  { %v4687_v1 = vld [vmem:[%s7276_s2 + $0x2e4] ss:$16 sps:$4 sm:$0xff]   ;;  %3247 = vmatprep.subr.bf16.mxu0 %v4685_v0  ;;  %v4690_v3 = vld [vmem:[%s7276_s2 + $0x2e0] ss:$16 sps:$4 sm:$0xff]   ;;  %v5635_v42 = vshrl.u32 %v551_v36, 7 }
   0x3   :  { %3288 = vmatprep.subr.bf16.mxu1 %v4687_v1  ;;  %v4691_v4 = vld [vmem:[%s7276_s2 + $0xc4] ss:$16 sps:$4 sm:$0xff]   ;;  %3248 = vmatpush1.bf16.msra.mxu0 %v4689_v2  ;;  %v4695_v6 = vld [vmem:[%s7276_s2 + $0xc0] ss:$16 sps:$4 sm:$0xff]   ;;  %v576_v43 = vunpack.c.0.s8 %v575_v38 }
   0x4   :  { %3289 = vmatpush1.bf16.msra.mxu1 %v4690_v3  ;;  %v4693_v5 = vld [vmem:[%s7276_s2 + $0x2c4] ss:$16 sps:$4 sm:$0xff]   ;;  %3249 = vmatprep.subr.bf16.mxu0 %v4691_v4  ;;  %v4696_v7 = vld [vmem:[%s7276_s2 + $0x2c0] ss:$16 sps:$4 sm:$0xff]  }
   0x5   :  { %3290 = vmatprep.subr.bf16.mxu1 %v4693_v5  ;;  %v4697_v8 = vld [vmem:[%s7276_s2 + $0xa4] ss:$16 sps:$4 sm:$0xff]   ;;  %v4701_v10 = vld [vmem:[%s7276_s2 + $0xa0] ss:$16 sps:$4 sm:$0xff]   ;;  %v5653_v49 = vsub.s32 %v576_v43, %v5635_v42 }
   0x6   :  { %v4699_v9 = vld [vmem:[%s7276_s2 + $0x2a4] ss:$16 sps:$4 sm:$0xff]   ;;  %v4702_v11 = vld [vmem:[%s7276_s2 + $0x2a0] ss:$16 sps:$4 sm:$0xff]  }
   0x7   :  { %3250 = vmatpush1.bf16.msra.mxu0 %v4695_v6  ;;  %v4703_v12 = vld [vmem:[%s7276_s2 + $0x84] ss:$16 sps:$4 sm:$0xff]   ;;  %v4707_v14 = vld [vmem:[%s7276_s2 + $0x80] ss:$16 sps:$4 sm:$0xff]  }
   0x8   :  { %3291 = vmatpush1.bf16.msra.mxu1 %v4696_v7  ;;  %3251 = vmatprep.subr.bf16.mxu0 %v4697_v8  ;;  %v4705_v13 = vld [vmem:[%s7276_s2 + $0x284] ss:$16 sps:$4 sm:$0xff]   ;;  %v4708_v15 = vld [vmem:[%s7276_s2 + $0x280] ss:$16 sps:$4 sm:$0xff]  }
   0x9   :  { %3292 = vmatprep.subr.bf16.mxu1 %v4699_v9  ;;  %v4709_v16 = vld [vmem:[%s7276_s2 + $0x64] ss:$16 sps:$4 sm:$0xff]   ;;  %v4713_v18 = vld [vmem:[%s7276_s2 + $0x60] ss:$16 sps:$4 sm:$0xff]  }
   0xa   :  { %v4711_v17 = vld [vmem:[%s7276_s2 + $0x264] ss:$16 sps:$4 sm:$0xff]   ;;  %v4714_v19 = vld [vmem:[%s7276_s2 + $0x260] ss:$16 sps:$4 sm:$0xff]  }
   0xb   :  { %3252 = vmatpush1.bf16.msra.mxu0 %v4701_v10  ;;  %v4715_v20 = vld [vmem:[%s7276_s2 + $0x44] ss:$16 sps:$4 sm:$0xff]   ;;  %v4719_v22 = vld [vmem:[%s7276_s2 + $0x40] ss:$16 sps:$4 sm:$0xff]  }
   0xc   :  { %3293 = vmatpush1.bf16.msra.mxu1 %v4702_v11  ;;  %3253 = vmatprep.subr.bf16.mxu0 %v4703_v12  ;;  %v4717_v21 = vld [vmem:[%s7276_s2 + $0x244] ss:$16 sps:$4 sm:$0xff]   ;;  %v4720_v23 = vld [vmem:[%s7276_s2 + $0x240] ss:$16 sps:$4 sm:$0xff]  }
   0xd   :  { %3294 = vmatprep.subr.bf16.mxu1 %v4705_v13  ;;  %v4721_v24 = vld [vmem:[%s7276_s2 + $0x24] ss:$16 sps:$4 sm:$0xff]   ;;  %v4725_v26 = vld [vmem:[%s7276_s2 + $0x20] ss:$16 sps:$4 sm:$0xff]  }
   0xe   :  { %v4723_v25 = vld [vmem:[%s7276_s2 + $0x224] ss:$16 sps:$4 sm:$0xff]   ;;  %v4726_v27 = vld [vmem:[%s7276_s2 + $0x220] ss:$16 sps:$4 sm:$0xff]  }
   0xf   :  { %3254 = vmatpush1.bf16.msra.mxu0 %v4707_v14  ;;  %v4727_v28 = vld [vmem:[%s7276_s2 + $0x4] ss:$16 sps:$4 sm:$0xff]   ;;  %v4731_v30 = vld [vmem:[%s7276_s2] ss:$16 sps:$4 sm:$0xff]  }
  0x10   :  { %3295 = vmatpush1.bf16.msra.mxu1 %v4708_v15  ;;  %3255 = vmatprep.subr.bf16.mxu0 %v4709_v16  ;;  %v4729_v29 = vld [vmem:[%s7276_s2 + $0x204] ss:$16 sps:$4 sm:$0xff]   ;;  %v4732_v31 = vld [vmem:[%s7276_s2 + $0x200] ss:$16 sps:$4 sm:$0xff]  }
  0x11   :  { %3296 = vmatprep.subr.bf16.mxu1 %v4711_v17  ;;  %v4733_v32 = vld [vmem:[%s7276_s2 + $0x1e4] ss:$16 sps:$4 sm:$0xff]   ;;  %v4737_v34 = vld [vmem:[%s7276_s2 + $0x1e0] ss:$16 sps:$4 sm:$0xff]  }
  0x12   :  { %v4735_v33 = vld [vmem:[%s7276_s2 + $0x3e4] ss:$16 sps:$4 sm:$0xff]   ;;  %v4738_v35 = vld [vmem:[%s7276_s2 + $0x3e0] ss:$16 sps:$4 sm:$0xff]  }
  0x13   :  { %3256 = vmatpush1.bf16.msra.mxu0 %v4713_v18  ;;  %v4739_v39 = vld [vmem:[%s7276_s2 + $0x1c4] ss:$16 sps:$4 sm:$0xff]   ;;  %v4743_v41 = vld [vmem:[%s7276_s2 + $0x1c0] ss:$16 sps:$4 sm:$0xff]  }
  0x14   :  { %3297 = vmatpush1.bf16.msra.mxu1 %v4714_v19  ;;  %3257 = vmatprep.subr.bf16.mxu0 %v4715_v20  ;;  %v4741_v40 = vld [vmem:[%s7276_s2 + $0x3c4] ss:$16 sps:$4 sm:$0xff]   ;;  %v4744_v44 = vld [vmem:[%s7276_s2 + $0x3c0] ss:$16 sps:$4 sm:$0xff]  }
  0x15   :  { %3298 = vmatprep.subr.bf16.mxu1 %v4717_v21  ;;  %v4745_v45 = vld [vmem:[%s7276_s2 + $0x1a4] ss:$16 sps:$4 sm:$0xff]   ;;  %v4749_v47 = vld [vmem:[%s7276_s2 + $0x1a0] ss:$16 sps:$4 sm:$0xff]  }
  0x16   :  { %v4747_v46 = vld [vmem:[%s7276_s2 + $0x3a4] ss:$16 sps:$4 sm:$0xff]   ;;  %v4750_v48 = vld [vmem:[%s7276_s2 + $0x3a0] ss:$16 sps:$4 sm:$0xff]  }
  0x17   :  { %3258 = vmatpush1.bf16.msra.mxu0 %v4719_v22  ;;  %v4751_v50 = vld [vmem:[%s7276_s2 + $0x184] ss:$16 sps:$4 sm:$0xff]   ;;  %v4755_v53 = vld [vmem:[%s7276_s2 + $0x180] ss:$16 sps:$4 sm:$0xff]  }
  0x18   :  { %3299 = vmatpush1.bf16.msra.mxu1 %v4720_v23  ;;  %3259 = vmatprep.subr.bf16.mxu0 %v4721_v24  ;;  %v4753_v51 = vld [vmem:[%s7276_s2 + $0x384] ss:$16 sps:$4 sm:$0xff]   ;;  %v4756_v55 = vld [vmem:[%s7276_s2 + $0x380] ss:$16 sps:$4 sm:$0xff]  }
  0x19   :  { %3300 = vmatprep.subr.bf16.mxu1 %v4723_v25  ;;  %v35_v52 = vld [vmem:[%s7277_s0] sm:$0xff] }
  0x1a   :  { %v580_v54 = vrot.slane %v35_v52, %v5653_v49  ;;  %v4757_v56 = vld [vmem:[%s7276_s2 + $0x164] ss:$16 sps:$4 sm:$0xff]   ;;  %v4761_v59 = vld [vmem:[%s7276_s2 + $0x160] ss:$16 sps:$4 sm:$0xff]   ;;  %v573_v1 = vcombine.high %v35_v52, %v35_v52 }
  0x1b   :  { %3260 = vmatpush1.bf16.msra.mxu0 %v4725_v26  ;;  %v4759_v57 = vld [vmem:[%s7276_s2 + $0x364] ss:$16 sps:$4 sm:$0xff]   ;;  %v4762_v61 = vld [vmem:[%s7276_s2 + $0x360] ss:$16 sps:$4 sm:$0xff]  }
  0x1c   :  { %3301 = vmatpush1.bf16.msra.mxu1 %v4726_v27  ;;  %3261 = vmatprep.subr.bf16.mxu0 %v4727_v28  ;;  %v588_v58 = vcombine.high %v580_v54, %v580_v54  ;;  %v4763_v62 = vld [vmem:[%s7276_s2 + $0x144] ss:$16 sps:$4 sm:$0xff]   ;;  %v4767_v2 = vld [vmem:[%s7276_s2 + $0x140] ss:$16 sps:$4 sm:$0xff]   ;;  %v5711_v6 = vrot.slane %v573_v1, %v5653_v49  ;;  %v5731_v13 = vrot.slane %v580_v54, %v5653_v49 }
  0x1d   :  { %3302 = vmatprep.subr.bf16.mxu1 %v4729_v29  ;;  %v4765_v63 = vld [vmem:[%s7276_s2 + $0x344] ss:$16 sps:$4 sm:$0xff]   ;;  %v4768_v3 = vld [vmem:[%s7276_s2 + $0x340] ss:$16 sps:$4 sm:$0xff]  }
  0x1e   :  { %v5681_v60 = vrot.slane %v588_v58, %v5653_v49  ;;  %v4769_v4 = vld [vmem:[%s7276_s2 + $0x124] ss:$16 sps:$4 sm:$0xff]   ;;  %v4773_v7 = vld [vmem:[%s7276_s2 + $0x120] ss:$16 sps:$4 sm:$0xff]   ;;  %v589_v11 = vcombine.high %v5711_v6, %v5711_v6  ;;  %v5747_v18 = vcombine.high %v5731_v13, %v5731_v13 }
  0x1f   :  { %3262 = vmatpush1.bf16.msra.mxu0 %v4731_v30  ;;  %v4771_v5 = vld [vmem:[%s7276_s2 + $0x324] ss:$16 sps:$4 sm:$0xff]   ;;  %v4774_v8 = vld [vmem:[%s7276_s2 + $0x320] ss:$16 sps:$4 sm:$0xff]  }
  0x20   :  { %3303 = vmatpush1.bf16.msra.mxu1 %v4732_v31  ;;  %3263 = vmatprep.subr.bf16.mxu0 %v4733_v32  ;;  %v5694_v0 = vcombine.high %v5681_v60, %v5681_v60  ;;  %v4775_v9 = vld [vmem:[%s7276_s2 + $0x104] ss:$16 sps:$4 sm:$0xff]   ;;  %v4779_v12 = vld [vmem:[%s7276_s2 + $0x100] ss:$16 sps:$4 sm:$0xff]   ;;  %v5743_v17 = vrot.slane %v589_v11, %v5653_v49 }
  0x21   :  { %3304 = vmatprep.subr.bf16.mxu1 %v4735_v33  ;;  %3279 = vmatprep.mubr.bf16.mxu0 %v5681_v60  ;;  %v4777_v10 = vld [vmem:[%s7276_s2 + $0x304] ss:$16 sps:$4 sm:$0xff]   ;;  %v4780_v14 = vld [vmem:[%s7276_s2 + $0x300] ss:$16 sps:$4 sm:$0xff]  }
  0x22   :  { %3320 = vmatprep.mubr.bf16.mxu1 %v5694_v0  ;;  %v4783_v15 = vld [vmem:[%s7276_s2 + $0x4e4] ss:$16 sps:$4 sm:$0xff]   ;;  %v4781_v19 = vld [vmem:[%s7276_s2 + $0x4e0] ss:$16 sps:$4 sm:$0xff]   ;;  %v5763_v23 = vcombine.high %v5743_v17, %v5743_v17 }
  0x23   :  { %3264 = vmatpush2.bf16.msra.mxu0 %v4737_v34  ;;  %v4786_v16 = vld [vmem:[%s7276_s2 + $0x6e4] ss:$16 sps:$4 sm:$0xff]   ;;  %v4784_v20 = vld [vmem:[%s7276_s2 + $0x6e0] ss:$16 sps:$4 sm:$0xff]  }
  0x24   :  { %3305 = vmatpush2.bf16.msra.mxu1 %v4738_v35  ;;  %3265 = vmatprep.subr.bf16.mxu0 %v4739_v39  ;;  %v4789_v21 = vld [vmem:[%s7276_s2 + $0x4c4] ss:$16 sps:$4 sm:$0xff]   ;;  %v4787_v24 = vld [vmem:[%s7276_s2 + $0x4c0] ss:$16 sps:$4 sm:$0xff]  }
  0x25   :  { %3306 = vmatprep.subr.bf16.mxu1 %v4741_v40  ;;  %v4792_v22 = vld [vmem:[%s7276_s2 + $0x6c4] ss:$16 sps:$4 sm:$0xff]   ;;  %v4790_v25 = vld [vmem:[%s7276_s2 + $0x6c0] ss:$16 sps:$4 sm:$0xff]  }
  0x26   :  { %v4795_v26 = vld [vmem:[%s7276_s2 + $0x4a4] ss:$16 sps:$4 sm:$0xff]   ;;  %v4793_v28 = vld [vmem:[%s7276_s2 + $0x4a0] ss:$16 sps:$4 sm:$0xff]  }
  0x27   :  { %3266 = vmatpush2.bf16.msra.mxu0 %v4743_v41  ;;  %v4798_v27 = vld [vmem:[%s7276_s2 + $0x6a4] ss:$16 sps:$4 sm:$0xff]   ;;  %v4796_v29 = vld [vmem:[%s7276_s2 + $0x6a0] ss:$16 sps:$4 sm:$0xff]  }
  0x28   :  { %3307 = vmatpush2.bf16.msra.mxu1 %v4744_v44  ;;  %3267 = vmatprep.subr.bf16.mxu0 %v4745_v45  ;;  %v4801_v30 = vld [vmem:[%s7276_s2 + $0x484] ss:$16 sps:$4 sm:$0xff]   ;;  %v4799_v32 = vld [vmem:[%s7276_s2 + $0x480] ss:$16 sps:$4 sm:$0xff]  }
  0x29   :  { %3308 = vmatprep.subr.bf16.mxu1 %v4747_v46  ;;  %v4804_v31 = vld [vmem:[%s7276_s2 + $0x684] ss:$16 sps:$4 sm:$0xff]   ;;  %v4802_v33 = vld [vmem:[%s7276_s2 + $0x680] ss:$16 sps:$4 sm:$0xff]  }
  0x2a   :  { %v4807_v34 = vld [vmem:[%s7276_s2 + $0x464] ss:$16 sps:$4 sm:$0xff]   ;;  %v4805_v36 = vld [vmem:[%s7276_s2 + $0x460] ss:$16 sps:$4 sm:$0xff]  }
  0x2b   :  { %3268 = vmatpush2.bf16.msra.mxu0 %v4749_v47  ;;  %v4810_v35 = vld [vmem:[%s7276_s2 + $0x664] ss:$16 sps:$4 sm:$0xff]   ;;  %v4808_v37 = vld [vmem:[%s7276_s2 + $0x660] ss:$16 sps:$4 sm:$0xff]  }
  0x2c   :  { %3309 = vmatpush2.bf16.msra.mxu1 %v4750_v48  ;;  %3269 = vmatprep.subr.bf16.mxu0 %v4751_v50  ;;  %v4813_v38 = vld [vmem:[%s7276_s2 + $0x444] ss:$16 sps:$4 sm:$0xff]   ;;  %v4811_v40 = vld [vmem:[%s7276_s2 + $0x440] ss:$16 sps:$4 sm:$0xff]  }
  0x2d   :  { %3310 = vmatprep.subr.bf16.mxu1 %v4753_v51  ;;  %v4816_v39 = vld [vmem:[%s7276_s2 + $0x644] ss:$16 sps:$4 sm:$0xff]   ;;  %v4814_v41 = vld [vmem:[%s7276_s2 + $0x640] ss:$16 sps:$4 sm:$0xff]  }
  0x2e   :  { %v4819_v43 = vld [vmem:[%s7276_s2 + $0x424] ss:$16 sps:$4 sm:$0xff]   ;;  %v4817_v45 = vld [vmem:[%s7276_s2 + $0x420] ss:$16 sps:$4 sm:$0xff]  }
  0x2f   :  { %3270 = vmatpush2.bf16.msra.mxu0 %v4755_v53  ;;  %v4822_v44 = vld [vmem:[%s7276_s2 + $0x624] ss:$16 sps:$4 sm:$0xff]   ;;  %v4820_v46 = vld [vmem:[%s7276_s2 + $0x620] ss:$16 sps:$4 sm:$0xff]  }
  0x30   :  { %3311 = vmatpush2.bf16.msra.mxu1 %v4756_v55  ;;  %3271 = vmatprep.subr.bf16.mxu0 %v4757_v56  ;;  %v4825_v47 = vld [vmem:[%s7276_s2 + $0x404] ss:$16 sps:$4 sm:$0xff]   ;;  %v4823_v50 = vld [vmem:[%s7276_s2 + $0x400] ss:$16 sps:$4 sm:$0xff]  }
  0x31   :  { %3312 = vmatprep.subr.bf16.mxu1 %v4759_v57  ;;  %v4828_v48 = vld [vmem:[%s7276_s2 + $0x604] ss:$16 sps:$4 sm:$0xff]   ;;  %v4826_v51 = vld [vmem:[%s7276_s2 + $0x600] ss:$16 sps:$4 sm:$0xff]  }
  0x32   :  { %v4831_v52 = vld [vmem:[%s7276_s2 + $0x5e4] ss:$16 sps:$4 sm:$0xff]   ;;  %v4829_v54 = vld [vmem:[%s7276_s2 + $0x5e0] ss:$16 sps:$4 sm:$0xff]  }
  0x33   :  { %3272 = vmatpush2.bf16.msra.mxu0 %v4761_v59  ;;  %v4834_v53 = vld [vmem:[%s7276_s2 + $0x7e4] ss:$16 sps:$4 sm:$0xff]   ;;  %v4832_v55 = vld [vmem:[%s7276_s2 + $0x7e0] ss:$16 sps:$4 sm:$0xff]  }
  0x34   :  { %3313 = vmatpush2.bf16.msra.mxu1 %v4762_v61  ;;  %3273 = vmatprep.subr.bf16.mxu0 %v4763_v62  ;;  %v4837_v56 = vld [vmem:[%s7276_s2 + $0x5c4] ss:$16 sps:$4 sm:$0xff]   ;;  %v4835_v58 = vld [vmem:[%s7276_s2 + $0x5c0] ss:$16 sps:$4 sm:$0xff]  }
  0x35   :  { %3314 = vmatprep.subr.bf16.mxu1 %v4765_v63  ;;  %v4840_v57 = vld [vmem:[%s7276_s2 + $0x7c4] ss:$16 sps:$4 sm:$0xff]   ;;  %v4838_v59 = vld [vmem:[%s7276_s2 + $0x7c0] ss:$16 sps:$4 sm:$0xff]  }
  0x36   :  { %v4843_v61 = vld [vmem:[%s7276_s2 + $0x5a4] ss:$16 sps:$4 sm:$0xff]   ;;  %v4841_v63 = vld [vmem:[%s7276_s2 + $0x5a0] ss:$16 sps:$4 sm:$0xff]  }
  0x37   :  { %3274 = vmatpush2.bf16.msra.mxu0 %v4767_v2  ;;  %v4846_v62 = vld [vmem:[%s7276_s2 + $0x7a4] ss:$16 sps:$4 sm:$0xff]   ;;  %v4844_v1 = vld [vmem:[%s7276_s2 + $0x7a0] ss:$16 sps:$4 sm:$0xff]  }
  0x38   :  { %3315 = vmatpush2.bf16.msra.mxu1 %v4768_v3  ;;  %3275 = vmatprep.subr.bf16.mxu0 %v4769_v4  ;;  %v4849_v2 = vld [vmem:[%s7276_s2 + $0x584] ss:$16 sps:$4 sm:$0xff]   ;;  %v4847_v4 = vld [vmem:[%s7276_s2 + $0x580] ss:$16 sps:$4 sm:$0xff]  }
  0x39   :  { %3316 = vmatprep.subr.bf16.mxu1 %v4771_v5  ;;  %v4852_v3 = vld [vmem:[%s7276_s2 + $0x784] ss:$16 sps:$4 sm:$0xff]   ;;  %v4850_v5 = vld [vmem:[%s7276_s2 + $0x780] ss:$16 sps:$4 sm:$0xff]  }
  0x3a   :  { %v4861_v11 = vld [vmem:[%s7276_s2 + $0x544] ss:$16 sps:$4 sm:$0xff]  }
  0x3b   :  { %3276 = vmatpush2.bf16.msra.mxu0 %v4773_v7  ;;  %v4855_v7 = vld [vmem:[%s7276_s2 + $0x564] ss:$16 sps:$4 sm:$0xff]  }
  0x3c   :  { %3317 = vmatpush2.bf16.msra.mxu1 %v4774_v8  ;;  %3277 = vmatprep.subr.bf16.mxu0 %v4775_v9  ;;  %v4858_v8 = vld [vmem:[%s7276_s2 + $0x764] ss:$16 sps:$4 sm:$0xff]   ;;  %v4853_v9 = vld [vmem:[%s7276_s2 + $0x560] ss:$16 sps:$4 sm:$0xff]  }
  0x3d   :  { %3318 = vmatprep.subr.bf16.mxu1 %v4777_v10  ;;  %v4856_v10 = vld [vmem:[%s7276_s2 + $0x760] ss:$16 sps:$4 sm:$0xff]  }
  0x3f   :  { %3278 = vmatpush2.bf16.msra.mxu0 %v4779_v12  ;;  %v4864_v12 = vld [vmem:[%s7276_s2 + $0x744] ss:$16 sps:$4 sm:$0xff]  }
  0x40   :  { %3319 = vmatpush2.bf16.msra.mxu1 %v4780_v14  ;;  %3329 = vmatprep.subr.bf16.mxu0 %v4783_v15  ;;  %v4859_v14 = vld [vmem:[%s7276_s2 + $0x540] ss:$16 sps:$4 sm:$0xff]  }
  0x41   :  { %3370 = vmatprep.subr.bf16.mxu1 %v4786_v16  ;;  %v4862_v15 = vld [vmem:[%s7276_s2 + $0x740] ss:$16 sps:$4 sm:$0xff]   ;;  %v4867_v16 = vld [vmem:[%s7276_s2 + $0x524] ss:$16 sps:$4 sm:$0xff]  }
  0x42   :  { %3280 = vmatmul.mubr.bf16.vlgmr.msra.gmra.mxu0 %v5731_v13 }
  0x43   :  { %3321 = vmatmul.mubr.bf16.vlgmr.msra.gmra.mxu1 %v5747_v18  ;;  %3330 = vmatpush1.bf16.msra.mxu0 %v4781_v19  ;;  %v4870_v19 = vld [vmem:[%s7276_s2 + $0x724] ss:$16 sps:$4 sm:$0xff]  }
  0x44   :  { %3371 = vmatpush1.bf16.msra.mxu1 %v4784_v20  ;;  %3331 = vmatprep.subr.bf16.mxu0 %v4789_v21  ;;  %v4865_v20 = vld [vmem:[%s7276_s2 + $0x520] ss:$16 sps:$4 sm:$0xff]  }
  0x45   :  { %3372 = vmatprep.subr.bf16.mxu1 %v4792_v22  ;;  %3361 = vmatprep.mubr.bf16.mxu0 %v5743_v17  ;;  %v4868_v21 = vld [vmem:[%s7276_s2 + $0x720] ss:$16 sps:$4 sm:$0xff]   ;;  %v4873_v22 = vld [vmem:[%s7276_s2 + $0x504] ss:$16 sps:$4 sm:$0xff]  }
  0x46   :  { %3402 = vmatprep.mubr.bf16.mxu1 %v5763_v23 }
  0x47   :  { %3332 = vmatpush1.bf16.msra.mxu0 %v4787_v24  ;;  %v4876_v24 = vld [vmem:[%s7276_s2 + $0x704] ss:$16 sps:$4 sm:$0xff]  }
  0x48   :  { %3373 = vmatpush1.bf16.msra.mxu1 %v4790_v25  ;;  %3333 = vmatprep.subr.bf16.mxu0 %v4795_v26  ;;  %v4871_v25 = vld [vmem:[%s7276_s2 + $0x500] ss:$16 sps:$4 sm:$0xff]   ;;  %v5942_v26 = vrot.slane %v5711_v6, %v5653_v49 }
  0x49   :  { %3374 = vmatprep.subr.bf16.mxu1 %v4798_v27  ;;  %v4874_v27 = vld [vmem:[%s7276_s2 + $0x700] ss:$16 sps:$4 sm:$0xff]  }
  0x4a   :  { %v5955_v6 = vcombine.high %v5942_v26, %v5942_v26 }
  0x4b   :  { %3334 = vmatpush1.bf16.msra.mxu0 %v4793_v28  ;;  %v4880_v28 = vld [vmem:[%s7276_s2 + $0x8e4] ss:$16 sps:$4 sm:$0xff]  }
  0x4c   :  { %3375 = vmatpush1.bf16.msra.mxu1 %v4796_v29  ;;  %3335 = vmatprep.subr.bf16.mxu0 %v4801_v30  ;;  %v4883_v29 = vld [vmem:[%s7276_s2 + $0xae4] ss:$16 sps:$4 sm:$0xff]   ;;  %v4878_v30 = vld [vmem:[%s7276_s2 + $0x8e0] ss:$16 sps:$4 sm:$0xff]  }
  0x4d   :  { %3376 = vmatprep.subr.bf16.mxu1 %v4804_v31  ;;  %v4881_v31 = vld [vmem:[%s7276_s2 + $0xae0] ss:$16 sps:$4 sm:$0xff]  }
  0x4f   :  { %3336 = vmatpush1.bf16.msra.mxu0 %v4799_v32  ;;  %v5966_v32 = vld [vmem:[%s7277_s0 + $0x8] sm:$0xff] }
  0x50   :  { %3377 = vmatpush1.bf16.msra.mxu1 %v4802_v33  ;;  %3337 = vmatprep.subr.bf16.mxu0 %v4807_v34  ;;  %v4886_v33 = vld [vmem:[%s7276_s2 + $0x8c4] ss:$16 sps:$4 sm:$0xff]  }
  0x51   :  { %3378 = vmatprep.subr.bf16.mxu1 %v4810_v35  ;;  %v4889_v34 = vld [vmem:[%s7276_s2 + $0xac4] ss:$16 sps:$4 sm:$0xff]   ;;  %v5976_v35 = vrot.slane %v5966_v32, %v5653_v49 }
  0x53   :  { %3338 = vmatpush1.bf16.msra.mxu0 %v4805_v36  ;;  %v637_v36 = vcombine.high %v5976_v35, %v5976_v35 }
  0x54   :  { %3379 = vmatpush1.bf16.msra.mxu1 %v4808_v37  ;;  %3339 = vmatprep.subr.bf16.mxu0 %v4813_v38  ;;  %v4884_v37 = vld [vmem:[%s7276_s2 + $0x8c0] ss:$16 sps:$4 sm:$0xff]  }
  0x55   :  { %3380 = vmatprep.subr.bf16.mxu1 %v4816_v39  ;;  %v4887_v38 = vld [vmem:[%s7276_s2 + $0xac0] ss:$16 sps:$4 sm:$0xff]   ;;  %v4892_v39 = vld [vmem:[%s7276_s2 + $0x8a4] ss:$16 sps:$4 sm:$0xff]  }
  0x57   :  { %3340 = vmatpush1.bf16.msra.mxu0 %v4811_v40  ;;  %v4895_v40 = vld [vmem:[%s7276_s2 + $0xaa4] ss:$16 sps:$4 sm:$0xff]  }
  0x58   :  { %3381 = vmatpush1.bf16.msra.mxu1 %v4814_v41  ;;  %3341 = vmatprep.subr.bf16.mxu0 %v4819_v43  ;;  %v5995_v41 = vrot.slane %v637_v36, %v5653_v49  ;;  %v4956_v36 = vld [vmem:[%s7276_s2 + $0x940] ss:$16 sps:$4 sm:$0xff]  }
  0x59   :  { %3382 = vmatprep.subr.bf16.mxu1 %v4822_v44  ;;  %v4890_v44 = vld [vmem:[%s7276_s2 + $0x8a0] ss:$16 sps:$4 sm:$0xff]  }
  0x5a   :  { %v6000_v43 = vcombine.high %v5995_v41, %v5995_v41 }
  0x5b   :  { %3342 = vmatpush1.bf16.msra.mxu0 %v4817_v45  ;;  %v4893_v45 = vld [vmem:[%s7276_s2 + $0xaa0] ss:$16 sps:$4 sm:$0xff]  }
  0x5c   :  { %3383 = vmatpush1.bf16.msra.mxu1 %v4820_v46  ;;  %3343 = vmatprep.subr.bf16.mxu0 %v4825_v47  ;;  %v4898_v46 = vld [vmem:[%s7276_s2 + $0x884] ss:$16 sps:$4 sm:$0xff]  }
  0x5d   :  { %3384 = vmatprep.subr.bf16.mxu1 %v4828_v48  ;;  %v4901_v47 = vld [vmem:[%s7276_s2 + $0xa84] ss:$16 sps:$4 sm:$0xff]   ;;  %v4896_v48 = vld [vmem:[%s7276_s2 + $0x880] ss:$16 sps:$4 sm:$0xff]  }
  0x5f   :  { %3344 = vmatpush1.bf16.msra.mxu0 %v4823_v50  ;;  %v4899_v50 = vld [vmem:[%s7276_s2 + $0xa80] ss:$16 sps:$4 sm:$0xff]  }
  0x60   :  { %3385 = vmatpush1.bf16.msra.mxu1 %v4826_v51  ;;  %3345 = vmatprep.subr.bf16.mxu0 %v4831_v52  ;;  %v4904_v51 = vld [vmem:[%s7276_s2 + $0x864] ss:$16 sps:$4 sm:$0xff]  }
  0x61   :  { %3386 = vmatprep.subr.bf16.mxu1 %v4834_v53  ;;  %v4907_v52 = vld [vmem:[%s7276_s2 + $0xa64] ss:$16 sps:$4 sm:$0xff]   ;;  %v4902_v53 = vld [vmem:[%s7276_s2 + $0x860] ss:$16 sps:$4 sm:$0xff]  }
  0x63   :  { %3346 = vmatpush2.bf16.msra.mxu0 %v4829_v54  ;;  %v4905_v54 = vld [vmem:[%s7276_s2 + $0xa60] ss:$16 sps:$4 sm:$0xff]  }
  0x64   :  { %3387 = vmatpush2.bf16.msra.mxu1 %v4832_v55  ;;  %3347 = vmatprep.subr.bf16.mxu0 %v4837_v56  ;;  %v4910_v55 = vld [vmem:[%s7276_s2 + $0x844] ss:$16 sps:$4 sm:$0xff]  }
  0x65   :  { %3388 = vmatprep.subr.bf16.mxu1 %v4840_v57  ;;  %v4913_v56 = vld [vmem:[%s7276_s2 + $0xa44] ss:$16 sps:$4 sm:$0xff]   ;;  %v4908_v57 = vld [vmem:[%s7276_s2 + $0x840] ss:$16 sps:$4 sm:$0xff]  }
  0x67   :  { %3348 = vmatpush2.bf16.msra.mxu0 %v4835_v58  ;;  %v4911_v58 = vld [vmem:[%s7276_s2 + $0xa40] ss:$16 sps:$4 sm:$0xff]  }
  0x68   :  { %3389 = vmatpush2.bf16.msra.mxu1 %v4838_v59  ;;  %3349 = vmatprep.subr.bf16.mxu0 %v4843_v61  ;;  %v4916_v59 = vld [vmem:[%s7276_s2 + $0x824] ss:$16 sps:$4 sm:$0xff]  }
  0x69   :  { %3390 = vmatprep.subr.bf16.mxu1 %v4846_v62  ;;  %v4919_v61 = vld [vmem:[%s7276_s2 + $0xa24] ss:$16 sps:$4 sm:$0xff]   ;;  %v4914_v62 = vld [vmem:[%s7276_s2 + $0x820] ss:$16 sps:$4 sm:$0xff]  }
  0x6b   :  { %3350 = vmatpush2.bf16.msra.mxu0 %v4841_v63  ;;  %v4917_v63 = vld [vmem:[%s7276_s2 + $0xa20] ss:$16 sps:$4 sm:$0xff]  }
  0x6c   :  { %3391 = vmatpush2.bf16.msra.mxu1 %v4844_v1  ;;  %3351 = vmatprep.subr.bf16.mxu0 %v4849_v2  ;;  %v4922_v1 = vld [vmem:[%s7276_s2 + $0x804] ss:$16 sps:$4 sm:$0xff]  }
  0x6d   :  { %3392 = vmatprep.subr.bf16.mxu1 %v4852_v3  ;;  %v4925_v2 = vld [vmem:[%s7276_s2 + $0xa04] ss:$16 sps:$4 sm:$0xff]   ;;  %v4920_v3 = vld [vmem:[%s7276_s2 + $0x800] ss:$16 sps:$4 sm:$0xff]  }
  0x6f   :  { %3352 = vmatpush2.bf16.msra.mxu0 %v4847_v4  ;;  %v4923_v4 = vld [vmem:[%s7276_s2 + $0xa00] ss:$16 sps:$4 sm:$0xff]  }
  0x70   :  { %3393 = vmatpush2.bf16.msra.mxu1 %v4850_v5  ;;  %3353 = vmatprep.subr.bf16.mxu0 %v4855_v7  ;;  %v4928_v5 = vld [vmem:[%s7276_s2 + $0x9e4] ss:$16 sps:$4 sm:$0xff]  }
  0x71   :  { %3394 = vmatprep.subr.bf16.mxu1 %v4858_v8  ;;  %v4931_v7 = vld [vmem:[%s7276_s2 + $0xbe4] ss:$16 sps:$4 sm:$0xff]   ;;  %v4926_v8 = vld [vmem:[%s7276_s2 + $0x9e0] ss:$16 sps:$4 sm:$0xff]  }
  0x73   :  { %3354 = vmatpush2.bf16.msra.mxu0 %v4853_v9  ;;  %v4929_v9 = vld [vmem:[%s7276_s2 + $0xbe0] ss:$16 sps:$4 sm:$0xff]  }
  0x74   :  { %3395 = vmatpush2.bf16.msra.mxu1 %v4856_v10  ;;  %3355 = vmatprep.subr.bf16.mxu0 %v4861_v11  ;;  %v4934_v10 = vld [vmem:[%s7276_s2 + $0x9c4] ss:$16 sps:$4 sm:$0xff]  }
  0x75   :  { %3396 = vmatprep.subr.bf16.mxu1 %v4864_v12  ;;  %v4937_v11 = vld [vmem:[%s7276_s2 + $0xbc4] ss:$16 sps:$4 sm:$0xff]   ;;  %v4932_v12 = vld [vmem:[%s7276_s2 + $0x9c0] ss:$16 sps:$4 sm:$0xff]  }
  0x77   :  { %3356 = vmatpush2.bf16.msra.mxu0 %v4859_v14  ;;  %v4935_v14 = vld [vmem:[%s7276_s2 + $0xbc0] ss:$16 sps:$4 sm:$0xff]  }
  0x78   :  { %3397 = vmatpush2.bf16.msra.mxu1 %v4862_v15  ;;  %3357 = vmatprep.subr.bf16.mxu0 %v4867_v16  ;;  %v4940_v15 = vld [vmem:[%s7276_s2 + $0x9a4] ss:$16 sps:$4 sm:$0xff]  }
  0x79   :  { %3398 = vmatprep.subr.bf16.mxu1 %v4870_v19  ;;  %v4943_v16 = vld [vmem:[%s7276_s2 + $0xba4] ss:$16 sps:$4 sm:$0xff]   ;;  %v4938_v19 = vld [vmem:[%s7276_s2 + $0x9a0] ss:$16 sps:$4 sm:$0xff]  }
  0x7b   :  { %3358 = vmatpush2.bf16.msra.mxu0 %v4865_v20  ;;  %v4941_v20 = vld [vmem:[%s7276_s2 + $0xba0] ss:$16 sps:$4 sm:$0xff]  }
  0x7c   :  { %3399 = vmatpush2.bf16.msra.mxu1 %v4868_v21  ;;  %3359 = vmatprep.subr.bf16.mxu0 %v4873_v22  ;;  %v4946_v21 = vld [vmem:[%s7276_s2 + $0x984] ss:$16 sps:$4 sm:$0xff]  }
  0x7d   :  { %3400 = vmatprep.subr.bf16.mxu1 %v4876_v24  ;;  %v4949_v22 = vld [vmem:[%s7276_s2 + $0xb84] ss:$16 sps:$4 sm:$0xff]   ;;  %v4944_v24 = vld [vmem:[%s7276_s2 + $0x980] ss:$16 sps:$4 sm:$0xff]  }
  0x7f   :  { %3360 = vmatpush2.bf16.msra.mxu0 %v4871_v25  ;;  %v4947_v25 = vld [vmem:[%s7276_s2 + $0xb80] ss:$16 sps:$4 sm:$0xff]  }
  0x80   :  { %3401 = vmatpush2.bf16.msra.mxu1 %v4874_v27  ;;  %3411 = vmatprep.subr.bf16.mxu0 %v4880_v28  ;;  %v4952_v27 = vld [vmem:[%s7276_s2 + $0x964] ss:$16 sps:$4 sm:$0xff]  }
  0x81   :  { %3452 = vmatprep.subr.bf16.mxu1 %v4883_v29  ;;  %v4955_v28 = vld [vmem:[%s7276_s2 + $0xb64] ss:$16 sps:$4 sm:$0xff]   ;;  %v4950_v29 = vld [vmem:[%s7276_s2 + $0x960] ss:$16 sps:$4 sm:$0xff]  }
  0x82   :  { %3362 = vmatmul.mubr.bf16.vlgmr.msra.gmra.mxu0 %v5942_v26 }
  0x83   :  { %3403 = vmatmul.mubr.bf16.vlgmr.msra.gmra.mxu1 %v5955_v6  ;;  %3412 = vmatpush1.bf16.msra.mxu0 %v4878_v30  ;;  %v4953_v30 = vld [vmem:[%s7276_s2 + $0xb60] ss:$16 sps:$4 sm:$0xff]  }
  0x84   :  { %3453 = vmatpush1.bf16.msra.mxu1 %v4881_v31  ;;  %3413 = vmatprep.subr.bf16.mxu0 %v4886_v33  ;;  %v4958_v31 = vld [vmem:[%s7276_s2 + $0x944] ss:$16 sps:$4 sm:$0xff]  }
  0x85   :  { %3454 = vmatprep.subr.bf16.mxu1 %v4889_v34  ;;  %3443 = vmatprep.mubr.bf16.mxu0 %v5995_v41  ;;  %v4961_v33 = vld [vmem:[%s7276_s2 + $0xb44] ss:$16 sps:$4 sm:$0xff]   ;;  %v622_v34 = vcombine.high %v5966_v32, %v5966_v32 }
  0x86   :  { %3484 = vmatprep.mubr.bf16.mxu1 %v6000_v43  ;;  %v4967_v32 = vld [vmem:[%s7276_s2 + $0xb24] ss:$16 sps:$4 sm:$0xff]  }
  0x87   :  { %3414 = vmatpush1.bf16.msra.mxu0 %v4884_v37  ;;  %v4959_v37 = vld [vmem:[%s7276_s2 + $0xb40] ss:$16 sps:$4 sm:$0xff]  }
  0x88   :  { %3455 = vmatpush1.bf16.msra.mxu1 %v4887_v38  ;;  %3415 = vmatprep.subr.bf16.mxu0 %v4892_v39  ;;  %v4964_v38 = vld [vmem:[%s7276_s2 + $0x924] ss:$16 sps:$4 sm:$0xff]   ;;  %v6150_v39 = vrot.slane %v622_v34, %v5653_v49  ;;  %v5025_v34 = vld [vmem:[%s7276_s2 + $0xfe0] ss:$16 sps:$4 sm:$0xff]  }
  0x89   :  { %3456 = vmatprep.subr.bf16.mxu1 %v4895_v40  ;;  %v4962_v40 = vld [vmem:[%s7276_s2 + $0x920] ss:$16 sps:$4 sm:$0xff]  }
  0x8b   :  { %3416 = vmatpush1.bf16.msra.mxu0 %v4890_v44  ;;  %v4965_v44 = vld [vmem:[%s7276_s2 + $0xb20] ss:$16 sps:$4 sm:$0xff]  }
  0x8c   :  { %3457 = vmatpush1.bf16.msra.mxu1 %v4893_v45  ;;  %3417 = vmatprep.subr.bf16.mxu0 %v4898_v46  ;;  %v4970_v45 = vld [vmem:[%s7276_s2 + $0x904] ss:$16 sps:$4 sm:$0xff]  }
  0x8d   :  { %3458 = vmatprep.subr.bf16.mxu1 %v4901_v47  ;;  %v4973_v46 = vld [vmem:[%s7276_s2 + $0xb04] ss:$16 sps:$4 sm:$0xff]   ;;  %v638_v47 = vcombine.high %v6150_v39, %v6150_v39 }
  0x8f   :  { %3418 = vmatpush1.bf16.msra.mxu0 %v4896_v48  ;;  %v4968_v48 = vld [vmem:[%s7276_s2 + $0x900] ss:$16 sps:$4 sm:$0xff]  }
  0x90   :  { %3459 = vmatpush1.bf16.msra.mxu1 %v4899_v50  ;;  %3419 = vmatprep.subr.bf16.mxu0 %v4904_v51  ;;  %v6171_v50 = vrot.slane %v5976_v35, %v5653_v49  ;;  %v4971_v51 = vld [vmem:[%s7276_s2 + $0xb00] ss:$16 sps:$4 sm:$0xff]  }
  0x91   :  { %3460 = vmatprep.subr.bf16.mxu1 %v4907_v52  ;;  %v4976_v52 = vld [vmem:[%s7276_s2 + $0xce4] ss:$16 sps:$4 sm:$0xff]  }
  0x92   :  { %v6187_v35 = vcombine.high %v6171_v50, %v6171_v50 }
  0x93   :  { %3420 = vmatpush1.bf16.msra.mxu0 %v4902_v53  ;;  %v4979_v53 = vld [vmem:[%s7276_s2 + $0xee4] ss:$16 sps:$4 sm:$0xff]  }
  0x94   :  { %3461 = vmatpush1.bf16.msra.mxu1 %v4905_v54  ;;  %3421 = vmatprep.subr.bf16.mxu0 %v4910_v55  ;;  %v6183_v54 = vrot.slane %v638_v47, %v5653_v49  ;;  %v4974_v55 = vld [vmem:[%s7276_s2 + $0xce0] ss:$16 sps:$4 sm:$0xff]   ;;  %v5042_v47 = vld [vmem:[%s7276_s2 + $0xd84] ss:$16 sps:$4 sm:$0xff]  }
  0x95   :  { %3462 = vmatprep.subr.bf16.mxu1 %v4913_v56  ;;  %v4977_v56 = vld [vmem:[%s7276_s2 + $0xee0] ss:$16 sps:$4 sm:$0xff]  }
  0x97   :  { %3422 = vmatpush1.bf16.msra.mxu0 %v4908_v57  ;;  %v4982_v57 = vld [vmem:[%s7276_s2 + $0xcc4] ss:$16 sps:$4 sm:$0xff]  }
  0x98   :  { %3463 = vmatpush1.bf16.msra.mxu1 %v4911_v58  ;;  %3423 = vmatprep.subr.bf16.mxu0 %v4916_v59  ;;  %v4985_v58 = vld [vmem:[%s7276_s2 + $0xec4] ss:$16 sps:$4 sm:$0xff]   ;;  %v6203_v59 = vcombine.high %v6183_v54, %v6183_v54 }
  0x99   :  { %3464 = vmatprep.subr.bf16.mxu1 %v4919_v61  ;;  %v4980_v61 = vld [vmem:[%s7276_s2 + $0xcc0] ss:$16 sps:$4 sm:$0xff]  }
  0x9b   :  { %3424 = vmatpush1.bf16.msra.mxu0 %v4914_v62  ;;  %v4983_v62 = vld [vmem:[%s7276_s2 + $0xec0] ss:$16 sps:$4 sm:$0xff]  }
  0x9c   :  { %3465 = vmatpush1.bf16.msra.mxu1 %v4917_v63  ;;  %3425 = vmatprep.subr.bf16.mxu0 %v4922_v1  ;;  %v4988_v63 = vld [vmem:[%s7276_s2 + $0xca4] ss:$16 sps:$4 sm:$0xff]  }
  0x9d   :  { %3466 = vmatprep.subr.bf16.mxu1 %v4925_v2  ;;  %v4991_v1 = vld [vmem:[%s7276_s2 + $0xea4] ss:$16 sps:$4 sm:$0xff]   ;;  %v4986_v2 = vld [vmem:[%s7276_s2 + $0xca0] ss:$16 sps:$4 sm:$0xff]  }
  0x9f   :  { %3426 = vmatpush1.bf16.msra.mxu0 %v4920_v3  ;;  %v4989_v3 = vld [vmem:[%s7276_s2 + $0xea0] ss:$16 sps:$4 sm:$0xff]  }
  0xa0   :  { %3467 = vmatpush1.bf16.msra.mxu1 %v4923_v4  ;;  %3427 = vmatprep.subr.bf16.mxu0 %v4928_v5  ;;  %v4994_v4 = vld [vmem:[%s7276_s2 + $0xc84] ss:$16 sps:$4 sm:$0xff]  }
  0xa1   :  { %3468 = vmatprep.subr.bf16.mxu1 %v4931_v7  ;;  %v4997_v5 = vld [vmem:[%s7276_s2 + $0xe84] ss:$16 sps:$4 sm:$0xff]   ;;  %v4992_v7 = vld [vmem:[%s7276_s2 + $0xc80] ss:$16 sps:$4 sm:$0xff]  }
  0xa3   :  { %3428 = vmatpush2.bf16.msra.mxu0 %v4926_v8  ;;  %v4995_v8 = vld [vmem:[%s7276_s2 + $0xe80] ss:$16 sps:$4 sm:$0xff]  }
  0xa4   :  { %3469 = vmatpush2.bf16.msra.mxu1 %v4929_v9  ;;  %3429 = vmatprep.subr.bf16.mxu0 %v4934_v10  ;;  %v5000_v9 = vld [vmem:[%s7276_s2 + $0xc64] ss:$16 sps:$4 sm:$0xff]  }
  0xa5   :  { %3470 = vmatprep.subr.bf16.mxu1 %v4937_v11  ;;  %v5003_v10 = vld [vmem:[%s7276_s2 + $0xe64] ss:$16 sps:$4 sm:$0xff]   ;;  %v4998_v11 = vld [vmem:[%s7276_s2 + $0xc60] ss:$16 sps:$4 sm:$0xff]  }
  0xa7   :  { %3430 = vmatpush2.bf16.msra.mxu0 %v4932_v12  ;;  %v5001_v12 = vld [vmem:[%s7276_s2 + $0xe60] ss:$16 sps:$4 sm:$0xff]  }
  0xa8   :  { %3471 = vmatpush2.bf16.msra.mxu1 %v4935_v14  ;;  %3431 = vmatprep.subr.bf16.mxu0 %v4940_v15  ;;  %v5006_v14 = vld [vmem:[%s7276_s2 + $0xc44] ss:$16 sps:$4 sm:$0xff]  }
  0xa9   :  { %3472 = vmatprep.subr.bf16.mxu1 %v4943_v16  ;;  %v5009_v15 = vld [vmem:[%s7276_s2 + $0xe44] ss:$16 sps:$4 sm:$0xff]   ;;  %v5004_v16 = vld [vmem:[%s7276_s2 + $0xc40] ss:$16 sps:$4 sm:$0xff]  }
  0xab   :  { %3432 = vmatpush2.bf16.msra.mxu0 %v4938_v19  ;;  %v5007_v19 = vld [vmem:[%s7276_s2 + $0xe40] ss:$16 sps:$4 sm:$0xff]  }
  0xac   :  { %3473 = vmatpush2.bf16.msra.mxu1 %v4941_v20  ;;  %3433 = vmatprep.subr.bf16.mxu0 %v4946_v21  ;;  %v5012_v20 = vld [vmem:[%s7276_s2 + $0xc24] ss:$16 sps:$4 sm:$0xff]  }
  0xad   :  { %3474 = vmatprep.subr.bf16.mxu1 %v4949_v22  ;;  %v5015_v21 = vld [vmem:[%s7276_s2 + $0xe24] ss:$16 sps:$4 sm:$0xff]   ;;  %v5010_v22 = vld [vmem:[%s7276_s2 + $0xc20] ss:$16 sps:$4 sm:$0xff]  }
  0xaf   :  { %3434 = vmatpush2.bf16.msra.mxu0 %v4944_v24  ;;  %v5013_v24 = vld [vmem:[%s7276_s2 + $0xe20] ss:$16 sps:$4 sm:$0xff]  }
  0xb0   :  { %3475 = vmatpush2.bf16.msra.mxu1 %v4947_v25  ;;  %3435 = vmatprep.subr.bf16.mxu0 %v4952_v27  ;;  %v5018_v25 = vld [vmem:[%s7276_s2 + $0xc04] ss:$16 sps:$4 sm:$0xff]  }
  0xb1   :  { %3476 = vmatprep.subr.bf16.mxu1 %v4955_v28  ;;  %v5021_v27 = vld [vmem:[%s7276_s2 + $0xe04] ss:$16 sps:$4 sm:$0xff]   ;;  %v5016_v28 = vld [vmem:[%s7276_s2 + $0xc00] ss:$16 sps:$4 sm:$0xff]  }
  0xb3   :  { %3436 = vmatpush2.bf16.msra.mxu0 %v4950_v29  ;;  %v5019_v29 = vld [vmem:[%s7276_s2 + $0xe00] ss:$16 sps:$4 sm:$0xff]  }
  0xb4   :  { %3477 = vmatpush2.bf16.msra.mxu1 %v4953_v30  ;;  %3437 = vmatprep.subr.bf16.mxu0 %v4958_v31  ;;  %v5024_v30 = vld [vmem:[%s7276_s2 + $0xde4] ss:$16 sps:$4 sm:$0xff]  }
  0xb5   :  { %3478 = vmatprep.subr.bf16.mxu1 %v4961_v33  ;;  %v5027_v31 = vld [vmem:[%s7276_s2 + $0xfe4] ss:$16 sps:$4 sm:$0xff]   ;;  %v5022_v33 = vld [vmem:[%s7276_s2 + $0xde0] ss:$16 sps:$4 sm:$0xff]  }
  0xb7   :  { %3438 = vmatpush2.bf16.msra.mxu0 %v4956_v36  ;;  %v5030_v36 = vld [vmem:[%s7276_s2 + $0xdc4] ss:$16 sps:$4 sm:$0xff]  }
  0xb8   :  { %3479 = vmatpush2.bf16.msra.mxu1 %v4959_v37  ;;  %3439 = vmatprep.subr.bf16.mxu0 %v4964_v38  ;;  %v5033_v37 = vld [vmem:[%s7276_s2 + $0xfc4] ss:$16 sps:$4 sm:$0xff]   ;;  %v5028_v38 = vld [vmem:[%s7276_s2 + $0xdc0] ss:$16 sps:$4 sm:$0xff]  }
  0xb9   :  { %3480 = vmatprep.subr.bf16.mxu1 %v4967_v32  ;;  %v5031_v32 = vld [vmem:[%s7276_s2 + $0xfc0] ss:$16 sps:$4 sm:$0xff]  }
  0xbb   :  { %3440 = vmatpush2.bf16.msra.mxu0 %v4962_v40  ;;  %v5036_v40 = vld [vmem:[%s7276_s2 + $0xda4] ss:$16 sps:$4 sm:$0xff]  }
  0xbc   :  { %3481 = vmatpush2.bf16.msra.mxu1 %v4965_v44  ;;  %3441 = vmatprep.subr.bf16.mxu0 %v4970_v45  ;;  %v5039_v44 = vld [vmem:[%s7276_s2 + $0xfa4] ss:$16 sps:$4 sm:$0xff]   ;;  %v5034_v45 = vld [vmem:[%s7276_s2 + $0xda0] ss:$16 sps:$4 sm:$0xff]  }
  0xbd   :  { %3482 = vmatprep.subr.bf16.mxu1 %v4973_v46  ;;  %v5037_v46 = vld [vmem:[%s7276_s2 + $0xfa0] ss:$16 sps:$4 sm:$0xff]  }
  0xbf   :  { %3442 = vmatpush2.bf16.msra.mxu0 %v4968_v48  ;;  %v5045_v48 = vld [vmem:[%s7276_s2 + $0xf84] ss:$16 sps:$4 sm:$0xff]  }
  0xc0   :  { %3483 = vmatpush2.bf16.msra.mxu1 %v4971_v51  ;;  %3493 = vmatprep.subr.bf16.mxu0 %v4976_v52  ;;  %v5040_v51 = vld [vmem:[%s7276_s2 + $0xd80] ss:$16 sps:$4 sm:$0xff]  }
  0xc1   :  { %3534 = vmatprep.subr.bf16.mxu1 %v4979_v53  ;;  %v5043_v52 = vld [vmem:[%s7276_s2 + $0xf80] ss:$16 sps:$4 sm:$0xff]   ;;  %v5048_v53 = vld [vmem:[%s7276_s2 + $0xd64] ss:$16 sps:$4 sm:$0xff]  }
  0xc2   :  { %3444 = vmatmul.mubr.bf16.vlgmr.msra.gmra.mxu0 %v6171_v50 }
  0xc3   :  { %3485 = vmatmul.mubr.bf16.vlgmr.msra.gmra.mxu1 %v6187_v35  ;;  %3494 = vmatpush1.bf16.msra.mxu0 %v4974_v55  ;;  %v5051_v55 = vld [vmem:[%s7276_s2 + $0xf64] ss:$16 sps:$4 sm:$0xff]  }
  0xc4   :  { %3535 = vmatpush1.bf16.msra.mxu1 %v4977_v56  ;;  %3495 = vmatprep.subr.bf16.mxu0 %v4982_v57  ;;  %v5046_v56 = vld [vmem:[%s7276_s2 + $0xd60] ss:$16 sps:$4 sm:$0xff]  }
  0xc5   :  { %3536 = vmatprep.subr.bf16.mxu1 %v4985_v58  ;;  %3525 = vmatprep.mubr.bf16.mxu0 %v6183_v54  ;;  %v5049_v57 = vld [vmem:[%s7276_s2 + $0xf60] ss:$16 sps:$4 sm:$0xff]   ;;  %v5054_v58 = vld [vmem:[%s7276_s2 + $0xd44] ss:$16 sps:$4 sm:$0xff]  }
  0xc6   :  { %3566 = vmatprep.mubr.bf16.mxu1 %v6203_v59 }
  0xc7   :  { %3496 = vmatpush1.bf16.msra.mxu0 %v4980_v61  ;;  %v5057_v61 = vld [vmem:[%s7276_s2 + $0xf44] ss:$16 sps:$4 sm:$0xff]  }
  0xc8   :  { %3537 = vmatpush1.bf16.msra.mxu1 %v4983_v62  ;;  %3497 = vmatprep.subr.bf16.mxu0 %v4988_v63  ;;  %v5052_v62 = vld [vmem:[%s7276_s2 + $0xd40] ss:$16 sps:$4 sm:$0xff]  }
  0xc9   :  { %3538 = vmatprep.subr.bf16.mxu1 %v4991_v1  ;;  %v5055_v63 = vld [vmem:[%s7276_s2 + $0xf40] ss:$16 sps:$4 sm:$0xff]   ;;  %v5060_v1 = vld [vmem:[%s7276_s2 + $0xd24] ss:$16 sps:$4 sm:$0xff]  }
  0xcb   :  { %3498 = vmatpush1.bf16.msra.mxu0 %v4986_v2  ;;  %v5063_v2 = vld [vmem:[%s7276_s2 + $0xf24] ss:$16 sps:$4 sm:$0xff]  }
  0xcc   :  { %3539 = vmatpush1.bf16.msra.mxu1 %v4989_v3  ;;  %3499 = vmatprep.subr.bf16.mxu0 %v4994_v4  ;;  %v5058_v3 = vld [vmem:[%s7276_s2 + $0xd20] ss:$16 sps:$4 sm:$0xff]  }
  0xcd   :  { %3540 = vmatprep.subr.bf16.mxu1 %v4997_v5  ;;  %v5061_v4 = vld [vmem:[%s7276_s2 + $0xf20] ss:$16 sps:$4 sm:$0xff]   ;;  %v5066_v5 = vld [vmem:[%s7276_s2 + $0xd04] ss:$16 sps:$4 sm:$0xff]  }
  0xcf   :  { %3500 = vmatpush1.bf16.msra.mxu0 %v4992_v7  ;;  %v5069_v7 = vld [vmem:[%s7276_s2 + $0xf04] ss:$16 sps:$4 sm:$0xff]  }
  0xd0   :  { %3541 = vmatpush1.bf16.msra.mxu1 %v4995_v8  ;;  %3501 = vmatprep.subr.bf16.mxu0 %v5000_v9  ;;  %v5064_v8 = vld [vmem:[%s7276_s2 + $0xd00] ss:$16 sps:$4 sm:$0xff]  }
  0xd1   :  { %3542 = vmatprep.subr.bf16.mxu1 %v5003_v10  ;;  %v5067_v9 = vld [vmem:[%s7276_s2 + $0xf00] ss:$16 sps:$4 sm:$0xff]   ;;  %v6385_v10 = vrot.slane %v6150_v39, %v5653_v49  ;;  %v5076_v49 = vld [vmem:[%s7276_s2 + $0x2ec] ss:$16 sps:$4 sm:$0xff]   ;;  %v6400_v39 = vsub.s32 1, %v5635_v42 }
  0xd3   :  { %3502 = vmatpush1.bf16.msra.mxu0 %v4998_v11  ;;  %v549_v11 = vld [vmem:[%s7278_s3] sm:$0xf] }
  0xd4   :  { %3543 = vmatpush1.bf16.msra.mxu1 %v5001_v12  ;;  %3503 = vmatprep.subr.bf16.mxu0 %v5006_v14  ;;  %v6391_v12 = vsub.s32 0, %v5635_v42  ;;  %v5073_v14 = vld [vmem:[%s7276_s2 + $0xec] ss:$16 sps:$4 sm:$0xff]  }
  0xd5   :  { %3544 = vmatprep.subr.bf16.mxu1 %v5009_v15  ;;  %v6404_v15 = vcombine.high %v6385_v10, %v6385_v10 }
  0xd7   :  { %3504 = vmatpush1.bf16.msra.mxu0 %v5004_v16  ;;  %v5071_v16 = vld [vmem:[%s7276_s2 + $0xe8] ss:$16 sps:$4 sm:$0xff]  }
  0xd8   :  { %3545 = vmatpush1.bf16.msra.mxu1 %v5007_v19  ;;  %3505 = vmatprep.subr.bf16.mxu0 %v5012_v20  ;;  %v554_v19 = vrot.slane %v549_v11, %v6391_v12  ;;  %v5074_v20 = vld [vmem:[%s7276_s2 + $0x2e8] ss:$16 sps:$4 sm:$0xff]  }
  0xd9   :  { %3546 = vmatprep.subr.bf16.mxu1 %v5015_v21  ;;  %v5079_v21 = vld [vmem:[%s7276_s2 + $0xcc] ss:$16 sps:$4 sm:$0xff]  }
  0xdb   :  { %3506 = vmatpush1.bf16.msra.mxu0 %v5010_v22  ;;  %v5082_v22 = vld [vmem:[%s7276_s2 + $0x2cc] ss:$16 sps:$4 sm:$0xff]  }
  0xdc   :  { %3547 = vmatpush1.bf16.msra.mxu1 %v5013_v24  ;;  %3507 = vmatprep.subr.bf16.mxu0 %v5018_v25  ;;  %v558_v24 = vrot.slane %v549_v11, %v6400_v39  ;;  %v5121_v11 = vld [vmem:[%s7276_s2 + $0x1ec] ss:$16 sps:$4 sm:$0xff]  }
  0xdd   :  { %3548 = vmatprep.subr.bf16.mxu1 %v5021_v27 }
  0xdf   :  { %3508 = vmatpush1.bf16.msra.mxu0 %v5016_v28  ;;  %v5077_v28 = vld [vmem:[%s7276_s2 + $0xc8] ss:$16 sps:$4 sm:$0xff]  }
  0xe0   :  { %3549 = vmatpush1.bf16.msra.mxu1 %v5019_v29  ;;  %3509 = vmatprep.subr.bf16.mxu0 %v5024_v30  ;;  %v5080_v29 = vld [vmem:[%s7276_s2 + $0x2c8] ss:$16 sps:$4 sm:$0xff]  }
  0xe1   :  { %3550 = vmatprep.subr.bf16.mxu1 %v5027_v31 }
  0xe3   :  { %3510 = vmatpush2.bf16.msra.mxu0 %v5022_v33 }
  0xe4   :  { %3551 = vmatpush2.bf16.msra.mxu1 %v5025_v34  ;;  %3511 = vmatprep.subr.bf16.mxu0 %v5030_v36  ;;  %v5085_v34 = vld [vmem:[%s7276_s2 + $0xac] ss:$16 sps:$4 sm:$0xff]  }
  0xe5   :  { %3552 = vmatprep.subr.bf16.mxu1 %v5033_v37  ;;  %v5088_v36 = vld [vmem:[%s7276_s2 + $0x2ac] ss:$16 sps:$4 sm:$0xff]  }
  0xe7   :  { %3512 = vmatpush2.bf16.msra.mxu0 %v5028_v38 }
  0xe8   :  { %3553 = vmatpush2.bf16.msra.mxu1 %v5031_v32  ;;  %3513 = vmatprep.subr.bf16.mxu0 %v5036_v40  ;;  %v5083_v32 = vld [vmem:[%s7276_s2 + $0xa8] ss:$16 sps:$4 sm:$0xff]  }
  0xe9   :  { %3554 = vmatprep.subr.bf16.mxu1 %v5039_v44  ;;  %v5086_v40 = vld [vmem:[%s7276_s2 + $0x2a8] ss:$16 sps:$4 sm:$0xff]  }
  0xeb   :  { %3514 = vmatpush2.bf16.msra.mxu0 %v5034_v45 }
  0xec   :  { %3555 = vmatpush2.bf16.msra.mxu1 %v5037_v46  ;;  %3515 = vmatprep.subr.bf16.mxu0 %v5042_v47 }
  0xed   :  { %3556 = vmatprep.subr.bf16.mxu1 %v5045_v48 }
  0xef   :  { %3516 = vmatpush2.bf16.msra.mxu0 %v5040_v51  ;;  %v5091_v51 = vld [vmem:[%s7276_s2 + $0x8c] ss:$16 sps:$4 sm:$0xff]  }
  0xf0   :  { %3557 = vmatpush2.bf16.msra.mxu1 %v5043_v52  ;;  %3517 = vmatprep.subr.bf16.mxu0 %v5048_v53  ;;  %v5092_v52 = vld [vmem:[%s7276_s2 + $0x288] ss:$16 sps:$4 sm:$0xff]   ;;  %v5097_v53 = vld [vmem:[%s7276_s2 + $0x6c] ss:$16 sps:$4 sm:$0xff]  }
  0xf1   :  { %3558 = vmatprep.subr.bf16.mxu1 %v5051_v55  ;;  %v5100_v55 = vld [vmem:[%s7276_s2 + $0x26c] ss:$16 sps:$4 sm:$0xff]  }
  0xf3   :  { %3518 = vmatpush2.bf16.msra.mxu0 %v5046_v56  ;;  %v5095_v56 = vld [vmem:[%s7276_s2 + $0x68] ss:$16 sps:$4 sm:$0xff]  }
  0xf4   :  { %3559 = vmatpush2.bf16.msra.mxu1 %v5049_v57  ;;  %3519 = vmatprep.subr.bf16.mxu0 %v5054_v58  ;;  %v5098_v57 = vld [vmem:[%s7276_s2 + $0x268] ss:$16 sps:$4 sm:$0xff]   ;;  %v5103_v58 = vld [vmem:[%s7276_s2 + $0x4c] ss:$16 sps:$4 sm:$0xff]  }
  0xf5   :  { %3560 = vmatprep.subr.bf16.mxu1 %v5057_v61  ;;  %v5106_v61 = vld [vmem:[%s7276_s2 + $0x24c] ss:$16 sps:$4 sm:$0xff]  }
  0xf7   :  { %3520 = vmatpush2.bf16.msra.mxu0 %v5052_v62  ;;  %v5101_v62 = vld [vmem:[%s7276_s2 + $0x48] ss:$16 sps:$4 sm:$0xff]  }
  0xf8   :  { %3561 = vmatpush2.bf16.msra.mxu1 %v5055_v63  ;;  %3521 = vmatprep.subr.bf16.mxu0 %v5060_v1  ;;  %v5104_v63 = vld [vmem:[%s7276_s2 + $0x248] ss:$16 sps:$4 sm:$0xff]   ;;  %v5109_v1 = vld [vmem:[%s7276_s2 + $0x2c] ss:$16 sps:$4 sm:$0xff]  }
  0xf9   :  { %3562 = vmatprep.subr.bf16.mxu1 %v5063_v2  ;;  %v5112_v2 = vld [vmem:[%s7276_s2 + $0x22c] ss:$16 sps:$4 sm:$0xff]  }
  0xfb   :  { %3522 = vmatpush2.bf16.msra.mxu0 %v5058_v3  ;;  %v5107_v3 = vld [vmem:[%s7276_s2 + $0x28] ss:$16 sps:$4 sm:$0xff]  }
  0xfc   :  { %3563 = vmatpush2.bf16.msra.mxu1 %v5061_v4  ;;  %3523 = vmatprep.subr.bf16.mxu0 %v5066_v5  ;;  %v5110_v4 = vld [vmem:[%s7276_s2 + $0x228] ss:$16 sps:$4 sm:$0xff]   ;;  %v5115_v5 = vld [vmem:[%s7276_s2 + $0xc] ss:$16 sps:$4 sm:$0xff]  }
  0xfd   :  { %3564 = vmatprep.subr.bf16.mxu1 %v5069_v7  ;;  %v5118_v7 = vld [vmem:[%s7276_s2 + $0x20c] ss:$16 sps:$4 sm:$0xff]  }
  0xff   :  { %3524 = vmatpush2.bf16.msra.mxu0 %v5064_v8  ;;  %v5113_v8 = vld [vmem:[%s7276_s2 + $0x8] ss:$16 sps:$4 sm:$0xff]  }
 0x100   :  { %3565 = vmatpush2.bf16.msra.mxu1 %v5067_v9  ;;  %3575 = vmatprep.subr.bf16.mxu0 %v5073_v14  ;;  %v5116_v9 = vld [vmem:[%s7276_s2 + $0x208] ss:$16 sps:$4 sm:$0xff]   ;;  %v5124_v14 = vld [vmem:[%s7276_s2 + $0x3ec] ss:$16 sps:$4 sm:$0xff]  }
 0x101   :  { %3616 = vmatprep.subr.bf16.mxu1 %v5076_v49  ;;  %v5119_v49 = vld [vmem:[%s7276_s2 + $0x1e8] ss:$16 sps:$4 sm:$0xff]  }
 0x102   :  { %v3281_v25 = vpop.f32.mrf.mxu0  ;;  %3526 = vmatmul.mubr.bf16.vlgmr.msra.gmra.mxu0 %v6385_v10 }
 0x103   :  { %v3322_v27 = vpop.f32.mrf.mxu1  ;;  %3567 = vmatmul.mubr.bf16.vlgmr.msra.gmra.mxu1 %v6404_v15  ;;  %v3282_v30 = vadd.f32 %v3281_v25, %v554_v19  ;;  %3576 = vmatpush1.bf16.msra.mxu0 %v5071_v16  ;;  %v5122_v16 = vld [vmem:[%s7276_s2 + $0x3e8] ss:$16 sps:$4 sm:$0xff]   ;;  %v5127_v19 = vld [vmem:[%s7276_s2 + $0x1cc] ss:$16 sps:$4 sm:$0xff]  }
 0x104   :  { %3617 = vmatpush1.bf16.msra.mxu1 %v5074_v20  ;;  %v3283_v31 = vpop.f32.mrf.mxu0  ;;  %3577 = vmatprep.subr.bf16.mxu0 %v5079_v21  ;;  %v5130_v20 = vld [vmem:[%s7276_s2 + $0x3cc] ss:$16 sps:$4 sm:$0xff]   ;;  %v5125_v21 = vld [vmem:[%s7276_s2 + $0x1c8] ss:$16 sps:$4 sm:$0xff]  }
 0x105   :  { %v3324_v33 = vpop.f32.mrf.mxu1  ;;  %3618 = vmatprep.subr.bf16.mxu1 %v5082_v22  ;;  %v6434_v37 = vadd.f32 %v3322_v27, %v3282_v30  ;;  %v3284_v38 = vadd.f32 %v3283_v31, %v558_v24  ;;  %3607 = vmatprep.mubr.bf16.mxu0 %v5681_v60  ;;  %v5094_v60 = vld [vmem:[%s7276_s2 + $0x28c] ss:$16 sps:$4 sm:$0xff]   ;;  %v5128_v22 = vld [vmem:[%s7276_s2 + $0x3c8] ss:$16 sps:$4 sm:$0xff]  }
 0x106   :  { %3648 = vmatprep.mubr.bf16.mxu1 %v5694_v0  ;;  %v3285_v44 = vpop.f32.mrf.mxu0  ;;  %v5089_v0 = vld [vmem:[%s7276_s2 + $0x88] ss:$16 sps:$4 sm:$0xff]   ;;  %v5133_v24 = vld [vmem:[%s7276_s2 + $0x1ac] ss:$16 sps:$4 sm:$0xff]  }
 0x107   :  { %v3326_v45 = vpop.f32.mrf.mxu1  ;;  %v6444_v46 = vadd.f32 %v3324_v33, %v3284_v38  ;;  %3578 = vmatpush1.bf16.msra.mxu0 %v5077_v28  ;;  %v5136_v25 = vld [vmem:[%s7276_s2 + $0x3ac] ss:$16 sps:$4 sm:$0xff]   ;;  %v5131_v27 = vld [vmem:[%s7276_s2 + $0x1a8] ss:$16 sps:$4 sm:$0xff]  }
 0x108   :  { %3619 = vmatpush1.bf16.msra.mxu1 %v5080_v29  ;;  %v3286_v47 = vpop.f32.mrf.mxu0  ;;  %3579 = vmatprep.subr.bf16.mxu0 %v5085_v34  ;;  %v5134_v28 = vld [vmem:[%s7276_s2 + $0x3a8] ss:$16 sps:$4 sm:$0xff]   ;;  %v5139_v29 = vld [vmem:[%s7276_s2 + $0x18c] ss:$16 sps:$4 sm:$0xff]  }
 0x109   :  { %v3327_v48 = vpop.f32.mrf.mxu1  ;;  %3620 = vmatprep.subr.bf16.mxu1 %v5088_v36  ;;  %v5142_v30 = vld [vmem:[%s7276_s2 + $0x38c] ss:$16 sps:$4 sm:$0xff]   ;;  %v5137_v31 = vld [vmem:[%s7276_s2 + $0x188] ss:$16 sps:$4 sm:$0xff]  }
 0x10a   :  { %v5140_v33 = vld [vmem:[%s7276_s2 + $0x388] ss:$16 sps:$4 sm:$0xff]   ;;  %v5145_v34 = vld [vmem:[%s7276_s2 + $0x16c] ss:$16 sps:$4 sm:$0xff]  }
 0x10b   :  { %3580 = vmatpush1.bf16.msra.mxu0 %v5083_v32  ;;  %v5148_v36 = vld [vmem:[%s7276_s2 + $0x36c] ss:$16 sps:$4 sm:$0xff]   ;;  %v5143_v38 = vld [vmem:[%s7276_s2 + $0x168] ss:$16 sps:$4 sm:$0xff]  }
 0x10c   :  { %3621 = vmatpush1.bf16.msra.mxu1 %v5086_v40  ;;  %3581 = vmatprep.subr.bf16.mxu0 %v5091_v51  ;;  %v5146_v32 = vld [vmem:[%s7276_s2 + $0x368] ss:$16 sps:$4 sm:$0xff]   ;;  %v5151_v40 = vld [vmem:[%s7276_s2 + $0x14c] ss:$16 sps:$4 sm:$0xff]  }
 0x10d   :  { %3622 = vmatprep.subr.bf16.mxu1 %v5094_v60  ;;  %v5154_v44 = vld [vmem:[%s7276_s2 + $0x34c] ss:$16 sps:$4 sm:$0xff]   ;;  %v5149_v45 = vld [vmem:[%s7276_s2 + $0x148] ss:$16 sps:$4 sm:$0xff]  }
 0x10e   :  { %v5152_v47 = vld [vmem:[%s7276_s2 + $0x348] ss:$16 sps:$4 sm:$0xff]   ;;  %v5157_v48 = vld [vmem:[%s7276_s2 + $0x12c] ss:$16 sps:$4 sm:$0xff]  }
 0x10f   :  { %3582 = vmatpush1.bf16.msra.mxu0 %v5089_v0  ;;  %v5160_v51 = vld [vmem:[%s7276_s2 + $0x32c] ss:$16 sps:$4 sm:$0xff]   ;;  %v5155_v60 = vld [vmem:[%s7276_s2 + $0x128] ss:$16 sps:$4 sm:$0xff]  }
 0x110   :  { %3623 = vmatpush1.bf16.msra.mxu1 %v5092_v52  ;;  %3583 = vmatprep.subr.bf16.mxu0 %v5097_v53  ;;  %v5158_v0 = vld [vmem:[%s7276_s2 + $0x328] ss:$16 sps:$4 sm:$0xff]   ;;  %v5163_v52 = vld [vmem:[%s7276_s2 + $0x10c] ss:$16 sps:$4 sm:$0xff]  }
 0x111   :  { %3624 = vmatprep.subr.bf16.mxu1 %v5100_v55  ;;  %v5166_v53 = vld [vmem:[%s7276_s2 + $0x30c] ss:$16 sps:$4 sm:$0xff]   ;;  %v5161_v55 = vld [vmem:[%s7276_s2 + $0x108] ss:$16 sps:$4 sm:$0xff]  }
 0x113   :  { %3584 = vmatpush1.bf16.msra.mxu0 %v5095_v56  ;;  %v5164_v56 = vld [vmem:[%s7276_s2 + $0x308] ss:$16 sps:$4 sm:$0xff]  }
 0x114   :  { %3625 = vmatpush1.bf16.msra.mxu1 %v5098_v57  ;;  %3585 = vmatprep.subr.bf16.mxu0 %v5103_v58  ;;  %v5169_v57 = vld [vmem:[%s7276_s2 + $0x4ec] ss:$16 sps:$4 sm:$0xff]  }
 0x115   :  { %3626 = vmatprep.subr.bf16.mxu1 %v5106_v61  ;;  %v5172_v58 = vld [vmem:[%s7276_s2 + $0x6ec] ss:$16 sps:$4 sm:$0xff]   ;;  %v5167_v61 = vld [vmem:[%s7276_s2 + $0x4e8] ss:$16 sps:$4 sm:$0xff]  }
 0x117   :  { %3586 = vmatpush1.bf16.msra.mxu0 %v5101_v62  ;;  %v5170_v62 = vld [vmem:[%s7276_s2 + $0x6e8] ss:$16 sps:$4 sm:$0xff]  }
 0x118   :  { %3627 = vmatpush1.bf16.msra.mxu1 %v5104_v63  ;;  %3587 = vmatprep.subr.bf16.mxu0 %v5109_v1  ;;  %v5175_v63 = vld [vmem:[%s7276_s2 + $0x4cc] ss:$16 sps:$4 sm:$0xff]  }
 0x119   :  { %3628 = vmatprep.subr.bf16.mxu1 %v5112_v2  ;;  %v5178_v1 = vld [vmem:[%s7276_s2 + $0x6cc] ss:$16 sps:$4 sm:$0xff]  }
 0x11b   :  { %3588 = vmatpush1.bf16.msra.mxu0 %v5107_v3 }
 0x11c   :  { %3629 = vmatpush1.bf16.msra.mxu1 %v5110_v4  ;;  %3589 = vmatprep.subr.bf16.mxu0 %v5115_v5  ;;  %v5173_v5 = vld [vmem:[%s7276_s2 + $0x4c8] ss:$16 sps:$4 sm:$0xff]  }
 0x11d   :  { %3630 = vmatprep.subr.bf16.mxu1 %v5118_v7  ;;  %v5176_v7 = vld [vmem:[%s7276_s2 + $0x6c8] ss:$16 sps:$4 sm:$0xff]  }
 0x11f   :  { %3590 = vmatpush1.bf16.msra.mxu0 %v5113_v8 }
 0x120   :  { %3631 = vmatpush1.bf16.msra.mxu1 %v5116_v9  ;;  %3591 = vmatprep.subr.bf16.mxu0 %v5121_v11 }
 0x121   :  { %3632 = vmatprep.subr.bf16.mxu1 %v5124_v14 }
 0x123   :  { %3592 = vmatpush2.bf16.msra.mxu0 %v5119_v49 }
 0x124   :  { %3633 = vmatpush2.bf16.msra.mxu1 %v5122_v16  ;;  %3593 = vmatprep.subr.bf16.mxu0 %v5127_v19  ;;  %v5179_v19 = vld [vmem:[%s7276_s2 + $0x4a8] ss:$16 sps:$4 sm:$0xff]  }
 0x125   :  { %3634 = vmatprep.subr.bf16.mxu1 %v5130_v20  ;;  %v5182_v20 = vld [vmem:[%s7276_s2 + $0x6a8] ss:$16 sps:$4 sm:$0xff]  }
 0x127   :  { %3594 = vmatpush2.bf16.msra.mxu0 %v5125_v21 }
 0x128   :  { %3635 = vmatpush2.bf16.msra.mxu1 %v5128_v22  ;;  %3595 = vmatprep.subr.bf16.mxu0 %v5133_v24  ;;  %v5185_v22 = vld [vmem:[%s7276_s2 + $0x488] ss:$16 sps:$4 sm:$0xff]  }
 0x129   :  { %3636 = vmatprep.subr.bf16.mxu1 %v5136_v25  ;;  %v5188_v24 = vld [vmem:[%s7276_s2 + $0x688] ss:$16 sps:$4 sm:$0xff]   ;;  %v5193_v25 = vld [vmem:[%s7276_s2 + $0x46c] ss:$16 sps:$4 sm:$0xff]  }
 0x12b   :  { %3596 = vmatpush2.bf16.msra.mxu0 %v5131_v27  ;;  %v5196_v27 = vld [vmem:[%s7276_s2 + $0x66c] ss:$16 sps:$4 sm:$0xff]  }
 0x12c   :  { %3637 = vmatpush2.bf16.msra.mxu1 %v5134_v28  ;;  %3597 = vmatprep.subr.bf16.mxu0 %v5139_v29  ;;  %v5191_v28 = vld [vmem:[%s7276_s2 + $0x468] ss:$16 sps:$4 sm:$0xff]  }
 0x12d   :  { %3638 = vmatprep.subr.bf16.mxu1 %v5142_v30  ;;  %v5194_v29 = vld [vmem:[%s7276_s2 + $0x668] ss:$16 sps:$4 sm:$0xff]   ;;  %v5199_v30 = vld [vmem:[%s7276_s2 + $0x44c] ss:$16 sps:$4 sm:$0xff]  }
 0x12f   :  { %3598 = vmatpush2.bf16.msra.mxu0 %v5137_v31  ;;  %v5202_v31 = vld [vmem:[%s7276_s2 + $0x64c] ss:$16 sps:$4 sm:$0xff]  }
 0x130   :  { %3639 = vmatpush2.bf16.msra.mxu1 %v5140_v33  ;;  %3599 = vmatprep.subr.bf16.mxu0 %v5145_v34  ;;  %v5197_v33 = vld [vmem:[%s7276_s2 + $0x448] ss:$16 sps:$4 sm:$0xff]  }
 0x131   :  { %3640 = vmatprep.subr.bf16.mxu1 %v5148_v36  ;;  %v5200_v34 = vld [vmem:[%s7276_s2 + $0x648] ss:$16 sps:$4 sm:$0xff]   ;;  %v5205_v36 = vld [vmem:[%s7276_s2 + $0x42c] ss:$16 sps:$4 sm:$0xff]  }
 0x133   :  { %3600 = vmatpush2.bf16.msra.mxu0 %v5143_v38  ;;  %v5208_v38 = vld [vmem:[%s7276_s2 + $0x62c] ss:$16 sps:$4 sm:$0xff]  }
 0x134   :  { %3641 = vmatpush2.bf16.msra.mxu1 %v5146_v32  ;;  %3601 = vmatprep.subr.bf16.mxu0 %v5151_v40  ;;  %v5203_v32 = vld [vmem:[%s7276_s2 + $0x428] ss:$16 sps:$4 sm:$0xff]  }
 0x135   :  { %3642 = vmatprep.subr.bf16.mxu1 %v5154_v44  ;;  %v5206_v40 = vld [vmem:[%s7276_s2 + $0x628] ss:$16 sps:$4 sm:$0xff]   ;;  %v5211_v44 = vld [vmem:[%s7276_s2 + $0x40c] ss:$16 sps:$4 sm:$0xff]  }
 0x137   :  { %3602 = vmatpush2.bf16.msra.mxu0 %v5149_v45  ;;  %v5214_v45 = vld [vmem:[%s7276_s2 + $0x60c] ss:$16 sps:$4 sm:$0xff]  }
 0x138   :  { %3643 = vmatpush2.bf16.msra.mxu1 %v5152_v47  ;;  %3603 = vmatprep.subr.bf16.mxu0 %v5157_v48  ;;  %v5209_v47 = vld [vmem:[%s7276_s2 + $0x408] ss:$16 sps:$4 sm:$0xff]  }
 0x139   :  { %3644 = vmatprep.subr.bf16.mxu1 %v5160_v51  ;;  %v5212_v48 = vld [vmem:[%s7276_s2 + $0x608] ss:$16 sps:$4 sm:$0xff]   ;;  %v5217_v51 = vld [vmem:[%s7276_s2 + $0x5ec] ss:$16 sps:$4 sm:$0xff]  }
 0x13b   :  { %3604 = vmatpush2.bf16.msra.mxu0 %v5155_v60  ;;  %v5220_v60 = vld [vmem:[%s7276_s2 + $0x7ec] ss:$16 sps:$4 sm:$0xff]  }
 0x13c   :  { %3645 = vmatpush2.bf16.msra.mxu1 %v5158_v0  ;;  %3605 = vmatprep.subr.bf16.mxu0 %v5163_v52  ;;  %v5215_v0 = vld [vmem:[%s7276_s2 + $0x5e8] ss:$16 sps:$4 sm:$0xff]  }
 0x13d   :  { %3646 = vmatprep.subr.bf16.mxu1 %v5166_v53  ;;  %v5218_v52 = vld [vmem:[%s7276_s2 + $0x7e8] ss:$16 sps:$4 sm:$0xff]   ;;  %v5223_v53 = vld [vmem:[%s7276_s2 + $0x5cc] ss:$16 sps:$4 sm:$0xff]  }
 0x13f   :  { %3606 = vmatpush2.bf16.msra.mxu0 %v5161_v55  ;;  %v5226_v55 = vld [vmem:[%s7276_s2 + $0x7cc] ss:$16 sps:$4 sm:$0xff]  }
 0x140   :  { %3647 = vmatpush2.bf16.msra.mxu1 %v5164_v56  ;;  %3657 = vmatprep.subr.bf16.mxu0 %v5169_v57  ;;  %v5221_v56 = vld [vmem:[%s7276_s2 + $0x5c8] ss:$16 sps:$4 sm:$0xff]  }
 0x141   :  { %3698 = vmatprep.subr.bf16.mxu1 %v5172_v58  ;;  %v5224_v57 = vld [vmem:[%s7276_s2 + $0x7c8] ss:$16 sps:$4 sm:$0xff]   ;;  %v5229_v58 = vld [vmem:[%s7276_s2 + $0x5ac] ss:$16 sps:$4 sm:$0xff]  }
 0x142   :  { %v3363_v2 = vpop.f32.mrf.mxu0  ;;  %3608 = vmatmul.mubr.bf16.vlgmr.msra.gmra.mxu0 %v5731_v13  ;;  %v5181_v13 = vld [vmem:[%s7276_s2 + $0x4ac] ss:$16 sps:$4 sm:$0xff]  }
 0x143   :  { %v3404_v3 = vpop.f32.mrf.mxu1  ;;  %3649 = vmatmul.mubr.bf16.vlgmr.msra.gmra.mxu1 %v5747_v18  ;;  %v3364_v4 = vadd.f32 %v3363_v2, %v6434_v37  ;;  %3658 = vmatpush1.bf16.msra.mxu0 %v5167_v61  ;;  %v5184_v18 = vld [vmem:[%s7276_s2 + $0x6ac] ss:$16 sps:$4 sm:$0xff]  }
 0x144   :  { %3699 = vmatpush1.bf16.msra.mxu1 %v5170_v62  ;;  %v3365_v8 = vpop.f32.mrf.mxu0  ;;  %3659 = vmatprep.subr.bf16.mxu0 %v5175_v63  ;;  %v5232_v61 = vld [vmem:[%s7276_s2 + $0x7ac] ss:$16 sps:$4 sm:$0xff]   ;;  %v5227_v62 = vld [vmem:[%s7276_s2 + $0x5a8] ss:$16 sps:$4 sm:$0xff]  }
 0x145   :  { %v3406_v9 = vpop.f32.mrf.mxu1  ;;  %3700 = vmatprep.subr.bf16.mxu1 %v5178_v1  ;;  %v6635_v37 = vadd.f32 %v3404_v3, %v3364_v4  ;;  %v3366_v11 = vadd.f32 %v3365_v8, %v6444_v46  ;;  %3689 = vmatprep.mubr.bf16.mxu0 %v5743_v17  ;;  %v5187_v17 = vld [vmem:[%s7276_s2 + $0x48c] ss:$16 sps:$4 sm:$0xff]   ;;  %v5230_v63 = vld [vmem:[%s7276_s2 + $0x7a8] ss:$16 sps:$4 sm:$0xff]  }
 0x146   :  { %3730 = vmatprep.mubr.bf16.mxu1 %v5763_v23  ;;  %v3367_v14 = vpop.f32.mrf.mxu0  ;;  %v5190_v23 = vld [vmem:[%s7276_s2 + $0x68c] ss:$16 sps:$4 sm:$0xff]   ;;  %v5233_v3 = vld [vmem:[%s7276_s2 + $0x588] ss:$16 sps:$4 sm:$0xff]  }
 0x147   :  { %v3408_v49 = vpop.f32.mrf.mxu1  ;;  %v6640_v16 = vadd.f32 %v3406_v9, %v3366_v11  ;;  %3660 = vmatpush1.bf16.msra.mxu0 %v5173_v5  ;;  %v5235_v1 = vld [vmem:[%s7276_s2 + $0x58c] ss:$16 sps:$4 sm:$0xff]   ;;  %v5236_v4 = vld [vmem:[%s7276_s2 + $0x788] ss:$16 sps:$4 sm:$0xff]  }
 0x148   :  { %3701 = vmatpush1.bf16.msra.mxu1 %v5176_v7  ;;  %v3368_v21 = vpop.f32.mrf.mxu0  ;;  %3661 = vmatprep.subr.bf16.mxu0 %v5181_v13  ;;  %v5238_v2 = vld [vmem:[%s7276_s2 + $0x78c] ss:$16 sps:$4 sm:$0xff]   ;;  %v5239_v8 = vld [vmem:[%s7276_s2 + $0x568] ss:$16 sps:$4 sm:$0xff]  }
 0x149   :  { %v3409_v46 = vpop.f32.mrf.mxu1  ;;  %3702 = vmatprep.subr.bf16.mxu1 %v5184_v18  ;;  %v5241_v5 = vld [vmem:[%s7276_s2 + $0x56c] ss:$16 sps:$4 sm:$0xff]   ;;  %v5242_v9 = vld [vmem:[%s7276_s2 + $0x768] ss:$16 sps:$4 sm:$0xff]  }
 0x14a   :  { %v5244_v7 = vld [vmem:[%s7276_s2 + $0x76c] ss:$16 sps:$4 sm:$0xff]   ;;  %v5245_v11 = vld [vmem:[%s7276_s2 + $0x548] ss:$16 sps:$4 sm:$0xff]  }
 0x14b   :  { %3662 = vmatpush1.bf16.msra.mxu0 %v5179_v19  ;;  %v5247_v13 = vld [vmem:[%s7276_s2 + $0x54c] ss:$16 sps:$4 sm:$0xff]   ;;  %v5248_v14 = vld [vmem:[%s7276_s2 + $0x748] ss:$16 sps:$4 sm:$0xff]  }
 0x14c   :  { %3703 = vmatpush1.bf16.msra.mxu1 %v5182_v20  ;;  %3663 = vmatprep.subr.bf16.mxu0 %v5187_v17  ;;  %v5250_v18 = vld [vmem:[%s7276_s2 + $0x74c] ss:$16 sps:$4 sm:$0xff]   ;;  %v5251_v20 = vld [vmem:[%s7276_s2 + $0x528] ss:$16 sps:$4 sm:$0xff]  }
 0x14d   :  { %3704 = vmatprep.subr.bf16.mxu1 %v5190_v23  ;;  %v5253_v49 = vld [vmem:[%s7276_s2 + $0x52c] ss:$16 sps:$4 sm:$0xff]   ;;  %v5254_v21 = vld [vmem:[%s7276_s2 + $0x728] ss:$16 sps:$4 sm:$0xff]  }
 0x14e   :  { %v5256_v19 = vld [vmem:[%s7276_s2 + $0x72c] ss:$16 sps:$4 sm:$0xff]   ;;  %v5257_v23 = vld [vmem:[%s7276_s2 + $0x508] ss:$16 sps:$4 sm:$0xff]  }
 0x14f   :  { %3664 = vmatpush1.bf16.msra.mxu0 %v5185_v22  ;;  %v5259_v46 = vld [vmem:[%s7276_s2 + $0x50c] ss:$16 sps:$4 sm:$0xff]   ;;  %v5260_v22 = vld [vmem:[%s7276_s2 + $0x708] ss:$16 sps:$4 sm:$0xff]  }
 0x150   :  { %3705 = vmatpush1.bf16.msra.mxu1 %v5188_v24  ;;  %3665 = vmatprep.subr.bf16.mxu0 %v5193_v25  ;;  %v5262_v17 = vld [vmem:[%s7276_s2 + $0x70c] ss:$16 sps:$4 sm:$0xff]  }
 0x151   :  { %3706 = vmatprep.subr.bf16.mxu1 %v5196_v27  ;;  %v5265_v24 = vld [vmem:[%s7276_s2 + $0x8ec] ss:$16 sps:$4 sm:$0xff]   ;;  %v5263_v27 = vld [vmem:[%s7276_s2 + $0x8e8] ss:$16 sps:$4 sm:$0xff]  }
 0x152   :  { %v5268_v25 = vld [vmem:[%s7276_s2 + $0xaec] ss:$16 sps:$4 sm:$0xff]  }
 0x153   :  { %3666 = vmatpush1.bf16.msra.mxu0 %v5191_v28  ;;  %v5266_v28 = vld [vmem:[%s7276_s2 + $0xae8] ss:$16 sps:$4 sm:$0xff]  }
 0x154   :  { %3707 = vmatpush1.bf16.msra.mxu1 %v5194_v29  ;;  %3667 = vmatprep.subr.bf16.mxu0 %v5199_v30  ;;  %v5271_v29 = vld [vmem:[%s7276_s2 + $0x8cc] ss:$16 sps:$4 sm:$0xff]  }
 0x155   :  { %3708 = vmatprep.subr.bf16.mxu1 %v5202_v31  ;;  %v5274_v30 = vld [vmem:[%s7276_s2 + $0xacc] ss:$16 sps:$4 sm:$0xff]  }
 0x157   :  { %3668 = vmatpush1.bf16.msra.mxu0 %v5197_v33 }
 0x158   :  { %3709 = vmatpush1.bf16.msra.mxu1 %v5200_v34  ;;  %3669 = vmatprep.subr.bf16.mxu0 %v5205_v36  ;;  %v5269_v36 = vld [vmem:[%s7276_s2 + $0x8c8] ss:$16 sps:$4 sm:$0xff]  }
 0x159   :  { %3710 = vmatprep.subr.bf16.mxu1 %v5208_v38  ;;  %v5272_v38 = vld [vmem:[%s7276_s2 + $0xac8] ss:$16 sps:$4 sm:$0xff]  }
 0x15b   :  { %3670 = vmatpush1.bf16.msra.mxu0 %v5203_v32  ;;  %v5277_v32 = vld [vmem:[%s7276_s2 + $0x8ac] ss:$16 sps:$4 sm:$0xff]  }
 0x15c   :  { %3711 = vmatpush1.bf16.msra.mxu1 %v5206_v40  ;;  %3671 = vmatprep.subr.bf16.mxu0 %v5211_v44 }
 0x15d   :  { %3712 = vmatprep.subr.bf16.mxu1 %v5214_v45 }
 0x15f   :  { %3672 = vmatpush1.bf16.msra.mxu0 %v5209_v47 }
 0x160   :  { %3713 = vmatpush1.bf16.msra.mxu1 %v5212_v48  ;;  %3673 = vmatprep.subr.bf16.mxu0 %v5217_v51  ;;  %v5275_v51 = vld [vmem:[%s7276_s2 + $0x8a8] ss:$16 sps:$4 sm:$0xff]  }
 0x161   :  { %3714 = vmatprep.subr.bf16.mxu1 %v5220_v60  ;;  %v5278_v60 = vld [vmem:[%s7276_s2 + $0xaa8] ss:$16 sps:$4 sm:$0xff]  }
 0x163   :  { %3674 = vmatpush2.bf16.msra.mxu0 %v5215_v0 }
 0x164   :  { %3715 = vmatpush2.bf16.msra.mxu1 %v5218_v52  ;;  %3675 = vmatprep.subr.bf16.mxu0 %v5223_v53  ;;  %v5281_v52 = vld [vmem:[%s7276_s2 + $0x888] ss:$16 sps:$4 sm:$0xff]  }
 0x165   :  { %3716 = vmatprep.subr.bf16.mxu1 %v5226_v55  ;;  %v5284_v53 = vld [vmem:[%s7276_s2 + $0xa88] ss:$16 sps:$4 sm:$0xff]   ;;  %v5289_v55 = vld [vmem:[%s7276_s2 + $0x86c] ss:$16 sps:$4 sm:$0xff]  }
 0x167   :  { %3676 = vmatpush2.bf16.msra.mxu0 %v5221_v56  ;;  %v5292_v56 = vld [vmem:[%s7276_s2 + $0xa6c] ss:$16 sps:$4 sm:$0xff]  }
 0x168   :  { %3717 = vmatpush2.bf16.msra.mxu1 %v5224_v57  ;;  %3677 = vmatprep.subr.bf16.mxu0 %v5229_v58  ;;  %v5287_v57 = vld [vmem:[%s7276_s2 + $0x868] ss:$16 sps:$4 sm:$0xff]  }
 0x169   :  { %3718 = vmatprep.subr.bf16.mxu1 %v5232_v61  ;;  %v5290_v58 = vld [vmem:[%s7276_s2 + $0xa68] ss:$16 sps:$4 sm:$0xff]   ;;  %v5295_v61 = vld [vmem:[%s7276_s2 + $0x84c] ss:$16 sps:$4 sm:$0xff]  }
 0x16b   :  { %3678 = vmatpush2.bf16.msra.mxu0 %v5227_v62  ;;  %v5298_v62 = vld [vmem:[%s7276_s2 + $0xa4c] ss:$16 sps:$4 sm:$0xff]  }
 0x16c   :  { %3719 = vmatpush2.bf16.msra.mxu1 %v5230_v63  ;;  %3679 = vmatprep.subr.bf16.mxu0 %v5235_v1  ;;  %v5293_v63 = vld [vmem:[%s7276_s2 + $0x848] ss:$16 sps:$4 sm:$0xff]  }
 0x16d   :  { %3720 = vmatprep.subr.bf16.mxu1 %v5238_v2  ;;  %v5296_v1 = vld [vmem:[%s7276_s2 + $0xa48] ss:$16 sps:$4 sm:$0xff]   ;;  %v5301_v2 = vld [vmem:[%s7276_s2 + $0x82c] ss:$16 sps:$4 sm:$0xff]  }
 0x16f   :  { %3680 = vmatpush2.bf16.msra.mxu0 %v5233_v3  ;;  %v5304_v3 = vld [vmem:[%s7276_s2 + $0xa2c] ss:$16 sps:$4 sm:$0xff]  }
 0x170   :  { %3721 = vmatpush2.bf16.msra.mxu1 %v5236_v4  ;;  %3681 = vmatprep.subr.bf16.mxu0 %v5241_v5  ;;  %v5299_v4 = vld [vmem:[%s7276_s2 + $0x828] ss:$16 sps:$4 sm:$0xff]  }
 0x171   :  { %3722 = vmatprep.subr.bf16.mxu1 %v5244_v7  ;;  %v5302_v5 = vld [vmem:[%s7276_s2 + $0xa28] ss:$16 sps:$4 sm:$0xff]   ;;  %v5307_v7 = vld [vmem:[%s7276_s2 + $0x80c] ss:$16 sps:$4 sm:$0xff]  }
 0x173   :  { %3682 = vmatpush2.bf16.msra.mxu0 %v5239_v8  ;;  %v5310_v8 = vld [vmem:[%s7276_s2 + $0xa0c] ss:$16 sps:$4 sm:$0xff]  }
 0x174   :  { %3723 = vmatpush2.bf16.msra.mxu1 %v5242_v9  ;;  %3683 = vmatprep.subr.bf16.mxu0 %v5247_v13  ;;  %v5305_v9 = vld [vmem:[%s7276_s2 + $0x808] ss:$16 sps:$4 sm:$0xff]  }
 0x175   :  { %3724 = vmatprep.subr.bf16.mxu1 %v5250_v18  ;;  %v5308_v13 = vld [vmem:[%s7276_s2 + $0xa08] ss:$16 sps:$4 sm:$0xff]   ;;  %v5313_v18 = vld [vmem:[%s7276_s2 + $0x9ec] ss:$16 sps:$4 sm:$0xff]  }
 0x177   :  { %3684 = vmatpush2.bf16.msra.mxu0 %v5245_v11  ;;  %v5316_v11 = vld [vmem:[%s7276_s2 + $0xbec] ss:$16 sps:$4 sm:$0xff]  }
 0x178   :  { %3725 = vmatpush2.bf16.msra.mxu1 %v5248_v14  ;;  %3685 = vmatprep.subr.bf16.mxu0 %v5253_v49  ;;  %v5311_v14 = vld [vmem:[%s7276_s2 + $0x9e8] ss:$16 sps:$4 sm:$0xff]  }
 0x179   :  { %3726 = vmatprep.subr.bf16.mxu1 %v5256_v19  ;;  %v5314_v49 = vld [vmem:[%s7276_s2 + $0xbe8] ss:$16 sps:$4 sm:$0xff]   ;;  %v5319_v19 = vld [vmem:[%s7276_s2 + $0x9cc] ss:$16 sps:$4 sm:$0xff]  }
 0x17b   :  { %3686 = vmatpush2.bf16.msra.mxu0 %v5251_v20  ;;  %v5322_v20 = vld [vmem:[%s7276_s2 + $0xbcc] ss:$16 sps:$4 sm:$0xff]  }
 0x17c   :  { %3727 = vmatpush2.bf16.msra.mxu1 %v5254_v21  ;;  %3687 = vmatprep.subr.bf16.mxu0 %v5259_v46  ;;  %v5317_v21 = vld [vmem:[%s7276_s2 + $0x9c8] ss:$16 sps:$4 sm:$0xff]  }
 0x17d   :  { %3728 = vmatprep.subr.bf16.mxu1 %v5262_v17  ;;  %v5320_v46 = vld [vmem:[%s7276_s2 + $0xbc8] ss:$16 sps:$4 sm:$0xff]   ;;  %v5325_v17 = vld [vmem:[%s7276_s2 + $0x9ac] ss:$16 sps:$4 sm:$0xff]  }
 0x17f   :  { %3688 = vmatpush2.bf16.msra.mxu0 %v5257_v23  ;;  %v5328_v23 = vld [vmem:[%s7276_s2 + $0xbac] ss:$16 sps:$4 sm:$0xff]  }
 0x180   :  { %3729 = vmatpush2.bf16.msra.mxu1 %v5260_v22  ;;  %3739 = vmatprep.subr.bf16.mxu0 %v5265_v24  ;;  %v5323_v22 = vld [vmem:[%s7276_s2 + $0x9a8] ss:$16 sps:$4 sm:$0xff]  }
 0x181   :  { %3780 = vmatprep.subr.bf16.mxu1 %v5268_v25  ;;  %v5326_v24 = vld [vmem:[%s7276_s2 + $0xba8] ss:$16 sps:$4 sm:$0xff]   ;;  %v5331_v25 = vld [vmem:[%s7276_s2 + $0x98c] ss:$16 sps:$4 sm:$0xff]  }
 0x182   :  { %v3445_v31 = vpop.f32.mrf.mxu0  ;;  %3690 = vmatmul.mubr.bf16.vlgmr.msra.gmra.mxu0 %v5942_v26 }
 0x183   :  { %v3486_v33 = vpop.f32.mrf.mxu1  ;;  %3731 = vmatmul.mubr.bf16.vlgmr.msra.gmra.mxu1 %v5955_v6  ;;  %v3446_v34 = vadd.f32 %v3445_v31, %v6635_v37  ;;  %3740 = vmatpush1.bf16.msra.mxu0 %v5263_v27  ;;  %v5280_v6 = vld [vmem:[%s7276_s2 + $0xaac] ss:$16 sps:$4 sm:$0xff]  }
 0x184   :  { %3781 = vmatpush1.bf16.msra.mxu1 %v5266_v28  ;;  %v3447_v40 = vpop.f32.mrf.mxu0  ;;  %3741 = vmatprep.subr.bf16.mxu0 %v5271_v29  ;;  %v5334_v27 = vld [vmem:[%s7276_s2 + $0xb8c] ss:$16 sps:$4 sm:$0xff]   ;;  %v5329_v28 = vld [vmem:[%s7276_s2 + $0x988] ss:$16 sps:$4 sm:$0xff]  }
 0x185   :  { %v3488_v26 = vpop.f32.mrf.mxu1  ;;  %3782 = vmatprep.subr.bf16.mxu1 %v5274_v30  ;;  %v6837_v37 = vadd.f32 %v3486_v33, %v3446_v34  ;;  %v3448_v44 = vadd.f32 %v3447_v40, %v6640_v16  ;;  %3771 = vmatprep.mubr.bf16.mxu0 %v5995_v41  ;;  %v5283_v41 = vld [vmem:[%s7276_s2 + $0x88c] ss:$16 sps:$4 sm:$0xff]   ;;  %v5332_v29 = vld [vmem:[%s7276_s2 + $0xb88] ss:$16 sps:$4 sm:$0xff]  }
 0x186   :  { %3812 = vmatprep.mubr.bf16.mxu1 %v6000_v43  ;;  %v3449_v45 = vpop.f32.mrf.mxu0  ;;  %v5286_v43 = vld [vmem:[%s7276_s2 + $0xa8c] ss:$16 sps:$4 sm:$0xff]   ;;  %v5335_v33 = vld [vmem:[%s7276_s2 + $0x968] ss:$16 sps:$4 sm:$0xff]  }
 0x187   :  { %v3490_v47 = vpop.f32.mrf.mxu1  ;;  %v6842_v48 = vadd.f32 %v3488_v26, %v3448_v44  ;;  %3742 = vmatpush1.bf16.msra.mxu0 %v5269_v36  ;;  %v5337_v30 = vld [vmem:[%s7276_s2 + $0x96c] ss:$16 sps:$4 sm:$0xff]   ;;  %v5338_v34 = vld [vmem:[%s7276_s2 + $0xb68] ss:$16 sps:$4 sm:$0xff]  }
 0x188   :  { %3783 = vmatpush1.bf16.msra.mxu1 %v5272_v38  ;;  %v3450_v0 = vpop.f32.mrf.mxu0  ;;  %3743 = vmatprep.subr.bf16.mxu0 %v5277_v32  ;;  %v5340_v31 = vld [vmem:[%s7276_s2 + $0xb6c] ss:$16 sps:$4 sm:$0xff]   ;;  %v5341_v32 = vld [vmem:[%s7276_s2 + $0x948] ss:$16 sps:$4 sm:$0xff]  }
 0x189   :  { %v3491_v16 = vpop.f32.mrf.mxu1  ;;  %3784 = vmatprep.subr.bf16.mxu1 %v5280_v6  ;;  %v5343_v36 = vld [vmem:[%s7276_s2 + $0x94c] ss:$16 sps:$4 sm:$0xff]   ;;  %v5344_v40 = vld [vmem:[%s7276_s2 + $0xb48] ss:$16 sps:$4 sm:$0xff]  }
 0x18a   :  { %v5346_v38 = vld [vmem:[%s7276_s2 + $0xb4c] ss:$16 sps:$4 sm:$0xff]   ;;  %v5347_v44 = vld [vmem:[%s7276_s2 + $0x928] ss:$16 sps:$4 sm:$0xff]  }
 0x18b   :  { %3744 = vmatpush1.bf16.msra.mxu0 %v5275_v51  ;;  %v5349_v26 = vld [vmem:[%s7276_s2 + $0x92c] ss:$16 sps:$4 sm:$0xff]   ;;  %v5350_v45 = vld [vmem:[%s7276_s2 + $0xb28] ss:$16 sps:$4 sm:$0xff]  }
 0x18c   :  { %3785 = vmatpush1.bf16.msra.mxu1 %v5278_v60  ;;  %3745 = vmatprep.subr.bf16.mxu0 %v5283_v41  ;;  %v5352_v6 = vld [vmem:[%s7276_s2 + $0xb2c] ss:$16 sps:$4 sm:$0xff]   ;;  %v5353_v60 = vld [vmem:[%s7276_s2 + $0x908] ss:$16 sps:$4 sm:$0xff]  }
 0x18d   :  { %3786 = vmatprep.subr.bf16.mxu1 %v5286_v43  ;;  %v5355_v47 = vld [vmem:[%s7276_s2 + $0x90c] ss:$16 sps:$4 sm:$0xff]   ;;  %v5356_v0 = vld [vmem:[%s7276_s2 + $0xb08] ss:$16 sps:$4 sm:$0xff]  }
 0x18e   :  { %v5358_v51 = vld [vmem:[%s7276_s2 + $0xb0c] ss:$16 sps:$4 sm:$0xff]   ;;  %v5359_v43 = vld [vmem:[%s7276_s2 + $0xce8] ss:$16 sps:$4 sm:$0xff]  }
 0x18f   :  { %3746 = vmatpush1.bf16.msra.mxu0 %v5281_v52  ;;  %v5361_v16 = vld [vmem:[%s7276_s2 + $0xcec] ss:$16 sps:$4 sm:$0xff]   ;;  %v5362_v52 = vld [vmem:[%s7276_s2 + $0xee8] ss:$16 sps:$4 sm:$0xff]  }
 0x190   :  { %3787 = vmatpush1.bf16.msra.mxu1 %v5284_v53  ;;  %3747 = vmatprep.subr.bf16.mxu0 %v5289_v55  ;;  %v5364_v41 = vld [vmem:[%s7276_s2 + $0xeec] ss:$16 sps:$4 sm:$0xff]  }
 0x191   :  { %3788 = vmatprep.subr.bf16.mxu1 %v5292_v56  ;;  %v5367_v53 = vld [vmem:[%s7276_s2 + $0xccc] ss:$16 sps:$4 sm:$0xff]  }
 0x192   :  { %v5370_v55 = vld [vmem:[%s7276_s2 + $0xecc] ss:$16 sps:$4 sm:$0xff]  }
 0x193   :  { %3748 = vmatpush1.bf16.msra.mxu0 %v5287_v57 }
 0x194   :  { %3789 = vmatpush1.bf16.msra.mxu1 %v5290_v58  ;;  %3749 = vmatprep.subr.bf16.mxu0 %v5295_v61  ;;  %v7030_v61 = vld [vmem:[%s7280_s6] sm:$0xf] }
 0x195   :  { %3790 = vmatprep.subr.bf16.mxu1 %v5298_v62  ;;  %v5365_v62 = vld [vmem:[%s7276_s2 + $0xcc8] ss:$16 sps:$4 sm:$0xff]  }
 0x197   :  { %3750 = vmatpush1.bf16.msra.mxu0 %v5293_v63  ;;  %v5368_v63 = vld [vmem:[%s7276_s2 + $0xec8] ss:$16 sps:$4 sm:$0xff]  }
 0x198   :  { %3791 = vmatpush1.bf16.msra.mxu1 %v5296_v1  ;;  %3751 = vmatprep.subr.bf16.mxu0 %v5301_v2 }
 0x199   :  { %3792 = vmatprep.subr.bf16.mxu1 %v5304_v3 }
 0x19b   :  { %3752 = vmatpush1.bf16.msra.mxu0 %v5299_v4  ;;  %v4074_v4 = vrot.slane %v7030_v61, %v6391_v12 }
 0x19c   :  { %3793 = vmatpush1.bf16.msra.mxu1 %v5302_v5  ;;  %3753 = vmatprep.subr.bf16.mxu0 %v5307_v7 }
 0x19d   :  { %3794 = vmatprep.subr.bf16.mxu1 %v5310_v8  ;;  %v5371_v8 = vld [vmem:[%s7276_s2 + $0xca8] ss:$16 sps:$4 sm:$0xff]  }
 0x19f   :  { %3754 = vmatpush1.bf16.msra.mxu0 %v5305_v9 }
 0x1a0   :  { %3795 = vmatpush1.bf16.msra.mxu1 %v5308_v13  ;;  %3755 = vmatprep.subr.bf16.mxu0 %v5313_v18 }
 0x1a1   :  { %3796 = vmatprep.subr.bf16.mxu1 %v5316_v11  ;;  %v5379_v11 = vld [vmem:[%s7276_s2 + $0xc8c] ss:$16 sps:$4 sm:$0xff]  }
 0x1a3   :  { %3756 = vmatpush2.bf16.msra.mxu0 %v5311_v14  ;;  %v5382_v14 = vld [vmem:[%s7276_s2 + $0xe8c] ss:$16 sps:$4 sm:$0xff]  }
 0x1a4   :  { %3797 = vmatpush2.bf16.msra.mxu1 %v5314_v49  ;;  %3757 = vmatprep.subr.bf16.mxu0 %v5319_v19 }
 0x1a5   :  { %3798 = vmatprep.subr.bf16.mxu1 %v5322_v20 }
 0x1a7   :  { %3758 = vmatpush2.bf16.msra.mxu0 %v5317_v21 }
 0x1a8   :  { %3799 = vmatpush2.bf16.msra.mxu1 %v5320_v46  ;;  %3759 = vmatprep.subr.bf16.mxu0 %v5325_v17  ;;  %v5377_v46 = vld [vmem:[%s7276_s2 + $0xc88] ss:$16 sps:$4 sm:$0xff]  }
 0x1a9   :  { %3800 = vmatprep.subr.bf16.mxu1 %v5328_v23  ;;  %v5380_v17 = vld [vmem:[%s7276_s2 + $0xe88] ss:$16 sps:$4 sm:$0xff]  }
 0x1ab   :  { %3760 = vmatpush2.bf16.msra.mxu0 %v5323_v22  ;;  %v5385_v22 = vld [vmem:[%s7276_s2 + $0xc6c] ss:$16 sps:$4 sm:$0xff]  }
 0x1ac   :  { %3801 = vmatpush2.bf16.msra.mxu1 %v5326_v24  ;;  %3761 = vmatprep.subr.bf16.mxu0 %v5331_v25  ;;  %v5388_v24 = vld [vmem:[%s7276_s2 + $0xe6c] ss:$16 sps:$4 sm:$0xff]  }
 0x1ad   :  { %3802 = vmatprep.subr.bf16.mxu1 %v5334_v27 }
 0x1af   :  { %3762 = vmatpush2.bf16.msra.mxu0 %v5329_v28  ;;  %v5383_v28 = vld [vmem:[%s7276_s2 + $0xc68] ss:$16 sps:$4 sm:$0xff]  }
 0x1b0   :  { %3803 = vmatpush2.bf16.msra.mxu1 %v5332_v29  ;;  %3763 = vmatprep.subr.bf16.mxu0 %v5337_v30  ;;  %v5386_v29 = vld [vmem:[%s7276_s2 + $0xe68] ss:$16 sps:$4 sm:$0xff]  }
 0x1b1   :  { %3804 = vmatprep.subr.bf16.mxu1 %v5340_v31  ;;  %v5391_v31 = vld [vmem:[%s7276_s2 + $0xc4c] ss:$16 sps:$4 sm:$0xff]  }
 0x1b3   :  { %3764 = vmatpush2.bf16.msra.mxu0 %v5335_v33  ;;  %v5394_v33 = vld [vmem:[%s7276_s2 + $0xe4c] ss:$16 sps:$4 sm:$0xff]  }
 0x1b4   :  { %3805 = vmatpush2.bf16.msra.mxu1 %v5338_v34  ;;  %3765 = vmatprep.subr.bf16.mxu0 %v5343_v36  ;;  %v5389_v34 = vld [vmem:[%s7276_s2 + $0xc48] ss:$16 sps:$4 sm:$0xff]  }
 0x1b5   :  { %3806 = vmatprep.subr.bf16.mxu1 %v5346_v38  ;;  %v5392_v36 = vld [vmem:[%s7276_s2 + $0xe48] ss:$16 sps:$4 sm:$0xff]   ;;  %v5397_v38 = vld [vmem:[%s7276_s2 + $0xc2c] ss:$16 sps:$4 sm:$0xff]  }
 0x1b7   :  { %3766 = vmatpush2.bf16.msra.mxu0 %v5341_v32  ;;  %v5400_v32 = vld [vmem:[%s7276_s2 + $0xe2c] ss:$16 sps:$4 sm:$0xff]  }
 0x1b8   :  { %3807 = vmatpush2.bf16.msra.mxu1 %v5344_v40  ;;  %3767 = vmatprep.subr.bf16.mxu0 %v5349_v26  ;;  %v5395_v40 = vld [vmem:[%s7276_s2 + $0xc28] ss:$16 sps:$4 sm:$0xff]  }
 0x1b9   :  { %3808 = vmatprep.subr.bf16.mxu1 %v5352_v6  ;;  %v5398_v26 = vld [vmem:[%s7276_s2 + $0xe28] ss:$16 sps:$4 sm:$0xff]   ;;  %v5403_v6 = vld [vmem:[%s7276_s2 + $0xc0c] ss:$16 sps:$4 sm:$0xff]  }
 0x1bb   :  { %3768 = vmatpush2.bf16.msra.mxu0 %v5347_v44  ;;  %v5406_v44 = vld [vmem:[%s7276_s2 + $0xe0c] ss:$16 sps:$4 sm:$0xff]  }
 0x1bc   :  { %3809 = vmatpush2.bf16.msra.mxu1 %v5350_v45  ;;  %3769 = vmatprep.subr.bf16.mxu0 %v5355_v47  ;;  %v5401_v45 = vld [vmem:[%s7276_s2 + $0xc08] ss:$16 sps:$4 sm:$0xff]  }
 0x1bd   :  { %3810 = vmatprep.subr.bf16.mxu1 %v5358_v51  ;;  %v5404_v47 = vld [vmem:[%s7276_s2 + $0xe08] ss:$16 sps:$4 sm:$0xff]   ;;  %v5409_v51 = vld [vmem:[%s7276_s2 + $0xdec] ss:$16 sps:$4 sm:$0xff]  }
 0x1bf   :  { %3770 = vmatpush2.bf16.msra.mxu0 %v5353_v60  ;;  %v5412_v60 = vld [vmem:[%s7276_s2 + $0xfec] ss:$16 sps:$4 sm:$0xff]  }
 0x1c0   :  { %3811 = vmatpush2.bf16.msra.mxu1 %v5356_v0  ;;  %3821 = vmatprep.subr.bf16.mxu0 %v5361_v16  ;;  %v5407_v0 = vld [vmem:[%s7276_s2 + $0xde8] ss:$16 sps:$4 sm:$0xff]  }
 0x1c1   :  { %3862 = vmatprep.subr.bf16.mxu1 %v5364_v41  ;;  %v5410_v16 = vld [vmem:[%s7276_s2 + $0xfe8] ss:$16 sps:$4 sm:$0xff]   ;;  %v5415_v41 = vld [vmem:[%s7276_s2 + $0xdcc] ss:$16 sps:$4 sm:$0xff]  }
 0x1c2   :  { %v3527_v56 = vpop.f32.mrf.mxu0  ;;  %3772 = vmatmul.mubr.bf16.vlgmr.msra.gmra.mxu0 %v6171_v50 }
 0x1c3   :  { %v3568_v57 = vpop.f32.mrf.mxu1  ;;  %3813 = vmatmul.mubr.bf16.vlgmr.msra.gmra.mxu1 %v6187_v35  ;;  %v3528_v58 = vadd.f32 %v3527_v56, %v6837_v37  ;;  %3822 = vmatpush1.bf16.msra.mxu0 %v5359_v43  ;;  %v5373_v35 = vld [vmem:[%s7276_s2 + $0xcac] ss:$16 sps:$4 sm:$0xff]  }
 0x1c4   :  { %3863 = vmatpush1.bf16.msra.mxu1 %v5362_v52  ;;  %v3529_v50 = vpop.f32.mrf.mxu0  ;;  %3823 = vmatprep.subr.bf16.mxu0 %v5367_v53  ;;  %v5376_v37 = vld [vmem:[%s7276_s2 + $0xeac] ss:$16 sps:$4 sm:$0xff]   ;;  %v5413_v52 = vld [vmem:[%s7276_s2 + $0xdc8] ss:$16 sps:$4 sm:$0xff]  }
 0x1c5   :  { %v3570_v1 = vpop.f32.mrf.mxu1  ;;  %3864 = vmatprep.subr.bf16.mxu1 %v5370_v55  ;;  %v3569_v2 = vadd.f32 %v3568_v57, %v3528_v58  ;;  %v3530_v3 = vadd.f32 %v3529_v50, %v6842_v48  ;;  %3853 = vmatprep.mubr.bf16.mxu0 %v6183_v54  ;;  %v5374_v54 = vld [vmem:[%s7276_s2 + $0xea8] ss:$16 sps:$4 sm:$0xff]   ;;  %v5418_v43 = vld [vmem:[%s7276_s2 + $0xfcc] ss:$16 sps:$4 sm:$0xff]  }
 0x1c6   :  { %3894 = vmatprep.mubr.bf16.mxu1 %v6203_v59  ;;  %v3531_v5 = vpop.f32.mrf.mxu0  ;;  %v4078_v59 = vrot.slane %v7030_v61, %v6400_v39  ;;  %v5416_v53 = vld [vmem:[%s7276_s2 + $0xfc8] ss:$16 sps:$4 sm:$0xff]   ;;  %v5421_v55 = vld [vmem:[%s7276_s2 + $0xdac] ss:$16 sps:$4 sm:$0xff]  }
 0x1c7   :  { %v3572_v7 = vpop.f32.mrf.mxu1  ;;  %vm3903_vm0 = vcmp.gt.f32.partialorder %v3569_v2, 0.0  ;;  %v3907_v9 = vmul.f32 0.01, %v3569_v2  ;;  %v3571_v13 = vadd.f32 %v3570_v1, %v3530_v3  ;;  %3824 = vmatpush1.bf16.msra.mxu0 %v5365_v62  ;;  %v5424_v56 = vld [vmem:[%s7276_s2 + $0xfac] ss:$16 sps:$4 sm:$0xff]  }
 0x1c8   :  { %3865 = vmatpush1.bf16.msra.mxu1 %v5368_v63  ;;  %v3532_v48 = vpop.f32.mrf.mxu0  ;;  %3825 = vmatprep.subr.bf16.mxu0 %v5373_v35  ;;  %v5419_v57 = vld [vmem:[%s7276_s2 + $0xda8] ss:$16 sps:$4 sm:$0xff]   ;;  %v5427_v62 = vld [vmem:[%s7276_s2 + $0xd8c] ss:$16 sps:$4 sm:$0xff]  }
 0x1c9   :  { %v3573_v18 = vpop.f32.mrf.mxu1  ;;  %3866 = vmatprep.subr.bf16.mxu1 %v5376_v37  ;;  %v3911_v49 = vsel %vm3903_vm0, %v3569_v2, %v3907_v9  ;;  %vm3904_vm1 = vcmp.gt.f32.partialorder %v3571_v13, 0.0  ;;  %v3908_v19 = vmul.f32 0.01, %v3571_v13  ;;  %v5422_v58 = vld [vmem:[%s7276_s2 + $0xfa8] ss:$16 sps:$4 sm:$0xff]  }
 0x1ca   :  { %v4091_v20 = vmul.f32 %v4074_v4, %v3911_v49  ;;  %v5430_v63 = vld [vmem:[%s7276_s2 + $0xf8c] ss:$16 sps:$4 sm:$0xff]   ;;  %v5425_v50 = vld [vmem:[%s7276_s2 + $0xd88] ss:$16 sps:$4 sm:$0xff]   ;;  %v7218_v49 = vsub.s32 2, %v5635_v42 }
 0x1cb   :  { %v3912_v21 = vsel %vm3904_vm1, %v3571_v13, %v3908_v19  ;;  %3826 = vmatpush1.bf16.msra.mxu0 %v5371_v8  ;;  %v5428_v1 = vld [vmem:[%s7276_s2 + $0xf88] ss:$16 sps:$4 sm:$0xff]   ;;  %v5433_v35 = vld [vmem:[%s7276_s2 + $0xd6c] ss:$16 sps:$4 sm:$0xff]  }
 0x1cc   :  { %3867 = vmatpush1.bf16.msra.mxu1 %v5374_v54  ;;  %v4092_v23 = vmul.f32 %v4078_v59, %v3912_v21  ;;  %3827 = vmatprep.subr.bf16.mxu0 %v5379_v11  ;;  %v4096_v25 = vsel %vm4095_vm2, %v4091_v20, 0.0  ;;  %v5436_v37 = vld [vmem:[%s7276_s2 + $0xf6c] ss:$16 sps:$4 sm:$0xff]   ;;  %v5431_v2 = vld [vmem:[%s7276_s2 + $0xd68] ss:$16 sps:$4 sm:$0xff]  }
 0x1cd   :  { %3868 = vmatprep.subr.bf16.mxu1 %v5382_v14  ;;  %v5434_v3 = vld [vmem:[%s7276_s2 + $0xf68] ss:$16 sps:$4 sm:$0xff]   ;;  %v5439_v4 = vld [vmem:[%s7276_s2 + $0xd4c] ss:$16 sps:$4 sm:$0xff]  }
 0x1ce   :  { %v4097_v27 = vsel %vm4095_vm2, %v4092_v23, 0.0  ;;  %v5442_v5 = vld [vmem:[%s7276_s2 + $0xf4c] ss:$16 sps:$4 sm:$0xff]   ;;  %v5437_v7 = vld [vmem:[%s7276_s2 + $0xd48] ss:$16 sps:$4 sm:$0xff]  }
 0x1cf   :  { %3828 = vmatpush1.bf16.msra.mxu0 %v5377_v46  ;;  %v7083_v30 = vadd.f32 %v4097_v27, %v4096_v25  ;;  %v5440_v8 = vld [vmem:[%s7276_s2 + $0xf48] ss:$16 sps:$4 sm:$0xff]   ;;  %v5445_v9 = vld [vmem:[%s7276_s2 + $0xd2c] ss:$16 sps:$4 sm:$0xff]   ;;  %v5465_v23 = vld [vmem:[%s7278_s3] sm:$0xf] }
 0x1d0   :  { %3869 = vmatpush1.bf16.msra.mxu1 %v5380_v17  ;;  %3829 = vmatprep.subr.bf16.mxu0 %v5385_v22  ;;  %v5448_v13 = vld [vmem:[%s7276_s2 + $0xf2c] ss:$16 sps:$4 sm:$0xff]   ;;  %v5443_v54 = vld [vmem:[%s7276_s2 + $0xd28] ss:$16 sps:$4 sm:$0xff]   ;;  %v7233_v17 = vsub.s32 3, %v5635_v42  ;;  %v562_v22 = vrot.slane %v5465_v23, %v7218_v49 }
 0x1d1   :  { %3870 = vmatprep.subr.bf16.mxu1 %v5388_v24  ;;  %v5446_v59 = vld [vmem:[%s7276_s2 + $0xf28] ss:$16 sps:$4 sm:$0xff]   ;;  %v5451_v48 = vld [vmem:[%s7276_s2 + $0xd0c] ss:$16 sps:$4 sm:$0xff]  }
 0x1d2   :  { %v5454_v18 = vld [vmem:[%s7276_s2 + $0xf0c] ss:$16 sps:$4 sm:$0xff]   ;;  %v5449_v11 = vld [vmem:[%s7276_s2 + $0xd08] ss:$16 sps:$4 sm:$0xff]   ;;  %v566_v27 = vrot.slane %v5465_v23, %v7233_v17 }
 0x1d3   :  { %3830 = vmatpush1.bf16.msra.mxu0 %v5383_v28  ;;  %v5452_v14 = vld [vmem:[%s7276_s2 + $0xf08] ss:$16 sps:$4 sm:$0xff]   ;;  %v5455_v19 = vld [vmem:[%s7279_s4 + $0x4] ss:$16 sps:$4 sm:$0x1f]  }
 0x1d4   :  { %3871 = vmatpush1.bf16.msra.mxu1 %v5386_v29  ;;  %3831 = vmatprep.subr.bf16.mxu0 %v5391_v31  ;;  %v5457_v20 = vld [vmem:[%s7279_s4] ss:$16 sps:$4 sm:$0x1f]   ;;  %v5458_v21 = vld [vmem:[%s7279_s4 + $0xc] ss:$16 sps:$4 sm:$0x1f]  }
 0x1d5   :  { %3872 = vmatprep.subr.bf16.mxu1 %v5394_v33  ;;  %v5460_v46 = vld [vmem:[%s7279_s4 + $0x8] ss:$16 sps:$4 sm:$0x1f]   ;;  %v3964_v24 = vsel %vm3962_vm3, %v5457_v20, 0 }
 0x1d6   :  { %v3970_v25 = vsel %vm3962_vm3, %v5460_v46, 0 }
 0x1d7   :  { %3832 = vmatpush1.bf16.msra.mxu0 %v5389_v34  ;;  %v5467_v34 = vmov 0  }
 0x1d8   :  { %3873 = vmatpush1.bf16.msra.mxu1 %v5392_v36  ;;  %3833 = vmatprep.subr.bf16.mxu0 %v5397_v38 }
 0x1d9   :  { %3874 = vmatprep.subr.bf16.mxu1 %v5400_v32 }
 0x1db   :  { %3834 = vmatpush1.bf16.msra.mxu0 %v5395_v40 }
 0x1dc   :  { %3875 = vmatpush1.bf16.msra.mxu1 %v5398_v26  ;;  %3835 = vmatprep.subr.bf16.mxu0 %v5403_v6  ;;  %v3915_v6 = vld [vmem:[%s7281_s1] sm:$0x1] }
 0x1dd   :  { %3876 = vmatprep.subr.bf16.mxu1 %v5406_v44 }
 0x1df   :  { %3836 = vmatpush1.bf16.msra.mxu0 %v5401_v45 }
 0x1e0   :  { %3877 = vmatpush1.bf16.msra.mxu1 %v5404_v47  ;;  %3837 = vmatprep.subr.bf16.mxu0 %v5409_v51 }
 0x1e1   :  { %3878 = vmatprep.subr.bf16.mxu1 %v5412_v60 }
 0x1e3   :  { %3838 = vmatpush2.bf16.msra.mxu0 %v5407_v0 }
 0x1e4   :  { %3879 = vmatpush2.bf16.msra.mxu1 %v5410_v16  ;;  %3839 = vmatprep.subr.bf16.mxu0 %v5415_v41 }
 0x1e5   :  { %3880 = vmatprep.subr.bf16.mxu1 %v5418_v43 }
 0x1e7   :  { %3840 = vmatpush2.bf16.msra.mxu0 %v5413_v52 }
 0x1e8   :  { %3881 = vmatpush2.bf16.msra.mxu1 %v5416_v53  ;;  %3841 = vmatprep.subr.bf16.mxu0 %v5421_v55 }
 0x1e9   :  { %3882 = vmatprep.subr.bf16.mxu1 %v5424_v56 }
 0x1eb   :  { %3842 = vmatpush2.bf16.msra.mxu0 %v5419_v57 }
 0x1ec   :  { %3883 = vmatpush2.bf16.msra.mxu1 %v5422_v58  ;;  %3843 = vmatprep.subr.bf16.mxu0 %v5427_v62 }
 0x1ed   :  { %3884 = vmatprep.subr.bf16.mxu1 %v5430_v63 }
 0x1ef   :  { %3844 = vmatpush2.bf16.msra.mxu0 %v5425_v50 }
 0x1f0   :  { %3885 = vmatpush2.bf16.msra.mxu1 %v5428_v1  ;;  %3845 = vmatprep.subr.bf16.mxu0 %v5433_v35 }
 0x1f1   :  { %3886 = vmatprep.subr.bf16.mxu1 %v5436_v37 }
 0x1f3   :  { %3846 = vmatpush2.bf16.msra.mxu0 %v5431_v2 }
 0x1f4   :  { %3887 = vmatpush2.bf16.msra.mxu1 %v5434_v3  ;;  %3847 = vmatprep.subr.bf16.mxu0 %v5439_v4 }
 0x1f5   :  { %3888 = vmatprep.subr.bf16.mxu1 %v5442_v5 }
 0x1f7   :  { %3848 = vmatpush2.bf16.msra.mxu0 %v5437_v7 }
 0x1f8   :  { %3889 = vmatpush2.bf16.msra.mxu1 %v5440_v8  ;;  %3849 = vmatprep.subr.bf16.mxu0 %v5445_v9  ;;  %v3920_v9 = vld [vmem:[%s7282_s5] sm:$0xf] }
 0x1f9   :  { %3890 = vmatprep.subr.bf16.mxu1 %v5448_v13  ;;  %v3933_v46 = vrot.slane %v3920_v9, %v7218_v49 }
 0x1fb   :  { %3850 = vmatpush2.bf16.msra.mxu0 %v5443_v54 }
 0x1fc   :  { %3891 = vmatpush2.bf16.msra.mxu1 %v5446_v59  ;;  %3851 = vmatprep.subr.bf16.mxu0 %v5451_v48 }
 0x1fd   :  { %3892 = vmatprep.subr.bf16.mxu1 %v5454_v18 }
 0x1ff   :  { %3852 = vmatpush2.bf16.msra.mxu0 %v5449_v11 }
 0x200   :  { %3893 = vmatpush2.bf16.msra.mxu1 %v5452_v14  ;;  %4677 = vmatprep.subr.msk.bf16.mxu0 %vm3962_vm3, %v5455_v19  ;;  %v3925_v14 = vrot.slane %v3920_v9, %v6391_v12  ;;  %v4082_v19 = vrot.slane %v7030_v61, %v7218_v49 }
 0x201   :  { %4679 = vmatprep.subr.msk.bf16.mxu1 %vm3962_vm3, %v5458_v21 }
 0x202   :  { %v3609_v28 = vpop.f32.mrf.mxu0  ;;  %3854 = vmatmul.mubr.bf16.vlgmr.msra.gmra.mxu0 %v6385_v10 }
 0x203   :  { %v3650_v29 = vpop.f32.mrf.mxu1  ;;  %3895 = vmatmul.mubr.bf16.vlgmr.msra.gmra.mxu1 %v6404_v15  ;;  %v3610_v42 = vadd.f32 %v3609_v28, %v562_v22  ;;  %3990 = vmatpush1.bf16.msra.mxu0 %v3964_v24  ;;  %v4086_v24 = vrot.slane %v7030_v61, %v7233_v17  ;;  %v4105_v28 = vld [vmem:[%s7283_s7] sm:$0xf] }
 0x204   :  { %4031 = vmatpush1.bf16.msra.mxu1 %v3970_v25  ;;  %v3611_v31 = vpop.f32.mrf.mxu0  ;;  %4007 = vmatprep.mubr.bf16.mxu0 %v5467_v34 }
 0x205   :  { %v3652_v33 = vpop.f32.mrf.mxu1  ;;  %4048 = vmatprep.mubr.bf16.mxu1 %v5467_v34  ;;  %v3651_v36 = vadd.f32 %v3650_v29, %v3610_v42  ;;  %v3612_v38 = vadd.f32 %v3611_v31, %v566_v27  ;;  %v3929_v31 = vrot.slane %v3920_v9, %v6400_v39 }
 0x206   :  { %v3613_v32 = vpop.f32.mrf.mxu0 }
 0x207   :  { %v3654_v40 = vpop.f32.mrf.mxu1  ;;  %v3653_v26 = vadd.f32 %v3652_v33, %v3612_v38  ;;  %v3937_v33 = vrot.slane %v3920_v9, %v7233_v17 }
 0x208   :  { %v3614_v10 = vpop.f32.mrf.mxu0  ;;  %v4110_v40 = vrot.slane %v4105_v28, %v6391_v12  ;;  %v4118_v12 = vrot.slane %v4105_v28, %v7218_v49 }
 0x209   :  { %v3655_v15 = vpop.f32.mrf.mxu1 }
 0x20a   :  { %4678 = vmatmul.mubr.msk.bf16.vlgmr.msra.gmra.mxu0 %vm3958_vm4, %v3915_v6 }
 0x20b   :  { %4680 = vmatmul.mubr.msk.bf16.vlgmr.msra.gmra.mxu1 %vm3958_vm4, %v3915_v6 }
 0x242   :  { %v3691_v44 = vpop.f32.mrf.mxu0 }
 0x243   :  { %v3732_v45 = vpop.f32.mrf.mxu1  ;;  %v3692_v47 = vadd.f32 %v3691_v44, %v3651_v36 }
 0x244   :  { %v3693_v51 = vpop.f32.mrf.mxu0 }
 0x245   :  { %v3734_v60 = vpop.f32.mrf.mxu1  ;;  %v3733_v0 = vadd.f32 %v3732_v45, %v3692_v47  ;;  %v3694_v16 = vadd.f32 %v3693_v51, %v3653_v26 }
 0x246   :  { %v3695_v41 = vpop.f32.mrf.mxu0 }
 0x247   :  { %v3736_v43 = vpop.f32.mrf.mxu1  ;;  %v3735_v52 = vadd.f32 %v3734_v60, %v3694_v16 }
 0x248   :  { %v3696_v53 = vpop.f32.mrf.mxu0  ;;  %v4114_v43 = vrot.slane %v4105_v28, %v6400_v39 }
 0x249   :  { %v3737_v55 = vpop.f32.mrf.mxu1 }
 0x282   :  { %v3773_v56 = vpop.f32.mrf.mxu0 }
 0x283   :  { %v3814_v57 = vpop.f32.mrf.mxu1  ;;  %v3774_v58 = vadd.f32 %v3773_v56, %v3733_v0 }
 0x284   :  { %v3775_v62 = vpop.f32.mrf.mxu0 }
 0x285   :  { %v3816_v63 = vpop.f32.mrf.mxu1  ;;  %v3815_v50 = vadd.f32 %v3814_v57, %v3774_v58  ;;  %v3776_v1 = vadd.f32 %v3775_v62, %v3735_v52  ;;  %v4122_v57 = vrot.slane %v4105_v28, %v7233_v17 }
 0x286   :  { %v3777_v35 = vpop.f32.mrf.mxu0 }
 0x287   :  { %v3818_v37 = vpop.f32.mrf.mxu1  ;;  %v3817_v2 = vadd.f32 %v3816_v63, %v3776_v1 }
 0x288   :  { %v3778_v3 = vpop.f32.mrf.mxu0 }
 0x289   :  { %v3819_v4 = vpop.f32.mrf.mxu1 }
 0x2c2   :  { %v3855_v5 = vpop.f32.mrf.mxu0 }
 0x2c3   :  { %v3896_v7 = vpop.f32.mrf.mxu1  ;;  %v3856_v8 = vadd.f32 %v3855_v5, %v3815_v50 }
 0x2c4   :  { %v3857_v13 = vpop.f32.mrf.mxu0 }
 0x2c5   :  { %v3898_v54 = vpop.f32.mrf.mxu1  ;;  %v3897_v59 = vadd.f32 %v3896_v7, %v3856_v8  ;;  %v3858_v48 = vadd.f32 %v3857_v13, %v3817_v2  ;;  %v14_v7 = vstv %s7284_s8 }
 0x2c6   :  { %v3859_v18 = vpop.f32.mrf.mxu0  ;;  %15 = vst [vmem:[#allocation2] sm:$0x1] %v14_v7 }
 0x2c7   :  { %v3900_v11 = vpop.f32.mrf.mxu1  ;;  %vm3905_vm5 = vcmp.gt.f32.partialorder %v3897_v59, 0.0  ;;  %v3909_v20 = vmul.f32 0.01, %v3897_v59  ;;  %v3899_v21 = vadd.f32 %v3898_v54, %v3858_v48 }
 0x2c8   :  { %v3860_v23 = vpop.f32.mrf.mxu0 }
 0x2c9   :  { %v3901_v22 = vpop.f32.mrf.mxu1  ;;  %v3913_v25 = vsel %vm3905_vm5, %v3897_v59, %v3909_v20  ;;  %vm3906_vm6 = vcmp.gt.f32.partialorder %v3899_v21, 0.0  ;;  %v3910_v27 = vmul.f32 0.01, %v3899_v21 }
 0x2ca   :  { %v4009_v29 = vpop.f32.mrf.mxu0  ;;  %v4093_v34 = vmul.f32 %v4082_v19, %v3913_v25 }
 0x2cb   :  { %v4050_v42 = vpop.f32.mrf.mxu1  ;;  %v4010_v36 = vadd.f32 %v4009_v29, %v3925_v14  ;;  %v3914_v32 = vsel %vm3906_vm6, %v3899_v21, %v3910_v27 }
 0x2cc   :  { %v4051_v38 = vadd.f32 %v4050_v42, %v3933_v46  ;;  %v4011_v61 = vpop.f32.mrf.mxu0  ;;  %v4094_v6 = vmul.f32 %v4086_v24, %v3914_v32  ;;  %v4099_v10 = vsel %vm4095_vm2, %v4093_v34, 0.0 }
 0x2cd   :  { %v4052_v26 = vpop.f32.mrf.mxu1  ;;  %vm4057_vm7 = vcmp.gt.f32.partialorder %v4010_v36, 0.0  ;;  %v4061_v15 = vmul.f32 0.01, %v4010_v36  ;;  %v4012_v45 = vadd.f32 %v4011_v61, %v3929_v31  ;;  %v4100_v0 = vadd.f32 %v4099_v10, %v7083_v30  ;;  %v4681_v9 = vld [vmem:[#allocation2] ss:$0 sm:$0xff] }
 0x2ce   :  { %vm4059_vm8 = vcmp.gt.f32.partialorder %v4051_v38, 0.0  ;;  %v4063_v44 = vmul.f32 0.01, %v4051_v38  ;;  %v4053_v47 = vadd.f32 %v4052_v26, %v3937_v33  ;;  %v4013_v51 = vpop.f32.mrf.mxu0  ;;  %v4101_v16 = vsel %vm4095_vm2, %v4094_v6, 0.0 }
 0x2cf   :  { %v4054_v60 = vpop.f32.mrf.mxu1  ;;  %v4065_v41 = vsel %vm4057_vm7, %v4010_v36, %v4061_v15  ;;  %vm4058_vm9 = vcmp.gt.f32.partialorder %v4012_v45, 0.0  ;;  %v4062_v53 = vmul.f32 0.01, %v4012_v45  ;;  %v4102_v63 = vadd.f32 %v4101_v16, %v4100_v0 }
 0x2d0   :  { %v4067_v52 = vsel %vm4059_vm8, %v4051_v38, %v4063_v44  ;;  %v4014_v55 = vpop.f32.mrf.mxu0  ;;  %v4127_v58 = vmul.f32 %v4110_v40, %v4065_v41  ;;  %vm4060_vm10 = vcmp.gt.f32.partialorder %v4053_v47, 0.0  ;;  %v4064_v62 = vmul.f32 0.01, %v4053_v47 }
 0x2d1   :  { %v4055_v56 = vpop.f32.mrf.mxu1  ;;  %v4066_v50 = vsel %vm4058_vm9, %v4012_v45, %v4062_v53  ;;  %v4129_v30 = vmul.f32 %v4118_v12, %v4067_v52  ;;  %4103 = vadd.xlane.f32.xlu0 %v4102_v63 }
 0x2d2   :  { %v4128_v1 = vmul.f32 %v4114_v43, %v4066_v50  ;;  %v4068_v35 = vsel %vm4060_vm10, %v4053_v47, %v4064_v62  ;;  %v4131_v49 = vsel %vm4095_vm2, %v4127_v58, 0.0 }
 0x2d3   :  { %v4130_v37 = vmul.f32 %v4122_v57, %v4068_v35  ;;  %v4134_v3 = vsel %vm4095_vm2, %v4129_v30, 0.0 }
 0x2d4   :  { %v4132_v39 = vsel %vm4095_vm2, %v4128_v1, 0.0 }
 0x2d5   :  { %v4133_v2 = vadd.f32 %v4132_v39, %v4131_v49  ;;  %v4136_v17 = vsel %vm4095_vm2, %v4130_v37, 0.0 }
 0x2d7   :  { %v4135_v4 = vadd.f32 %v4134_v3, %v4133_v2 }
 0x2d9   :  { %v4137_v5 = vadd.f32 %v4136_v17, %v4135_v4 }
 0x2db   :  { %4138 = vadd.xlane.f32.xlu0 %v4137_v5 }
 0x35a   :  { %v4104_v8 = vpop.xlane.xlu0 %4103 }
 0x364   :  { %v4139_v13 = vpop.xlane.xlu0 %4138 }
 0x365   :  { %v4140_v54 = vadd.f32 %v4139_v13, %v4104_v8 }
 0x367   :  { %v4148_v59 = vadd.f32 %v4681_v9, %v4140_v54 }
 0x369   :  { %v4682_v48 = vmul.f32 -1.442695, %v4148_v59 }
 0x36b   :  { %5461 = vpow2.f32 %v4682_v48 }
 0x378   :  { %v5462_v18 = vpop.eup %5461 }
 0x379   :  { %v4152_v11 = vadd.f32 1.0, %v5462_v18 }
 0x37b   :  { %5463 = vrcp.f32 %v4152_v11 }
 0x388   :  { %v5464_v14 = vpop.eup %5463 }
 0x389   :  { %4156 = vst.msk [vmem:[%s7285_s9] sm:$0x3] %vm4155_vm11, %v5464_v14 }

// kernel: discriminator_forward.8
= control target key start
LH: loop header
LB: loop body
LE: loop exit
PB: predicated region body
PF: predicated region fallthrough
CT: control target
= control target key end

     0   :  { %s7757_s1 = inlined_call_operand.vmem [shape: bf16[2304,512], index: 1, kind: input, shape index: {}]   ;;  %s7758_s0 = inlined_call_operand.vmem [shape: bf16[8,2304], index: 0, kind: input, shape index: {}]   ;;  %s7759_s2 = inlined_call_operand.vmem [shape: f32[1,512], index: 2, kind: input, shape index: {}]   ;;  %s7760_s3 = inlined_call_operand.vmem [shape: bf16[8,512], index: 3, kind: output, shape index: {}]  }
   0x1   :  { %v4934_v0 = vld [vmem:[%s7757_s1 + $0xe4] ss:$16 sps:$4 sm:$0xff]   ;;  %v4938_v2 = vld [vmem:[%s7757_s1 + $0xe0] ss:$16 sps:$4 sm:$0xff]   ;;  %v15_v48 = vld [vmem:[%s7758_s0 + $0x8] sm:$0xff] }
   0x2   :  { %v4936_v1 = vld [vmem:[%s7757_s1 + $0x2e4] ss:$16 sps:$4 sm:$0xff]   ;;  %3564 = vmatprep.subr.bf16.mxu0 %v4934_v0  ;;  %v4939_v3 = vld [vmem:[%s7757_s1 + $0x2e0] ss:$16 sps:$4 sm:$0xff]   ;;  %v5989_v51 = vcombine.high %v15_v48, %v15_v48 }
   0x3   :  { %3605 = vmatprep.subr.bf16.mxu1 %v4936_v1  ;;  %v4940_v4 = vld [vmem:[%s7757_s1 + $0xc4] ss:$16 sps:$4 sm:$0xff]   ;;  %3565 = vmatpush1.bf16.msra.mxu0 %v4938_v2  ;;  %v4944_v6 = vld [vmem:[%s7757_s1 + $0xc0] ss:$16 sps:$4 sm:$0xff]  }
   0x4   :  { %3606 = vmatpush1.bf16.msra.mxu1 %v4939_v3  ;;  %v4942_v5 = vld [vmem:[%s7757_s1 + $0x2c4] ss:$16 sps:$4 sm:$0xff]   ;;  %3566 = vmatprep.subr.bf16.mxu0 %v4940_v4  ;;  %v4945_v7 = vld [vmem:[%s7757_s1 + $0x2c0] ss:$16 sps:$4 sm:$0xff]  }
   0x5   :  { %3607 = vmatprep.subr.bf16.mxu1 %v4942_v5  ;;  %v4946_v8 = vld [vmem:[%s7757_s1 + $0xa4] ss:$16 sps:$4 sm:$0xff]   ;;  %v4950_v10 = vld [vmem:[%s7757_s1 + $0xa0] ss:$16 sps:$4 sm:$0xff]   ;;  %3637 = vmatprep.mubr.bf16.mxu1 %v5989_v51 }
   0x6   :  { %v4948_v9 = vld [vmem:[%s7757_s1 + $0x2a4] ss:$16 sps:$4 sm:$0xff]   ;;  %v4951_v11 = vld [vmem:[%s7757_s1 + $0x2a0] ss:$16 sps:$4 sm:$0xff]  }
   0x7   :  { %3567 = vmatpush1.bf16.msra.mxu0 %v4944_v6  ;;  %v4952_v12 = vld [vmem:[%s7757_s1 + $0x84] ss:$16 sps:$4 sm:$0xff]   ;;  %v4956_v14 = vld [vmem:[%s7757_s1 + $0x80] ss:$16 sps:$4 sm:$0xff]  }
   0x8   :  { %3608 = vmatpush1.bf16.msra.mxu1 %v4945_v7  ;;  %3568 = vmatprep.subr.bf16.mxu0 %v4946_v8  ;;  %v4954_v13 = vld [vmem:[%s7757_s1 + $0x284] ss:$16 sps:$4 sm:$0xff]   ;;  %v4957_v15 = vld [vmem:[%s7757_s1 + $0x280] ss:$16 sps:$4 sm:$0xff]   ;;  %v6049_v7 = vcombine.low %v15_v48, %v15_v48 }
   0x9   :  { %3609 = vmatprep.subr.bf16.mxu1 %v4948_v9  ;;  %v4958_v16 = vld [vmem:[%s7757_s1 + $0x64] ss:$16 sps:$4 sm:$0xff]   ;;  %v4962_v18 = vld [vmem:[%s7757_s1 + $0x60] ss:$16 sps:$4 sm:$0xff]  }
   0xa   :  { %v4960_v17 = vld [vmem:[%s7757_s1 + $0x264] ss:$16 sps:$4 sm:$0xff]   ;;  %v4963_v19 = vld [vmem:[%s7757_s1 + $0x260] ss:$16 sps:$4 sm:$0xff]  }
   0xb   :  { %3569 = vmatpush1.bf16.msra.mxu0 %v4950_v10  ;;  %v4964_v20 = vld [vmem:[%s7757_s1 + $0x44] ss:$16 sps:$4 sm:$0xff]   ;;  %v4968_v22 = vld [vmem:[%s7757_s1 + $0x40] ss:$16 sps:$4 sm:$0xff]  }
   0xc   :  { %3610 = vmatpush1.bf16.msra.mxu1 %v4951_v11  ;;  %3570 = vmatprep.subr.bf16.mxu0 %v4952_v12  ;;  %v4966_v21 = vld [vmem:[%s7757_s1 + $0x244] ss:$16 sps:$4 sm:$0xff]   ;;  %v4969_v23 = vld [vmem:[%s7757_s1 + $0x240] ss:$16 sps:$4 sm:$0xff]  }
   0xd   :  { %3611 = vmatprep.subr.bf16.mxu1 %v4954_v13  ;;  %v4970_v24 = vld [vmem:[%s7757_s1 + $0x24] ss:$16 sps:$4 sm:$0xff]   ;;  %v4974_v26 = vld [vmem:[%s7757_s1 + $0x20] ss:$16 sps:$4 sm:$0xff]  }
   0xe   :  { %v4972_v25 = vld [vmem:[%s7757_s1 + $0x224] ss:$16 sps:$4 sm:$0xff]   ;;  %v4975_v27 = vld [vmem:[%s7757_s1 + $0x220] ss:$16 sps:$4 sm:$0xff]  }
   0xf   :  { %3571 = vmatpush1.bf16.msra.mxu0 %v4956_v14  ;;  %v4976_v28 = vld [vmem:[%s7757_s1 + $0x4] ss:$16 sps:$4 sm:$0xff]   ;;  %v4980_v30 = vld [vmem:[%s7757_s1] ss:$16 sps:$4 sm:$0xff]  }
  0x10   :  { %3612 = vmatpush1.bf16.msra.mxu1 %v4957_v15  ;;  %3572 = vmatprep.subr.bf16.mxu0 %v4958_v16  ;;  %v4978_v29 = vld [vmem:[%s7757_s1 + $0x204] ss:$16 sps:$4 sm:$0xff]   ;;  %v4981_v31 = vld [vmem:[%s7757_s1 + $0x200] ss:$16 sps:$4 sm:$0xff]  }
  0x11   :  { %3613 = vmatprep.subr.bf16.mxu1 %v4960_v17  ;;  %v4982_v32 = vld [vmem:[%s7757_s1 + $0x1e4] ss:$16 sps:$4 sm:$0xff]   ;;  %v4986_v34 = vld [vmem:[%s7757_s1 + $0x1e0] ss:$16 sps:$4 sm:$0xff]  }
  0x12   :  { %v4984_v33 = vld [vmem:[%s7757_s1 + $0x3e4] ss:$16 sps:$4 sm:$0xff]   ;;  %v4987_v35 = vld [vmem:[%s7757_s1 + $0x3e0] ss:$16 sps:$4 sm:$0xff]  }
  0x13   :  { %3573 = vmatpush1.bf16.msra.mxu0 %v4962_v18  ;;  %v4988_v36 = vld [vmem:[%s7757_s1 + $0x1c4] ss:$16 sps:$4 sm:$0xff]   ;;  %v4992_v38 = vld [vmem:[%s7757_s1 + $0x1c0] ss:$16 sps:$4 sm:$0xff]  }
  0x14   :  { %3614 = vmatpush1.bf16.msra.mxu1 %v4963_v19  ;;  %3574 = vmatprep.subr.bf16.mxu0 %v4964_v20  ;;  %v4990_v37 = vld [vmem:[%s7757_s1 + $0x3c4] ss:$16 sps:$4 sm:$0xff]   ;;  %v4993_v39 = vld [vmem:[%s7757_s1 + $0x3c0] ss:$16 sps:$4 sm:$0xff]  }
  0x15   :  { %3615 = vmatprep.subr.bf16.mxu1 %v4966_v21  ;;  %v4994_v40 = vld [vmem:[%s7757_s1 + $0x1a4] ss:$16 sps:$4 sm:$0xff]   ;;  %v4998_v42 = vld [vmem:[%s7757_s1 + $0x1a0] ss:$16 sps:$4 sm:$0xff]  }
  0x16   :  { %v4996_v41 = vld [vmem:[%s7757_s1 + $0x3a4] ss:$16 sps:$4 sm:$0xff]   ;;  %v4999_v43 = vld [vmem:[%s7757_s1 + $0x3a0] ss:$16 sps:$4 sm:$0xff]  }
  0x17   :  { %3575 = vmatpush1.bf16.msra.mxu0 %v4968_v22  ;;  %v5000_v44 = vld [vmem:[%s7757_s1 + $0x184] ss:$16 sps:$4 sm:$0xff]   ;;  %v5004_v49 = vld [vmem:[%s7757_s1 + $0x180] ss:$16 sps:$4 sm:$0xff]  }
  0x18   :  { %3616 = vmatpush1.bf16.msra.mxu1 %v4969_v23  ;;  %3576 = vmatprep.subr.bf16.mxu0 %v4970_v24  ;;  %v5002_v45 = vld [vmem:[%s7757_s1 + $0x384] ss:$16 sps:$4 sm:$0xff]   ;;  %v5005_v50 = vld [vmem:[%s7757_s1 + $0x380] ss:$16 sps:$4 sm:$0xff]  }
  0x19   :  { %3617 = vmatprep.subr.bf16.mxu1 %v4972_v25  ;;  %v14_v46 = vld [vmem:[%s7758_s0] sm:$0xff] }
  0x1a   :  { %v5978_v47 = vcombine.high %v14_v46, %v14_v46  ;;  %v5006_v52 = vld [vmem:[%s7757_s1 + $0x164] ss:$16 sps:$4 sm:$0xff]   ;;  %v5010_v54 = vld [vmem:[%s7757_s1 + $0x160] ss:$16 sps:$4 sm:$0xff]   ;;  %v6047_v6 = vcombine.low %v14_v46, %v14_v46 }
  0x1b   :  { %3577 = vmatpush1.bf16.msra.mxu0 %v4974_v26  ;;  %v5008_v53 = vld [vmem:[%s7757_s1 + $0x364] ss:$16 sps:$4 sm:$0xff]   ;;  %v5011_v55 = vld [vmem:[%s7757_s1 + $0x360] ss:$16 sps:$4 sm:$0xff]  }
  0x1c   :  { %3618 = vmatpush1.bf16.msra.mxu1 %v4975_v27  ;;  %3578 = vmatprep.subr.bf16.mxu0 %v4976_v28  ;;  %v5012_v56 = vld [vmem:[%s7757_s1 + $0x144] ss:$16 sps:$4 sm:$0xff]   ;;  %v5016_v58 = vld [vmem:[%s7757_s1 + $0x140] ss:$16 sps:$4 sm:$0xff]  }
  0x1d   :  { %3619 = vmatprep.subr.bf16.mxu1 %v4978_v29  ;;  %3596 = vmatprep.mubr.bf16.mxu0 %v5978_v47  ;;  %v5014_v57 = vld [vmem:[%s7757_s1 + $0x344] ss:$16 sps:$4 sm:$0xff]   ;;  %v5017_v59 = vld [vmem:[%s7757_s1 + $0x340] ss:$16 sps:$4 sm:$0xff]  }
  0x1e   :  { %v5018_v60 = vld [vmem:[%s7757_s1 + $0x124] ss:$16 sps:$4 sm:$0xff]   ;;  %v5022_v62 = vld [vmem:[%s7757_s1 + $0x120] ss:$16 sps:$4 sm:$0xff]  }
  0x1f   :  { %3579 = vmatpush1.bf16.msra.mxu0 %v4980_v30  ;;  %v5020_v61 = vld [vmem:[%s7757_s1 + $0x324] ss:$16 sps:$4 sm:$0xff]   ;;  %v5023_v63 = vld [vmem:[%s7757_s1 + $0x320] ss:$16 sps:$4 sm:$0xff]  }
  0x20   :  { %3620 = vmatpush1.bf16.msra.mxu1 %v4981_v31  ;;  %3580 = vmatprep.subr.bf16.mxu0 %v4982_v32  ;;  %v5024_v0 = vld [vmem:[%s7757_s1 + $0x104] ss:$16 sps:$4 sm:$0xff]   ;;  %v5028_v2 = vld [vmem:[%s7757_s1 + $0x100] ss:$16 sps:$4 sm:$0xff]  }
  0x21   :  { %3621 = vmatprep.subr.bf16.mxu1 %v4984_v33  ;;  %v5026_v1 = vld [vmem:[%s7757_s1 + $0x304] ss:$16 sps:$4 sm:$0xff]   ;;  %v5029_v3 = vld [vmem:[%s7757_s1 + $0x300] ss:$16 sps:$4 sm:$0xff]   ;;  %v6133_v33 = vld [vmem:[%s7758_s0 + $0x18] sm:$0xff] }
  0x22   :  { %v5036_v4 = vld [vmem:[%s7757_s1 + $0x4e4] ss:$16 sps:$4 sm:$0xff]   ;;  %v5034_v8 = vld [vmem:[%s7757_s1 + $0x4e0] ss:$16 sps:$4 sm:$0xff]  }
  0x23   :  { %3581 = vmatpush2.bf16.msra.mxu0 %v4986_v34  ;;  %v5039_v5 = vld [vmem:[%s7757_s1 + $0x6e4] ss:$16 sps:$4 sm:$0xff]   ;;  %v5037_v9 = vld [vmem:[%s7757_s1 + $0x6e0] ss:$16 sps:$4 sm:$0xff]  }
  0x24   :  { %3622 = vmatpush2.bf16.msra.mxu1 %v4987_v35  ;;  %3582 = vmatprep.subr.bf16.mxu0 %v4988_v36  ;;  %v5042_v10 = vld [vmem:[%s7757_s1 + $0x4c4] ss:$16 sps:$4 sm:$0xff]   ;;  %v5040_v12 = vld [vmem:[%s7757_s1 + $0x4c0] ss:$16 sps:$4 sm:$0xff]  }
  0x25   :  { %3623 = vmatprep.subr.bf16.mxu1 %v4990_v37  ;;  %v5045_v11 = vld [vmem:[%s7757_s1 + $0x6c4] ss:$16 sps:$4 sm:$0xff]   ;;  %v5043_v13 = vld [vmem:[%s7757_s1 + $0x6c0] ss:$16 sps:$4 sm:$0xff]   ;;  %v6147_v37 = vcombine.high %v6133_v33, %v6133_v33 }
  0x26   :  { %v5048_v14 = vld [vmem:[%s7757_s1 + $0x4a4] ss:$16 sps:$4 sm:$0xff]   ;;  %v5046_v16 = vld [vmem:[%s7757_s1 + $0x4a0] ss:$16 sps:$4 sm:$0xff]  }
  0x27   :  { %3583 = vmatpush2.bf16.msra.mxu0 %v4992_v38  ;;  %v5051_v15 = vld [vmem:[%s7757_s1 + $0x6a4] ss:$16 sps:$4 sm:$0xff]   ;;  %v5049_v17 = vld [vmem:[%s7757_s1 + $0x6a0] ss:$16 sps:$4 sm:$0xff]  }
  0x28   :  { %3624 = vmatpush2.bf16.msra.mxu1 %v4993_v39  ;;  %3584 = vmatprep.subr.bf16.mxu0 %v4994_v40  ;;  %v5054_v18 = vld [vmem:[%s7757_s1 + $0x484] ss:$16 sps:$4 sm:$0xff]   ;;  %v5052_v20 = vld [vmem:[%s7757_s1 + $0x480] ss:$16 sps:$4 sm:$0xff]  }
  0x29   :  { %3625 = vmatprep.subr.bf16.mxu1 %v4996_v41  ;;  %v5057_v19 = vld [vmem:[%s7757_s1 + $0x684] ss:$16 sps:$4 sm:$0xff]   ;;  %v5055_v21 = vld [vmem:[%s7757_s1 + $0x680] ss:$16 sps:$4 sm:$0xff]  }
  0x2a   :  { %v5060_v22 = vld [vmem:[%s7757_s1 + $0x464] ss:$16 sps:$4 sm:$0xff]   ;;  %v5058_v24 = vld [vmem:[%s7757_s1 + $0x460] ss:$16 sps:$4 sm:$0xff]  }
  0x2b   :  { %3585 = vmatpush2.bf16.msra.mxu0 %v4998_v42  ;;  %v5063_v23 = vld [vmem:[%s7757_s1 + $0x664] ss:$16 sps:$4 sm:$0xff]   ;;  %v5061_v25 = vld [vmem:[%s7757_s1 + $0x660] ss:$16 sps:$4 sm:$0xff]  }
  0x2c   :  { %3626 = vmatpush2.bf16.msra.mxu1 %v4999_v43  ;;  %3586 = vmatprep.subr.bf16.mxu0 %v5000_v44  ;;  %v5066_v26 = vld [vmem:[%s7757_s1 + $0x444] ss:$16 sps:$4 sm:$0xff]   ;;  %v5064_v28 = vld [vmem:[%s7757_s1 + $0x440] ss:$16 sps:$4 sm:$0xff]  }
  0x2d   :  { %3627 = vmatprep.subr.bf16.mxu1 %v5002_v45  ;;  %v5069_v27 = vld [vmem:[%s7757_s1 + $0x644] ss:$16 sps:$4 sm:$0xff]   ;;  %v5067_v29 = vld [vmem:[%s7757_s1 + $0x640] ss:$16 sps:$4 sm:$0xff]  }
  0x2e   :  { %v5072_v30 = vld [vmem:[%s7757_s1 + $0x424] ss:$16 sps:$4 sm:$0xff]   ;;  %v5070_v34 = vld [vmem:[%s7757_s1 + $0x420] ss:$16 sps:$4 sm:$0xff]  }
  0x2f   :  { %3587 = vmatpush2.bf16.msra.mxu0 %v5004_v49  ;;  %v5075_v31 = vld [vmem:[%s7757_s1 + $0x624] ss:$16 sps:$4 sm:$0xff]   ;;  %v5073_v35 = vld [vmem:[%s7757_s1 + $0x620] ss:$16 sps:$4 sm:$0xff]  }
  0x30   :  { %3628 = vmatpush2.bf16.msra.mxu1 %v5005_v50  ;;  %3588 = vmatprep.subr.bf16.mxu0 %v5006_v52  ;;  %v6128_v32 = vld [vmem:[%s7758_s0 + $0x10] sm:$0xff] }
  0x31   :  { %3629 = vmatprep.subr.bf16.mxu1 %v5008_v53  ;;  %v6143_v36 = vcombine.high %v6128_v32, %v6128_v32  ;;  %v5078_v38 = vld [vmem:[%s7757_s1 + $0x404] ss:$16 sps:$4 sm:$0xff]   ;;  %v5076_v40 = vld [vmem:[%s7757_s1 + $0x400] ss:$16 sps:$4 sm:$0xff]  }
  0x32   :  { %v5081_v39 = vld [vmem:[%s7757_s1 + $0x604] ss:$16 sps:$4 sm:$0xff]   ;;  %v5079_v41 = vld [vmem:[%s7757_s1 + $0x600] ss:$16 sps:$4 sm:$0xff]  }
  0x33   :  { %3589 = vmatpush2.bf16.msra.mxu0 %v5010_v54  ;;  %v5084_v42 = vld [vmem:[%s7757_s1 + $0x5e4] ss:$16 sps:$4 sm:$0xff]   ;;  %v5082_v44 = vld [vmem:[%s7757_s1 + $0x5e0] ss:$16 sps:$4 sm:$0xff]  }
  0x34   :  { %3630 = vmatpush2.bf16.msra.mxu1 %v5011_v55  ;;  %3590 = vmatprep.subr.bf16.mxu0 %v5012_v56  ;;  %v5087_v43 = vld [vmem:[%s7757_s1 + $0x7e4] ss:$16 sps:$4 sm:$0xff]   ;;  %v5085_v45 = vld [vmem:[%s7757_s1 + $0x7e0] ss:$16 sps:$4 sm:$0xff]  }
  0x35   :  { %3631 = vmatprep.subr.bf16.mxu1 %v5014_v57  ;;  %v5090_v46 = vld [vmem:[%s7757_s1 + $0x5c4] ss:$16 sps:$4 sm:$0xff]   ;;  %v5088_v49 = vld [vmem:[%s7757_s1 + $0x5c0] ss:$16 sps:$4 sm:$0xff]  }
  0x36   :  { %v5093_v48 = vld [vmem:[%s7757_s1 + $0x7c4] ss:$16 sps:$4 sm:$0xff]   ;;  %v5091_v50 = vld [vmem:[%s7757_s1 + $0x7c0] ss:$16 sps:$4 sm:$0xff]  }
  0x37   :  { %3591 = vmatpush2.bf16.msra.mxu0 %v5016_v58  ;;  %v5096_v52 = vld [vmem:[%s7757_s1 + $0x5a4] ss:$16 sps:$4 sm:$0xff]   ;;  %v5094_v54 = vld [vmem:[%s7757_s1 + $0x5a0] ss:$16 sps:$4 sm:$0xff]  }
  0x38   :  { %3632 = vmatpush2.bf16.msra.mxu1 %v5017_v59  ;;  %3592 = vmatprep.subr.bf16.mxu0 %v5018_v60  ;;  %v5099_v53 = vld [vmem:[%s7757_s1 + $0x7a4] ss:$16 sps:$4 sm:$0xff]   ;;  %v5097_v55 = vld [vmem:[%s7757_s1 + $0x7a0] ss:$16 sps:$4 sm:$0xff]  }
  0x39   :  { %3633 = vmatprep.subr.bf16.mxu1 %v5020_v61  ;;  %v5102_v56 = vld [vmem:[%s7757_s1 + $0x584] ss:$16 sps:$4 sm:$0xff]   ;;  %v5100_v58 = vld [vmem:[%s7757_s1 + $0x580] ss:$16 sps:$4 sm:$0xff]  }
  0x3a   :  { %v5105_v57 = vld [vmem:[%s7757_s1 + $0x784] ss:$16 sps:$4 sm:$0xff]   ;;  %v5103_v59 = vld [vmem:[%s7757_s1 + $0x780] ss:$16 sps:$4 sm:$0xff]  }
  0x3b   :  { %3593 = vmatpush2.bf16.msra.mxu0 %v5022_v62  ;;  %v5108_v60 = vld [vmem:[%s7757_s1 + $0x564] ss:$16 sps:$4 sm:$0xff]   ;;  %v5106_v62 = vld [vmem:[%s7757_s1 + $0x560] ss:$16 sps:$4 sm:$0xff]  }
  0x3c   :  { %3634 = vmatpush2.bf16.msra.mxu1 %v5023_v63  ;;  %3594 = vmatprep.subr.bf16.mxu0 %v5024_v0  ;;  %v5111_v61 = vld [vmem:[%s7757_s1 + $0x764] ss:$16 sps:$4 sm:$0xff]   ;;  %v5109_v63 = vld [vmem:[%s7757_s1 + $0x760] ss:$16 sps:$4 sm:$0xff]  }
  0x3d   :  { %3635 = vmatprep.subr.bf16.mxu1 %v5026_v1  ;;  %v5114_v0 = vld [vmem:[%s7757_s1 + $0x544] ss:$16 sps:$4 sm:$0xff]  }
  0x3e   :  { %v5117_v1 = vld [vmem:[%s7757_s1 + $0x744] ss:$16 sps:$4 sm:$0xff]  }
  0x3f   :  { %3595 = vmatpush2.bf16.msra.mxu0 %v5028_v2  ;;  %v5112_v2 = vld [vmem:[%s7757_s1 + $0x540] ss:$16 sps:$4 sm:$0xff]  }
  0x40   :  { %3636 = vmatpush2.bf16.msra.mxu1 %v5029_v3  ;;  %3646 = vmatprep.subr.bf16.mxu0 %v5036_v4  ;;  %v5115_v3 = vld [vmem:[%s7757_s1 + $0x740] ss:$16 sps:$4 sm:$0xff]   ;;  %v5120_v4 = vld [vmem:[%s7757_s1 + $0x524] ss:$16 sps:$4 sm:$0xff]  }
  0x41   :  { %3687 = vmatprep.subr.bf16.mxu1 %v5039_v5  ;;  %v5123_v5 = vld [vmem:[%s7757_s1 + $0x724] ss:$16 sps:$4 sm:$0xff]  }
  0x42   :  { %3597 = vmatmul.mubr.bf16.vlgmr.msra.gmra.mxu0 %v6047_v6 }
  0x43   :  { %3638 = vmatmul.mubr.bf16.vlgmr.msra.gmra.mxu1 %v6049_v7  ;;  %3647 = vmatpush1.bf16.msra.mxu0 %v5034_v8  ;;  %v5118_v8 = vld [vmem:[%s7757_s1 + $0x520] ss:$16 sps:$4 sm:$0xff]  }
  0x44   :  { %3688 = vmatpush1.bf16.msra.mxu1 %v5037_v9  ;;  %3648 = vmatprep.subr.bf16.mxu0 %v5042_v10  ;;  %v5121_v9 = vld [vmem:[%s7757_s1 + $0x720] ss:$16 sps:$4 sm:$0xff]   ;;  %v5126_v10 = vld [vmem:[%s7757_s1 + $0x504] ss:$16 sps:$4 sm:$0xff]  }
  0x45   :  { %3689 = vmatprep.subr.bf16.mxu1 %v5045_v11  ;;  %3678 = vmatprep.mubr.bf16.mxu0 %v6143_v36  ;;  %v5129_v11 = vld [vmem:[%s7757_s1 + $0x704] ss:$16 sps:$4 sm:$0xff]  }
  0x46   :  { %3719 = vmatprep.mubr.bf16.mxu1 %v6147_v37 }
  0x47   :  { %3649 = vmatpush1.bf16.msra.mxu0 %v5040_v12  ;;  %v5124_v12 = vld [vmem:[%s7757_s1 + $0x500] ss:$16 sps:$4 sm:$0xff]  }
  0x48   :  { %3690 = vmatpush1.bf16.msra.mxu1 %v5043_v13  ;;  %3650 = vmatprep.subr.bf16.mxu0 %v5048_v14  ;;  %v5127_v13 = vld [vmem:[%s7757_s1 + $0x700] ss:$16 sps:$4 sm:$0xff]   ;;  %v5136_v14 = vld [vmem:[%s7757_s1 + $0x8e4] ss:$16 sps:$4 sm:$0xff]  }
  0x49   :  { %3691 = vmatprep.subr.bf16.mxu1 %v5051_v15  ;;  %v5139_v15 = vld [vmem:[%s7757_s1 + $0xae4] ss:$16 sps:$4 sm:$0xff]  }
  0x4b   :  { %3651 = vmatpush1.bf16.msra.mxu0 %v5046_v16  ;;  %v6267_v16 = vcombine.low %v6128_v32, %v6128_v32  ;;  %v5154_v32 = vld [vmem:[%s7757_s1 + $0x884] ss:$16 sps:$4 sm:$0xff]  }
  0x4c   :  { %3692 = vmatpush1.bf16.msra.mxu1 %v5049_v17  ;;  %3652 = vmatprep.subr.bf16.mxu0 %v5054_v18  ;;  %v6271_v17 = vcombine.low %v6133_v33, %v6133_v33  ;;  %v5134_v18 = vld [vmem:[%s7757_s1 + $0x8e0] ss:$16 sps:$4 sm:$0xff]   ;;  %v5157_v33 = vld [vmem:[%s7757_s1 + $0xa84] ss:$16 sps:$4 sm:$0xff]  }
  0x4d   :  { %3693 = vmatprep.subr.bf16.mxu1 %v5057_v19  ;;  %v5137_v19 = vld [vmem:[%s7757_s1 + $0xae0] ss:$16 sps:$4 sm:$0xff]  }
  0x4f   :  { %3653 = vmatpush1.bf16.msra.mxu0 %v5052_v20  ;;  %v5142_v20 = vld [vmem:[%s7757_s1 + $0x8c4] ss:$16 sps:$4 sm:$0xff]  }
  0x50   :  { %3694 = vmatpush1.bf16.msra.mxu1 %v5055_v21  ;;  %3654 = vmatprep.subr.bf16.mxu0 %v5060_v22  ;;  %v5145_v21 = vld [vmem:[%s7757_s1 + $0xac4] ss:$16 sps:$4 sm:$0xff]  }
  0x51   :  { %3695 = vmatprep.subr.bf16.mxu1 %v5063_v23  ;;  %v6288_v22 = vld [vmem:[%s7758_s0 + $0x20] sm:$0xff]  ;;  %v6293_v23 = vld [vmem:[%s7758_s0 + $0x28] sm:$0xff] }
  0x53   :  { %3655 = vmatpush1.bf16.msra.mxu0 %v5058_v24  ;;  %v6297_v24 = vcombine.high %v6288_v22, %v6288_v22 }
  0x54   :  { %3696 = vmatpush1.bf16.msra.mxu1 %v5061_v25  ;;  %3656 = vmatprep.subr.bf16.mxu0 %v5066_v26  ;;  %v6301_v25 = vcombine.high %v6293_v23, %v6293_v23  ;;  %v5140_v26 = vld [vmem:[%s7757_s1 + $0x8c0] ss:$16 sps:$4 sm:$0xff]  }
  0x55   :  { %3697 = vmatprep.subr.bf16.mxu1 %v5069_v27  ;;  %v5143_v27 = vld [vmem:[%s7757_s1 + $0xac0] ss:$16 sps:$4 sm:$0xff]  }
  0x57   :  { %3657 = vmatpush1.bf16.msra.mxu0 %v5064_v28  ;;  %v5148_v28 = vld [vmem:[%s7757_s1 + $0x8a4] ss:$16 sps:$4 sm:$0xff]  }
  0x58   :  { %3698 = vmatpush1.bf16.msra.mxu1 %v5067_v29  ;;  %3658 = vmatprep.subr.bf16.mxu0 %v5072_v30  ;;  %v5151_v29 = vld [vmem:[%s7757_s1 + $0xaa4] ss:$16 sps:$4 sm:$0xff]   ;;  %v5146_v30 = vld [vmem:[%s7757_s1 + $0x8a0] ss:$16 sps:$4 sm:$0xff]  }
  0x59   :  { %3699 = vmatprep.subr.bf16.mxu1 %v5075_v31  ;;  %v5149_v31 = vld [vmem:[%s7757_s1 + $0xaa0] ss:$16 sps:$4 sm:$0xff]  }
  0x5b   :  { %3659 = vmatpush1.bf16.msra.mxu0 %v5070_v34  ;;  %v5152_v34 = vld [vmem:[%s7757_s1 + $0x880] ss:$16 sps:$4 sm:$0xff]  }
  0x5c   :  { %3700 = vmatpush1.bf16.msra.mxu1 %v5073_v35  ;;  %3660 = vmatprep.subr.bf16.mxu0 %v5078_v38  ;;  %v5155_v35 = vld [vmem:[%s7757_s1 + $0xa80] ss:$16 sps:$4 sm:$0xff]   ;;  %v5160_v38 = vld [vmem:[%s7757_s1 + $0x864] ss:$16 sps:$4 sm:$0xff]  }
  0x5d   :  { %3701 = vmatprep.subr.bf16.mxu1 %v5081_v39  ;;  %v5163_v39 = vld [vmem:[%s7757_s1 + $0xa64] ss:$16 sps:$4 sm:$0xff]  }
  0x5f   :  { %3661 = vmatpush1.bf16.msra.mxu0 %v5076_v40  ;;  %v5158_v40 = vld [vmem:[%s7757_s1 + $0x860] ss:$16 sps:$4 sm:$0xff]  }
  0x60   :  { %3702 = vmatpush1.bf16.msra.mxu1 %v5079_v41  ;;  %3662 = vmatprep.subr.bf16.mxu0 %v5084_v42  ;;  %v5161_v41 = vld [vmem:[%s7757_s1 + $0xa60] ss:$16 sps:$4 sm:$0xff]   ;;  %v5166_v42 = vld [vmem:[%s7757_s1 + $0x844] ss:$16 sps:$4 sm:$0xff]  }
  0x61   :  { %3703 = vmatprep.subr.bf16.mxu1 %v5087_v43  ;;  %v5169_v43 = vld [vmem:[%s7757_s1 + $0xa44] ss:$16 sps:$4 sm:$0xff]  }
  0x63   :  { %3663 = vmatpush2.bf16.msra.mxu0 %v5082_v44  ;;  %v5164_v44 = vld [vmem:[%s7757_s1 + $0x840] ss:$16 sps:$4 sm:$0xff]  }
  0x64   :  { %3704 = vmatpush2.bf16.msra.mxu1 %v5085_v45  ;;  %3664 = vmatprep.subr.bf16.mxu0 %v5090_v46  ;;  %v5167_v45 = vld [vmem:[%s7757_s1 + $0xa40] ss:$16 sps:$4 sm:$0xff]   ;;  %v5172_v46 = vld [vmem:[%s7757_s1 + $0x824] ss:$16 sps:$4 sm:$0xff]  }
  0x65   :  { %3705 = vmatprep.subr.bf16.mxu1 %v5093_v48  ;;  %v5175_v48 = vld [vmem:[%s7757_s1 + $0xa24] ss:$16 sps:$4 sm:$0xff]  }
  0x67   :  { %3665 = vmatpush2.bf16.msra.mxu0 %v5088_v49  ;;  %v5170_v49 = vld [vmem:[%s7757_s1 + $0x820] ss:$16 sps:$4 sm:$0xff]  }
  0x68   :  { %3706 = vmatpush2.bf16.msra.mxu1 %v5091_v50  ;;  %3666 = vmatprep.subr.bf16.mxu0 %v5096_v52  ;;  %v5173_v50 = vld [vmem:[%s7757_s1 + $0xa20] ss:$16 sps:$4 sm:$0xff]   ;;  %v5178_v52 = vld [vmem:[%s7757_s1 + $0x804] ss:$16 sps:$4 sm:$0xff]  }
  0x69   :  { %3707 = vmatprep.subr.bf16.mxu1 %v5099_v53  ;;  %v5181_v53 = vld [vmem:[%s7757_s1 + $0xa04] ss:$16 sps:$4 sm:$0xff]  }
  0x6b   :  { %3667 = vmatpush2.bf16.msra.mxu0 %v5094_v54  ;;  %v5176_v54 = vld [vmem:[%s7757_s1 + $0x800] ss:$16 sps:$4 sm:$0xff]  }
  0x6c   :  { %3708 = vmatpush2.bf16.msra.mxu1 %v5097_v55  ;;  %3668 = vmatprep.subr.bf16.mxu0 %v5102_v56  ;;  %v5179_v55 = vld [vmem:[%s7757_s1 + $0xa00] ss:$16 sps:$4 sm:$0xff]   ;;  %v5184_v56 = vld [vmem:[%s7757_s1 + $0x9e4] ss:$16 sps:$4 sm:$0xff]  }
  0x6d   :  { %3709 = vmatprep.subr.bf16.mxu1 %v5105_v57  ;;  %v5187_v57 = vld [vmem:[%s7757_s1 + $0xbe4] ss:$16 sps:$4 sm:$0xff]  }
  0x6f   :  { %3669 = vmatpush2.bf16.msra.mxu0 %v5100_v58  ;;  %v5182_v58 = vld [vmem:[%s7757_s1 + $0x9e0] ss:$16 sps:$4 sm:$0xff]  }
  0x70   :  { %3710 = vmatpush2.bf16.msra.mxu1 %v5103_v59  ;;  %3670 = vmatprep.subr.bf16.mxu0 %v5108_v60  ;;  %v5185_v59 = vld [vmem:[%s7757_s1 + $0xbe0] ss:$16 sps:$4 sm:$0xff]   ;;  %v5190_v60 = vld [vmem:[%s7757_s1 + $0x9c4] ss:$16 sps:$4 sm:$0xff]  }
  0x71   :  { %3711 = vmatprep.subr.bf16.mxu1 %v5111_v61  ;;  %v5193_v61 = vld [vmem:[%s7757_s1 + $0xbc4] ss:$16 sps:$4 sm:$0xff]  }
  0x73   :  { %3671 = vmatpush2.bf16.msra.mxu0 %v5106_v62  ;;  %v5188_v62 = vld [vmem:[%s7757_s1 + $0x9c0] ss:$16 sps:$4 sm:$0xff]  }
  0x74   :  { %3712 = vmatpush2.bf16.msra.mxu1 %v5109_v63  ;;  %3672 = vmatprep.subr.bf16.mxu0 %v5114_v0  ;;  %v5191_v63 = vld [vmem:[%s7757_s1 + $0xbc0] ss:$16 sps:$4 sm:$0xff]   ;;  %v5196_v0 = vld [vmem:[%s7757_s1 + $0x9a4] ss:$16 sps:$4 sm:$0xff]  }
  0x75   :  { %3713 = vmatprep.subr.bf16.mxu1 %v5117_v1  ;;  %v5199_v1 = vld [vmem:[%s7757_s1 + $0xba4] ss:$16 sps:$4 sm:$0xff]  }
  0x77   :  { %3673 = vmatpush2.bf16.msra.mxu0 %v5112_v2  ;;  %v5194_v2 = vld [vmem:[%s7757_s1 + $0x9a0] ss:$16 sps:$4 sm:$0xff]  }
  0x78   :  { %3714 = vmatpush2.bf16.msra.mxu1 %v5115_v3  ;;  %3674 = vmatprep.subr.bf16.mxu0 %v5120_v4  ;;  %v5197_v3 = vld [vmem:[%s7757_s1 + $0xba0] ss:$16 sps:$4 sm:$0xff]   ;;  %v5202_v4 = vld [vmem:[%s7757_s1 + $0x984] ss:$16 sps:$4 sm:$0xff]  }
  0x79   :  { %3715 = vmatprep.subr.bf16.mxu1 %v5123_v5  ;;  %v5205_v5 = vld [vmem:[%s7757_s1 + $0xb84] ss:$16 sps:$4 sm:$0xff]  }
  0x7b   :  { %3675 = vmatpush2.bf16.msra.mxu0 %v5118_v8  ;;  %v5200_v8 = vld [vmem:[%s7757_s1 + $0x980] ss:$16 sps:$4 sm:$0xff]  }
  0x7c   :  { %3716 = vmatpush2.bf16.msra.mxu1 %v5121_v9  ;;  %3676 = vmatprep.subr.bf16.mxu0 %v5126_v10  ;;  %v5203_v9 = vld [vmem:[%s7757_s1 + $0xb80] ss:$16 sps:$4 sm:$0xff]   ;;  %v5208_v10 = vld [vmem:[%s7757_s1 + $0x964] ss:$16 sps:$4 sm:$0xff]  }
  0x7d   :  { %3717 = vmatprep.subr.bf16.mxu1 %v5129_v11  ;;  %v5211_v11 = vld [vmem:[%s7757_s1 + $0xb64] ss:$16 sps:$4 sm:$0xff]  }
  0x7f   :  { %3677 = vmatpush2.bf16.msra.mxu0 %v5124_v12  ;;  %v5206_v12 = vld [vmem:[%s7757_s1 + $0x960] ss:$16 sps:$4 sm:$0xff]  }
  0x80   :  { %3718 = vmatpush2.bf16.msra.mxu1 %v5127_v13  ;;  %3728 = vmatprep.subr.bf16.mxu0 %v5136_v14  ;;  %v5209_v13 = vld [vmem:[%s7757_s1 + $0xb60] ss:$16 sps:$4 sm:$0xff]   ;;  %v5214_v14 = vld [vmem:[%s7757_s1 + $0x944] ss:$16 sps:$4 sm:$0xff]  }
  0x81   :  { %3769 = vmatprep.subr.bf16.mxu1 %v5139_v15  ;;  %v5217_v15 = vld [vmem:[%s7757_s1 + $0xb44] ss:$16 sps:$4 sm:$0xff]  }
  0x82   :  { %3679 = vmatmul.mubr.bf16.vlgmr.msra.gmra.mxu0 %v6267_v16 }
  0x83   :  { %3720 = vmatmul.mubr.bf16.vlgmr.msra.gmra.mxu1 %v6271_v17  ;;  %3729 = vmatpush1.bf16.msra.mxu0 %v5134_v18  ;;  %v5212_v18 = vld [vmem:[%s7757_s1 + $0x940] ss:$16 sps:$4 sm:$0xff]  }
  0x84   :  { %3770 = vmatpush1.bf16.msra.mxu1 %v5137_v19  ;;  %3730 = vmatprep.subr.bf16.mxu0 %v5142_v20  ;;  %v5215_v19 = vld [vmem:[%s7757_s1 + $0xb40] ss:$16 sps:$4 sm:$0xff]   ;;  %v5220_v20 = vld [vmem:[%s7757_s1 + $0x924] ss:$16 sps:$4 sm:$0xff]  }
  0x85   :  { %3771 = vmatprep.subr.bf16.mxu1 %v5145_v21  ;;  %3760 = vmatprep.mubr.bf16.mxu0 %v6297_v24  ;;  %v5223_v21 = vld [vmem:[%s7757_s1 + $0xb24] ss:$16 sps:$4 sm:$0xff]  }
  0x86   :  { %3801 = vmatprep.mubr.bf16.mxu1 %v6301_v25 }
  0x87   :  { %3731 = vmatpush1.bf16.msra.mxu0 %v5140_v26  ;;  %v5218_v26 = vld [vmem:[%s7757_s1 + $0x920] ss:$16 sps:$4 sm:$0xff]  }
  0x88   :  { %3772 = vmatpush1.bf16.msra.mxu1 %v5143_v27  ;;  %3732 = vmatprep.subr.bf16.mxu0 %v5148_v28  ;;  %v5221_v27 = vld [vmem:[%s7757_s1 + $0xb20] ss:$16 sps:$4 sm:$0xff]   ;;  %v5226_v28 = vld [vmem:[%s7757_s1 + $0x904] ss:$16 sps:$4 sm:$0xff]  }
  0x89   :  { %3773 = vmatprep.subr.bf16.mxu1 %v5151_v29  ;;  %v5229_v29 = vld [vmem:[%s7757_s1 + $0xb04] ss:$16 sps:$4 sm:$0xff]  }
  0x8b   :  { %3733 = vmatpush1.bf16.msra.mxu0 %v5146_v30  ;;  %v5224_v30 = vld [vmem:[%s7757_s1 + $0x900] ss:$16 sps:$4 sm:$0xff]  }
  0x8c   :  { %3774 = vmatpush1.bf16.msra.mxu1 %v5149_v31  ;;  %3734 = vmatprep.subr.bf16.mxu0 %v5154_v32  ;;  %v5227_v31 = vld [vmem:[%s7757_s1 + $0xb00] ss:$16 sps:$4 sm:$0xff]   ;;  %v5236_v32 = vld [vmem:[%s7757_s1 + $0xce4] ss:$16 sps:$4 sm:$0xff]  }
  0x8d   :  { %3775 = vmatprep.subr.bf16.mxu1 %v5157_v33  ;;  %v5239_v33 = vld [vmem:[%s7757_s1 + $0xee4] ss:$16 sps:$4 sm:$0xff]  }
  0x8f   :  { %3735 = vmatpush1.bf16.msra.mxu0 %v5152_v34  ;;  %v5234_v34 = vld [vmem:[%s7757_s1 + $0xce0] ss:$16 sps:$4 sm:$0xff]  }
  0x90   :  { %3776 = vmatpush1.bf16.msra.mxu1 %v5155_v35  ;;  %3736 = vmatprep.subr.bf16.mxu0 %v5160_v38  ;;  %v6493_v35 = vld [vmem:[%s7758_s0 + $0x30] sm:$0xff]  ;;  %v6497_v38 = vcombine.low %v6288_v22, %v6288_v22 }
  0x91   :  { %3777 = vmatprep.subr.bf16.mxu1 %v5163_v39  ;;  %v6501_v39 = vcombine.low %v6293_v23, %v6293_v23  ;;  %v5242_v22 = vld [vmem:[%s7757_s1 + $0xcc4] ss:$16 sps:$4 sm:$0xff]  }
  0x92   :  { %v5245_v23 = vld [vmem:[%s7757_s1 + $0xec4] ss:$16 sps:$4 sm:$0xff]  }
  0x93   :  { %3737 = vmatpush1.bf16.msra.mxu0 %v5158_v40  ;;  %v6506_v40 = vld [vmem:[%s7758_s0 + $0x38] sm:$0xff] }
  0x94   :  { %3778 = vmatpush1.bf16.msra.mxu1 %v5161_v41  ;;  %3738 = vmatprep.subr.bf16.mxu0 %v5166_v42  ;;  %v5237_v41 = vld [vmem:[%s7757_s1 + $0xee0] ss:$16 sps:$4 sm:$0xff]   ;;  %v6519_v42 = vcombine.high %v6493_v35, %v6493_v35 }
  0x95   :  { %3779 = vmatprep.subr.bf16.mxu1 %v5169_v43  ;;  %v6523_v43 = vcombine.high %v6506_v40, %v6506_v40 }
  0x97   :  { %3739 = vmatpush1.bf16.msra.mxu0 %v5164_v44  ;;  %v5240_v44 = vld [vmem:[%s7757_s1 + $0xcc0] ss:$16 sps:$4 sm:$0xff]  }
  0x98   :  { %3780 = vmatpush1.bf16.msra.mxu1 %v5167_v45  ;;  %3740 = vmatprep.subr.bf16.mxu0 %v5172_v46  ;;  %v5243_v45 = vld [vmem:[%s7757_s1 + $0xec0] ss:$16 sps:$4 sm:$0xff]   ;;  %v5248_v46 = vld [vmem:[%s7757_s1 + $0xca4] ss:$16 sps:$4 sm:$0xff]  }
  0x99   :  { %3781 = vmatprep.subr.bf16.mxu1 %v5175_v48  ;;  %v5251_v48 = vld [vmem:[%s7757_s1 + $0xea4] ss:$16 sps:$4 sm:$0xff]  }
  0x9b   :  { %3741 = vmatpush1.bf16.msra.mxu0 %v5170_v49  ;;  %v5246_v49 = vld [vmem:[%s7757_s1 + $0xca0] ss:$16 sps:$4 sm:$0xff]  }
  0x9c   :  { %3782 = vmatpush1.bf16.msra.mxu1 %v5173_v50  ;;  %3742 = vmatprep.subr.bf16.mxu0 %v5178_v52  ;;  %v5249_v50 = vld [vmem:[%s7757_s1 + $0xea0] ss:$16 sps:$4 sm:$0xff]   ;;  %v5254_v52 = vld [vmem:[%s7757_s1 + $0xc84] ss:$16 sps:$4 sm:$0xff]  }
  0x9d   :  { %3783 = vmatprep.subr.bf16.mxu1 %v5181_v53  ;;  %v5257_v53 = vld [vmem:[%s7757_s1 + $0xe84] ss:$16 sps:$4 sm:$0xff]  }
  0x9f   :  { %3743 = vmatpush1.bf16.msra.mxu0 %v5176_v54  ;;  %v5252_v54 = vld [vmem:[%s7757_s1 + $0xc80] ss:$16 sps:$4 sm:$0xff]  }
  0xa0   :  { %3784 = vmatpush1.bf16.msra.mxu1 %v5179_v55  ;;  %3744 = vmatprep.subr.bf16.mxu0 %v5184_v56  ;;  %v5255_v55 = vld [vmem:[%s7757_s1 + $0xe80] ss:$16 sps:$4 sm:$0xff]   ;;  %v5260_v56 = vld [vmem:[%s7757_s1 + $0xc64] ss:$16 sps:$4 sm:$0xff]  }
  0xa1   :  { %3785 = vmatprep.subr.bf16.mxu1 %v5187_v57  ;;  %v5263_v57 = vld [vmem:[%s7757_s1 + $0xe64] ss:$16 sps:$4 sm:$0xff]  }
  0xa3   :  { %3745 = vmatpush2.bf16.msra.mxu0 %v5182_v58  ;;  %v5258_v58 = vld [vmem:[%s7757_s1 + $0xc60] ss:$16 sps:$4 sm:$0xff]  }
  0xa4   :  { %3786 = vmatpush2.bf16.msra.mxu1 %v5185_v59  ;;  %3746 = vmatprep.subr.bf16.mxu0 %v5190_v60  ;;  %v5261_v59 = vld [vmem:[%s7757_s1 + $0xe60] ss:$16 sps:$4 sm:$0xff]   ;;  %v5266_v60 = vld [vmem:[%s7757_s1 + $0xc44] ss:$16 sps:$4 sm:$0xff]  }
  0xa5   :  { %3787 = vmatprep.subr.bf16.mxu1 %v5193_v61  ;;  %v5269_v61 = vld [vmem:[%s7757_s1 + $0xe44] ss:$16 sps:$4 sm:$0xff]  }
  0xa7   :  { %3747 = vmatpush2.bf16.msra.mxu0 %v5188_v62  ;;  %v5264_v62 = vld [vmem:[%s7757_s1 + $0xc40] ss:$16 sps:$4 sm:$0xff]  }
  0xa8   :  { %3788 = vmatpush2.bf16.msra.mxu1 %v5191_v63  ;;  %3748 = vmatprep.subr.bf16.mxu0 %v5196_v0  ;;  %v5267_v63 = vld [vmem:[%s7757_s1 + $0xe40] ss:$16 sps:$4 sm:$0xff]   ;;  %v5272_v0 = vld [vmem:[%s7757_s1 + $0xc24] ss:$16 sps:$4 sm:$0xff]  }
  0xa9   :  { %3789 = vmatprep.subr.bf16.mxu1 %v5199_v1  ;;  %v5275_v1 = vld [vmem:[%s7757_s1 + $0xe24] ss:$16 sps:$4 sm:$0xff]  }
  0xab   :  { %3749 = vmatpush2.bf16.msra.mxu0 %v5194_v2  ;;  %v5270_v2 = vld [vmem:[%s7757_s1 + $0xc20] ss:$16 sps:$4 sm:$0xff]  }
  0xac   :  { %3790 = vmatpush2.bf16.msra.mxu1 %v5197_v3  ;;  %3750 = vmatprep.subr.bf16.mxu0 %v5202_v4  ;;  %v5273_v3 = vld [vmem:[%s7757_s1 + $0xe20] ss:$16 sps:$4 sm:$0xff]   ;;  %v5278_v4 = vld [vmem:[%s7757_s1 + $0xc04] ss:$16 sps:$4 sm:$0xff]  }
  0xad   :  { %3791 = vmatprep.subr.bf16.mxu1 %v5205_v5  ;;  %v5281_v5 = vld [vmem:[%s7757_s1 + $0xe04] ss:$16 sps:$4 sm:$0xff]  }
  0xaf   :  { %3751 = vmatpush2.bf16.msra.mxu0 %v5200_v8  ;;  %v5276_v8 = vld [vmem:[%s7757_s1 + $0xc00] ss:$16 sps:$4 sm:$0xff]  }
  0xb0   :  { %3792 = vmatpush2.bf16.msra.mxu1 %v5203_v9  ;;  %3752 = vmatprep.subr.bf16.mxu0 %v5208_v10  ;;  %v5279_v9 = vld [vmem:[%s7757_s1 + $0xe00] ss:$16 sps:$4 sm:$0xff]   ;;  %v5284_v10 = vld [vmem:[%s7757_s1 + $0xde4] ss:$16 sps:$4 sm:$0xff]  }
  0xb1   :  { %3793 = vmatprep.subr.bf16.mxu1 %v5211_v11  ;;  %v5287_v11 = vld [vmem:[%s7757_s1 + $0xfe4] ss:$16 sps:$4 sm:$0xff]  }
  0xb3   :  { %3753 = vmatpush2.bf16.msra.mxu0 %v5206_v12  ;;  %v5282_v12 = vld [vmem:[%s7757_s1 + $0xde0] ss:$16 sps:$4 sm:$0xff]  }
  0xb4   :  { %3794 = vmatpush2.bf16.msra.mxu1 %v5209_v13  ;;  %3754 = vmatprep.subr.bf16.mxu0 %v5214_v14  ;;  %v5285_v13 = vld [vmem:[%s7757_s1 + $0xfe0] ss:$16 sps:$4 sm:$0xff]   ;;  %v5290_v14 = vld [vmem:[%s7757_s1 + $0xdc4] ss:$16 sps:$4 sm:$0xff]  }
  0xb5   :  { %3795 = vmatprep.subr.bf16.mxu1 %v5217_v15  ;;  %v5293_v15 = vld [vmem:[%s7757_s1 + $0xfc4] ss:$16 sps:$4 sm:$0xff]  }
  0xb7   :  { %3755 = vmatpush2.bf16.msra.mxu0 %v5212_v18  ;;  %v5288_v18 = vld [vmem:[%s7757_s1 + $0xdc0] ss:$16 sps:$4 sm:$0xff]  }
  0xb8   :  { %3796 = vmatpush2.bf16.msra.mxu1 %v5215_v19  ;;  %3756 = vmatprep.subr.bf16.mxu0 %v5220_v20  ;;  %v5291_v19 = vld [vmem:[%s7757_s1 + $0xfc0] ss:$16 sps:$4 sm:$0xff]   ;;  %v5296_v20 = vld [vmem:[%s7757_s1 + $0xda4] ss:$16 sps:$4 sm:$0xff]  }
  0xb9   :  { %3797 = vmatprep.subr.bf16.mxu1 %v5223_v21  ;;  %v5299_v21 = vld [vmem:[%s7757_s1 + $0xfa4] ss:$16 sps:$4 sm:$0xff]  }
  0xbb   :  { %3757 = vmatpush2.bf16.msra.mxu0 %v5218_v26  ;;  %v5294_v26 = vld [vmem:[%s7757_s1 + $0xda0] ss:$16 sps:$4 sm:$0xff]  }
  0xbc   :  { %3798 = vmatpush2.bf16.msra.mxu1 %v5221_v27  ;;  %3758 = vmatprep.subr.bf16.mxu0 %v5226_v28  ;;  %v5297_v27 = vld [vmem:[%s7757_s1 + $0xfa0] ss:$16 sps:$4 sm:$0xff]   ;;  %v5302_v28 = vld [vmem:[%s7757_s1 + $0xd84] ss:$16 sps:$4 sm:$0xff]  }
  0xbd   :  { %3799 = vmatprep.subr.bf16.mxu1 %v5229_v29  ;;  %v5305_v29 = vld [vmem:[%s7757_s1 + $0xf84] ss:$16 sps:$4 sm:$0xff]  }
  0xbf   :  { %3759 = vmatpush2.bf16.msra.mxu0 %v5224_v30  ;;  %v5300_v30 = vld [vmem:[%s7757_s1 + $0xd80] ss:$16 sps:$4 sm:$0xff]  }
  0xc0   :  { %3800 = vmatpush2.bf16.msra.mxu1 %v5227_v31  ;;  %3810 = vmatprep.subr.bf16.mxu0 %v5236_v32  ;;  %v5303_v31 = vld [vmem:[%s7757_s1 + $0xf80] ss:$16 sps:$4 sm:$0xff]   ;;  %v5308_v32 = vld [vmem:[%s7757_s1 + $0xd64] ss:$16 sps:$4 sm:$0xff]  }
  0xc1   :  { %3851 = vmatprep.subr.bf16.mxu1 %v5239_v33  ;;  %v5311_v33 = vld [vmem:[%s7757_s1 + $0xf64] ss:$16 sps:$4 sm:$0xff]  }
  0xc2   :  { %3761 = vmatmul.mubr.bf16.vlgmr.msra.gmra.mxu0 %v6497_v38 }
  0xc3   :  { %3802 = vmatmul.mubr.bf16.vlgmr.msra.gmra.mxu1 %v6501_v39  ;;  %3811 = vmatpush1.bf16.msra.mxu0 %v5234_v34  ;;  %v5306_v34 = vld [vmem:[%s7757_s1 + $0xd60] ss:$16 sps:$4 sm:$0xff]  }
  0xc4   :  { %3852 = vmatpush1.bf16.msra.mxu1 %v5237_v41  ;;  %3812 = vmatprep.subr.bf16.mxu0 %v5242_v22  ;;  %v5309_v41 = vld [vmem:[%s7757_s1 + $0xf60] ss:$16 sps:$4 sm:$0xff]   ;;  %v5314_v22 = vld [vmem:[%s7757_s1 + $0xd44] ss:$16 sps:$4 sm:$0xff]  }
  0xc5   :  { %3853 = vmatprep.subr.bf16.mxu1 %v5245_v23  ;;  %3842 = vmatprep.mubr.bf16.mxu0 %v6519_v42  ;;  %v5317_v23 = vld [vmem:[%s7757_s1 + $0xf44] ss:$16 sps:$4 sm:$0xff]  }
  0xc6   :  { %3883 = vmatprep.mubr.bf16.mxu1 %v6523_v43 }
  0xc7   :  { %3813 = vmatpush1.bf16.msra.mxu0 %v5240_v44  ;;  %v5312_v44 = vld [vmem:[%s7757_s1 + $0xd40] ss:$16 sps:$4 sm:$0xff]  }
  0xc8   :  { %3854 = vmatpush1.bf16.msra.mxu1 %v5243_v45  ;;  %3814 = vmatprep.subr.bf16.mxu0 %v5248_v46  ;;  %v5315_v45 = vld [vmem:[%s7757_s1 + $0xf40] ss:$16 sps:$4 sm:$0xff]   ;;  %v601_v46 = vlaneseq }
  0xc9   :  { %3855 = vmatprep.subr.bf16.mxu1 %v5251_v48  ;;  %v5320_v48 = vld [vmem:[%s7757_s1 + $0xd24] ss:$16 sps:$4 sm:$0xff]  }
  0xcb   :  { %3815 = vmatpush1.bf16.msra.mxu0 %v5246_v49  ;;  %v5323_v49 = vld [vmem:[%s7757_s1 + $0xf24] ss:$16 sps:$4 sm:$0xff]  }
  0xcc   :  { %3856 = vmatpush1.bf16.msra.mxu1 %v5249_v50  ;;  %3816 = vmatprep.subr.bf16.mxu0 %v5254_v52  ;;  %v5318_v50 = vld [vmem:[%s7757_s1 + $0xd20] ss:$16 sps:$4 sm:$0xff]  }
  0xcd   :  { %3857 = vmatprep.subr.bf16.mxu1 %v5257_v53  ;;  %v5321_v52 = vld [vmem:[%s7757_s1 + $0xf20] ss:$16 sps:$4 sm:$0xff]   ;;  %v6691_v53 = vshrl.u32 %v601_v46, 7  ;;  %v5366_v46 = vld [vmem:[%s7757_s1 + $0x1044] ss:$16 sps:$4 sm:$0xff]  }
  0xcf   :  { %3817 = vmatpush1.bf16.msra.mxu0 %v5252_v54  ;;  %v5326_v54 = vld [vmem:[%s7757_s1 + $0xd04] ss:$16 sps:$4 sm:$0xff]  }
  0xd0   :  { %3858 = vmatpush1.bf16.msra.mxu1 %v5255_v55  ;;  %3818 = vmatprep.subr.bf16.mxu0 %v5260_v56  ;;  %v5329_v55 = vld [vmem:[%s7757_s1 + $0xf04] ss:$16 sps:$4 sm:$0xff]   ;;  %v5324_v56 = vld [vmem:[%s7757_s1 + $0xd00] ss:$16 sps:$4 sm:$0xff]  }
  0xd1   :  { %3859 = vmatprep.subr.bf16.mxu1 %v5263_v57  ;;  %v5327_v57 = vld [vmem:[%s7757_s1 + $0xf00] ss:$16 sps:$4 sm:$0xff]  }
  0xd3   :  { %3819 = vmatpush1.bf16.msra.mxu0 %v5258_v58  ;;  %v599_v58 = vld [vmem:[%s7759_s2] sm:$0xf] }
  0xd4   :  { %3860 = vmatpush1.bf16.msra.mxu1 %v5261_v59  ;;  %3820 = vmatprep.subr.bf16.mxu0 %v5266_v60  ;;  %v603_v59 = vsub.s32 0, %v6691_v53  ;;  %v5336_v60 = vld [vmem:[%s7757_s1 + $0x10e4] ss:$16 sps:$4 sm:$0xff]  }
  0xd5   :  { %3861 = vmatprep.subr.bf16.mxu1 %v5269_v61  ;;  %v5339_v61 = vld [vmem:[%s7757_s1 + $0xec] ss:$16 sps:$4 sm:$0xff]  }
  0xd7   :  { %3821 = vmatpush1.bf16.msra.mxu0 %v5264_v62  ;;  %v607_v62 = vsub.s32 1, %v6691_v53 }
  0xd8   :  { %3862 = vmatpush1.bf16.msra.mxu1 %v5267_v63  ;;  %3822 = vmatprep.subr.bf16.mxu0 %v5272_v0  ;;  %v6718_v63 = vcombine.low %v6493_v35, %v6493_v35  ;;  %v6722_v0 = vcombine.low %v6506_v40, %v6506_v40  ;;  %v5337_v35 = vld [vmem:[%s7757_s1 + $0xe8] ss:$16 sps:$4 sm:$0xff]   ;;  %v5342_v40 = vld [vmem:[%s7757_s1 + $0x10c4] ss:$16 sps:$4 sm:$0xff]  }
  0xd9   :  { %3863 = vmatprep.subr.bf16.mxu1 %v5275_v1  ;;  %v6727_v1 = vld [vmem:[%s7758_s0 + $0x40] sm:$0xff] }
  0xdb   :  { %3823 = vmatpush1.bf16.msra.mxu0 %v5270_v2  ;;  %v604_v2 = vrot.slane %v599_v58, %v603_v59  ;;  %v5376_v59 = vld [vmem:[%s7757_s1 + $0x1000] ss:$16 sps:$4 sm:$0xff]  }
  0xdc   :  { %3864 = vmatpush1.bf16.msra.mxu1 %v5273_v3  ;;  %3824 = vmatprep.subr.bf16.mxu0 %v5278_v4  ;;  %v5334_v3 = vld [vmem:[%s7757_s1 + $0x10e0] ss:$16 sps:$4 sm:$0xff]   ;;  %v5345_v4 = vld [vmem:[%s7757_s1 + $0xcc] ss:$16 sps:$4 sm:$0xff]  }
  0xdd   :  { %3865 = vmatprep.subr.bf16.mxu1 %v5281_v5  ;;  %v608_v5 = vrot.slane %v599_v58, %v607_v62  ;;  %v5381_v58 = vld [vmem:[%s7757_s1 + $0xc] ss:$16 sps:$4 sm:$0xff]  }
  0xde   :  { %v5387_v62 = vld [vmem:[%s7757_s1 + $0x1ec] ss:$16 sps:$4 sm:$0xff]  }
  0xdf   :  { %3825 = vmatpush1.bf16.msra.mxu0 %v5276_v8  ;;  %v6743_v8 = vcombine.high %v6727_v1, %v6727_v1 }
  0xe0   :  { %3866 = vmatpush1.bf16.msra.mxu1 %v5279_v9  ;;  %3826 = vmatprep.subr.bf16.mxu0 %v5284_v10 }
  0xe1   :  { %3867 = vmatprep.subr.bf16.mxu1 %v5287_v11 }
  0xe3   :  { %3827 = vmatpush2.bf16.msra.mxu0 %v5282_v12  ;;  %v5340_v12 = vld [vmem:[%s7757_s1 + $0x10c0] ss:$16 sps:$4 sm:$0xff]  }
  0xe4   :  { %3868 = vmatpush2.bf16.msra.mxu1 %v5285_v13  ;;  %3828 = vmatprep.subr.bf16.mxu0 %v5290_v14  ;;  %v5343_v13 = vld [vmem:[%s7757_s1 + $0xc8] ss:$16 sps:$4 sm:$0xff]  }
  0xe5   :  { %3869 = vmatprep.subr.bf16.mxu1 %v5293_v15 }
  0xe7   :  { %3829 = vmatpush2.bf16.msra.mxu0 %v5288_v18  ;;  %v5348_v18 = vld [vmem:[%s7757_s1 + $0x10a4] ss:$16 sps:$4 sm:$0xff]  }
  0xe8   :  { %3870 = vmatpush2.bf16.msra.mxu1 %v5291_v19  ;;  %3830 = vmatprep.subr.bf16.mxu0 %v5296_v20  ;;  %v5351_v19 = vld [vmem:[%s7757_s1 + $0xac] ss:$16 sps:$4 sm:$0xff]  }
  0xe9   :  { %3871 = vmatprep.subr.bf16.mxu1 %v5299_v21 }
  0xeb   :  { %3831 = vmatpush2.bf16.msra.mxu0 %v5294_v26 }
  0xec   :  { %3872 = vmatpush2.bf16.msra.mxu1 %v5297_v27  ;;  %3832 = vmatprep.subr.bf16.mxu0 %v5302_v28 }
  0xed   :  { %3873 = vmatprep.subr.bf16.mxu1 %v5305_v29  ;;  %v5346_v29 = vld [vmem:[%s7757_s1 + $0x10a0] ss:$16 sps:$4 sm:$0xff]  }
  0xef   :  { %3833 = vmatpush2.bf16.msra.mxu0 %v5300_v30  ;;  %v5349_v30 = vld [vmem:[%s7757_s1 + $0xa8] ss:$16 sps:$4 sm:$0xff]  }
  0xf0   :  { %3874 = vmatpush2.bf16.msra.mxu1 %v5303_v31  ;;  %3834 = vmatprep.subr.bf16.mxu0 %v5308_v32 }
  0xf1   :  { %3875 = vmatprep.subr.bf16.mxu1 %v5311_v33  ;;  %v5357_v33 = vld [vmem:[%s7757_s1 + $0x8c] ss:$16 sps:$4 sm:$0xff]  }
  0xf3   :  { %3835 = vmatpush2.bf16.msra.mxu0 %v5306_v34  ;;  %v5352_v34 = vld [vmem:[%s7757_s1 + $0x1080] ss:$16 sps:$4 sm:$0xff]  }
  0xf4   :  { %3876 = vmatpush2.bf16.msra.mxu1 %v5309_v41  ;;  %3836 = vmatprep.subr.bf16.mxu0 %v5314_v22  ;;  %v5355_v41 = vld [vmem:[%s7757_s1 + $0x88] ss:$16 sps:$4 sm:$0xff]   ;;  %v5360_v22 = vld [vmem:[%s7757_s1 + $0x1064] ss:$16 sps:$4 sm:$0xff]  }
  0xf5   :  { %3877 = vmatprep.subr.bf16.mxu1 %v5317_v23  ;;  %v5363_v23 = vld [vmem:[%s7757_s1 + $0x6c] ss:$16 sps:$4 sm:$0xff]  }
  0xf7   :  { %3837 = vmatpush2.bf16.msra.mxu0 %v5312_v44  ;;  %v5358_v44 = vld [vmem:[%s7757_s1 + $0x1060] ss:$16 sps:$4 sm:$0xff]  }
  0xf8   :  { %3878 = vmatpush2.bf16.msra.mxu1 %v5315_v45  ;;  %3838 = vmatprep.subr.bf16.mxu0 %v5320_v48  ;;  %v5361_v45 = vld [vmem:[%s7757_s1 + $0x68] ss:$16 sps:$4 sm:$0xff]   ;;  %v5369_v48 = vld [vmem:[%s7757_s1 + $0x4c] ss:$16 sps:$4 sm:$0xff]  }
  0xf9   :  { %3879 = vmatprep.subr.bf16.mxu1 %v5323_v49  ;;  %v5364_v49 = vld [vmem:[%s7757_s1 + $0x1040] ss:$16 sps:$4 sm:$0xff]  }
  0xfb   :  { %3839 = vmatpush2.bf16.msra.mxu0 %v5318_v50  ;;  %v5367_v50 = vld [vmem:[%s7757_s1 + $0x48] ss:$16 sps:$4 sm:$0xff]  }
  0xfc   :  { %3880 = vmatpush2.bf16.msra.mxu1 %v5321_v52  ;;  %3840 = vmatprep.subr.bf16.mxu0 %v5326_v54  ;;  %v5372_v52 = vld [vmem:[%s7757_s1 + $0x1024] ss:$16 sps:$4 sm:$0xff]   ;;  %v5375_v54 = vld [vmem:[%s7757_s1 + $0x2c] ss:$16 sps:$4 sm:$0xff]  }
  0xfd   :  { %3881 = vmatprep.subr.bf16.mxu1 %v5329_v55  ;;  %v5370_v55 = vld [vmem:[%s7757_s1 + $0x1020] ss:$16 sps:$4 sm:$0xff]  }
  0xff   :  { %3841 = vmatpush2.bf16.msra.mxu0 %v5324_v56  ;;  %v5373_v56 = vld [vmem:[%s7757_s1 + $0x28] ss:$16 sps:$4 sm:$0xff]  }
 0x100   :  { %3882 = vmatpush2.bf16.msra.mxu1 %v5327_v57  ;;  %3892 = vmatprep.subr.bf16.mxu0 %v5336_v60  ;;  %v5378_v57 = vld [vmem:[%s7757_s1 + $0x1004] ss:$16 sps:$4 sm:$0xff]   ;;  %v5379_v60 = vld [vmem:[%s7757_s1 + $0x8] ss:$16 sps:$4 sm:$0xff]  }
 0x101   :  { %3933 = vmatprep.subr.bf16.mxu1 %v5339_v61  ;;  %v5384_v61 = vld [vmem:[%s7757_s1 + $0x11e4] ss:$16 sps:$4 sm:$0xff]  }
 0x102   :  { %v3598_v9 = vpop.f32.mrf.mxu0  ;;  %3843 = vmatmul.mubr.bf16.vlgmr.msra.gmra.mxu0 %v6718_v63 }
 0x103   :  { %v3639_v10 = vpop.f32.mrf.mxu1  ;;  %3884 = vmatmul.mubr.bf16.vlgmr.msra.gmra.mxu1 %v6722_v0  ;;  %v3599_v11 = vadd.f32 %v3598_v9, %v604_v2  ;;  %3893 = vmatpush1.bf16.msra.mxu0 %v5334_v3  ;;  %v5382_v2 = vld [vmem:[%s7757_s1 + $0x11e0] ss:$16 sps:$4 sm:$0xff]   ;;  %v5385_v3 = vld [vmem:[%s7757_s1 + $0x1e8] ss:$16 sps:$4 sm:$0xff]   ;;  %v5396_v9 = vld [vmem:[%s7757_s1 + $0x11a4] ss:$16 sps:$4 sm:$0xff]  }
 0x104   :  { %3934 = vmatpush1.bf16.msra.mxu1 %v5337_v35  ;;  %v3600_v14 = vpop.f32.mrf.mxu0  ;;  %3894 = vmatprep.subr.bf16.mxu0 %v5342_v40  ;;  %v5390_v35 = vld [vmem:[%s7757_s1 + $0x11c4] ss:$16 sps:$4 sm:$0xff]   ;;  %v5393_v40 = vld [vmem:[%s7757_s1 + $0x1cc] ss:$16 sps:$4 sm:$0xff]  }
 0x105   :  { %v3641_v15 = vpop.f32.mrf.mxu1  ;;  %3935 = vmatprep.subr.bf16.mxu1 %v5345_v4  ;;  %v6759_v20 = vadd.f32 %v3639_v10, %v3599_v11  ;;  %v3601_v21 = vadd.f32 %v3600_v14, %v608_v5  ;;  %3924 = vmatprep.mubr.bf16.mxu0 %v6743_v8  ;;  %v5388_v4 = vld [vmem:[%s7757_s1 + $0x11c0] ss:$16 sps:$4 sm:$0xff]   ;;  %v5391_v5 = vld [vmem:[%s7757_s1 + $0x1c8] ss:$16 sps:$4 sm:$0xff]   ;;  %v5399_v10 = vld [vmem:[%s7757_s1 + $0x1ac] ss:$16 sps:$4 sm:$0xff]  }
 0x106   :  { %3965 = vmatprep.mubr.bf16.mxu1 %v5978_v47  ;;  %v3602_v26 = vpop.f32.mrf.mxu0  ;;  %v5354_v47 = vld [vmem:[%s7757_s1 + $0x1084] ss:$16 sps:$4 sm:$0xff]   ;;  %v5394_v11 = vld [vmem:[%s7757_s1 + $0x11a0] ss:$16 sps:$4 sm:$0xff]   ;;  %v5405_v14 = vld [vmem:[%s7757_s1 + $0x18c] ss:$16 sps:$4 sm:$0xff]  }
 0x107   :  { %v3643_v27 = vpop.f32.mrf.mxu1  ;;  %v6763_v28 = vadd.f32 %v3641_v15, %v3601_v21  ;;  %3895 = vmatpush1.bf16.msra.mxu0 %v5340_v12  ;;  %v5397_v12 = vld [vmem:[%s7757_s1 + $0x1a8] ss:$16 sps:$4 sm:$0xff]   ;;  %v5400_v15 = vld [vmem:[%s7757_s1 + $0x1180] ss:$16 sps:$4 sm:$0xff]   ;;  %v5411_v21 = vld [vmem:[%s7757_s1 + $0x16c] ss:$16 sps:$4 sm:$0xff]  }
 0x108   :  { %3936 = vmatpush1.bf16.msra.mxu1 %v5343_v13  ;;  %v3603_v31 = vpop.f32.mrf.mxu0  ;;  %3896 = vmatprep.subr.bf16.mxu0 %v5348_v18  ;;  %v5402_v13 = vld [vmem:[%s7757_s1 + $0x1184] ss:$16 sps:$4 sm:$0xff]   ;;  %v5403_v18 = vld [vmem:[%s7757_s1 + $0x188] ss:$16 sps:$4 sm:$0xff]   ;;  %v5406_v26 = vld [vmem:[%s7757_s1 + $0x1160] ss:$16 sps:$4 sm:$0xff]  }
 0x109   :  { %v3644_v32 = vpop.f32.mrf.mxu1  ;;  %3937 = vmatprep.subr.bf16.mxu1 %v5351_v19  ;;  %v5408_v19 = vld [vmem:[%s7757_s1 + $0x1164] ss:$16 sps:$4 sm:$0xff]   ;;  %v5409_v27 = vld [vmem:[%s7757_s1 + $0x168] ss:$16 sps:$4 sm:$0xff]   ;;  %v5412_v31 = vld [vmem:[%s7757_s1 + $0x1140] ss:$16 sps:$4 sm:$0xff]  }
 0x10a   :  { %v5415_v32 = vld [vmem:[%s7757_s1 + $0x148] ss:$16 sps:$4 sm:$0xff]  }
 0x10b   :  { %3897 = vmatpush1.bf16.msra.mxu0 %v5346_v29  ;;  %v5414_v29 = vld [vmem:[%s7757_s1 + $0x1144] ss:$16 sps:$4 sm:$0xff]  }
 0x10c   :  { %3938 = vmatpush1.bf16.msra.mxu1 %v5349_v30  ;;  %3898 = vmatprep.subr.bf16.mxu0 %v5354_v47  ;;  %v5417_v30 = vld [vmem:[%s7757_s1 + $0x14c] ss:$16 sps:$4 sm:$0xff]   ;;  %v5420_v47 = vld [vmem:[%s7757_s1 + $0x1124] ss:$16 sps:$4 sm:$0xff]  }
 0x10d   :  { %3939 = vmatprep.subr.bf16.mxu1 %v5357_v33  ;;  %v5423_v33 = vld [vmem:[%s7757_s1 + $0x12c] ss:$16 sps:$4 sm:$0xff]  }
 0x10f   :  { %3899 = vmatpush1.bf16.msra.mxu0 %v5352_v34  ;;  %v5418_v34 = vld [vmem:[%s7757_s1 + $0x1120] ss:$16 sps:$4 sm:$0xff]  }
 0x110   :  { %3940 = vmatpush1.bf16.msra.mxu1 %v5355_v41  ;;  %3900 = vmatprep.subr.bf16.mxu0 %v5360_v22  ;;  %v5421_v41 = vld [vmem:[%s7757_s1 + $0x128] ss:$16 sps:$4 sm:$0xff]   ;;  %v5426_v22 = vld [vmem:[%s7757_s1 + $0x1104] ss:$16 sps:$4 sm:$0xff]  }
 0x111   :  { %3941 = vmatprep.subr.bf16.mxu1 %v5363_v23  ;;  %v5429_v23 = vld [vmem:[%s7757_s1 + $0x10c] ss:$16 sps:$4 sm:$0xff]  }
 0x113   :  { %3901 = vmatpush1.bf16.msra.mxu0 %v5358_v44  ;;  %v5424_v44 = vld [vmem:[%s7757_s1 + $0x1100] ss:$16 sps:$4 sm:$0xff]  }
 0x114   :  { %3942 = vmatpush1.bf16.msra.mxu1 %v5361_v45  ;;  %3902 = vmatprep.subr.bf16.mxu0 %v5366_v46  ;;  %v5427_v45 = vld [vmem:[%s7757_s1 + $0x108] ss:$16 sps:$4 sm:$0xff]   ;;  %v5434_v46 = vld [vmem:[%s7757_s1 + $0x2ec] ss:$16 sps:$4 sm:$0xff]  }
 0x115   :  { %3943 = vmatprep.subr.bf16.mxu1 %v5369_v48  ;;  %v5437_v48 = vld [vmem:[%s7757_s1 + $0x4ec] ss:$16 sps:$4 sm:$0xff]  }
 0x117   :  { %3903 = vmatpush1.bf16.msra.mxu0 %v5364_v49  ;;  %v5432_v49 = vld [vmem:[%s7757_s1 + $0x2e8] ss:$16 sps:$4 sm:$0xff]  }
 0x118   :  { %3944 = vmatpush1.bf16.msra.mxu1 %v5367_v50  ;;  %3904 = vmatprep.subr.bf16.mxu0 %v5372_v52  ;;  %v5435_v50 = vld [vmem:[%s7757_s1 + $0x4e8] ss:$16 sps:$4 sm:$0xff]   ;;  %v6941_v52 = vcombine.low %v6727_v1, %v6727_v1 }
 0x119   :  { %3945 = vmatprep.subr.bf16.mxu1 %v5375_v54  ;;  %v5440_v54 = vld [vmem:[%s7757_s1 + $0x2cc] ss:$16 sps:$4 sm:$0xff]   ;;  %v5441_v1 = vld [vmem:[%s7757_s1 + $0x4c8] ss:$16 sps:$4 sm:$0xff]  }
 0x11b   :  { %3905 = vmatpush1.bf16.msra.mxu0 %v5370_v55  ;;  %v5443_v55 = vld [vmem:[%s7757_s1 + $0x4cc] ss:$16 sps:$4 sm:$0xff]  }
 0x11c   :  { %3946 = vmatpush1.bf16.msra.mxu1 %v5373_v56  ;;  %3906 = vmatprep.subr.bf16.mxu0 %v5378_v57  ;;  %v5438_v56 = vld [vmem:[%s7757_s1 + $0x2c8] ss:$16 sps:$4 sm:$0xff]  }
 0x11d   :  { %3947 = vmatprep.subr.bf16.mxu1 %v5381_v58 }
 0x11f   :  { %3907 = vmatpush1.bf16.msra.mxu0 %v5376_v59 }
 0x120   :  { %3948 = vmatpush1.bf16.msra.mxu1 %v5379_v60  ;;  %3908 = vmatprep.subr.bf16.mxu0 %v5384_v61 }
 0x121   :  { %3949 = vmatprep.subr.bf16.mxu1 %v5387_v62  ;;  %v5446_v62 = vld [vmem:[%s7757_s1 + $0x2ac] ss:$16 sps:$4 sm:$0xff]  }
 0x123   :  { %3909 = vmatpush2.bf16.msra.mxu0 %v5382_v2  ;;  %v5449_v2 = vld [vmem:[%s7757_s1 + $0x4ac] ss:$16 sps:$4 sm:$0xff]  }
 0x124   :  { %3950 = vmatpush2.bf16.msra.mxu1 %v5385_v3  ;;  %3910 = vmatprep.subr.bf16.mxu0 %v5390_v35  ;;  %v5447_v35 = vld [vmem:[%s7757_s1 + $0x4a8] ss:$16 sps:$4 sm:$0xff]  }
 0x125   :  { %3951 = vmatprep.subr.bf16.mxu1 %v5393_v40 }
 0x127   :  { %3911 = vmatpush2.bf16.msra.mxu0 %v5388_v4 }
 0x128   :  { %3952 = vmatpush2.bf16.msra.mxu1 %v5391_v5  ;;  %3912 = vmatprep.subr.bf16.mxu0 %v5396_v9 }
 0x129   :  { %3953 = vmatprep.subr.bf16.mxu1 %v5399_v10  ;;  %v5452_v10 = vld [vmem:[%s7757_s1 + $0x28c] ss:$16 sps:$4 sm:$0xff]  }
 0x12b   :  { %3913 = vmatpush2.bf16.msra.mxu0 %v5394_v11  ;;  %v5453_v11 = vld [vmem:[%s7757_s1 + $0x488] ss:$16 sps:$4 sm:$0xff]  }
 0x12c   :  { %3954 = vmatpush2.bf16.msra.mxu1 %v5397_v12  ;;  %3914 = vmatprep.subr.bf16.mxu0 %v5402_v13  ;;  %v5458_v12 = vld [vmem:[%s7757_s1 + $0x26c] ss:$16 sps:$4 sm:$0xff]  }
 0x12d   :  { %3955 = vmatprep.subr.bf16.mxu1 %v5405_v14  ;;  %v5461_v13 = vld [vmem:[%s7757_s1 + $0x46c] ss:$16 sps:$4 sm:$0xff]   ;;  %v5456_v14 = vld [vmem:[%s7757_s1 + $0x268] ss:$16 sps:$4 sm:$0xff]  }
 0x12f   :  { %3915 = vmatpush2.bf16.msra.mxu0 %v5400_v15  ;;  %v5459_v15 = vld [vmem:[%s7757_s1 + $0x468] ss:$16 sps:$4 sm:$0xff]  }
 0x130   :  { %3956 = vmatpush2.bf16.msra.mxu1 %v5403_v18  ;;  %3916 = vmatprep.subr.bf16.mxu0 %v5408_v19  ;;  %v5464_v18 = vld [vmem:[%s7757_s1 + $0x24c] ss:$16 sps:$4 sm:$0xff]  }
 0x131   :  { %3957 = vmatprep.subr.bf16.mxu1 %v5411_v21  ;;  %v5467_v19 = vld [vmem:[%s7757_s1 + $0x44c] ss:$16 sps:$4 sm:$0xff]   ;;  %v5462_v21 = vld [vmem:[%s7757_s1 + $0x248] ss:$16 sps:$4 sm:$0xff]  }
 0x133   :  { %3917 = vmatpush2.bf16.msra.mxu0 %v5406_v26  ;;  %v5465_v26 = vld [vmem:[%s7757_s1 + $0x448] ss:$16 sps:$4 sm:$0xff]  }
 0x134   :  { %3958 = vmatpush2.bf16.msra.mxu1 %v5409_v27  ;;  %3918 = vmatprep.subr.bf16.mxu0 %v5414_v29  ;;  %v5470_v27 = vld [vmem:[%s7757_s1 + $0x22c] ss:$16 sps:$4 sm:$0xff]  }
 0x135   :  { %3959 = vmatprep.subr.bf16.mxu1 %v5417_v30  ;;  %v5473_v29 = vld [vmem:[%s7757_s1 + $0x42c] ss:$16 sps:$4 sm:$0xff]   ;;  %v5468_v30 = vld [vmem:[%s7757_s1 + $0x228] ss:$16 sps:$4 sm:$0xff]  }
 0x137   :  { %3919 = vmatpush2.bf16.msra.mxu0 %v5412_v31  ;;  %v5471_v31 = vld [vmem:[%s7757_s1 + $0x428] ss:$16 sps:$4 sm:$0xff]  }
 0x138   :  { %3960 = vmatpush2.bf16.msra.mxu1 %v5415_v32  ;;  %3920 = vmatprep.subr.bf16.mxu0 %v5420_v47  ;;  %v5476_v32 = vld [vmem:[%s7757_s1 + $0x20c] ss:$16 sps:$4 sm:$0xff]  }
 0x139   :  { %3961 = vmatprep.subr.bf16.mxu1 %v5423_v33  ;;  %v5479_v47 = vld [vmem:[%s7757_s1 + $0x40c] ss:$16 sps:$4 sm:$0xff]   ;;  %v5474_v33 = vld [vmem:[%s7757_s1 + $0x208] ss:$16 sps:$4 sm:$0xff]  }
 0x13b   :  { %3921 = vmatpush2.bf16.msra.mxu0 %v5418_v34  ;;  %v5477_v34 = vld [vmem:[%s7757_s1 + $0x408] ss:$16 sps:$4 sm:$0xff]  }
 0x13c   :  { %3962 = vmatpush2.bf16.msra.mxu1 %v5421_v41  ;;  %3922 = vmatprep.subr.bf16.mxu0 %v5426_v22  ;;  %v5482_v41 = vld [vmem:[%s7757_s1 + $0x3ec] ss:$16 sps:$4 sm:$0xff]  }
 0x13d   :  { %3963 = vmatprep.subr.bf16.mxu1 %v5429_v23  ;;  %v5485_v22 = vld [vmem:[%s7757_s1 + $0x5ec] ss:$16 sps:$4 sm:$0xff]   ;;  %v5480_v23 = vld [vmem:[%s7757_s1 + $0x3e8] ss:$16 sps:$4 sm:$0xff]  }
 0x13f   :  { %3923 = vmatpush2.bf16.msra.mxu0 %v5424_v44  ;;  %v5483_v44 = vld [vmem:[%s7757_s1 + $0x5e8] ss:$16 sps:$4 sm:$0xff]  }
 0x140   :  { %3964 = vmatpush2.bf16.msra.mxu1 %v5427_v45  ;;  %3974 = vmatprep.subr.bf16.mxu0 %v5434_v46  ;;  %v5488_v45 = vld [vmem:[%s7757_s1 + $0x3cc] ss:$16 sps:$4 sm:$0xff]  }
 0x141   :  { %4015 = vmatprep.subr.bf16.mxu1 %v5437_v48  ;;  %v5491_v46 = vld [vmem:[%s7757_s1 + $0x5cc] ss:$16 sps:$4 sm:$0xff]   ;;  %v5486_v48 = vld [vmem:[%s7757_s1 + $0x3c8] ss:$16 sps:$4 sm:$0xff]  }
 0x142   :  { %v3680_v57 = vpop.f32.mrf.mxu0  ;;  %3925 = vmatmul.mubr.bf16.vlgmr.msra.gmra.mxu0 %v6941_v52 }
 0x143   :  { %v3721_v58 = vpop.f32.mrf.mxu1  ;;  %3966 = vmatmul.mubr.bf16.vlgmr.msra.gmra.mxu1 %v6047_v6  ;;  %v3681_v59 = vadd.f32 %v3680_v57, %v6759_v20  ;;  %3975 = vmatpush1.bf16.msra.mxu0 %v5432_v49  ;;  %v5444_v20 = vld [vmem:[%s7757_s1 + $0x2a8] ss:$16 sps:$4 sm:$0xff]   ;;  %v5503_v57 = vld [vmem:[%s7757_s1 + $0x58c] ss:$16 sps:$4 sm:$0xff]  }
 0x144   :  { %4016 = vmatpush1.bf16.msra.mxu1 %v5435_v50  ;;  %v3682_v60 = vpop.f32.mrf.mxu0  ;;  %3976 = vmatprep.subr.bf16.mxu0 %v5440_v54  ;;  %v5489_v49 = vld [vmem:[%s7757_s1 + $0x5c8] ss:$16 sps:$4 sm:$0xff]   ;;  %v5494_v50 = vld [vmem:[%s7757_s1 + $0x3ac] ss:$16 sps:$4 sm:$0xff]  }
 0x145   :  { %v3723_v61 = vpop.f32.mrf.mxu1  ;;  %4017 = vmatprep.subr.bf16.mxu1 %v5443_v55  ;;  %v6964_v3 = vadd.f32 %v3721_v58, %v3681_v59  ;;  %v3683_v6 = vadd.f32 %v3682_v60, %v6763_v28  ;;  %4006 = vmatprep.mubr.bf16.mxu0 %v5989_v51  ;;  %v5455_v51 = vld [vmem:[%s7757_s1 + $0x48c] ss:$16 sps:$4 sm:$0xff]   ;;  %v5492_v55 = vld [vmem:[%s7757_s1 + $0x3a8] ss:$16 sps:$4 sm:$0xff]  }
 0x146   :  { %4047 = vmatprep.mubr.bf16.mxu1 %v6143_v36  ;;  %v3684_v40 = vpop.f32.mrf.mxu0  ;;  %v5450_v36 = vld [vmem:[%s7757_s1 + $0x288] ss:$16 sps:$4 sm:$0xff]   ;;  %v5497_v54 = vld [vmem:[%s7757_s1 + $0x5ac] ss:$16 sps:$4 sm:$0xff]  }
 0x147   :  { %v3725_v4 = vpop.f32.mrf.mxu1  ;;  %v6975_v5 = vadd.f32 %v3723_v61, %v3683_v6  ;;  %3977 = vmatpush1.bf16.msra.mxu0 %v5438_v56  ;;  %v5495_v56 = vld [vmem:[%s7757_s1 + $0x5a8] ss:$16 sps:$4 sm:$0xff]   ;;  %v5506_v60 = vld [vmem:[%s7757_s1 + $0x36c] ss:$16 sps:$4 sm:$0xff]  }
 0x148   :  { %4018 = vmatpush1.bf16.msra.mxu1 %v5441_v1  ;;  %v3685_v9 = vpop.f32.mrf.mxu0  ;;  %3978 = vmatprep.subr.bf16.mxu0 %v5446_v62  ;;  %v5500_v1 = vld [vmem:[%s7757_s1 + $0x38c] ss:$16 sps:$4 sm:$0xff]   ;;  %v5498_v58 = vld [vmem:[%s7757_s1 + $0x388] ss:$16 sps:$4 sm:$0xff]  }
 0x149   :  { %v3726_v28 = vpop.f32.mrf.mxu1  ;;  %4019 = vmatprep.subr.bf16.mxu1 %v5449_v2  ;;  %v5501_v59 = vld [vmem:[%s7757_s1 + $0x588] ss:$16 sps:$4 sm:$0xff]   ;;  %v5509_v61 = vld [vmem:[%s7757_s1 + $0x56c] ss:$16 sps:$4 sm:$0xff]  }
 0x14a   :  { %v5504_v62 = vld [vmem:[%s7757_s1 + $0x368] ss:$16 sps:$4 sm:$0xff]   ;;  %v5512_v6 = vld [vmem:[%s7757_s1 + $0x34c] ss:$16 sps:$4 sm:$0xff]  }
 0x14b   :  { %3979 = vmatpush1.bf16.msra.mxu0 %v5444_v20  ;;  %v5507_v2 = vld [vmem:[%s7757_s1 + $0x568] ss:$16 sps:$4 sm:$0xff]   ;;  %v5515_v20 = vld [vmem:[%s7757_s1 + $0x54c] ss:$16 sps:$4 sm:$0xff]  }
 0x14c   :  { %4020 = vmatpush1.bf16.msra.mxu1 %v5447_v35  ;;  %3980 = vmatprep.subr.bf16.mxu0 %v5452_v10  ;;  %v5510_v35 = vld [vmem:[%s7757_s1 + $0x348] ss:$16 sps:$4 sm:$0xff]   ;;  %v5518_v4 = vld [vmem:[%s7757_s1 + $0x32c] ss:$16 sps:$4 sm:$0xff]  }
 0x14d   :  { %4021 = vmatprep.subr.bf16.mxu1 %v5455_v51  ;;  %v5513_v40 = vld [vmem:[%s7757_s1 + $0x548] ss:$16 sps:$4 sm:$0xff]   ;;  %v5521_v9 = vld [vmem:[%s7757_s1 + $0x52c] ss:$16 sps:$4 sm:$0xff]  }
 0x14e   :  { %v5516_v28 = vld [vmem:[%s7757_s1 + $0x328] ss:$16 sps:$4 sm:$0xff]   ;;  %v5524_v51 = vld [vmem:[%s7757_s1 + $0x30c] ss:$16 sps:$4 sm:$0xff]  }
 0x14f   :  { %3981 = vmatpush1.bf16.msra.mxu0 %v5450_v36  ;;  %v5519_v10 = vld [vmem:[%s7757_s1 + $0x528] ss:$16 sps:$4 sm:$0xff]   ;;  %v5527_v36 = vld [vmem:[%s7757_s1 + $0x50c] ss:$16 sps:$4 sm:$0xff]  }
 0x150   :  { %4022 = vmatpush1.bf16.msra.mxu1 %v5453_v11  ;;  %3982 = vmatprep.subr.bf16.mxu0 %v5458_v12  ;;  %v5522_v11 = vld [vmem:[%s7757_s1 + $0x308] ss:$16 sps:$4 sm:$0xff]  }
 0x151   :  { %4023 = vmatprep.subr.bf16.mxu1 %v5461_v13  ;;  %v5525_v12 = vld [vmem:[%s7757_s1 + $0x508] ss:$16 sps:$4 sm:$0xff]   ;;  %v5530_v13 = vld [vmem:[%s7757_s1 + $0x6ec] ss:$16 sps:$4 sm:$0xff]  }
 0x153   :  { %3983 = vmatpush1.bf16.msra.mxu0 %v5456_v14  ;;  %v5533_v14 = vld [vmem:[%s7757_s1 + $0x8ec] ss:$16 sps:$4 sm:$0xff]  }
 0x154   :  { %4024 = vmatpush1.bf16.msra.mxu1 %v5459_v15  ;;  %3984 = vmatprep.subr.bf16.mxu0 %v5464_v18  ;;  %v5528_v15 = vld [vmem:[%s7757_s1 + $0x6e8] ss:$16 sps:$4 sm:$0xff]  }
 0x155   :  { %4025 = vmatprep.subr.bf16.mxu1 %v5467_v19  ;;  %v5531_v18 = vld [vmem:[%s7757_s1 + $0x8e8] ss:$16 sps:$4 sm:$0xff]   ;;  %v5536_v19 = vld [vmem:[%s7757_s1 + $0x6cc] ss:$16 sps:$4 sm:$0xff]  }
 0x157   :  { %3985 = vmatpush1.bf16.msra.mxu0 %v5462_v21  ;;  %v5539_v21 = vld [vmem:[%s7757_s1 + $0x8cc] ss:$16 sps:$4 sm:$0xff]  }
 0x158   :  { %4026 = vmatpush1.bf16.msra.mxu1 %v5465_v26  ;;  %3986 = vmatprep.subr.bf16.mxu0 %v5470_v27 }
 0x159   :  { %4027 = vmatprep.subr.bf16.mxu1 %v5473_v29 }
 0x15b   :  { %3987 = vmatpush1.bf16.msra.mxu0 %v5468_v30  ;;  %v5534_v30 = vld [vmem:[%s7757_s1 + $0x6c8] ss:$16 sps:$4 sm:$0xff]  }
 0x15c   :  { %4028 = vmatpush1.bf16.msra.mxu1 %v5471_v31  ;;  %3988 = vmatprep.subr.bf16.mxu0 %v5476_v32  ;;  %v5537_v31 = vld [vmem:[%s7757_s1 + $0x8c8] ss:$16 sps:$4 sm:$0xff]  }
 0x15d   :  { %4029 = vmatprep.subr.bf16.mxu1 %v5479_v47 }
 0x15f   :  { %3989 = vmatpush1.bf16.msra.mxu0 %v5474_v33 }
 0x160   :  { %4030 = vmatpush1.bf16.msra.mxu1 %v5477_v34  ;;  %3990 = vmatprep.subr.bf16.mxu0 %v5482_v41 }
 0x161   :  { %4031 = vmatprep.subr.bf16.mxu1 %v5485_v22 }
 0x163   :  { %3991 = vmatpush2.bf16.msra.mxu0 %v5480_v23  ;;  %v5540_v23 = vld [vmem:[%s7757_s1 + $0x6a8] ss:$16 sps:$4 sm:$0xff]  }
 0x164   :  { %4032 = vmatpush2.bf16.msra.mxu1 %v5483_v44  ;;  %3992 = vmatprep.subr.bf16.mxu0 %v5488_v45  ;;  %v5543_v44 = vld [vmem:[%s7757_s1 + $0x8a8] ss:$16 sps:$4 sm:$0xff]  }
 0x165   :  { %4033 = vmatprep.subr.bf16.mxu1 %v5491_v46  ;;  %v5546_v46 = vld [vmem:[%s7757_s1 + $0x688] ss:$16 sps:$4 sm:$0xff]  }
 0x167   :  { %3993 = vmatpush2.bf16.msra.mxu0 %v5486_v48  ;;  %v5549_v48 = vld [vmem:[%s7757_s1 + $0x888] ss:$16 sps:$4 sm:$0xff]  }
 0x168   :  { %4034 = vmatpush2.bf16.msra.mxu1 %v5489_v49  ;;  %3994 = vmatprep.subr.bf16.mxu0 %v5494_v50  ;;  %v5554_v49 = vld [vmem:[%s7757_s1 + $0x66c] ss:$16 sps:$4 sm:$0xff]  }
 0x169   :  { %4035 = vmatprep.subr.bf16.mxu1 %v5497_v54  ;;  %v5557_v50 = vld [vmem:[%s7757_s1 + $0x86c] ss:$16 sps:$4 sm:$0xff]   ;;  %v5552_v54 = vld [vmem:[%s7757_s1 + $0x668] ss:$16 sps:$4 sm:$0xff]  }
 0x16b   :  { %3995 = vmatpush2.bf16.msra.mxu0 %v5492_v55  ;;  %v5555_v55 = vld [vmem:[%s7757_s1 + $0x868] ss:$16 sps:$4 sm:$0xff]  }
 0x16c   :  { %4036 = vmatpush2.bf16.msra.mxu1 %v5495_v56  ;;  %3996 = vmatprep.subr.bf16.mxu0 %v5500_v1  ;;  %v5560_v56 = vld [vmem:[%s7757_s1 + $0x64c] ss:$16 sps:$4 sm:$0xff]  }
 0x16d   :  { %4037 = vmatprep.subr.bf16.mxu1 %v5503_v57  ;;  %v5563_v1 = vld [vmem:[%s7757_s1 + $0x84c] ss:$16 sps:$4 sm:$0xff]   ;;  %v5558_v57 = vld [vmem:[%s7757_s1 + $0x648] ss:$16 sps:$4 sm:$0xff]  }
 0x16f   :  { %3997 = vmatpush2.bf16.msra.mxu0 %v5498_v58  ;;  %v5561_v58 = vld [vmem:[%s7757_s1 + $0x848] ss:$16 sps:$4 sm:$0xff]  }
 0x170   :  { %4038 = vmatpush2.bf16.msra.mxu1 %v5501_v59  ;;  %3998 = vmatprep.subr.bf16.mxu0 %v5506_v60  ;;  %v5566_v59 = vld [vmem:[%s7757_s1 + $0x62c] ss:$16 sps:$4 sm:$0xff]  }
 0x171   :  { %4039 = vmatprep.subr.bf16.mxu1 %v5509_v61  ;;  %v5569_v60 = vld [vmem:[%s7757_s1 + $0x82c] ss:$16 sps:$4 sm:$0xff]   ;;  %v5564_v61 = vld [vmem:[%s7757_s1 + $0x628] ss:$16 sps:$4 sm:$0xff]  }
 0x173   :  { %3999 = vmatpush2.bf16.msra.mxu0 %v5504_v62  ;;  %v5567_v62 = vld [vmem:[%s7757_s1 + $0x828] ss:$16 sps:$4 sm:$0xff]  }
 0x174   :  { %4040 = vmatpush2.bf16.msra.mxu1 %v5507_v2  ;;  %4000 = vmatprep.subr.bf16.mxu0 %v5512_v6  ;;  %v5572_v2 = vld [vmem:[%s7757_s1 + $0x60c] ss:$16 sps:$4 sm:$0xff]  }
 0x175   :  { %4041 = vmatprep.subr.bf16.mxu1 %v5515_v20  ;;  %v5575_v6 = vld [vmem:[%s7757_s1 + $0x80c] ss:$16 sps:$4 sm:$0xff]   ;;  %v5570_v20 = vld [vmem:[%s7757_s1 + $0x608] ss:$16 sps:$4 sm:$0xff]  }
 0x177   :  { %4001 = vmatpush2.bf16.msra.mxu0 %v5510_v35  ;;  %v5573_v35 = vld [vmem:[%s7757_s1 + $0x808] ss:$16 sps:$4 sm:$0xff]  }
 0x178   :  { %4042 = vmatpush2.bf16.msra.mxu1 %v5513_v40  ;;  %4002 = vmatprep.subr.bf16.mxu0 %v5518_v4  ;;  %v5578_v40 = vld [vmem:[%s7757_s1 + $0x7ec] ss:$16 sps:$4 sm:$0xff]  }
 0x179   :  { %4043 = vmatprep.subr.bf16.mxu1 %v5521_v9  ;;  %v5581_v4 = vld [vmem:[%s7757_s1 + $0x9ec] ss:$16 sps:$4 sm:$0xff]   ;;  %v5576_v9 = vld [vmem:[%s7757_s1 + $0x7e8] ss:$16 sps:$4 sm:$0xff]  }
 0x17b   :  { %4003 = vmatpush2.bf16.msra.mxu0 %v5516_v28  ;;  %v5579_v28 = vld [vmem:[%s7757_s1 + $0x9e8] ss:$16 sps:$4 sm:$0xff]  }
 0x17c   :  { %4044 = vmatpush2.bf16.msra.mxu1 %v5519_v10  ;;  %4004 = vmatprep.subr.bf16.mxu0 %v5524_v51  ;;  %v5584_v10 = vld [vmem:[%s7757_s1 + $0x7cc] ss:$16 sps:$4 sm:$0xff]  }
 0x17d   :  { %4045 = vmatprep.subr.bf16.mxu1 %v5527_v36  ;;  %v5587_v51 = vld [vmem:[%s7757_s1 + $0x9cc] ss:$16 sps:$4 sm:$0xff]   ;;  %v5582_v36 = vld [vmem:[%s7757_s1 + $0x7c8] ss:$16 sps:$4 sm:$0xff]  }
 0x17f   :  { %4005 = vmatpush2.bf16.msra.mxu0 %v5522_v11  ;;  %v5585_v11 = vld [vmem:[%s7757_s1 + $0x9c8] ss:$16 sps:$4 sm:$0xff]  }
 0x180   :  { %4046 = vmatpush2.bf16.msra.mxu1 %v5525_v12  ;;  %4056 = vmatprep.subr.bf16.mxu0 %v5530_v13  ;;  %v5590_v12 = vld [vmem:[%s7757_s1 + $0x7ac] ss:$16 sps:$4 sm:$0xff]  }
 0x181   :  { %4097 = vmatprep.subr.bf16.mxu1 %v5533_v14  ;;  %v5593_v13 = vld [vmem:[%s7757_s1 + $0x9ac] ss:$16 sps:$4 sm:$0xff]   ;;  %v5588_v14 = vld [vmem:[%s7757_s1 + $0x7a8] ss:$16 sps:$4 sm:$0xff]  }
 0x182   :  { %v3762_v26 = vpop.f32.mrf.mxu0  ;;  %4007 = vmatmul.mubr.bf16.vlgmr.msra.gmra.mxu0 %v6049_v7  ;;  %v5542_v7 = vld [vmem:[%s7757_s1 + $0x6ac] ss:$16 sps:$4 sm:$0xff]  }
 0x183   :  { %v3803_v27 = vpop.f32.mrf.mxu1  ;;  %4048 = vmatmul.mubr.bf16.vlgmr.msra.gmra.mxu1 %v6267_v16  ;;  %v3763_v29 = vadd.f32 %v3762_v26, %v6964_v3  ;;  %4057 = vmatpush1.bf16.msra.mxu0 %v5528_v15  ;;  %v5545_v16 = vld [vmem:[%s7757_s1 + $0x8ac] ss:$16 sps:$4 sm:$0xff]   ;;  %v5591_v15 = vld [vmem:[%s7757_s1 + $0x9a8] ss:$16 sps:$4 sm:$0xff]  }
 0x184   :  { %4098 = vmatpush1.bf16.msra.mxu1 %v5531_v18  ;;  %v3764_v32 = vpop.f32.mrf.mxu0  ;;  %4058 = vmatprep.subr.bf16.mxu0 %v5536_v19  ;;  %v5596_v18 = vld [vmem:[%s7757_s1 + $0x78c] ss:$16 sps:$4 sm:$0xff]   ;;  %v5597_v26 = vld [vmem:[%s7757_s1 + $0x988] ss:$16 sps:$4 sm:$0xff]  }
 0x185   :  { %v3805_v47 = vpop.f32.mrf.mxu1  ;;  %4099 = vmatprep.subr.bf16.mxu1 %v5539_v21  ;;  %v7166_v3 = vadd.f32 %v3803_v27, %v3763_v29  ;;  %v3765_v33 = vadd.f32 %v3764_v32, %v6975_v5  ;;  %4088 = vmatprep.mubr.bf16.mxu0 %v6147_v37  ;;  %v5548_v37 = vld [vmem:[%s7757_s1 + $0x68c] ss:$16 sps:$4 sm:$0xff]   ;;  %v5594_v21 = vld [vmem:[%s7757_s1 + $0x788] ss:$16 sps:$4 sm:$0xff]  }
 0x186   :  { %4129 = vmatprep.mubr.bf16.mxu1 %v6297_v24  ;;  %v3766_v34 = vpop.f32.mrf.mxu0  ;;  %v5551_v24 = vld [vmem:[%s7757_s1 + $0x88c] ss:$16 sps:$4 sm:$0xff]  }
 0x187   :  { %v3807_v41 = vpop.f32.mrf.mxu1  ;;  %v7171_v22 = vadd.f32 %v3805_v47, %v3765_v33  ;;  %4059 = vmatpush1.bf16.msra.mxu0 %v5534_v30  ;;  %v5599_v19 = vld [vmem:[%s7757_s1 + $0x98c] ss:$16 sps:$4 sm:$0xff]   ;;  %v5600_v30 = vld [vmem:[%s7757_s1 + $0x768] ss:$16 sps:$4 sm:$0xff]  }
 0x188   :  { %4100 = vmatpush1.bf16.msra.mxu1 %v5537_v31  ;;  %v3767_v45 = vpop.f32.mrf.mxu0  ;;  %4060 = vmatprep.subr.bf16.mxu0 %v5542_v7  ;;  %v5602_v27 = vld [vmem:[%s7757_s1 + $0x76c] ss:$16 sps:$4 sm:$0xff]   ;;  %v5603_v31 = vld [vmem:[%s7757_s1 + $0x968] ss:$16 sps:$4 sm:$0xff]  }
 0x189   :  { %v3808_v5 = vpop.f32.mrf.mxu1  ;;  %4101 = vmatprep.subr.bf16.mxu1 %v5545_v16  ;;  %v5605_v29 = vld [vmem:[%s7757_s1 + $0x96c] ss:$16 sps:$4 sm:$0xff]   ;;  %v5606_v7 = vld [vmem:[%s7757_s1 + $0x748] ss:$16 sps:$4 sm:$0xff]  }
 0x18a   :  { %v5608_v32 = vld [vmem:[%s7757_s1 + $0x74c] ss:$16 sps:$4 sm:$0xff]   ;;  %v5609_v16 = vld [vmem:[%s7757_s1 + $0x948] ss:$16 sps:$4 sm:$0xff]  }
 0x18b   :  { %4061 = vmatpush1.bf16.msra.mxu0 %v5540_v23  ;;  %v5611_v47 = vld [vmem:[%s7757_s1 + $0x94c] ss:$16 sps:$4 sm:$0xff]   ;;  %v5612_v41 = vld [vmem:[%s7757_s1 + $0x728] ss:$16 sps:$4 sm:$0xff]  }
 0x18c   :  { %4102 = vmatpush1.bf16.msra.mxu1 %v5543_v44  ;;  %4062 = vmatprep.subr.bf16.mxu0 %v5548_v37  ;;  %v5614_v33 = vld [vmem:[%s7757_s1 + $0x72c] ss:$16 sps:$4 sm:$0xff]   ;;  %v5615_v23 = vld [vmem:[%s7757_s1 + $0x928] ss:$16 sps:$4 sm:$0xff]  }
 0x18d   :  { %4103 = vmatprep.subr.bf16.mxu1 %v5551_v24  ;;  %v5617_v34 = vld [vmem:[%s7757_s1 + $0x92c] ss:$16 sps:$4 sm:$0xff]   ;;  %v5618_v5 = vld [vmem:[%s7757_s1 + $0x708] ss:$16 sps:$4 sm:$0xff]  }
 0x18e   :  { %v5620_v44 = vld [vmem:[%s7757_s1 + $0x70c] ss:$16 sps:$4 sm:$0xff]   ;;  %v5621_v37 = vld [vmem:[%s7757_s1 + $0x908] ss:$16 sps:$4 sm:$0xff]  }
 0x18f   :  { %4063 = vmatpush1.bf16.msra.mxu0 %v5546_v46  ;;  %v5623_v45 = vld [vmem:[%s7757_s1 + $0x90c] ss:$16 sps:$4 sm:$0xff]  }
 0x190   :  { %4104 = vmatpush1.bf16.msra.mxu1 %v5549_v48  ;;  %4064 = vmatprep.subr.bf16.mxu0 %v5554_v49  ;;  %v5626_v24 = vld [vmem:[%s7757_s1 + $0xaec] ss:$16 sps:$4 sm:$0xff]   ;;  %v5624_v48 = vld [vmem:[%s7757_s1 + $0xae8] ss:$16 sps:$4 sm:$0xff]  }
 0x191   :  { %4105 = vmatprep.subr.bf16.mxu1 %v5557_v50  ;;  %v5629_v46 = vld [vmem:[%s7757_s1 + $0xcec] ss:$16 sps:$4 sm:$0xff]   ;;  %v5627_v49 = vld [vmem:[%s7757_s1 + $0xce8] ss:$16 sps:$4 sm:$0xff]  }
 0x192   :  { %v5632_v50 = vld [vmem:[%s7757_s1 + $0xacc] ss:$16 sps:$4 sm:$0xff]  }
 0x193   :  { %4065 = vmatpush1.bf16.msra.mxu0 %v5552_v54  ;;  %v5635_v54 = vld [vmem:[%s7757_s1 + $0xccc] ss:$16 sps:$4 sm:$0xff]  }
 0x194   :  { %4106 = vmatpush1.bf16.msra.mxu1 %v5555_v55  ;;  %4066 = vmatprep.subr.bf16.mxu0 %v5560_v56 }
 0x195   :  { %4107 = vmatprep.subr.bf16.mxu1 %v5563_v1 }
 0x197   :  { %4067 = vmatpush1.bf16.msra.mxu0 %v5558_v57  ;;  %v5630_v57 = vld [vmem:[%s7757_s1 + $0xac8] ss:$16 sps:$4 sm:$0xff]  }
 0x198   :  { %4108 = vmatpush1.bf16.msra.mxu1 %v5561_v58  ;;  %4068 = vmatprep.subr.bf16.mxu0 %v5566_v59  ;;  %v5633_v58 = vld [vmem:[%s7757_s1 + $0xcc8] ss:$16 sps:$4 sm:$0xff]  }
 0x199   :  { %4109 = vmatprep.subr.bf16.mxu1 %v5569_v60 }
 0x19b   :  { %4069 = vmatpush1.bf16.msra.mxu0 %v5564_v61 }
 0x19c   :  { %4110 = vmatpush1.bf16.msra.mxu1 %v5567_v62  ;;  %4070 = vmatprep.subr.bf16.mxu0 %v5572_v2  ;;  %v5636_v2 = vld [vmem:[%s7757_s1 + $0xaa8] ss:$16 sps:$4 sm:$0xff]  }
 0x19d   :  { %4111 = vmatprep.subr.bf16.mxu1 %v5575_v6  ;;  %v5639_v6 = vld [vmem:[%s7757_s1 + $0xca8] ss:$16 sps:$4 sm:$0xff]  }
 0x19f   :  { %4071 = vmatpush1.bf16.msra.mxu0 %v5570_v20 }
 0x1a0   :  { %4112 = vmatpush1.bf16.msra.mxu1 %v5573_v35  ;;  %4072 = vmatprep.subr.bf16.mxu0 %v5578_v40  ;;  %v5642_v40 = vld [vmem:[%s7757_s1 + $0xa88] ss:$16 sps:$4 sm:$0xff]  }
 0x1a1   :  { %4113 = vmatprep.subr.bf16.mxu1 %v5581_v4  ;;  %v5645_v4 = vld [vmem:[%s7757_s1 + $0xc88] ss:$16 sps:$4 sm:$0xff]  }
 0x1a3   :  { %4073 = vmatpush2.bf16.msra.mxu0 %v5576_v9  ;;  %v5650_v9 = vld [vmem:[%s7757_s1 + $0xa6c] ss:$16 sps:$4 sm:$0xff]  }
 0x1a4   :  { %4114 = vmatpush2.bf16.msra.mxu1 %v5579_v28  ;;  %4074 = vmatprep.subr.bf16.mxu0 %v5584_v10  ;;  %v5653_v28 = vld [vmem:[%s7757_s1 + $0xc6c] ss:$16 sps:$4 sm:$0xff]   ;;  %v5648_v10 = vld [vmem:[%s7757_s1 + $0xa68] ss:$16 sps:$4 sm:$0xff]  }
 0x1a5   :  { %4115 = vmatprep.subr.bf16.mxu1 %v5587_v51  ;;  %v5651_v51 = vld [vmem:[%s7757_s1 + $0xc68] ss:$16 sps:$4 sm:$0xff]  }
 0x1a7   :  { %4075 = vmatpush2.bf16.msra.mxu0 %v5582_v36  ;;  %v5656_v36 = vld [vmem:[%s7757_s1 + $0xa4c] ss:$16 sps:$4 sm:$0xff]  }
 0x1a8   :  { %4116 = vmatpush2.bf16.msra.mxu1 %v5585_v11  ;;  %4076 = vmatprep.subr.bf16.mxu0 %v5590_v12  ;;  %v5659_v11 = vld [vmem:[%s7757_s1 + $0xc4c] ss:$16 sps:$4 sm:$0xff]   ;;  %v5654_v12 = vld [vmem:[%s7757_s1 + $0xa48] ss:$16 sps:$4 sm:$0xff]  }
 0x1a9   :  { %4117 = vmatprep.subr.bf16.mxu1 %v5593_v13  ;;  %v5657_v13 = vld [vmem:[%s7757_s1 + $0xc48] ss:$16 sps:$4 sm:$0xff]  }
 0x1ab   :  { %4077 = vmatpush2.bf16.msra.mxu0 %v5588_v14  ;;  %v5662_v14 = vld [vmem:[%s7757_s1 + $0xa2c] ss:$16 sps:$4 sm:$0xff]  }
 0x1ac   :  { %4118 = vmatpush2.bf16.msra.mxu1 %v5591_v15  ;;  %4078 = vmatprep.subr.bf16.mxu0 %v5596_v18  ;;  %v5665_v15 = vld [vmem:[%s7757_s1 + $0xc2c] ss:$16 sps:$4 sm:$0xff]   ;;  %v5660_v18 = vld [vmem:[%s7757_s1 + $0xa28] ss:$16 sps:$4 sm:$0xff]  }
 0x1ad   :  { %4119 = vmatprep.subr.bf16.mxu1 %v5599_v19  ;;  %v5663_v19 = vld [vmem:[%s7757_s1 + $0xc28] ss:$16 sps:$4 sm:$0xff]  }
 0x1af   :  { %4079 = vmatpush2.bf16.msra.mxu0 %v5594_v21  ;;  %v5668_v21 = vld [vmem:[%s7757_s1 + $0xa0c] ss:$16 sps:$4 sm:$0xff]  }
 0x1b0   :  { %4120 = vmatpush2.bf16.msra.mxu1 %v5597_v26  ;;  %4080 = vmatprep.subr.bf16.mxu0 %v5602_v27  ;;  %v5671_v26 = vld [vmem:[%s7757_s1 + $0xc0c] ss:$16 sps:$4 sm:$0xff]   ;;  %v5666_v27 = vld [vmem:[%s7757_s1 + $0xa08] ss:$16 sps:$4 sm:$0xff]  }
 0x1b1   :  { %4121 = vmatprep.subr.bf16.mxu1 %v5605_v29  ;;  %v5669_v29 = vld [vmem:[%s7757_s1 + $0xc08] ss:$16 sps:$4 sm:$0xff]  }
 0x1b3   :  { %4081 = vmatpush2.bf16.msra.mxu0 %v5600_v30  ;;  %v5674_v30 = vld [vmem:[%s7757_s1 + $0xbec] ss:$16 sps:$4 sm:$0xff]  }
 0x1b4   :  { %4122 = vmatpush2.bf16.msra.mxu1 %v5603_v31  ;;  %4082 = vmatprep.subr.bf16.mxu0 %v5608_v32  ;;  %v5677_v31 = vld [vmem:[%s7757_s1 + $0xdec] ss:$16 sps:$4 sm:$0xff]   ;;  %v5672_v32 = vld [vmem:[%s7757_s1 + $0xbe8] ss:$16 sps:$4 sm:$0xff]  }
 0x1b5   :  { %4123 = vmatprep.subr.bf16.mxu1 %v5611_v47  ;;  %v5675_v47 = vld [vmem:[%s7757_s1 + $0xde8] ss:$16 sps:$4 sm:$0xff]  }
 0x1b7   :  { %4083 = vmatpush2.bf16.msra.mxu0 %v5606_v7  ;;  %v5680_v7 = vld [vmem:[%s7757_s1 + $0xbcc] ss:$16 sps:$4 sm:$0xff]  }
 0x1b8   :  { %4124 = vmatpush2.bf16.msra.mxu1 %v5609_v16  ;;  %4084 = vmatprep.subr.bf16.mxu0 %v5614_v33  ;;  %v5683_v16 = vld [vmem:[%s7757_s1 + $0xdcc] ss:$16 sps:$4 sm:$0xff]   ;;  %v5678_v33 = vld [vmem:[%s7757_s1 + $0xbc8] ss:$16 sps:$4 sm:$0xff]  }
 0x1b9   :  { %4125 = vmatprep.subr.bf16.mxu1 %v5617_v34  ;;  %v5681_v34 = vld [vmem:[%s7757_s1 + $0xdc8] ss:$16 sps:$4 sm:$0xff]  }
 0x1bb   :  { %4085 = vmatpush2.bf16.msra.mxu0 %v5612_v41  ;;  %v5686_v41 = vld [vmem:[%s7757_s1 + $0xbac] ss:$16 sps:$4 sm:$0xff]  }
 0x1bc   :  { %4126 = vmatpush2.bf16.msra.mxu1 %v5615_v23  ;;  %4086 = vmatprep.subr.bf16.mxu0 %v5620_v44  ;;  %v5689_v23 = vld [vmem:[%s7757_s1 + $0xdac] ss:$16 sps:$4 sm:$0xff]   ;;  %v5684_v44 = vld [vmem:[%s7757_s1 + $0xba8] ss:$16 sps:$4 sm:$0xff]  }
 0x1bd   :  { %4127 = vmatprep.subr.bf16.mxu1 %v5623_v45  ;;  %v5687_v45 = vld [vmem:[%s7757_s1 + $0xda8] ss:$16 sps:$4 sm:$0xff]  }
 0x1bf   :  { %4087 = vmatpush2.bf16.msra.mxu0 %v5618_v5  ;;  %v5692_v5 = vld [vmem:[%s7757_s1 + $0xb8c] ss:$16 sps:$4 sm:$0xff]  }
 0x1c0   :  { %4128 = vmatpush2.bf16.msra.mxu1 %v5621_v37  ;;  %4138 = vmatprep.subr.bf16.mxu0 %v5626_v24  ;;  %v5695_v37 = vld [vmem:[%s7757_s1 + $0xd8c] ss:$16 sps:$4 sm:$0xff]   ;;  %v5690_v24 = vld [vmem:[%s7757_s1 + $0xb88] ss:$16 sps:$4 sm:$0xff]  }
 0x1c1   :  { %4179 = vmatprep.subr.bf16.mxu1 %v5629_v46  ;;  %v5693_v46 = vld [vmem:[%s7757_s1 + $0xd88] ss:$16 sps:$4 sm:$0xff]  }
 0x1c2   :  { %v3844_v55 = vpop.f32.mrf.mxu0  ;;  %4089 = vmatmul.mubr.bf16.vlgmr.msra.gmra.mxu0 %v6271_v17  ;;  %v5638_v17 = vld [vmem:[%s7757_s1 + $0xaac] ss:$16 sps:$4 sm:$0xff]  }
 0x1c3   :  { %v3885_v56 = vpop.f32.mrf.mxu1  ;;  %4130 = vmatmul.mubr.bf16.vlgmr.msra.gmra.mxu1 %v6497_v38  ;;  %v3845_v1 = vadd.f32 %v3844_v55, %v7166_v3  ;;  %4139 = vmatpush1.bf16.msra.mxu0 %v5624_v48  ;;  %v5641_v38 = vld [vmem:[%s7757_s1 + $0xcac] ss:$16 sps:$4 sm:$0xff]  }
 0x1c4   :  { %4180 = vmatpush1.bf16.msra.mxu1 %v5627_v49  ;;  %v7362_v59 = vpop.f32.mrf.mxu0  ;;  %4140 = vmatprep.subr.bf16.mxu0 %v5632_v50  ;;  %v5698_v48 = vld [vmem:[%s7757_s1 + $0xb6c] ss:$16 sps:$4 sm:$0xff]   ;;  %v5696_v50 = vld [vmem:[%s7757_s1 + $0xb68] ss:$16 sps:$4 sm:$0xff]  }
 0x1c5   :  { %v7364_v60 = vpop.f32.mrf.mxu1  ;;  %4181 = vmatprep.subr.bf16.mxu1 %v5635_v54  ;;  %v7372_v3 = vadd.f32 %v3885_v56, %v3845_v1  ;;  %4170 = vmatprep.mubr.bf16.mxu0 %v6301_v25  ;;  %v5644_v25 = vld [vmem:[%s7757_s1 + $0xa8c] ss:$16 sps:$4 sm:$0xff]   ;;  %v5699_v54 = vld [vmem:[%s7757_s1 + $0xd68] ss:$16 sps:$4 sm:$0xff]  }
 0x1c6   :  { %4211 = vmatprep.mubr.bf16.mxu1 %v6519_v42  ;;  %v3848_v61 = vpop.f32.mrf.mxu0  ;;  %v5647_v42 = vld [vmem:[%s7757_s1 + $0xc8c] ss:$16 sps:$4 sm:$0xff]   ;;  %v5702_v1 = vld [vmem:[%s7757_s1 + $0xb48] ss:$16 sps:$4 sm:$0xff]  }
 0x1c7   :  { %v3889_v62 = vpop.f32.mrf.mxu1  ;;  %4141 = vmatpush1.bf16.msra.mxu0 %v5630_v57  ;;  %v5701_v49 = vld [vmem:[%s7757_s1 + $0xd6c] ss:$16 sps:$4 sm:$0xff]   ;;  %v5705_v57 = vld [vmem:[%s7757_s1 + $0xd48] ss:$16 sps:$4 sm:$0xff]  }
 0x1c8   :  { %4182 = vmatpush1.bf16.msra.mxu1 %v5633_v58  ;;  %v3849_v20 = vpop.f32.mrf.mxu0  ;;  %4142 = vmatprep.subr.bf16.mxu0 %v5638_v17  ;;  %v5704_v55 = vld [vmem:[%s7757_s1 + $0xb4c] ss:$16 sps:$4 sm:$0xff]   ;;  %v5711_v61 = vld [vmem:[%s7757_s1 + $0xd28] ss:$16 sps:$4 sm:$0xff]  }
 0x1c9   :  { %v3890_v35 = vpop.f32.mrf.mxu1  ;;  %4183 = vmatprep.subr.bf16.mxu1 %v5641_v38  ;;  %v5707_v56 = vld [vmem:[%s7757_s1 + $0xd4c] ss:$16 sps:$4 sm:$0xff]   ;;  %v5708_v38 = vld [vmem:[%s7757_s1 + $0xb28] ss:$16 sps:$4 sm:$0xff]  }
 0x1ca   :  { %v5710_v58 = vld [vmem:[%s7757_s1 + $0xb2c] ss:$16 sps:$4 sm:$0xff]   ;;  %v5717_v20 = vld [vmem:[%s7757_s1 + $0xd08] ss:$16 sps:$4 sm:$0xff]  }
 0x1cb   :  { %4143 = vmatpush1.bf16.msra.mxu0 %v5636_v2  ;;  %v5713_v17 = vld [vmem:[%s7757_s1 + $0xd2c] ss:$16 sps:$4 sm:$0xff]  }
 0x1cc   :  { %4184 = vmatpush1.bf16.msra.mxu1 %v5639_v6  ;;  %4144 = vmatprep.subr.bf16.mxu0 %v5644_v25  ;;  %v5716_v62 = vld [vmem:[%s7757_s1 + $0xb0c] ss:$16 sps:$4 sm:$0xff]   ;;  %v5714_v6 = vld [vmem:[%s7757_s1 + $0xb08] ss:$16 sps:$4 sm:$0xff]  }
 0x1cd   :  { %4185 = vmatprep.subr.bf16.mxu1 %v5647_v42  ;;  %v5719_v2 = vld [vmem:[%s7757_s1 + $0xd0c] ss:$16 sps:$4 sm:$0xff]   ;;  %v3847_v42 = vadd.f32 %v7362_v59, %v7171_v22 }
 0x1ce   :  { %v5722_v35 = vld [vmem:[%s7757_s1 + $0xeec] ss:$16 sps:$4 sm:$0xff]  }
 0x1cf   :  { %4145 = vmatpush1.bf16.msra.mxu0 %v5642_v40  ;;  %v5725_v25 = vld [vmem:[%s7757_s1 + $0x10ec] ss:$16 sps:$4 sm:$0xff]   ;;  %v5720_v40 = vld [vmem:[%s7757_s1 + $0xee8] ss:$16 sps:$4 sm:$0xff]  }
 0x1d0   :  { %4186 = vmatpush1.bf16.msra.mxu1 %v5645_v4  ;;  %4146 = vmatprep.subr.bf16.mxu0 %v5650_v9  ;;  %v5723_v4 = vld [vmem:[%s7757_s1 + $0x10e8] ss:$16 sps:$4 sm:$0xff]   ;;  %v5728_v9 = vld [vmem:[%s7757_s1 + $0xecc] ss:$16 sps:$4 sm:$0xff]  }
 0x1d1   :  { %4187 = vmatprep.subr.bf16.mxu1 %v5653_v28  ;;  %v5731_v22 = vld [vmem:[%s7757_s1 + $0x10cc] ss:$16 sps:$4 sm:$0xff]  }
 0x1d3   :  { %4147 = vmatpush1.bf16.msra.mxu0 %v5648_v10  ;;  %v3888_v10 = vadd.f32 %v7364_v60, %v3847_v42  ;;  %v5786_v42 = vld [vmem:[%s7757_s1 + $0xf88] ss:$16 sps:$4 sm:$0xff]  }
 0x1d4   :  { %4188 = vmatpush1.bf16.msra.mxu1 %v5651_v51  ;;  %4148 = vmatprep.subr.bf16.mxu0 %v5656_v36  ;;  %v5726_v36 = vld [vmem:[%s7757_s1 + $0xec8] ss:$16 sps:$4 sm:$0xff]  }
 0x1d5   :  { %4189 = vmatprep.subr.bf16.mxu1 %v5659_v11  ;;  %v5729_v11 = vld [vmem:[%s7757_s1 + $0x10c8] ss:$16 sps:$4 sm:$0xff]  }
 0x1d7   :  { %4149 = vmatpush1.bf16.msra.mxu0 %v5654_v12 }
 0x1d8   :  { %4190 = vmatpush1.bf16.msra.mxu1 %v5657_v13  ;;  %4150 = vmatprep.subr.bf16.mxu0 %v5662_v14 }
 0x1d9   :  { %4191 = vmatprep.subr.bf16.mxu1 %v5665_v15 }
 0x1db   :  { %4151 = vmatpush1.bf16.msra.mxu0 %v5660_v18  ;;  %v5732_v18 = vld [vmem:[%s7757_s1 + $0xea8] ss:$16 sps:$4 sm:$0xff]  }
 0x1dc   :  { %4192 = vmatpush1.bf16.msra.mxu1 %v5663_v19  ;;  %4152 = vmatprep.subr.bf16.mxu0 %v5668_v21  ;;  %v5735_v21 = vld [vmem:[%s7757_s1 + $0x10a8] ss:$16 sps:$4 sm:$0xff]  }
 0x1dd   :  { %4193 = vmatprep.subr.bf16.mxu1 %v5671_v26 }
 0x1df   :  { %4153 = vmatpush1.bf16.msra.mxu0 %v5666_v27 }
 0x1e0   :  { %4194 = vmatpush1.bf16.msra.mxu1 %v5669_v29  ;;  %4154 = vmatprep.subr.bf16.mxu0 %v5674_v30 }
 0x1e1   :  { %4195 = vmatprep.subr.bf16.mxu1 %v5677_v31 }
 0x1e3   :  { %4155 = vmatpush2.bf16.msra.mxu0 %v5672_v32  ;;  %v5738_v32 = vld [vmem:[%s7757_s1 + $0xe88] ss:$16 sps:$4 sm:$0xff]  }
 0x1e4   :  { %4196 = vmatpush2.bf16.msra.mxu1 %v5675_v47  ;;  %4156 = vmatprep.subr.bf16.mxu0 %v5680_v7  ;;  %v5741_v47 = vld [vmem:[%s7757_s1 + $0x1088] ss:$16 sps:$4 sm:$0xff]   ;;  %v5746_v7 = vld [vmem:[%s7757_s1 + $0xe6c] ss:$16 sps:$4 sm:$0xff]  }
 0x1e5   :  { %4197 = vmatprep.subr.bf16.mxu1 %v5683_v16  ;;  %v5749_v16 = vld [vmem:[%s7757_s1 + $0x106c] ss:$16 sps:$4 sm:$0xff]  }
 0x1e7   :  { %4157 = vmatpush2.bf16.msra.mxu0 %v5678_v33  ;;  %v5744_v33 = vld [vmem:[%s7757_s1 + $0xe68] ss:$16 sps:$4 sm:$0xff]  }
 0x1e8   :  { %4198 = vmatpush2.bf16.msra.mxu1 %v5681_v34  ;;  %4158 = vmatprep.subr.bf16.mxu0 %v5686_v41  ;;  %v5747_v34 = vld [vmem:[%s7757_s1 + $0x1068] ss:$16 sps:$4 sm:$0xff]   ;;  %v5752_v41 = vld [vmem:[%s7757_s1 + $0xe4c] ss:$16 sps:$4 sm:$0xff]  }
 0x1e9   :  { %4199 = vmatprep.subr.bf16.mxu1 %v5689_v23  ;;  %v5755_v23 = vld [vmem:[%s7757_s1 + $0x104c] ss:$16 sps:$4 sm:$0xff]  }
 0x1eb   :  { %4159 = vmatpush2.bf16.msra.mxu0 %v5684_v44  ;;  %v5750_v44 = vld [vmem:[%s7757_s1 + $0xe48] ss:$16 sps:$4 sm:$0xff]  }
 0x1ec   :  { %4200 = vmatpush2.bf16.msra.mxu1 %v5687_v45  ;;  %4160 = vmatprep.subr.bf16.mxu0 %v5692_v5  ;;  %v5753_v45 = vld [vmem:[%s7757_s1 + $0x1048] ss:$16 sps:$4 sm:$0xff]   ;;  %v5758_v5 = vld [vmem:[%s7757_s1 + $0xe2c] ss:$16 sps:$4 sm:$0xff]  }
 0x1ed   :  { %4201 = vmatprep.subr.bf16.mxu1 %v5695_v37  ;;  %v5761_v37 = vld [vmem:[%s7757_s1 + $0x102c] ss:$16 sps:$4 sm:$0xff]  }
 0x1ef   :  { %4161 = vmatpush2.bf16.msra.mxu0 %v5690_v24  ;;  %v5756_v24 = vld [vmem:[%s7757_s1 + $0xe28] ss:$16 sps:$4 sm:$0xff]  }
 0x1f0   :  { %4202 = vmatpush2.bf16.msra.mxu1 %v5693_v46  ;;  %4162 = vmatprep.subr.bf16.mxu0 %v5698_v48  ;;  %v5759_v46 = vld [vmem:[%s7757_s1 + $0x1028] ss:$16 sps:$4 sm:$0xff]   ;;  %v5764_v48 = vld [vmem:[%s7757_s1 + $0xe0c] ss:$16 sps:$4 sm:$0xff]  }
 0x1f1   :  { %4203 = vmatprep.subr.bf16.mxu1 %v5701_v49  ;;  %v5767_v49 = vld [vmem:[%s7757_s1 + $0x100c] ss:$16 sps:$4 sm:$0xff]  }
 0x1f3   :  { %4163 = vmatpush2.bf16.msra.mxu0 %v5696_v50  ;;  %v5762_v50 = vld [vmem:[%s7757_s1 + $0xe08] ss:$16 sps:$4 sm:$0xff]  }
 0x1f4   :  { %4204 = vmatpush2.bf16.msra.mxu1 %v5699_v54  ;;  %4164 = vmatprep.subr.bf16.mxu0 %v5704_v55  ;;  %v5765_v54 = vld [vmem:[%s7757_s1 + $0x1008] ss:$16 sps:$4 sm:$0xff]   ;;  %v5770_v55 = vld [vmem:[%s7757_s1 + $0xfec] ss:$16 sps:$4 sm:$0xff]  }
 0x1f5   :  { %4205 = vmatprep.subr.bf16.mxu1 %v5707_v56  ;;  %v5773_v56 = vld [vmem:[%s7757_s1 + $0x11ec] ss:$16 sps:$4 sm:$0xff]  }
 0x1f7   :  { %4165 = vmatpush2.bf16.msra.mxu0 %v5702_v1  ;;  %v5768_v1 = vld [vmem:[%s7757_s1 + $0xfe8] ss:$16 sps:$4 sm:$0xff]  }
 0x1f8   :  { %4206 = vmatpush2.bf16.msra.mxu1 %v5705_v57  ;;  %4166 = vmatprep.subr.bf16.mxu0 %v5710_v58  ;;  %v5771_v57 = vld [vmem:[%s7757_s1 + $0x11e8] ss:$16 sps:$4 sm:$0xff]   ;;  %v5776_v58 = vld [vmem:[%s7757_s1 + $0xfcc] ss:$16 sps:$4 sm:$0xff]  }
 0x1f9   :  { %4207 = vmatprep.subr.bf16.mxu1 %v5713_v17  ;;  %v5779_v17 = vld [vmem:[%s7757_s1 + $0x11cc] ss:$16 sps:$4 sm:$0xff]  }
 0x1fb   :  { %4167 = vmatpush2.bf16.msra.mxu0 %v5708_v38  ;;  %v5774_v38 = vld [vmem:[%s7757_s1 + $0xfc8] ss:$16 sps:$4 sm:$0xff]  }
 0x1fc   :  { %4208 = vmatpush2.bf16.msra.mxu1 %v5711_v61  ;;  %4168 = vmatprep.subr.bf16.mxu0 %v5716_v62  ;;  %v5777_v61 = vld [vmem:[%s7757_s1 + $0x11c8] ss:$16 sps:$4 sm:$0xff]   ;;  %v5782_v62 = vld [vmem:[%s7757_s1 + $0xfac] ss:$16 sps:$4 sm:$0xff]  }
 0x1fd   :  { %4209 = vmatprep.subr.bf16.mxu1 %v5719_v2  ;;  %v5785_v2 = vld [vmem:[%s7757_s1 + $0x11ac] ss:$16 sps:$4 sm:$0xff]  }
 0x1ff   :  { %4169 = vmatpush2.bf16.msra.mxu0 %v5714_v6  ;;  %v5780_v6 = vld [vmem:[%s7757_s1 + $0xfa8] ss:$16 sps:$4 sm:$0xff]  }
 0x200   :  { %4210 = vmatpush2.bf16.msra.mxu1 %v5717_v20  ;;  %4220 = vmatprep.subr.bf16.mxu0 %v5722_v35  ;;  %v5783_v20 = vld [vmem:[%s7757_s1 + $0x11a8] ss:$16 sps:$4 sm:$0xff]   ;;  %v5788_v35 = vld [vmem:[%s7757_s1 + $0xf8c] ss:$16 sps:$4 sm:$0xff]  }
 0x201   :  { %4261 = vmatprep.subr.bf16.mxu1 %v5725_v25  ;;  %v5791_v25 = vld [vmem:[%s7757_s1 + $0x118c] ss:$16 sps:$4 sm:$0xff]  }
 0x202   :  { %v3926_v59 = vpop.f32.mrf.mxu0  ;;  %4171 = vmatmul.mubr.bf16.vlgmr.msra.gmra.mxu0 %v6501_v39  ;;  %v5734_v39 = vld [vmem:[%s7757_s1 + $0xeac] ss:$16 sps:$4 sm:$0xff]  }
 0x203   :  { %v7558_v28 = vpop.f32.mrf.mxu1  ;;  %4212 = vmatmul.mubr.bf16.vlgmr.msra.gmra.mxu1 %v6718_v63  ;;  %v3927_v51 = vadd.f32 %v3926_v59, %v7372_v3  ;;  %4221 = vmatpush1.bf16.msra.mxu0 %v5720_v40  ;;  %v5737_v63 = vld [vmem:[%s7757_s1 + $0x10ac] ss:$16 sps:$4 sm:$0xff]   ;;  %v5789_v40 = vld [vmem:[%s7757_s1 + $0x1188] ss:$16 sps:$4 sm:$0xff]  }
 0x204   :  { %4262 = vmatpush1.bf16.msra.mxu1 %v5723_v4  ;;  %v3928_v12 = vpop.f32.mrf.mxu0  ;;  %4222 = vmatprep.subr.bf16.mxu0 %v5728_v9  ;;  %v5794_v4 = vld [vmem:[%s7757_s1 + $0xf6c] ss:$16 sps:$4 sm:$0xff]   ;;  %v5795_v59 = vld [vmem:[%s7757_s1 + $0x1168] ss:$16 sps:$4 sm:$0xff]  }
 0x205   :  { %v7570_v13 = vpop.f32.mrf.mxu1  ;;  %4263 = vmatprep.subr.bf16.mxu1 %v5731_v22  ;;  %v4306_v60 = vmul.f32 0.01, %v3927_v51  ;;  %v3929_v3 = vadd.f32 %v3928_v12, %v3888_v10  ;;  %4252 = vmatprep.mubr.bf16.mxu0 %v6523_v43  ;;  %vm4302_vm0 = vcmp.gt.f32.partialorder %v3927_v51, 0.0  ;;  %v5740_v43 = vld [vmem:[%s7757_s1 + $0xe8c] ss:$16 sps:$4 sm:$0xff]  }
 0x206   :  { %4293 = vmatprep.mubr.bf16.mxu1 %v6743_v8  ;;  %v3930_v14 = vpop.f32.mrf.mxu0  ;;  %v5743_v8 = vld [vmem:[%s7757_s1 + $0x108c] ss:$16 sps:$4 sm:$0xff]   ;;  %v5792_v22 = vld [vmem:[%s7757_s1 + $0xf68] ss:$16 sps:$4 sm:$0xff]  }
 0x207   :  { %v3971_v15 = vpop.f32.mrf.mxu1  ;;  %vm4303_vm1 = vcmp.gt.f32.partialorder %v3929_v3, 0.0  ;;  %v4307_v19 = vmul.f32 0.01, %v3929_v3  ;;  %4223 = vmatpush1.bf16.msra.mxu0 %v5726_v36  ;;  %v4310_v29 = vsel %vm4302_vm0, %v3927_v51, %v4306_v60  ;;  %v5797_v9 = vld [vmem:[%s7757_s1 + $0x116c] ss:$16 sps:$4 sm:$0xff]  }
 0x208   :  { %4264 = vmatpush1.bf16.msra.mxu1 %v5729_v11  ;;  %v3931_v26 = vpop.f32.mrf.mxu0  ;;  %4224 = vmatprep.subr.bf16.mxu0 %v5734_v39  ;;  %v5800_v10 = vld [vmem:[%s7757_s1 + $0xf4c] ss:$16 sps:$4 sm:$0xff]   ;;  %v5798_v36 = vld [vmem:[%s7757_s1 + $0xf48] ss:$16 sps:$4 sm:$0xff]   ;;  %v611_v15 = vsub.s32 2, %v6691_v53 }
 0x209   :  { %v3972_v27 = vpop.f32.mrf.mxu1  ;;  %4265 = vmatprep.subr.bf16.mxu1 %v5737_v63  ;;  %v4311_v30 = vsel %vm4303_vm1, %v3929_v3, %v4307_v19  ;;  %v5803_v51 = vld [vmem:[%s7757_s1 + $0x114c] ss:$16 sps:$4 sm:$0xff]   ;;  %v5801_v11 = vld [vmem:[%s7757_s1 + $0x1148] ss:$16 sps:$4 sm:$0xff]   ;;  %v5816_v26 = vld [vmem:[%s7759_s2] sm:$0xf] }
 0x20a   :  { %v4932_v31 = vpack.c.bf16 %v4311_v30, %v4310_v29  ;;  %v5806_v12 = vld [vmem:[%s7757_s1 + $0xf2c] ss:$16 sps:$4 sm:$0xff]   ;;  %v5804_v63 = vld [vmem:[%s7757_s1 + $0xf28] ss:$16 sps:$4 sm:$0xff]   ;;  %v612_v27 = vrot.slane %v5816_v26, %v611_v15 }
 0x20b   :  { %4225 = vmatpush1.bf16.msra.mxu0 %v5732_v18  ;;  %v5809_v39 = vld [vmem:[%s7757_s1 + $0x112c] ss:$16 sps:$4 sm:$0xff]   ;;  %v5807_v60 = vld [vmem:[%s7757_s1 + $0x1128] ss:$16 sps:$4 sm:$0xff]   ;;  %v615_v18 = vsub.s32 3, %v6691_v53 }
 0x20c   :  { %4266 = vmatpush1.bf16.msra.mxu1 %v5735_v21  ;;  %4330 = vst [vmem:[%s7760_s3] sm:$0xff] %v4932_v31  ;;  %4226 = vmatprep.subr.bf16.mxu0 %v5740_v43  ;;  %v5812_v3 = vld [vmem:[%s7757_s1 + $0xf0c] ss:$16 sps:$4 sm:$0xff]   ;;  %v5810_v19 = vld [vmem:[%s7757_s1 + $0xf08] ss:$16 sps:$4 sm:$0xff]   ;;  %v3968_v53 = vadd.f32 %v7558_v28, %v612_v27 }
 0x20d   :  { %4267 = vmatprep.subr.bf16.mxu1 %v5743_v8  ;;  %v5815_v14 = vld [vmem:[%s7757_s1 + $0x110c] ss:$16 sps:$4 sm:$0xff]   ;;  %v5813_v21 = vld [vmem:[%s7757_s1 + $0x1108] ss:$16 sps:$4 sm:$0xff]   ;;  %v616_v43 = vrot.slane %v5816_v26, %v615_v18 }
 0x20f   :  { %4227 = vmatpush1.bf16.msra.mxu0 %v5738_v32  ;;  %v3970_v30 = vadd.f32 %v7570_v13, %v616_v43 }
 0x210   :  { %4268 = vmatpush1.bf16.msra.mxu1 %v5741_v47  ;;  %4228 = vmatprep.subr.bf16.mxu0 %v5746_v7 }
 0x211   :  { %4269 = vmatprep.subr.bf16.mxu1 %v5749_v16 }
 0x213   :  { %4229 = vmatpush1.bf16.msra.mxu0 %v5744_v33 }
 0x214   :  { %4270 = vmatpush1.bf16.msra.mxu1 %v5747_v34  ;;  %4230 = vmatprep.subr.bf16.mxu0 %v5752_v41 }
 0x215   :  { %4271 = vmatprep.subr.bf16.mxu1 %v5755_v23 }
 0x217   :  { %4231 = vmatpush1.bf16.msra.mxu0 %v5750_v44 }
 0x218   :  { %4272 = vmatpush1.bf16.msra.mxu1 %v5753_v45  ;;  %4232 = vmatprep.subr.bf16.mxu0 %v5758_v5 }
 0x219   :  { %4273 = vmatprep.subr.bf16.mxu1 %v5761_v37 }
 0x21b   :  { %4233 = vmatpush1.bf16.msra.mxu0 %v5756_v24 }
 0x21c   :  { %4274 = vmatpush1.bf16.msra.mxu1 %v5759_v46  ;;  %4234 = vmatprep.subr.bf16.mxu0 %v5764_v48 }
 0x21d   :  { %4275 = vmatprep.subr.bf16.mxu1 %v5767_v49 }
 0x21f   :  { %4235 = vmatpush1.bf16.msra.mxu0 %v5762_v50 }
 0x220   :  { %4276 = vmatpush1.bf16.msra.mxu1 %v5765_v54  ;;  %4236 = vmatprep.subr.bf16.mxu0 %v5770_v55 }
 0x221   :  { %4277 = vmatprep.subr.bf16.mxu1 %v5773_v56 }
 0x223   :  { %4237 = vmatpush2.bf16.msra.mxu0 %v5768_v1 }
 0x224   :  { %4278 = vmatpush2.bf16.msra.mxu1 %v5771_v57  ;;  %4238 = vmatprep.subr.bf16.mxu0 %v5776_v58 }
 0x225   :  { %4279 = vmatprep.subr.bf16.mxu1 %v5779_v17 }
 0x227   :  { %4239 = vmatpush2.bf16.msra.mxu0 %v5774_v38 }
 0x228   :  { %4280 = vmatpush2.bf16.msra.mxu1 %v5777_v61  ;;  %4240 = vmatprep.subr.bf16.mxu0 %v5782_v62 }
 0x229   :  { %4281 = vmatprep.subr.bf16.mxu1 %v5785_v2 }
 0x22b   :  { %4241 = vmatpush2.bf16.msra.mxu0 %v5780_v6 }
 0x22c   :  { %4282 = vmatpush2.bf16.msra.mxu1 %v5783_v20  ;;  %4242 = vmatprep.subr.bf16.mxu0 %v5788_v35 }
 0x22d   :  { %4283 = vmatprep.subr.bf16.mxu1 %v5791_v25 }
 0x22f   :  { %4243 = vmatpush2.bf16.msra.mxu0 %v5786_v42 }
 0x230   :  { %4284 = vmatpush2.bf16.msra.mxu1 %v5789_v40  ;;  %4244 = vmatprep.subr.bf16.mxu0 %v5794_v4 }
 0x231   :  { %4285 = vmatprep.subr.bf16.mxu1 %v5797_v9 }
 0x233   :  { %4245 = vmatpush2.bf16.msra.mxu0 %v5792_v22 }
 0x234   :  { %4286 = vmatpush2.bf16.msra.mxu1 %v5795_v59  ;;  %4246 = vmatprep.subr.bf16.mxu0 %v5800_v10 }
 0x235   :  { %4287 = vmatprep.subr.bf16.mxu1 %v5803_v51 }
 0x237   :  { %4247 = vmatpush2.bf16.msra.mxu0 %v5798_v36 }
 0x238   :  { %4288 = vmatpush2.bf16.msra.mxu1 %v5801_v11  ;;  %4248 = vmatprep.subr.bf16.mxu0 %v5806_v12 }
 0x239   :  { %4289 = vmatprep.subr.bf16.mxu1 %v5809_v39 }
 0x23b   :  { %4249 = vmatpush2.bf16.msra.mxu0 %v5804_v63 }
 0x23c   :  { %4290 = vmatpush2.bf16.msra.mxu1 %v5807_v60  ;;  %4250 = vmatprep.subr.bf16.mxu0 %v5812_v3 }
 0x23d   :  { %4291 = vmatprep.subr.bf16.mxu1 %v5815_v14 }
 0x23f   :  { %4251 = vmatpush2.bf16.msra.mxu0 %v5810_v19 }
 0x240   :  { %4292 = vmatpush2.bf16.msra.mxu1 %v5813_v21 }
 0x242   :  { %v4008_v8 = vpop.f32.mrf.mxu0  ;;  %4253 = vmatmul.mubr.bf16.vlgmr.msra.gmra.mxu0 %v6722_v0 }
 0x243   :  { %v4049_v29 = vpop.f32.mrf.mxu1  ;;  %4294 = vmatmul.mubr.bf16.vlgmr.msra.gmra.mxu1 %v6941_v52  ;;  %v4009_v31 = vadd.f32 %v4008_v8, %v3968_v53 }
 0x244   :  { %v4010_v32 = vpop.f32.mrf.mxu0 }
 0x245   :  { %v4051_v47 = vpop.f32.mrf.mxu1  ;;  %v4050_v7 = vadd.f32 %v4049_v29, %v4009_v31  ;;  %v4011_v16 = vadd.f32 %v4010_v32, %v3970_v30 }
 0x246   :  { %v4012_v33 = vpop.f32.mrf.mxu0 }
 0x247   :  { %v4053_v34 = vpop.f32.mrf.mxu1  ;;  %v4052_v41 = vadd.f32 %v4051_v47, %v4011_v16 }
 0x248   :  { %v4013_v23 = vpop.f32.mrf.mxu0 }
 0x249   :  { %v4054_v44 = vpop.f32.mrf.mxu1 }
 0x282   :  { %v4090_v45 = vpop.f32.mrf.mxu0 }
 0x283   :  { %v4131_v28 = vpop.f32.mrf.mxu1  ;;  %v4091_v5 = vadd.f32 %v4090_v45, %v4050_v7 }
 0x284   :  { %v4092_v37 = vpop.f32.mrf.mxu0 }
 0x285   :  { %v4133_v24 = vpop.f32.mrf.mxu1  ;;  %v4132_v0 = vadd.f32 %v4131_v28, %v4091_v5  ;;  %v4093_v46 = vadd.f32 %v4092_v37, %v4052_v41 }
 0x286   :  { %v4094_v52 = vpop.f32.mrf.mxu0 }
 0x287   :  { %v4135_v48 = vpop.f32.mrf.mxu1  ;;  %v4134_v13 = vadd.f32 %v4133_v24, %v4093_v46 }
 0x288   :  { %v4095_v49 = vpop.f32.mrf.mxu0 }
 0x289   :  { %v4136_v50 = vpop.f32.mrf.mxu1 }
 0x2c2   :  { %v4172_v54 = vpop.f32.mrf.mxu0 }
 0x2c3   :  { %v4213_v55 = vpop.f32.mrf.mxu1  ;;  %v4173_v56 = vadd.f32 %v4172_v54, %v4132_v0 }
 0x2c4   :  { %v4174_v1 = vpop.f32.mrf.mxu0 }
 0x2c5   :  { %v4215_v57 = vpop.f32.mrf.mxu1  ;;  %v4214_v58 = vadd.f32 %v4213_v55, %v4173_v56  ;;  %v4175_v2 = vadd.f32 %v4174_v1, %v4134_v13 }
 0x2c6   :  { %v4176_v17 = vpop.f32.mrf.mxu0 }
 0x2c7   :  { %v4217_v38 = vpop.f32.mrf.mxu1  ;;  %v4216_v35 = vadd.f32 %v4215_v57, %v4175_v2 }
 0x2c8   :  { %v4177_v61 = vpop.f32.mrf.mxu0 }
 0x2c9   :  { %v4218_v62 = vpop.f32.mrf.mxu1 }
 0x302   :  { %v4254_v6 = vpop.f32.mrf.mxu0 }
 0x303   :  { %v4295_v20 = vpop.f32.mrf.mxu1  ;;  %v4255_v25 = vadd.f32 %v4254_v6, %v4214_v58 }
 0x304   :  { %v4256_v42 = vpop.f32.mrf.mxu0 }
 0x305   :  { %v4297_v40 = vpop.f32.mrf.mxu1  ;;  %v4296_v4 = vadd.f32 %v4295_v20, %v4255_v25  ;;  %v4257_v9 = vadd.f32 %v4256_v42, %v4216_v35 }
 0x306   :  { %v4258_v22 = vpop.f32.mrf.mxu0 }
 0x307   :  { %v4299_v59 = vpop.f32.mrf.mxu1  ;;  %v4308_v10 = vmul.f32 0.01, %v4296_v4  ;;  %v4298_v51 = vadd.f32 %v4297_v40, %v4257_v9  ;;  %vm4304_vm2 = vcmp.gt.f32.partialorder %v4296_v4, 0.0 }
 0x308   :  { %v4259_v36 = vpop.f32.mrf.mxu0 }
 0x309   :  { %v4300_v11 = vpop.f32.mrf.mxu1  ;;  %vm4305_vm3 = vcmp.gt.f32.partialorder %v4298_v51, 0.0  ;;  %v4309_v12 = vmul.f32 0.01, %v4298_v51  ;;  %v4312_v39 = vsel %vm4304_vm2, %v4296_v4, %v4308_v10 }
 0x30b   :  { %v4313_v63 = vsel %vm4305_vm3, %v4298_v51, %v4309_v12 }
 0x30c   :  { %v4933_v60 = vpack.c.bf16 %v4313_v63, %v4312_v39 }
 0x30e   :  { %4331 = vst [vmem:[%s7760_s3 + $0x8] sm:$0xff] %v4933_v60 }

</bundles_post_ra>
